<compile_context>
chip_gen: v7x
topology: tpu7x:2x2x1
jax: 0.10.0
libtpu: 0.0.40
codegen_flags: <defaults>
</compile_context>

<pallas_src>
import functools

import jax
import jax.numpy as jnp
from jax.experimental import pallas as pl
from jax.experimental.pallas import tpu as pltpu

NEG_SLOPE = 0.2


def _lrelu(x):
    return jnp.where(x > 0, x, NEG_SLOPE * x)


# ----------------------------------------------------------------------------
# Conv2d kernel: one batch element per grid step.
#   stride 1: x_ref block = (1, Hp, Wp, Cin)            (input already padded)
#   stride 2: x_ref block = (1, Hp/2, 2, Wp/2, 2, Cin)  (parity decomposition)
# The conv is a single deep-K matmul: (OH*OW, KH*KW*Cin) @ (KH*KW*Cin, Cout),
# with the im2col patch matrix built in VMEM from contiguous tap windows.
# The fused pre-LeakyReLU is exact on zero padding (lrelu(0) == 0).
# ----------------------------------------------------------------------------
def _conv_kernel(x_ref, w_ref, b_ref, o_ref, *, KH, KW, stride, OH, OW,
                 out_pad, pre_lrelu):
    Cin = x_ref.shape[-1]
    Cout = o_ref.shape[-1]

    x = x_ref[0]
    if pre_lrelu:
        x = _lrelu(x)                      # hoisted: once per tile, not per tap
    xb = x.astype(jnp.bfloat16)            # bf16 MXU operands, f32 accumulation

    # Build im2col patches: concat taps along channels, then one reshape.
    taps = []
    for kh in range(KH):
        for kw in range(KW):
            if stride == 1:
                win = xb[kh:kh + OH, kw:kw + OW, :]
            else:  # stride 2: contiguous slice of the (p, q) parity plane
                win = xb[kh // 2:kh // 2 + OH, kh % 2,
                         kw // 2:kw // 2 + OW, kw % 2, :]
            taps.append(win)                               # (OH, OW, Cin)
    patches = jnp.concatenate(taps, axis=-1)               # (OH, OW, KH*KW*Cin)
    patches = patches.reshape(OH * OW, KH * KW * Cin)

    acc = jnp.dot(patches, w_ref[...],                     # single deep-K matmul
                  preferred_element_type=jnp.float32)
    y = (acc + b_ref[...]).reshape(OH, OW, Cout)

    if out_pad:
        # Fused halo: emit the zero border the NEXT conv needs, so no jnp.pad
        # (extra HBM read+write of the activation) is required between layers.
        o_ref[0] = jnp.zeros(o_ref.shape[1:], o_ref.dtype)
        o_ref[0, pl.ds(out_pad, OH), pl.ds(out_pad, OW), :] = y
    else:
        o_ref[0] = y


def conv2d(x_nhwc, w2d_bf16, b, *, KH, KW, stride, out_pad, pre_lrelu):
    """x_nhwc: (N, Hp, Wp, Cin), ALREADY zero-padded for this conv.
    w2d_bf16: (KH*KW*Cin, Cout) bf16.  b: (Cout,) f32.
    Returns (N, OH + 2*out_pad, OW + 2*out_pad, Cout) f32 with a zero halo."""
    N, Hp, Wp, Cin = x_nhwc.shape
    Cout = b.shape[0]
    OH = (Hp - KH) // stride + 1
    OW = (Wp - KW) // stride + 1
    OHp, OWp = OH + 2 * out_pad, OW + 2 * out_pad

    if stride == 1:
        x_in = x_nhwc
        in_spec = pl.BlockSpec((1, Hp, Wp, Cin), lambda n: (n, 0, 0, 0))
    else:
        assert stride == 2 and Hp % 2 == 0 and Wp % 2 == 0
        # Free (row-major) reshape -> parity decomposition; no data movement.
        x_in = x_nhwc.reshape(N, Hp // 2, 2, Wp // 2, 2, Cin)
        in_spec = pl.BlockSpec((1, Hp // 2, 2, Wp // 2, 2, Cin),
                               lambda n: (n, 0, 0, 0, 0, 0))

    kern = functools.partial(_conv_kernel, KH=KH, KW=KW, stride=stride,
                             OH=OH, OW=OW, out_pad=out_pad,
                             pre_lrelu=pre_lrelu)
    return pl.pallas_call(
        kern,
        out_shape=jax.ShapeDtypeStruct((N, OHp, OWp, Cout), jnp.float32),
        grid=(N,),
        in_specs=[
            in_spec,
            # constant index maps -> weights/bias stay resident across batch
            pl.BlockSpec((KH * KW * Cin, Cout), lambda n: (0, 0)),
            pl.BlockSpec((1, Cout), lambda n: (0, 0)),
        ],
        out_specs=pl.BlockSpec((1, OHp, OWp, Cout), lambda n: (n, 0, 0, 0)),
        compiler_params=pltpu.CompilerParams(
            dimension_semantics=("parallel",)),
    )(x_in, w2d_bf16, b.reshape(1, Cout))


# ----------------------------------------------------------------------------
# Fused classifier head: LReLU (tail of last_conv) -> Linear -> LReLU -> Linear
# ----------------------------------------------------------------------------
def _head_kernel(x_ref, w1_ref, b1_ref, w2_ref, b2_ref, o_ref):
    x = _lrelu(x_ref[...])
    h = jnp.dot(x.astype(jnp.bfloat16), w1_ref[...],
                preferred_element_type=jnp.float32) + b1_ref[...]
    h = _lrelu(h)
    y = jnp.dot(h.astype(jnp.bfloat16), w2_ref[...],
                preferred_element_type=jnp.float32) + b2_ref[...]
    o_ref[...] = y


def classifier_head(x_flat, w1_bf16, b1, w2_bf16, b2):
    N, _ = x_flat.shape
    D1 = w1_bf16.shape[1]
    return pl.pallas_call(
        _head_kernel,
        out_shape=jax.ShapeDtypeStruct((N, 1), jnp.float32),
    )(x_flat, w1_bf16, b1.reshape(1, D1), w2_bf16, b2.reshape(1, 1))


# ----------------------------------------------------------------------------
# Parameter construction (init_type='normal' ~ N(0, 0.02)).
# Conv weights stored as (KH, KW, Cin, Cout); linear weights as (in, out) with
# the 'in' axis in PyTorch Flatten (C, H, W) order for cls1.
# ----------------------------------------------------------------------------
def init_discriminator_params(key, in_dim=3, dim=16, dim_mults=(2, 4)):
    def conv_param(k, kh, kw, cin, cout):
        w = jax.random.normal(k, (kh, kw, cin, cout), jnp.float32) * 0.02
        return w, jnp.zeros((cout,), jnp.float32)

    def linear_param(k, fin, fout):
        w = jax.random.normal(k, (fin, fout), jnp.float32) * 0.02
        return w, jnp.zeros((fout,), jnp.float32)

    keys = iter(jax.random.split(key, 1 + 2 * len(dim_mults) + 1 + 2))

    params = {"first_conv": conv_param(next(keys), 7, 7, in_dim, dim)}
    cur_dim = dim
    layers = []
    for m in dim_mults:
        c1 = conv_param(next(keys), 3, 3, cur_dim, cur_dim)       # stride 1
        c2 = conv_param(next(keys), 3, 3, cur_dim, dim * m)       # stride 2
        layers.append((c1, c2))
        cur_dim = dim * m
    params["layers"] = layers
    params["last_conv"] = conv_param(next(keys), 3, 3, cur_dim, cur_dim)
    params["cls1"] = linear_param(next(keys), cur_dim * 4 * 4, cur_dim)
    params["cls2"] = linear_param(next(keys), cur_dim, 1)
    return params


# ----------------------------------------------------------------------------
# Forward pass (mirrors Discriminator.forward; with_bn=False => Identity).
# ----------------------------------------------------------------------------
def _prep_conv_w(w):
    KH, KW, Cin, Cout = w.shape
    return w.reshape(KH * KW * Cin, Cout).astype(jnp.bfloat16)


def discriminator_forward(params, x_nchw):
    x = jnp.transpose(x_nchw, (0, 2, 3, 1))                # NCHW -> NHWC
    N = x.shape[0]

    # first_conv: Conv2d(in_dim, dim, 7, stride=1, padding=3)
    w, b = params["first_conv"]
    x = jnp.pad(x, ((0, 0), (3, 3), (3, 3), (0, 0)))       # only explicit pad
    x = conv2d(x, _prep_conv_w(w), b, KH=7, KW=7, stride=1, out_pad=1,
               pre_lrelu=False)

    # each layer: Identity -> LReLU -> Conv(s1,p1) -> Identity -> LReLU -> Conv(s2,p1)
    for (w1, b1), (w2, b2) in params["layers"]:
        x = conv2d(x, _prep_conv_w(w1), b1, KH=3, KW=3, stride=1, out_pad=1,
                   pre_lrelu=True)
        x = conv2d(x, _prep_conv_w(w2), b2, KH=3, KW=3, stride=2, out_pad=1,
                   pre_lrelu=True)

    # last_conv: Identity -> LReLU -> Conv(s1,p1) -> [LReLU -> Flatten fused below]
    w, b = params["last_conv"]
    x = conv2d(x, _prep_conv_w(w), b, KH=3, KW=3, stride=1, out_pad=0,
               pre_lrelu=True)

    # Flatten: torch flattens in (C, H, W) order.  Fold that permutation into
    # w1's rows so the NHWC activation flattens for free (no transpose pass).
    _, Hf, Wf, C = x.shape
    x_flat = x.reshape(N, Hf * Wf * C)

    (w1, b1), (w2, b2) = params["cls1"], params["cls2"]
    w1_nhwc = (w1.reshape(C, Hf, Wf, -1).transpose(1, 2, 0, 3)
                 .reshape(Hf * Wf * C, -1).astype(jnp.bfloat16))
    return classifier_head(x_flat, w1_nhwc, b1, w2.astype(jnp.bfloat16), b2)


if __name__ == "__main__":
    key = jax.random.PRNGKey(0)
    k_param, k_x = jax.random.split(key)

    # Small config consistent with the module structure: two stride-2 stages
    # take 16x16 -> 4x4 so Flatten produces cur_dim*4*4 features.
    in_dim, dim, dim_mults = 3, 8, (2, 4)
    N, H, W = 2, 16, 16

    params = init_discriminator_params(k_param, in_dim=in_dim, dim=dim,
                                       dim_mults=dim_mults)
    x = jax.random.normal(k_x, (N, in_dim, H, W), jnp.float32)

    out = discriminator_forward(params, x)
    out = jax.block_until_ready(out)
    assert out.shape == (N, 1), out.shape
    assert out.dtype == jnp.float32
    print("KERNEL_OK")
</pallas_src>

<mosaic_0001>
module attributes {stable_mosaic.version = 11 : i64} {
  func.func @_conv_kernel(%arg0: i32, %arg1: memref<1x22x22x3xf32, #tpu.memory_space<vmem>>, %arg2: memref<147x8xbf16, #tpu.memory_space<vmem>>, %arg3: memref<1x8xf32, #tpu.memory_space<vmem>>, %arg4: memref<1x18x18x8xf32, #tpu.memory_space<vmem>>) attributes {dimension_semantics = [#tpu.dimension_semantics<parallel>], iteration_bounds = array<i64: 2>, scalar_prefetch = 0 : i64, scratch_operands = 0 : i64, tpu.core_type = #tpu.core_type<tc>, window_params = [{transform_indices = @transform_0, window_bounds = array<i64: 1, 22, 22, 3>}, {pipeline_mode = #tpu.pipeline_mode<synchronous>, transform_indices = @transform_1, window_bounds = array<i64: 147, 8>}, {pipeline_mode = #tpu.pipeline_mode<synchronous>, transform_indices = @transform_2, window_bounds = array<i64: 1, 8>}, {transform_indices = @transform_3, window_bounds = array<i64: 1, 18, 18, 8>}]} {
    %c0 = arith.constant 0 : index
    %c0_0 = arith.constant 0 : index
    %c0_1 = arith.constant 0 : index
    %c0_2 = arith.constant 0 : index
    %0 = vector.load %arg1[%c0, %c0_0, %c0_1, %c0_2] : memref<1x22x22x3xf32, #tpu.memory_space<vmem>>, vector<1x22x22x3xf32>
    %1 = vector.shape_cast %0 : vector<1x22x22x3xf32> to vector<22x22x3xf32>
    %2 = arith.truncf %1 : vector<22x22x3xf32> to vector<22x22x3xbf16>
    %3 = vector.extract_strided_slice %2 {offsets = [0, 0, 0], sizes = [16, 16, 3], strides = [1, 1, 1]} : vector<22x22x3xbf16> to vector<16x16x3xbf16>
    %4 = vector.extract_strided_slice %2 {offsets = [0, 1, 0], sizes = [16, 16, 3], strides = [1, 1, 1]} : vector<22x22x3xbf16> to vector<16x16x3xbf16>
    %5 = vector.extract_strided_slice %2 {offsets = [0, 2, 0], sizes = [16, 16, 3], strides = [1, 1, 1]} : vector<22x22x3xbf16> to vector<16x16x3xbf16>
    %6 = vector.extract_strided_slice %2 {offsets = [0, 3, 0], sizes = [16, 16, 3], strides = [1, 1, 1]} : vector<22x22x3xbf16> to vector<16x16x3xbf16>
    %7 = vector.extract_strided_slice %2 {offsets = [0, 4, 0], sizes = [16, 16, 3], strides = [1, 1, 1]} : vector<22x22x3xbf16> to vector<16x16x3xbf16>
    %8 = vector.extract_strided_slice %2 {offsets = [0, 5, 0], sizes = [16, 16, 3], strides = [1, 1, 1]} : vector<22x22x3xbf16> to vector<16x16x3xbf16>
    %9 = vector.extract_strided_slice %2 {offsets = [0, 6, 0], sizes = [16, 16, 3], strides = [1, 1, 1]} : vector<22x22x3xbf16> to vector<16x16x3xbf16>
    %10 = vector.extract_strided_slice %2 {offsets = [1, 0, 0], sizes = [16, 16, 3], strides = [1, 1, 1]} : vector<22x22x3xbf16> to vector<16x16x3xbf16>
    %11 = vector.extract_strided_slice %2 {offsets = [1, 1, 0], sizes = [16, 16, 3], strides = [1, 1, 1]} : vector<22x22x3xbf16> to vector<16x16x3xbf16>
    %12 = vector.extract_strided_slice %2 {offsets = [1, 2, 0], sizes = [16, 16, 3], strides = [1, 1, 1]} : vector<22x22x3xbf16> to vector<16x16x3xbf16>
    %13 = vector.extract_strided_slice %2 {offsets = [1, 3, 0], sizes = [16, 16, 3], strides = [1, 1, 1]} : vector<22x22x3xbf16> to vector<16x16x3xbf16>
    %14 = vector.extract_strided_slice %2 {offsets = [1, 4, 0], sizes = [16, 16, 3], strides = [1, 1, 1]} : vector<22x22x3xbf16> to vector<16x16x3xbf16>
    %15 = vector.extract_strided_slice %2 {offsets = [1, 5, 0], sizes = [16, 16, 3], strides = [1, 1, 1]} : vector<22x22x3xbf16> to vector<16x16x3xbf16>
    %16 = vector.extract_strided_slice %2 {offsets = [1, 6, 0], sizes = [16, 16, 3], strides = [1, 1, 1]} : vector<22x22x3xbf16> to vector<16x16x3xbf16>
    %17 = vector.extract_strided_slice %2 {offsets = [2, 0, 0], sizes = [16, 16, 3], strides = [1, 1, 1]} : vector<22x22x3xbf16> to vector<16x16x3xbf16>
    %18 = vector.extract_strided_slice %2 {offsets = [2, 1, 0], sizes = [16, 16, 3], strides = [1, 1, 1]} : vector<22x22x3xbf16> to vector<16x16x3xbf16>
    %19 = vector.extract_strided_slice %2 {offsets = [2, 2, 0], sizes = [16, 16, 3], strides = [1, 1, 1]} : vector<22x22x3xbf16> to vector<16x16x3xbf16>
    %20 = vector.extract_strided_slice %2 {offsets = [2, 3, 0], sizes = [16, 16, 3], strides = [1, 1, 1]} : vector<22x22x3xbf16> to vector<16x16x3xbf16>
    %21 = vector.extract_strided_slice %2 {offsets = [2, 4, 0], sizes = [16, 16, 3], strides = [1, 1, 1]} : vector<22x22x3xbf16> to vector<16x16x3xbf16>
    %22 = vector.extract_strided_slice %2 {offsets = [2, 5, 0], sizes = [16, 16, 3], strides = [1, 1, 1]} : vector<22x22x3xbf16> to vector<16x16x3xbf16>
    %23 = vector.extract_strided_slice %2 {offsets = [2, 6, 0], sizes = [16, 16, 3], strides = [1, 1, 1]} : vector<22x22x3xbf16> to vector<16x16x3xbf16>
    %24 = vector.extract_strided_slice %2 {offsets = [3, 0, 0], sizes = [16, 16, 3], strides = [1, 1, 1]} : vector<22x22x3xbf16> to vector<16x16x3xbf16>
    %25 = vector.extract_strided_slice %2 {offsets = [3, 1, 0], sizes = [16, 16, 3], strides = [1, 1, 1]} : vector<22x22x3xbf16> to vector<16x16x3xbf16>
    %26 = vector.extract_strided_slice %2 {offsets = [3, 2, 0], sizes = [16, 16, 3], strides = [1, 1, 1]} : vector<22x22x3xbf16> to vector<16x16x3xbf16>
    %27 = vector.extract_strided_slice %2 {offsets = [3, 3, 0], sizes = [16, 16, 3], strides = [1, 1, 1]} : vector<22x22x3xbf16> to vector<16x16x3xbf16>
    %28 = vector.extract_strided_slice %2 {offsets = [3, 4, 0], sizes = [16, 16, 3], strides = [1, 1, 1]} : vector<22x22x3xbf16> to vector<16x16x3xbf16>
    %29 = vector.extract_strided_slice %2 {offsets = [3, 5, 0], sizes = [16, 16, 3], strides = [1, 1, 1]} : vector<22x22x3xbf16> to vector<16x16x3xbf16>
    %30 = vector.extract_strided_slice %2 {offsets = [3, 6, 0], sizes = [16, 16, 3], strides = [1, 1, 1]} : vector<22x22x3xbf16> to vector<16x16x3xbf16>
    %31 = vector.extract_strided_slice %2 {offsets = [4, 0, 0], sizes = [16, 16, 3], strides = [1, 1, 1]} : vector<22x22x3xbf16> to vector<16x16x3xbf16>
    %32 = vector.extract_strided_slice %2 {offsets = [4, 1, 0], sizes = [16, 16, 3], strides = [1, 1, 1]} : vector<22x22x3xbf16> to vector<16x16x3xbf16>
    %33 = vector.extract_strided_slice %2 {offsets = [4, 2, 0], sizes = [16, 16, 3], strides = [1, 1, 1]} : vector<22x22x3xbf16> to vector<16x16x3xbf16>
    %34 = vector.extract_strided_slice %2 {offsets = [4, 3, 0], sizes = [16, 16, 3], strides = [1, 1, 1]} : vector<22x22x3xbf16> to vector<16x16x3xbf16>
    %35 = vector.extract_strided_slice %2 {offsets = [4, 4, 0], sizes = [16, 16, 3], strides = [1, 1, 1]} : vector<22x22x3xbf16> to vector<16x16x3xbf16>
    %36 = vector.extract_strided_slice %2 {offsets = [4, 5, 0], sizes = [16, 16, 3], strides = [1, 1, 1]} : vector<22x22x3xbf16> to vector<16x16x3xbf16>
    %37 = vector.extract_strided_slice %2 {offsets = [4, 6, 0], sizes = [16, 16, 3], strides = [1, 1, 1]} : vector<22x22x3xbf16> to vector<16x16x3xbf16>
    %38 = vector.extract_strided_slice %2 {offsets = [5, 0, 0], sizes = [16, 16, 3], strides = [1, 1, 1]} : vector<22x22x3xbf16> to vector<16x16x3xbf16>
    %39 = vector.extract_strided_slice %2 {offsets = [5, 1, 0], sizes = [16, 16, 3], strides = [1, 1, 1]} : vector<22x22x3xbf16> to vector<16x16x3xbf16>
    %40 = vector.extract_strided_slice %2 {offsets = [5, 2, 0], sizes = [16, 16, 3], strides = [1, 1, 1]} : vector<22x22x3xbf16> to vector<16x16x3xbf16>
    %41 = vector.extract_strided_slice %2 {offsets = [5, 3, 0], sizes = [16, 16, 3], strides = [1, 1, 1]} : vector<22x22x3xbf16> to vector<16x16x3xbf16>
    %42 = vector.extract_strided_slice %2 {offsets = [5, 4, 0], sizes = [16, 16, 3], strides = [1, 1, 1]} : vector<22x22x3xbf16> to vector<16x16x3xbf16>
    %43 = vector.extract_strided_slice %2 {offsets = [5, 5, 0], sizes = [16, 16, 3], strides = [1, 1, 1]} : vector<22x22x3xbf16> to vector<16x16x3xbf16>
    %44 = vector.extract_strided_slice %2 {offsets = [5, 6, 0], sizes = [16, 16, 3], strides = [1, 1, 1]} : vector<22x22x3xbf16> to vector<16x16x3xbf16>
    %45 = vector.extract_strided_slice %2 {offsets = [6, 0, 0], sizes = [16, 16, 3], strides = [1, 1, 1]} : vector<22x22x3xbf16> to vector<16x16x3xbf16>
    %46 = vector.extract_strided_slice %2 {offsets = [6, 1, 0], sizes = [16, 16, 3], strides = [1, 1, 1]} : vector<22x22x3xbf16> to vector<16x16x3xbf16>
    %47 = vector.extract_strided_slice %2 {offsets = [6, 2, 0], sizes = [16, 16, 3], strides = [1, 1, 1]} : vector<22x22x3xbf16> to vector<16x16x3xbf16>
    %48 = vector.extract_strided_slice %2 {offsets = [6, 3, 0], sizes = [16, 16, 3], strides = [1, 1, 1]} : vector<22x22x3xbf16> to vector<16x16x3xbf16>
    %49 = vector.extract_strided_slice %2 {offsets = [6, 4, 0], sizes = [16, 16, 3], strides = [1, 1, 1]} : vector<22x22x3xbf16> to vector<16x16x3xbf16>
    %50 = vector.extract_strided_slice %2 {offsets = [6, 5, 0], sizes = [16, 16, 3], strides = [1, 1, 1]} : vector<22x22x3xbf16> to vector<16x16x3xbf16>
    %51 = vector.extract_strided_slice %2 {offsets = [6, 6, 0], sizes = [16, 16, 3], strides = [1, 1, 1]} : vector<22x22x3xbf16> to vector<16x16x3xbf16>
    %52 = tpu.concatenate %3, %4, %5, %6, %7, %8, %9, %10, %11, %12, %13, %14, %15, %16, %17, %18 in 2 : vector<16x16x3xbf16>, vector<16x16x3xbf16>, vector<16x16x3xbf16>, vector<16x16x3xbf16>, vector<16x16x3xbf16>, vector<16x16x3xbf16>, vector<16x16x3xbf16>, vector<16x16x3xbf16>, vector<16x16x3xbf16>, vector<16x16x3xbf16>, vector<16x16x3xbf16>, vector<16x16x3xbf16>, vector<16x16x3xbf16>, vector<16x16x3xbf16>, vector<16x16x3xbf16>, vector<16x16x3xbf16> -> vector<16x16x48xbf16>
    %53 = tpu.concatenate %19, %20, %21, %22, %23, %24, %25, %26, %27, %28, %29, %30, %31, %32, %33, %34 in 2 : vector<16x16x3xbf16>, vector<16x16x3xbf16>, vector<16x16x3xbf16>, vector<16x16x3xbf16>, vector<16x16x3xbf16>, vector<16x16x3xbf16>, vector<16x16x3xbf16>, vector<16x16x3xbf16>, vector<16x16x3xbf16>, vector<16x16x3xbf16>, vector<16x16x3xbf16>, vector<16x16x3xbf16>, vector<16x16x3xbf16>, vector<16x16x3xbf16>, vector<16x16x3xbf16>, vector<16x16x3xbf16> -> vector<16x16x48xbf16>
    %54 = tpu.concatenate %35, %36, %37, %38, %39, %40, %41, %42, %43, %44, %45, %46, %47, %48, %49, %50 in 2 : vector<16x16x3xbf16>, vector<16x16x3xbf16>, vector<16x16x3xbf16>, vector<16x16x3xbf16>, vector<16x16x3xbf16>, vector<16x16x3xbf16>, vector<16x16x3xbf16>, vector<16x16x3xbf16>, vector<16x16x3xbf16>, vector<16x16x3xbf16>, vector<16x16x3xbf16>, vector<16x16x3xbf16>, vector<16x16x3xbf16>, vector<16x16x3xbf16>, vector<16x16x3xbf16>, vector<16x16x3xbf16> -> vector<16x16x48xbf16>
    %55 = tpu.concatenate %52, %53, %54, %51 in 2 : vector<16x16x48xbf16>, vector<16x16x48xbf16>, vector<16x16x48xbf16>, vector<16x16x3xbf16> -> vector<16x16x147xbf16>
    %56 = vector.shape_cast %55 : vector<16x16x147xbf16> to vector<256x147xbf16>
    %c0_3 = arith.constant 0 : index
    %c0_4 = arith.constant 0 : index
    %57 = vector.load %arg2[%c0_3, %c0_4] : memref<147x8xbf16, #tpu.memory_space<vmem>>, vector<147x8xbf16>
    %cst = arith.constant dense<0.000000e+00> : vector<256x8xf32>
    %58 = tpu.matmul %56, %57, %cst {dimension_numbers = #tpu.dot_dimension_numbers<[1], [0], [0], [1], [0, 0, 1, 1], [], []>} : vector<256x147xbf16>, vector<147x8xbf16>, vector<256x8xf32> -> vector<256x8xf32>
    %c0_5 = arith.constant 0 : index
    %c0_6 = arith.constant 0 : index
    %59 = vector.load %arg3[%c0_5, %c0_6] : memref<1x8xf32, #tpu.memory_space<vmem>>, vector<1x8xf32>
    %60 = vector.broadcast %59 : vector<1x8xf32> to vector<256x8xf32>
    %61 = arith.addf %58, %60 : vector<256x8xf32>
    %62 = vector.shape_cast %61 : vector<256x8xf32> to vector<16x16x8xf32>
    %cst_7 = arith.constant 0.000000e+00 : f32
    %63 = vector.broadcast %cst_7 : f32 to vector<18x18x8xf32>
    %c0_8 = arith.constant 0 : index
    %c0_9 = arith.constant 0 : index
    %c0_10 = arith.constant 0 : index
    %c0_11 = arith.constant 0 : index
    %64 = vector.load %arg4[%c0_8, %c0_9, %c0_10, %c0_11] : memref<1x18x18x8xf32, #tpu.memory_space<vmem>>, vector<1x18x18x8xf32>
    %65 = vector.shape_cast %64 : vector<1x18x18x8xf32> to vector<18x18x8xf32>
    %66 = vector.shape_cast %63 : vector<18x18x8xf32> to vector<1x18x18x8xf32>
    tpu.vector_store %arg4[%c0_8, %c0_9, %c0_10, %c0_11], %66 {strides = array<i32>} : memref<1x18x18x8xf32, #tpu.memory_space<vmem>>, vector<1x18x18x8xf32>,
    %c0_12 = arith.constant 0 : index
    %c1 = arith.constant 1 : index
    %c1_13 = arith.constant 1 : index
    %c0_14 = arith.constant 0 : index
    %67 = vector.load %arg4[%c0_12, %c1, %c1_13, %c0_14] : memref<1x18x18x8xf32, #tpu.memory_space<vmem>>, vector<1x16x16x8xf32>
    %68 = vector.shape_cast %67 : vector<1x16x16x8xf32> to vector<16x16x8xf32>
    %69 = vector.shape_cast %62 : vector<16x16x8xf32> to vector<1x16x16x8xf32>
    tpu.vector_store %arg4[%c0_12, %c1, %c1_13, %c0_14], %69 {strides = array<i32>} : memref<1x18x18x8xf32, #tpu.memory_space<vmem>>, vector<1x16x16x8xf32>,
    return
  }
  func.func @transform_0(%arg0: i32) -> (i32, i32, i32, i32) {
    %c0_i32 = arith.constant 0 : i32
    %c0_i32_0 = arith.constant 0 : i32
    %c0_i32_1 = arith.constant 0 : i32
    %c0_i32_2 = arith.constant 0 : i32
    return %arg0, %c0_i32, %c0_i32_0, %c0_i32_1 : i32, i32, i32, i32
  }
  func.func @transform_1(%arg0: i32) -> (i32, i32) {
    %c0_i32 = arith.constant 0 : i32
    %c0_i32_0 = arith.constant 0 : i32
    %c0_i32_1 = arith.constant 0 : i32
    return %c0_i32, %c0_i32_0 : i32, i32
  }
  func.func @transform_2(%arg0: i32) -> (i32, i32) {
    %c0_i32 = arith.constant 0 : i32
    %c0_i32_0 = arith.constant 0 : i32
    %c0_i32_1 = arith.constant 0 : i32
    return %c0_i32, %c0_i32_0 : i32, i32
  }
  func.func @transform_3(%arg0: i32) -> (i32, i32, i32, i32) {
    %c0_i32 = arith.constant 0 : i32
    %c0_i32_0 = arith.constant 0 : i32
    %c0_i32_1 = arith.constant 0 : i32
    %c0_i32_2 = arith.constant 0 : i32
    return %arg0, %c0_i32, %c0_i32_0, %c0_i32_1 : i32, i32, i32, i32
  }
}

</mosaic_0001>

<bundles_post_ra>
// kernel: tpu_custom_call.1
= control target key start
LH: loop header
LB: loop body
LE: loop exit
PB: predicated region body
PF: predicated region fallthrough
CT: control target
= control target key end

     0   :  { %s5632_s12 = smov 0   ;;  %s13492_s0 = inlined_call_operand.vmem [shape: f32[2,22,22,3], index: 0, kind: input, shape index: {}]   ;;  %s13493_s1 = inlined_call_operand.vmem [shape: bf16[147,8], index: 1, kind: input, shape index: {}]   ;;  %s13494_s2 = inlined_call_operand.vmem [shape: f32[1,8], index: 2, kind: input, shape index: {}]   ;;  %s13495_s3 = inlined_call_operand.vmem [shape: f32[2,18,18,8], index: 3, kind: output, shape index: {}]  }
   0x1 LB: > { %s5454_s13 = sadd.s32 4294967295, %s5589_s12   ;;  %p5458_p0 = scmp.ge.s32.totalorder %s5589_s12, 1  ;;  %s5589_s12 = sphi %s5632_s12, %s13_s12  }
   0x2   : > { %p137_p1 = scmp.lt.s32.totalorder %s5589_s12, 3 }
   0x4   : > { %p138_p2 = pnand %p5458_p0, %p137_p1 }
   0x6   : > { %141 = sbr.rel (%p138_p2) target bundleno = 2017 (0x7e1), region = 32 }
   0xd   : > { %p161_p3 = scmp.lt.s32.totalorder %s5454_s13, 1  ;;  %vm282_vm0 = vsmask.f32 7424  ;;  %s5591_s18 = smov 3   ;;  %vm14339_vm1 = vcmask 1046528   ;;  %vm14313_vm3 = vcmask 1045504  }
   0xe   : > { %s5592_s19 = smov 6   ;;  %vm620_vm2 = vsmask.f32 6400  ;;  %s5593_s20 = smov 9   ;;  %vm878_vm4 = vsmask.f32 5376 }
   0xf   : > { %s17112_s13 = smov (!%p161_p3, %s5454_s13), 1  ;;  %s5594_s21 = smov 12   ;;  %vm14312_vm5 = vcmask 1044480   ;;  %vm2164_vm6 = vsmask.f32 256  ;;  %vm3615_vm8 = vcmask 1040384  }
  0x10   : > { %s5542_s14 = smul.u32 528, %s17112_s13  ;;  %s5595_s22 = smov 15   ;;  %vm3461_vm7 = vsmask.f32 1280  ;;  %vm14282_vm9 = vcmask 23552   ;;  %vm14276_vm10 = vcmask 48128  }
  0x11   : > { %s5596_s23 = smov 18   ;;  %s5597_s24 = smov 21   ;;  %vm14340_vm11 = vcmask 72704   ;;  %vm1543_vm12 = vcmask 97280   ;;  %vm1576_vm13 = vcmask 121856   ;;  %vm1609_vm14 = vcmask 146432  }
  0x12   : > { %s5646_s17 = scalar_lea.vmem %s13492_s0, %s5542_s14  ;;  %s5598_s25 = smov 24   ;;  %vm14349_vm15 = vcmask 171008  }
  0x13   : > { %v178_v0 = vld [vmem:[%s5646_s17 + $0x30] sm:$0xff]  ;;  %v179_v1 = vld [vmem:[%s5646_s17 + $0x38] sm:$0xff]  ;;  %v180_v2 = vld [vmem:[%s5646_s17 + $0x40] sm:$0x3f]  ;;  %s5599_s26 = smov 27   ;;  %s5600_s27 = smov 30  }
  0x14   : > { %v5651_v3 = vpack.c.bf16 %v179_v1, %v178_v0  ;;  %v5653_v4 = vpack.c.bf16 %v180_v2, %v180_v2  ;;  %v172_v5 = vld [vmem:[%s5646_s17] sm:$0xff]  ;;  %v173_v6 = vld [vmem:[%s5646_s17 + $0x8] sm:$0xff]  ;;  %v174_v7 = vld [vmem:[%s5646_s17 + $0x10] sm:$0x3f]  ;;  %s5601_s28 = smov 33   ;;  %s5602_s29 = smov 36  }
  0x15   : > { %v5658_v8 = vpack.c.bf16 %v173_v6, %v172_v5  ;;  %v5660_v9 = vpack.c.bf16 %v174_v7, %v174_v7  ;;  %v181_v10 = vld [vmem:[%s5646_s17 + $0x48] sm:$0xff]  ;;  %v182_v11 = vld [vmem:[%s5646_s17 + $0x50] sm:$0xff]  ;;  %v183_v12 = vld [vmem:[%s5646_s17 + $0x58] sm:$0x3f]  ;;  %s5603_s30 = smov 39   ;;  %s5604_s4 = smov 42  }
  0x16   : > { %14351 = vst [vmem:[#allocation2_spill] sm:$0xff] %v5651_v3  ;;  %14352 = vst [vmem:[#allocation3_spill] sm:$0xff] %v5653_v4  ;;  %v5666_v13 = vshrl.u32 %v5651_v3, 16  ;;  %v5669_v14 = vshll.u32 %v5651_v3, 16  ;;  %v5672_v15 = vshll.u32 %v5653_v4, 16  ;;  %v5674_v16 = vpack.c.bf16 %v182_v11, %v181_v10  ;;  %v175_v17 = vld [vmem:[%s5646_s17 + $0x18] sm:$0xff] }
  0x17   : > { %14353 = vst [vmem:[#allocation4_spill] sm:$0xff] %v5658_v8  ;;  %v176_v18 = vld [vmem:[%s5646_s17 + $0x20] sm:$0xff]  ;;  %v187_v19 = vld [vmem:[%s5646_s17 + $0x78] sm:$0xff]  ;;  %v5680_v20 = vshrl.u32 %v5658_v8, 16  ;;  %v5683_v21 = vshll.u32 %v5658_v8, 16  ;;  %v5686_v22 = vshll.u32 %v5660_v9, 16  ;;  %v5688_v23 = vpack.c.bf16 %v183_v12, %v183_v12 }
  0x18   : > { %14354 = vst [vmem:[#allocation5_spill] sm:$0xff] %v5669_v14  ;;  %14355 = vst [vmem:[#allocation6_spill] sm:$0xff] %v5672_v15  ;;  %v177_v24 = vld [vmem:[%s5646_s17 + $0x28] sm:$0x3f]  ;;  %v188_v25 = vld [vmem:[%s5646_s17 + $0x80] sm:$0xff]  ;;  %v312_v26 = vrot.slane %v5669_v14, 1  ;;  %v5705_v33 = vpack.c.bf16 %v176_v18, %v175_v17 }
  0x19   : > { %14356 = vst [vmem:[#allocation7_spill] sm:$0xff] %v5674_v16  ;;  %14357 = vst [vmem:[#allocation8_spill] sm:$0xff] %v5680_v20  ;;  %v13497_v27 = vrot.slane %v5672_v15, 1  ;;  %v5695_v28 = vshrl.u32 %v5674_v16, 16  ;;  %v5698_v29 = vshll.u32 %v5674_v16, 16  ;;  %v288_v30 = vrot.slane %v5683_v21, 1 }
  0x1a   : > { %14358 = vst [vmem:[#allocation9_spill] sm:$0xff] %v5683_v21  ;;  %14359 = vst [vmem:[#allocation10_spill] sm:$0xff] %v5686_v22  ;;  %v293_v31 = vrot.slane %v5686_v22, 1  ;;  %v5703_v32 = vshll.u32 %v5688_v23, 16  ;;  %v189_v34 = vld [vmem:[%s5646_s17 + $0x88] sm:$0x3f]  ;;  %v313_v35 = vor.u32 %v312_v26, %v5666_v13  ;;  %v5710_v37 = vpack.c.bf16 %v177_v24, %v177_v24 }
  0x1b   : > { %14360 = vst [vmem:[#allocation11_spill] sm:$0xff] %v5688_v23  ;;  %14361 = vst [vmem:[#allocation12_spill] sm:$0xff] %v5695_v28  ;;  %v324_v36 = vrot.slane %v5698_v29, 1  ;;  %v5712_v38 = vpack.c.bf16 %v188_v25, %v187_v19  ;;  %v289_v39 = vor.u32 %v288_v30, %v5680_v20  ;;  %v5717_v41 = vshrl.u32 %v5705_v33, 16  ;;  %v184_v43 = vld [vmem:[%s5646_s17 + $0x60] sm:$0xff]  ;;  %v185_v44 = vld [vmem:[%s5646_s17 + $0x68] sm:$0xff] }
  0x1c   : > { %14362 = vst [vmem:[#allocation13_spill] sm:$0xff] %v5698_v29  ;;  %14363 = vst [vmem:[#allocation14_spill] sm:$0xff] %v5703_v32  ;;  %v13498_v40 = vrot.slane %v5703_v32, 1  ;;  %v5720_v42 = vshll.u32 %v5705_v33, 16  ;;  %v5727_v45 = vsel %vm282_vm0, %v313_v35, %v13497_v27  ;;  %v5731_v47 = vshll.u32 %v5710_v37, 16  ;;  %v193_v50 = vld [vmem:[%s5646_s17 + $0xa8] sm:$0xff] }
  0x1d   : > { %14364 = vst [vmem:[#allocation15_spill] sm:$0xff] %v5705_v33  ;;  %14365 = vst [vmem:[#allocation16_spill] sm:$0xff] %v5712_v38  ;;  %v325_v46 = vor.u32 %v324_v36, %v5695_v28  ;;  %v5733_v48 = vpack.c.bf16 %v189_v34, %v189_v34  ;;  %v186_v49 = vld [vmem:[%s5646_s17 + $0x70] sm:$0x3f]  ;;  %479 = vrot.lane.b32.xlu1 %v5727_v45, %s5591_s18  ;;  %v294_v52 = vsel %vm282_vm0, %v289_v39, %v293_v31  ;;  %v195_v56 = vld [vmem:[%s5646_s17 + $0xb8] sm:$0x3f] }
  0x1e   : > { %14366 = vst [vmem:[#allocation17_spill] sm:$0xff] %v5717_v41  ;;  %14367 = vst [vmem:[#allocation18_spill] sm:$0xff] %v5720_v42  ;;  %v194_v51 = vld [vmem:[%s5646_s17 + $0xb0] sm:$0xff]  ;;  %v300_v53 = vrot.slane %v5720_v42, 1  ;;  %v5743_v54 = vshrl.u32 %v5712_v38, 16  ;;  %v5746_v55 = vshll.u32 %v5712_v38, 16  ;;  %475 = vrot.lane.b32.xlu0 %v294_v52, %s5591_s18  ;;  %v5759_v60 = vpack.c.bf16 %v185_v44, %v184_v43 }
  0x1f   : > { %14368 = vst [vmem:[#allocation19_spill] sm:$0xff] %v5727_v45  ;;  %14369 = vst [vmem:[#allocation20_spill] sm:$0xff] %v5731_v47  ;;  %v5753_v57 = vsel %vm282_vm0, %v325_v46, %v13498_v40  ;;  %v305_v58 = vrot.slane %v5731_v47, 1  ;;  %v5757_v59 = vshll.u32 %v5733_v48, 16  ;;  %v5763_v63 = vpack.c.bf16 %v186_v49, %v186_v49  ;;  %v190_v1 = vld [vmem:[%s5646_s17 + $0x90] sm:$0xff]  ;;  %v191_v2 = vld [vmem:[%s5646_s17 + $0x98] sm:$0xff] }
  0x20   : > { %14370 = vst [vmem:[#allocation21_spill] sm:$0xff] %v5733_v48  ;;  %14371 = vst [vmem:[#allocation22_spill] sm:$0xff] %v5743_v54  ;;  %v301_v61 = vor.u32 %v300_v53, %v5717_v41  ;;  %v348_v62 = vrot.slane %v5746_v55, 1  ;;  %v5765_v0 = vpack.c.bf16 %v194_v51, %v193_v50  ;;  %v199_v5 = vld [vmem:[%s5646_s17 + $0xd8] sm:$0xff]  ;;  %v5772_v7 = vshrl.u32 %v5759_v60, 16  ;;  %v200_v17 = vld [vmem:[%s5646_s17 + $0xe0] sm:$0xff] }
  0x21   : > { %14372 = vst [vmem:[#allocation23_spill] sm:$0xff] %v5746_v55  ;;  %14373 = vst [vmem:[#allocation24_spill] sm:$0xff] %v5753_v57  ;;  %v13496_v6 = vrot.slane %v5757_v59, 1  ;;  %v5775_v10 = vshll.u32 %v5759_v60, 16  ;;  %v5777_v11 = vpack.c.bf16 %v195_v56, %v195_v56  ;;  %v192_v12 = vld [vmem:[%s5646_s17 + $0xa0] sm:$0x3f]  ;;  %481 = vrot.lane.b32.xlu1 %v5753_v57, %s5591_s18  ;;  %v5802_v34 = vpack.c.bf16 %v191_v2, %v190_v1 }
  0x22   : > { %14374 = vst [vmem:[#allocation25_spill] sm:$0xff] %v5757_v59  ;;  %14375 = vst [vmem:[#allocation26_spill] sm:$0xff] %v5763_v63  ;;  %v5784_v18 = vsel %vm282_vm0, %v301_v61, %v305_v58  ;;  %v349_v19 = vor.u32 %v348_v62, %v5743_v54  ;;  %v5788_v24 = vshll.u32 %v5763_v63, 16  ;;  %v5791_v25 = vshrl.u32 %v5765_v0, 16  ;;  %v201_v35 = vld [vmem:[%s5646_s17 + $0xe8] sm:$0x3f] }
  0x23   : > { %14376 = vst [vmem:[#allocation27_spill] sm:$0xff] %v5765_v0  ;;  %14377 = vst [vmem:[#allocation28_spill] sm:$0xff] %v5772_v7  ;;  %477 = vrot.lane.b32.xlu0 %v5784_v18, %s5591_s18  ;;  %v336_v26 = vrot.slane %v5775_v10, 1  ;;  %v5797_v30 = vshll.u32 %v5765_v0, 16  ;;  %v5800_v31 = vshll.u32 %v5777_v11, 16  ;;  %v5811_v43 = vpack.c.bf16 %v192_v12, %v192_v12  ;;  %v196_v46 = vld [vmem:[%s5646_s17 + $0xc0] sm:$0xff] }
  0x24   : > { %14378 = vst [vmem:[#allocation29_spill] sm:$0xff] %v5775_v10  ;;  %14379 = vst [vmem:[#allocation30_spill] sm:$0xff] %v5777_v11  ;;  %v5808_v36 = vsel %vm282_vm0, %v349_v19, %v13496_v6  ;;  %v13499_v39 = vrot.slane %v5788_v24, 1  ;;  %v5813_v44 = vpack.c.bf16 %v200_v17, %v199_v5  ;;  %v197_v49 = vld [vmem:[%s5646_s17 + $0xc8] sm:$0xff]  ;;  %v5821_v53 = vshrl.u32 %v5802_v34, 16  ;;  %v206_v5 = vld [vmem:[%s5646_s17 + $0x110] sm:$0xff] }
  0x25   : > { %14380 = vst [vmem:[#allocation31_spill] sm:$0xff] %v5784_v18  ;;  %14381 = vst [vmem:[#allocation32_spill] sm:$0xff] %v5788_v24  ;;  %v337_v50 = vor.u32 %v336_v26, %v5772_v7  ;;  %v372_v51 = vrot.slane %v5797_v30, 1  ;;  %v198_v56 = vld [vmem:[%s5646_s17 + $0xd0] sm:$0x3f]  ;;  %v205_v58 = vld [vmem:[%s5646_s17 + $0x108] sm:$0xff]  ;;  %485 = vrot.lane.b32.xlu1 %v5808_v36, %s5591_s18  ;;  %v5833_v1 = vpack.c.bf16 %v201_v35, %v201_v35 }
  0x26   : > { %14382 = vst [vmem:[#allocation33_spill] sm:$0xff] %v5791_v25  ;;  %14383 = vst [vmem:[#allocation34_spill] sm:$0xff] %v5797_v30  ;;  %v5828_v61 = vshll.u32 %v5802_v34, 16  ;;  %v5831_v62 = vshll.u32 %v5811_v43, 16  ;;  %v5836_v2 = vshrl.u32 %v5813_v44, 16  ;;  %v5847_v26 = vshll.u32 %v5813_v44, 16 }
  0x27   : > { %14384 = vst [vmem:[#allocation35_spill] sm:$0xff] %v5800_v31  ;;  %14385 = vst [vmem:[#allocation36_spill] sm:$0xff] %v5802_v34  ;;  %v207_v12 = vld [vmem:[%s5646_s17 + $0x118] sm:$0x3f]  ;;  %v5843_v17 = vsel %vm282_vm0, %v337_v50, %v13499_v39  ;;  %v373_v19 = vor.u32 %v372_v51, %v5791_v25  ;;  %v5849_v6 = vpack.c.bf16 %v197_v49, %v196_v46  ;;  %v202_v27 = vld [vmem:[%s5646_s17 + $0xf0] sm:$0xff]  ;;  %v5857_v52 = vshll.u32 %v5833_v1, 16 }
  0x28   : > { %14386 = vst [vmem:[#allocation37_spill] sm:$0xff] %v5808_v36  ;;  %14387 = vst [vmem:[#allocation38_spill] sm:$0xff] %v5811_v43  ;;  %483 = vrot.lane.b32.xlu0 %v5843_v17, %s5591_s18  ;;  %v360_v35 = vrot.slane %v5828_v61, 1  ;;  %v5859_v50 = vpack.c.bf16 %v198_v56, %v198_v56  ;;  %v203_v51 = vld [vmem:[%s5646_s17 + $0xf8] sm:$0xff]  ;;  %v204_v39 = vld [vmem:[%s5646_s17 + $0x100] sm:$0x3f] }
  0x29   : > { %14388 = vst [vmem:[#allocation39_spill] sm:$0xff] %v5813_v44  ;;  %14389 = vst [vmem:[#allocation40_spill] sm:$0xff] %v5821_v53  ;;  %v14399_v46 = vrot.slane %v5800_v31, 1  ;;  %v396_v36 = vrot.slane %v5847_v26, 1  ;;  %v5870_v57 = vshrl.u32 %v5849_v6, 16  ;;  %v5873_v40 = vshll.u32 %v5849_v6, 16 }
  0x2a   : > { %14390 = vst [vmem:[#allocation41_spill] sm:$0xff] %v5828_v61  ;;  %14391 = vst [vmem:[#allocation42_spill] sm:$0xff] %v5831_v62  ;;  %v361_v56 = vor.u32 %v360_v35, %v5821_v53  ;;  %v5880_v18 = vshll.u32 %v5859_v50, 16  ;;  %v5888_v61 = vpack.c.bf16 %v203_v51, %v202_v27  ;;  %v211_v31 = vld [vmem:[%s5646_s17 + $0x138] sm:$0xff]  ;;  %v14407_v35 = vrot.slane %v5831_v62, 1  ;;  %v217_v53 = vld [vmem:[%s5646_s17 + $0x168] sm:$0xff] }
  0x2b   : > { %14392 = vst [vmem:[#allocation43_spill] sm:$0xff] %v5833_v1  ;;  %14393 = vst [vmem:[#allocation44_spill] sm:$0xff] %v5836_v2  ;;  %v5866_v49 = vsel %vm282_vm0, %v373_v19, %v14399_v46  ;;  %v5882_v19 = vpack.c.bf16 %v206_v5, %v205_v58  ;;  %v397_v46 = vor.u32 %v396_v36, %v5836_v2  ;;  %v384_v45 = vrot.slane %v5873_v40, 1  ;;  %v218_v30 = vld [vmem:[%s5646_s17 + $0x170] sm:$0xff]  ;;  %v215_v7 = vld [vmem:[%s5646_s17 + $0x158] sm:$0xff]  ;;  %s5605_s5 = smov 45  }
  0x2c   : > { %14394 = vst [vmem:[#allocation45_spill] sm:$0xff] %v5843_v17  ;;  %14395 = vst [vmem:[#allocation46_spill] sm:$0xff] %v5847_v26  ;;  %489 = vrot.lane.b32.xlu1 %v5866_v49, %s5591_s18  ;;  %v5886_v26 = vpack.c.bf16 %v207_v12, %v207_v12  ;;  %v5895_v17 = vsel %vm282_vm0, %v361_v56, %v14407_v35  ;;  %v213_v12 = vld [vmem:[%s5646_s17 + $0x148] sm:$0x3f]  ;;  %v14411_v27 = vrot.slane %v5857_v52, 1  ;;  %v14418_v2 = vrot.slane %v5880_v18, 1 }
  0x2d   : > { %14396 = vst [vmem:[#allocation47_spill] sm:$0xff] %v5849_v6  ;;  %14397 = vst [vmem:[#allocation48_spill] sm:$0xff] %v5857_v52  ;;  %v5899_v36 = vshrl.u32 %v5882_v19, 16  ;;  %v5902_v5 = vshll.u32 %v5882_v19, 16  ;;  %487 = vrot.lane.b32.xlu0 %v5895_v17, %s5591_s18  ;;  %v385_v56 = vor.u32 %v384_v45, %v5870_v57  ;;  %v5916_v58 = vpack.c.bf16 %v204_v39, %v204_v39  ;;  %v209_v45 = vld [vmem:[%s5646_s17 + $0x128] sm:$0xff] }
  0x2e   : > { %14398 = vst [vmem:[#allocation49_spill] sm:$0xff] %v5859_v50  ;;  %14400 = vst [vmem:[#allocation50_spill] sm:$0xff] %v5866_v49  ;;  %v212_v49 = vld [vmem:[%s5646_s17 + $0x140] sm:$0xff]  ;;  %v5910_v51 = vsel %vm282_vm0, %v397_v46, %v14411_v27  ;;  %v5914_v35 = vshll.u32 %v5886_v26, 16  ;;  %v5923_v52 = vshrl.u32 %v5888_v61, 16  ;;  %v5926_v46 = vshll.u32 %v5888_v61, 16 }
  0x2f   : > { %14401 = vst [vmem:[#allocation51_spill] sm:$0xff] %v5870_v57  ;;  %14402 = vst [vmem:[#allocation52_spill] sm:$0xff] %v5873_v40  ;;  %v208_v40 = vld [vmem:[%s5646_s17 + $0x120] sm:$0xff]  ;;  %v5928_v27 = vpack.c.bf16 %v212_v49, %v211_v31  ;;  %v210_v57 = vld [vmem:[%s5646_s17 + $0x130] sm:$0x3f]  ;;  %v5935_v39 = vsel %vm282_vm0, %v385_v56, %v14418_v2  ;;  %v5941_v62 = vpack.c.bf16 %v213_v12, %v213_v12 }
  0x30   : > { %14403 = vst [vmem:[#allocation53_spill] sm:$0xff] %v5880_v18  ;;  %14404 = vst [vmem:[#allocation54_spill] sm:$0xff] %v5882_v19  ;;  %493 = vrot.lane.b32.xlu1 %v5910_v51, %s5591_s18  ;;  %v408_v49 = vrot.slane %v5926_v46, 1  ;;  %v5971_v10 = vpack.c.bf16 %v218_v30, %v217_v53  ;;  %v214_v12 = vld [vmem:[%s5646_s17 + $0x150] sm:$0xff] }
  0x31   : > { %14405 = vst [vmem:[#allocation55_spill] sm:$0xff] %v5886_v26  ;;  %14406 = vst [vmem:[#allocation56_spill] sm:$0xff] %v5888_v61  ;;  %v5948_v18 = vshrl.u32 %v5928_v27, 16  ;;  %v5951_v2 = vshll.u32 %v5928_v27, 16  ;;  %491 = vrot.lane.b32.xlu0 %v5935_v39, %s5591_s18  ;;  %v5957_v56 = vshll.u32 %v5941_v62, 16 }
  0x32   : > { %14408 = vst [vmem:[#allocation57_spill] sm:$0xff] %v5895_v17  ;;  %14409 = vst [vmem:[#allocation58_spill] sm:$0xff] %v5899_v36  ;;  %v420_v17 = vrot.slane %v5902_v5, 1  ;;  %v409_v24 = vor.u32 %v408_v49, %v5923_v52 }
  0x33   : > { %14410 = vst [vmem:[#allocation59_spill] sm:$0xff] %v5902_v5  ;;  %14412 = vst [vmem:[#allocation60_spill] sm:$0xff] %v5910_v51  ;;  %v5939_v5 = vshll.u32 %v5916_v58, 16  ;;  %v5959_v51 = vpack.c.bf16 %v209_v45, %v208_v40  ;;  %v5997_v40 = vshrl.u32 %v5971_v10, 16 }
  0x34   : > { %14413 = vst [vmem:[#allocation61_spill] sm:$0xff] %v5914_v35  ;;  %14414 = vst [vmem:[#allocation62_spill] sm:$0xff] %v5916_v58  ;;  %v421_v31 = vor.u32 %v420_v17, %v5899_v36  ;;  %v5961_v17 = vpack.c.bf16 %v210_v57, %v210_v57  ;;  %v14427_v36 = vrot.slane %v5914_v35, 1  ;;  %v6004_v35 = vshll.u32 %v5971_v10, 16 }
  0x35   : > { %14415 = vst [vmem:[#allocation63_spill] sm:$0xff] %v5923_v52  ;;  %14416 = vst [vmem:[#allocation64_spill] sm:$0xff] %v5926_v46  ;;  %v219_v46 = vld [vmem:[%s5646_s17 + $0x178] sm:$0x3f]  ;;  %v5979_v57 = vshrl.u32 %v5959_v51, 16  ;;  %v5982_v45 = vshll.u32 %v5959_v51, 16 }
  0x36   : > { %14417 = vst [vmem:[#allocation65_spill] sm:$0xff] %v5928_v27  ;;  %14419 = vst [vmem:[#allocation66_spill] sm:$0xff] %v5935_v39  ;;  %v5967_v25 = vsel %vm282_vm0, %v421_v31, %v14427_v36  ;;  %v444_v39 = vrot.slane %v5951_v2, 1  ;;  %v5985_v36 = vshll.u32 %v5961_v17, 16  ;;  %v216_v31 = vld [vmem:[%s5646_s17 + $0x160] sm:$0x3f] }
  0x37   : > { %14420 = vst [vmem:[#allocation67_spill] sm:$0xff] %v5939_v5  ;;  %14421 = vst [vmem:[#allocation68_spill] sm:$0xff] %v5941_v62  ;;  %497 = vrot.lane.b32.xlu1 %v5967_v25, %s5591_s18  ;;  %v14433_v30 = vrot.slane %v5939_v5, 1  ;;  %v6006_v5 = vpack.c.bf16 %v215_v7, %v214_v12 }
  0x38   : > { %14422 = vst [vmem:[#allocation69_spill] sm:$0xff] %v5948_v18  ;;  %14423 = vst [vmem:[#allocation70_spill] sm:$0xff] %v5951_v2  ;;  %v445_v49 = vor.u32 %v444_v39, %v5948_v18  ;;  %v432_v2 = vrot.slane %v5982_v45, 1 }
  0x39   : > { %14424 = vst [vmem:[#allocation71_spill] sm:$0xff] %v5957_v56  ;;  %14425 = vst [vmem:[#allocation72_spill] sm:$0xff] %v5959_v51  ;;  %v5991_v53 = vsel %vm282_vm0, %v409_v24, %v14433_v30  ;;  %v14439_v24 = vrot.slane %v5957_v56, 1  ;;  %v6016_v30 = vpack.c.bf16 %v216_v31, %v216_v31  ;;  %v6023_v7 = vshrl.u32 %v6006_v5, 16 }
  0x3a   : > { %14426 = vst [vmem:[#allocation73_spill] sm:$0xff] %v5961_v17  ;;  %14428 = vst [vmem:[#allocation74_spill] sm:$0xff] %v5967_v25  ;;  %v5994_v25 = vpack.c.bf16 %v219_v46, %v219_v46  ;;  %495 = vrot.lane.b32.xlu0 %v5991_v53, %s5591_s18  ;;  %v433_v52 = vor.u32 %v432_v2, %v5979_v57  ;;  %v6026_v12 = vshll.u32 %v6006_v5, 16  ;;  %v543_v31 = vrot.slane %v5705_v33, 1 }
  0x3b   : > { %14429 = vst [vmem:[#allocation75_spill] sm:$0xff] %v5971_v10  ;;  %14430 = vst [vmem:[#allocation76_spill] sm:$0xff] %v5979_v57  ;;  %v6011_v46 = vsel %vm282_vm0, %v445_v49, %v14439_v24  ;;  %v6030_v24 = vshll.u32 %v6016_v30, 16  ;;  %v544_v57 = vrot.slane %v5710_v37, 1 }
  0x3c   : > { %14431 = vst [vmem:[#allocation77_spill] sm:$0xff] %v5982_v45  ;;  %14432 = vst [vmem:[#allocation78_spill] sm:$0xff] %v5985_v36  ;;  %v6014_v39 = vshll.u32 %v5994_v25, 16  ;;  %501 = vrot.lane.b32.xlu1 %v6011_v46, %s5591_s18  ;;  %v14446_v45 = vrot.slane %v5985_v36, 1 }
  0x3d   : > { %14434 = vst [vmem:[#allocation79_spill] sm:$0xff] %v5991_v53  ;;  %14435 = vst [vmem:[#allocation80_spill] sm:$0xff] %v5994_v25  ;;  %v468_v53 = vrot.slane %v6004_v35, 1  ;;  %v13585_v49 = vrot.slane %v6030_v24, 1 }
  0x3e   : > { %14436 = vst [vmem:[#allocation81_spill] sm:$0xff] %v5997_v40  ;;  %14437 = vst [vmem:[#allocation82_spill] sm:$0xff] %v6004_v35  ;;  %v456_v35 = vrot.slane %v6026_v12, 1  ;;  %v14448_v56 = vrot.slane %v6014_v39, 1 }
  0x3f   : > { %14438 = vst [vmem:[#allocation83_spill] sm:$0xff] %v6006_v5  ;;  %14440 = vst [vmem:[#allocation84_spill] sm:$0xff] %v6011_v46  ;;  %v6036_v46 = vsel %vm282_vm0, %v433_v52, %v14446_v45  ;;  %v469_v2 = vor.u32 %v468_v53, %v5997_v40  ;;  %v540_v45 = vrot.slane %v5658_v8, 1  ;;  %v541_v53 = vrot.slane %v5660_v9, 1 }
  0x40   : > { %14441 = vst [vmem:[#allocation85_spill] sm:$0xff] %v6014_v39  ;;  %14442 = vst [vmem:[#allocation86_spill] sm:$0xff] %v6016_v30  ;;  %499 = vrot.lane.b32.xlu0 %v6036_v46, %s5591_s18  ;;  %v457_v52 = vor.u32 %v456_v35, %v6023_v7  ;;  %v13588_v8 = vrot.slane %v5653_v4, 1 }
  0x41   : > { %14443 = vst [vmem:[#allocation87_spill] sm:$0xff] %v6023_v7  ;;  %14444 = vst [vmem:[#allocation88_spill] sm:$0xff] %v6026_v12  ;;  %v6047_v33 = vsel %vm282_vm0, %v469_v2, %v14448_v56  ;;  %v6060_v12 = vsel %vm14339_vm1, %v543_v31, %v544_v57  ;;  %v549_v56 = vrot.slane %v5674_v16, 1  ;;  %v6064_v2 = vrot.slane %v5688_v23, 1 }
  0x42   : > { %14445 = vst [vmem:[#allocation89_spill] sm:$0xff] %v6030_v24  ;;  %14447 = vst [vmem:[#allocation90_spill] sm:$0xff] %v6036_v46  ;;  %505 = vrot.lane.b32.xlu1 %v6047_v33, %s5591_s18  ;;  %v6057_v46 = vsel %vm282_vm0, %v457_v52, %v13585_v49  ;;  %v542_v35 = vsel %vm14339_vm1, %v540_v45, %v541_v53  ;;  %v555_v31 = vrot.slane %v5712_v38, 1  ;;  %v6079_v52 = vrot.slane %v5733_v48, 1 }
  0x43   : > { %14449 = vst [vmem:[#allocation91_spill] sm:$0xff] %v6047_v33  ;;  %14450 = vst [vmem:[#allocation92_spill] sm:$0xff] %v6057_v46  ;;  %v546_v33 = vrot.slane %v5651_v3, 1  ;;  %v6075_v57 = vsel %vm14339_vm1, %v549_v56, %v6064_v2  ;;  %v552_v53 = vrot.slane %v5759_v60, 1  ;;  %v6089_v49 = vrot.slane %v5763_v63, 1 }
  0x44   : > { %14451 = vst [vmem:[#allocation93_spill] sm:$0xff] %v6060_v12  ;;  %14452 = vst [vmem:[#allocation94_spill] sm:$0xff] %v6064_v2  ;;  %503 = vrot.lane.b32.xlu0 %v6057_v46, %s5591_s18  ;;  %v6095_v56 = vsel %vm14339_vm1, %v555_v31, %v6079_v52  ;;  %v561_v2 = vrot.slane %v5765_v0, 1  ;;  %v14475_v46 = vshrl.u32 %v5710_v37, 16 }
  0x45   : > { %14453 = vst [vmem:[#allocation95_spill] sm:$0xff] %v6075_v57  ;;  %14454 = vst [vmem:[#allocation96_spill] sm:$0xff] %v6079_v52  ;;  %v6085_v45 = vsel %vm14339_vm1, %v546_v33, %v13588_v8  ;;  %v6105_v33 = vsel %vm14339_vm1, %v552_v53, %v6089_v49  ;;  %v558_v8 = vrot.slane %v5802_v34, 1  ;;  %v567_v52 = vrot.slane %v5813_v44, 1 }
  0x46   : > { %590 = vrot.lane.b32.xlu1 %v6060_v12, %s5592_s19  ;;  %14455 = vst [vmem:[#allocation97_spill] sm:$0xff] %v6085_v45  ;;  %14456 = vst [vmem:[#allocation98_spill] sm:$0xff] %v6089_v49  ;;  %v6119_v12 = vrot.slane %v5833_v1, 1  ;;  %v564_v49 = vrot.slane %v5849_v6, 1 }
  0x47   : > { %14457 = vst [vmem:[#allocation99_spill] sm:$0xff] %v6095_v56  ;;  %14459 = vst [vmem:[#allocation101_spill] sm:$0xff] %v6105_v33 }
  0x48   : > { %588 = vrot.lane.b32.xlu0 %v542_v35, %s5592_s19  ;;  %v6099_v35 = vrot.slane %v5777_v11, 1  ;;  %14462 = vst [vmem:[#allocation104_spill] sm:$0xff] %v6119_v12 }
  0x4a   : > { %594 = vrot.lane.b32.xlu1 %v6075_v57, %s5592_s19  ;;  %14458 = vst [vmem:[#allocation100_spill] sm:$0xff] %v6099_v35  ;;  %v6109_v57 = vrot.slane %v5811_v43, 1  ;;  %v6115_v31 = vsel %vm14339_vm1, %v561_v2, %v6099_v35  ;;  %v6135_v2 = vsel %vm14339_vm1, %v567_v52, %v6119_v12  ;;  %v573_v35 = vrot.slane %v5882_v19, 1 }
  0x4b   : > { %14461 = vst [vmem:[#allocation103_spill] sm:$0xff] %v6115_v31  ;;  %14465 = vst [vmem:[#allocation107_spill] sm:$0xff] %v6135_v2  ;;  %v579_v12 = vrot.slane %v5928_v27, 1  ;;  %v627_v27 = vrot.slane %v5686_v22, 2 }
  0x4c   : > { %592 = vrot.lane.b32.xlu0 %v6085_v45, %s5592_s19  ;;  %14460 = vst [vmem:[#allocation102_spill] sm:$0xff] %v6109_v57  ;;  %v6125_v53 = vsel %vm14339_vm1, %v558_v8, %v6109_v57  ;;  %v570_v57 = vrot.slane %v5888_v61, 1  ;;  %v6177_v45 = vrot.slane %v5994_v25, 1  ;;  %v654_v61 = vrot.slane %v5703_v32, 2 }
  0x4d   : > { %14463 = vst [vmem:[#allocation105_spill] sm:$0xff] %v6125_v53  ;;  %v645_v32 = vrot.slane %v5672_v15, 2  ;;  %v14489_v15 = vld [vmem:[#allocation29_spill] sm:$0xff] }
  0x4e   : > { %598 = vrot.lane.b32.xlu1 %v6095_v56, %s5592_s19  ;;  %v6129_v56 = vrot.slane %v5859_v50, 1  ;;  %14473 = vst [vmem:[#allocation115_spill] sm:$0xff] %v6177_v45 }
  0x50   : > { %596 = vrot.lane.b32.xlu0 %v6105_v33, %s5592_s19  ;;  %14464 = vst [vmem:[#allocation106_spill] sm:$0xff] %v6129_v56  ;;  %v6139_v33 = vrot.slane %v5886_v26, 1  ;;  %v6145_v8 = vsel %vm14339_vm1, %v564_v49, %v6129_v56  ;;  %v585_v49 = vrot.slane %v5971_v10, 1  ;;  %v582_v10 = vrot.slane %v6006_v5, 1 }
  0x51   : > { %14467 = vst [vmem:[#allocation109_spill] sm:$0xff] %v6145_v8  ;;  %v648_v5 = vrot.slane %v5695_v28, 1 }
  0x52   : > { %602 = vrot.lane.b32.xlu1 %v6115_v31, %s5592_s19  ;;  %14466 = vst [vmem:[#allocation108_spill] sm:$0xff] %v6139_v33  ;;  %v6149_v31 = vrot.slane %v5916_v58, 1  ;;  %v6155_v52 = vsel %vm14339_vm1, %v573_v35, %v6139_v33  ;;  %v6170_v35 = vrot.slane %v5961_v17, 1  ;;  %v636_v33 = vrot.slane %v5731_v47, 2 }
  0x53   : > { %14469 = vst [vmem:[#allocation111_spill] sm:$0xff] %v6155_v52 }
  0x54   : > { %600 = vrot.lane.b32.xlu0 %v6125_v53, %s5592_s19  ;;  %14468 = vst [vmem:[#allocation110_spill] sm:$0xff] %v6149_v31  ;;  %v6159_v53 = vrot.slane %v5941_v62, 1  ;;  %v6166_v56 = vsel %vm14339_vm1, %v570_v57, %v6149_v31  ;;  %14472 = vst [vmem:[#allocation114_spill] sm:$0xff] %v6170_v35  ;;  %v631_v57 = vrot.slane %v5720_v42, 2  ;;  %v621_v42 = vrot.slane %v5680_v20, 1 }
  0x55   : > { %14471 = vst [vmem:[#allocation113_spill] sm:$0xff] %v6166_v56  ;;  %v6213_v20 = vsel %vm14339_vm1, %v585_v49, %v6177_v45  ;;  %v6230_v45 = vshrl.u32 %v5763_v63, 16 }
  0x56   : > { %606 = vrot.lane.b32.xlu1 %v6135_v2, %s5592_s19  ;;  %14470 = vst [vmem:[#allocation112_spill] sm:$0xff] %v6159_v53  ;;  %v576_v2 = vrot.slane %v5959_v51, 1  ;;  %v6183_v31 = vsel %vm14339_vm1, %v579_v12, %v6159_v53  ;;  %v635_v51 = vrot.slane %v14475_v46, 1  ;;  %v622_v12 = vrot.slane %v5683_v21, 2  ;;  %14481 = vst [vmem:[#allocation121_spill] sm:$0xff] %v6213_v20 }
  0x57   : > { %14474 = vst [vmem:[#allocation116_spill] sm:$0xff] %v6183_v31  ;;  %v14479_v53 = vshrl.u32 %v5660_v9, 16  ;;  %14484 = vst [vmem:[#allocation124_spill] sm:$0xff] %v6230_v45 }
  0x58   : > { %604 = vrot.lane.b32.xlu0 %v6145_v8, %s5592_s19  ;;  %v630_v8 = vrot.slane %v5717_v41, 1  ;;  %v6195_v41 = vrot.slane %v6016_v30, 1  ;;  %v6201_v46 = vsel %vm14339_vm1, %v576_v2, %v6170_v35  ;;  %v6217_v2 = vshrl.u32 %v5733_v48, 16 }
  0x59   : > { %14478 = vst [vmem:[#allocation119_spill] sm:$0xff] %v6201_v46  ;;  %v626_v47 = vrot.slane %v14479_v53, 1  ;;  %v637_v35 = vor.u32 %v636_v33, %v635_v51  ;;  %v649_v53 = vrot.slane %v5698_v29, 2  ;;  %v640_v33 = vrot.slane %v5669_v14, 2  ;;  %v14490_v14 = vld [vmem:[#allocation32_spill] sm:$0xff] }
  0x5a   : > { %610 = vrot.lane.b32.xlu1 %v6155_v52, %s5592_s19  ;;  %v6189_v52 = vshrl.u32 %v5688_v23, 16  ;;  %14477 = vst [vmem:[#allocation118_spill] sm:$0xff] %v6195_v41  ;;  %v632_v21 = vor.u32 %v631_v57, %v630_v8  ;;  %14482 = vst [vmem:[#allocation122_spill] sm:$0xff] %v6217_v2  ;;  %v6226_v49 = vsel %vm14339_vm1, %v582_v10, %v6195_v41  ;;  %v639_v57 = vrot.slane %v5666_v13, 1 }
  0x5b   : > { %14483 = vst [vmem:[#allocation123_spill] sm:$0xff] %v6226_v49  ;;  %v623_v8 = vor.u32 %v622_v12, %v621_v42  ;;  %v628_v51 = vor.u32 %v627_v27, %v626_v47  ;;  %v667_v10 = vrot.slane %v5746_v55, 2  ;;  %v671_v42 = vrot.slane %v6217_v2, 1 }
  0x5c   : > { %14476 = vst [vmem:[#allocation117_spill] sm:$0xff] %v6189_v52  ;;  %608 = vrot.lane.b32.xlu0 %v6166_v56, %s5592_s19  ;;  %v6207_v56 = vshrl.u32 %v5653_v4, 16  ;;  %v653_v22 = vrot.slane %v6189_v52, 1  ;;  %v672_v12 = vrot.slane %v5757_v59, 2  ;;  %v6242_v41 = vsel %vm620_vm2, %v632_v21, %v637_v35 }
  0x5d   : > { %14485 = vst [vmem:[#allocation125_spill] sm:$0xff] %v6242_v41  ;;  %v650_v47 = vor.u32 %v649_v53, %v648_v5  ;;  %v658_v55 = vrot.slane %v14489_v15, 2  ;;  %v662_v2 = vrot.slane %v6230_v45, 1  ;;  %v663_v59 = vrot.slane %v14490_v14, 2  ;;  %v14495_v45 = vld [vmem:[#allocation34_spill] sm:$0xff] }
  0x5e   : > { %14480 = vst [vmem:[#allocation120_spill] sm:$0xff] %v6207_v56  ;;  %614 = vrot.lane.b32.xlu1 %v6183_v31, %s5592_s19  ;;  %v644_v31 = vrot.slane %v6207_v56, 1  ;;  %v6244_v27 = vor.u32 %v654_v61, %v653_v22  ;;  %v6247_v56 = vshrl.u32 %v5777_v11, 16  ;;  %v629_v21 = vsel %vm620_vm2, %v623_v8, %v628_v51 }
  0x5f   : > { %v641_v35 = vor.u32 %v640_v33, %v639_v57  ;;  %v6259_v22 = vshrl.u32 %v5811_v43, 16  ;;  %v6263_v53 = vor.u32 %v672_v12, %v671_v42  ;;  %v6274_v51 = vshrl.u32 %v5833_v1, 16  ;;  %v14501_v12 = vld [vmem:[#allocation41_spill] sm:$0xff] }
  0x60   : > { %612 = vrot.lane.b32.xlu0 %v6201_v46, %s5592_s19  ;;  %v666_v46 = vrot.slane %v5743_v54, 1  ;;  %14486 = vst [vmem:[#allocation126_spill] sm:$0xff] %v6244_v27  ;;  %14487 = vst [vmem:[#allocation127_spill] sm:$0xff] %v6247_v56  ;;  %v6256_v5 = vor.u32 %v645_v32, %v644_v31  ;;  %v6269_v8 = vsel %vm620_vm2, %v650_v47, %v6244_v27  ;;  %v689_v32 = vrot.slane %v6247_v56, 1  ;;  %v14497_v31 = vld [vmem:[#allocation35_spill] sm:$0xff]  ;;  %v14503_v56 = vld [vmem:[#allocation42_spill] sm:$0xff] }
  0x61   : > { %14492 = vst [vmem:[#allocation129_spill] sm:$0xff] %v6259_v22  ;;  %14493 = vst [vmem:[#allocation130_spill] sm:$0xff] %v6263_v53  ;;  %v690_v57 = vrot.slane %v14497_v31, 2  ;;  %v6277_v33 = vor.u32 %v663_v59, %v662_v2  ;;  %v680_v27 = vrot.slane %v6259_v22, 1  ;;  %v681_v31 = vrot.slane %v14503_v56, 2  ;;  %v14506_v59 = vld [vmem:[#allocation44_spill] sm:$0xff] }
  0x62   : > { %618 = vrot.lane.b32.xlu1 %v6213_v20, %s5592_s19  ;;  %v14488_v20 = vld [vmem:[#allocation28_spill] sm:$0xff]  ;;  %14491 = vst [vmem:[#allocation128_spill] sm:$0xff] %v6256_v5  ;;  %v668_v61 = vor.u32 %v667_v10, %v666_v46  ;;  %14496 = vst [vmem:[#allocation131_spill] sm:$0xff] %v6269_v8  ;;  %v6283_v47 = vsel %vm620_vm2, %v641_v35, %v6256_v5  ;;  %v702_v2 = vrot.slane %v14506_v59, 1  ;;  %v14509_v5 = vld [vmem:[#allocation46_spill] sm:$0xff]  ;;  %v707_v22 = vrot.slane %v6274_v51, 1 }
  0x63   : > { %v657_v54 = vrot.slane %v14488_v20, 1  ;;  %v685_v20 = vrot.slane %v14495_v45, 2  ;;  %14498 = vst [vmem:[#allocation132_spill] sm:$0xff] %v6274_v51  ;;  %14499 = vst [vmem:[#allocation133_spill] sm:$0xff] %v6277_v33  ;;  %v14500_v10 = vld [vmem:[#allocation40_spill] sm:$0xff]  ;;  %v6288_v45 = vshrl.u32 %v5859_v50, 16  ;;  %v6300_v35 = vor.u32 %v690_v57, %v689_v32 }
  0x64   : > { %616 = vrot.lane.b32.xlu0 %v6226_v49, %s5592_s19  ;;  %v14494_v49 = vld [vmem:[#allocation33_spill] sm:$0xff]  ;;  %v675_v42 = vrot.slane %v14500_v10, 1  ;;  %14502 = vst [vmem:[#allocation134_spill] sm:$0xff] %v6283_v47  ;;  %v703_v56 = vrot.slane %v14509_v5, 2  ;;  %v6315_v32 = vor.u32 %v681_v31, %v680_v27  ;;  %v14515_v57 = vld [vmem:[#allocation52_spill] sm:$0xff] }
  0x65   : > { %v684_v15 = vrot.slane %v14494_v49, 1  ;;  %v659_v46 = vor.u32 %v658_v55, %v657_v54  ;;  %14504 = vst [vmem:[#allocation135_spill] sm:$0xff] %v6288_v45  ;;  %v6294_v54 = vsel %vm620_vm2, %v668_v61, %v6263_v53  ;;  %14508 = vst [vmem:[#allocation138_spill] sm:$0xff] %v6300_v35  ;;  %v694_v5 = vrot.slane %v14515_v57, 2 }
  0x66   : > { %767 = vrot.lane.b32.xlu1 %v6242_v41, %s5593_s20  ;;  %v676_v41 = vrot.slane %v14501_v12, 2  ;;  %14505 = vst [vmem:[#allocation136_spill] sm:$0xff] %v6294_v54  ;;  %v14510_v12 = vld [vmem:[#allocation48_spill] sm:$0xff]  ;;  %14514 = vst [vmem:[#allocation141_spill] sm:$0xff] %v6315_v32  ;;  %v698_v51 = vrot.slane %v6288_v45, 1  ;;  %v704_v31 = vor.u32 %v703_v56, %v702_v2 }
  0x67   : > { %v686_v55 = vor.u32 %v685_v20, %v684_v15  ;;  %v708_v10 = vrot.slane %v14510_v12, 2  ;;  %v6309_v61 = vsel %vm620_vm2, %v659_v46, %v6277_v33  ;;  %v14512_v20 = vld [vmem:[#allocation51_spill] sm:$0xff]  ;;  %v14516_v12 = vld [vmem:[#allocation53_spill] sm:$0xff] }
  0x68   : > { %765 = vrot.lane.b32.xlu0 %v629_v21, %s5593_s20  ;;  %v6298_v21 = vshrl.u32 %v5886_v26, 16  ;;  %14511 = vst [vmem:[#allocation139_spill] sm:$0xff] %v6309_v61  ;;  %v677_v15 = vor.u32 %v676_v41, %v675_v42  ;;  %v693_v53 = vrot.slane %v14512_v20, 1  ;;  %v699_v59 = vrot.slane %v14516_v12, 2  ;;  %v14518_v33 = vld [vmem:[#allocation59_spill] sm:$0xff]  ;;  %v14519_v20 = vld [vmem:[#allocation61_spill] sm:$0xff] }
  0x69   : > { %v721_v41 = vrot.slane %v14518_v33, 2  ;;  %v726_v49 = vrot.slane %v14519_v20, 2  ;;  %v6328_v27 = vsel %vm620_vm2, %v686_v55, %v6300_v35  ;;  %v6330_v57 = vor.u32 %v708_v10, %v707_v22  ;;  %v14524_v33 = vld [vmem:[#allocation64_spill] sm:$0xff]  ;;  %v14525_v20 = vld [vmem:[#allocation67_spill] sm:$0xff] }
  0x6a   : > { %771 = vrot.lane.b32.xlu1 %v6269_v8, %s5593_s20  ;;  %14507 = vst [vmem:[#allocation137_spill] sm:$0xff] %v6298_v21  ;;  %v6313_v8 = vshrl.u32 %v5916_v58, 16  ;;  %v725_v42 = vrot.slane %v6298_v21, 1  ;;  %14520 = vst [vmem:[#allocation142_spill] sm:$0xff] %v6328_v27  ;;  %v6333_v12 = vshrl.u32 %v5941_v62, 16  ;;  %v712_v45 = vrot.slane %v14524_v33, 2 }
  0x6b   : > { %14521 = vst [vmem:[#allocation143_spill] sm:$0xff] %v6330_v57  ;;  %v717_v14 = vrot.slane %v14525_v20, 2  ;;  %v6343_v55 = vsel %vm620_vm2, %v677_v15, %v6315_v32  ;;  %v695_v56 = vor.u32 %v694_v5, %v693_v53  ;;  %v6345_v22 = vor.u32 %v699_v59, %v698_v51  ;;  %v14532_v53 = vld [vmem:[#allocation71_spill] sm:$0xff]  ;;  %v14536_v32 = vld [vmem:[#allocation77_spill] sm:$0xff] }
  0x6c   : > { %769 = vrot.lane.b32.xlu0 %v6283_v47, %s5593_s20  ;;  %14513 = vst [vmem:[#allocation140_spill] sm:$0xff] %v6313_v8  ;;  %v14517_v47 = vld [vmem:[#allocation58_spill] sm:$0xff]  ;;  %14522 = vst [vmem:[#allocation144_spill] sm:$0xff] %v6333_v12  ;;  %v716_v21 = vrot.slane %v6313_v8, 1  ;;  %v6348_v10 = vshrl.u32 %v5961_v17, 16  ;;  %v6352_v35 = vor.u32 %v726_v49, %v725_v42  ;;  %v6358_v15 = vsel %vm620_vm2, %v704_v31, %v6330_v57 }
  0x6d   : > { %v720_v46 = vrot.slane %v14517_v47, 1  ;;  %14526 = vst [vmem:[#allocation145_spill] sm:$0xff] %v6343_v55  ;;  %14527 = vst [vmem:[#allocation146_spill] sm:$0xff] %v6345_v22  ;;  %v14530_v8 = vld [vmem:[#allocation70_spill] sm:$0xff]  ;;  %v743_v5 = vrot.slane %v6333_v12, 1  ;;  %v744_v51 = vrot.slane %v14532_v53, 2  ;;  %v6373_v31 = vsel %vm620_vm2, %v695_v56, %v6345_v22 }
  0x6e   : > { %775 = vrot.lane.b32.xlu1 %v6294_v54, %s5593_s20  ;;  %v14523_v54 = vld [vmem:[#allocation63_spill] sm:$0xff]  ;;  %14528 = vst [vmem:[#allocation147_spill] sm:$0xff] %v6348_v10  ;;  %14529 = vst [vmem:[#allocation148_spill] sm:$0xff] %v6352_v35  ;;  %v739_v20 = vrot.slane %v14530_v8, 2  ;;  %v6363_v59 = vshrl.u32 %v5994_v25, 16  ;;  %v734_v57 = vrot.slane %v6348_v10, 1 }
  0x6f   : > { %v711_v47 = vrot.slane %v14523_v54, 1  ;;  %v722_v2 = vor.u32 %v721_v41, %v720_v46  ;;  %14531 = vst [vmem:[#allocation149_spill] sm:$0xff] %v6358_v15  ;;  %v6367_v46 = vor.u32 %v717_v14, %v716_v21  ;;  %v14535_v41 = vld [vmem:[#allocation76_spill] sm:$0xff]  ;;  %14537 = vst [vmem:[#allocation152_spill] sm:$0xff] %v6373_v31  ;;  %v735_v53 = vrot.slane %v5985_v36, 2  ;;  %v14541_v56 = vld [vmem:[#allocation82_spill] sm:$0xff] }
  0x70   : > { %773 = vrot.lane.b32.xlu0 %v6309_v61, %s5593_s20  ;;  %v738_v61 = vrot.slane %v5948_v18, 1  ;;  %14533 = vst [vmem:[#allocation150_spill] sm:$0xff] %v6363_v59  ;;  %v729_v42 = vrot.slane %v14535_v41, 1  ;;  %v6378_v12 = vshrl.u32 %v6016_v30, 16  ;;  %v6387_v21 = vor.u32 %v744_v51, %v743_v5  ;;  %v14544_v5 = vld [vmem:[#allocation88_spill] sm:$0xff] }
  0x71   : > { %v713_v49 = vor.u32 %v712_v45, %v711_v47  ;;  %14534 = vst [vmem:[#allocation151_spill] sm:$0xff] %v6367_v46  ;;  %v6384_v14 = vsel %vm620_vm2, %v722_v2, %v6352_v35  ;;  %v756_v47 = vrot.slane %v5997_v40, 1  ;;  %v757_v22 = vrot.slane %v14541_v56, 2 }
  0x72   : > { %779 = vrot.lane.b32.xlu1 %v6328_v27, %s5593_s20  ;;  %v730_v27 = vrot.slane %v14536_v32, 2  ;;  %14538 = vst [vmem:[#allocation153_spill] sm:$0xff] %v6378_v12  ;;  %14539 = vst [vmem:[#allocation154_spill] sm:$0xff] %v6384_v14  ;;  %v740_v45 = vor.u32 %v739_v20, %v738_v61  ;;  %v762_v36 = vrot.slane %v6014_v39, 2  ;;  %v747_v61 = vrot.slane %v6023_v7, 1 }
  0x73   : > { %14540 = vst [vmem:[#allocation155_spill] sm:$0xff] %v6387_v21  ;;  %v6399_v20 = vor.u32 %v735_v53, %v734_v57  ;;  %v748_v51 = vrot.slane %v14544_v5, 2  ;;  %v752_v35 = vrot.slane %v6378_v12, 1 }
  0x74   : > { %777 = vrot.lane.b32.xlu0 %v6343_v55, %s5593_s20  ;;  %v761_v55 = vrot.slane %v6363_v59, 1  ;;  %v731_v2 = vor.u32 %v730_v27, %v729_v42  ;;  %v753_v59 = vrot.slane %v6030_v24, 2 }
  0x75   : > { %14543 = vst [vmem:[#allocation157_spill] sm:$0xff] %v6399_v20  ;;  %v749_v27 = vor.u32 %v748_v51, %v747_v61  ;;  %v807_v61 = vrot.slane %v5674_v16, 2  ;;  %v6443_v51 = vrot.slane %v5688_v23, 2 }
  0x76   : > { %783 = vrot.lane.b32.xlu1 %v6358_v15, %s5593_s20  ;;  %v6396_v15 = vsel %vm620_vm2, %v713_v49, %v6367_v46  ;;  %v758_v49 = vor.u32 %v757_v22, %v756_v47  ;;  %v6410_v46 = vor.u32 %v762_v36, %v761_v55  ;;  %v6416_v57 = vsel %vm620_vm2, %v731_v2, %v6399_v20  ;;  %v14550_v22 = vld [vmem:[#allocation15_spill] sm:$0xff] }
  0x77   : > { %14542 = vst [vmem:[#allocation156_spill] sm:$0xff] %v6396_v15  ;;  %14547 = vst [vmem:[#allocation160_spill] sm:$0xff] %v6416_v57  ;;  %v6418_v53 = vor.u32 %v753_v59, %v752_v35  ;;  %v801_v36 = vrot.slane %v14550_v22, 2  ;;  %v802_v55 = vrot.slane %v5710_v37, 2  ;;  %v14552_v35 = vld [vmem:[#allocation4_spill] sm:$0xff]  ;;  %v799_v47 = vrot.slane %v5660_v9, 2 }
  0x78   : > { %781 = vrot.lane.b32.xlu0 %v6373_v31, %s5593_s20  ;;  %v6408_v31 = vsel %vm620_vm2, %v740_v45, %v6387_v21  ;;  %14546 = vst [vmem:[#allocation159_spill] sm:$0xff] %v6410_v46  ;;  %v6424_v42 = vsel %vm620_vm2, %v758_v49, %v6410_v46  ;;  %v798_v59 = vrot.slane %v14552_v35, 2  ;;  %14554 = vst [vmem:[#allocation165_spill] sm:$0xff] %v6443_v51  ;;  %v6458_v46 = vrot.slane %v5733_v48, 2 }
  0x79   : > { %14545 = vst [vmem:[#allocation158_spill] sm:$0xff] %v6408_v31  ;;  %14548 = vst [vmem:[#allocation161_spill] sm:$0xff] %v6418_v53  ;;  %v6432_v45 = vsel %vm620_vm2, %v749_v27, %v6418_v53  ;;  %v6439_v2 = vsel %vm14313_vm3, %v801_v36, %v802_v55  ;;  %v804_v27 = vrot.slane %v5651_v3, 2  ;;  %v13717_v53 = vrot.slane %v5653_v4, 2 }
  0x7a   : > { %787 = vrot.lane.b32.xlu1 %v6384_v14, %s5593_s20  ;;  %14549 = vst [vmem:[#allocation162_spill] sm:$0xff] %v6424_v42  ;;  %14551 = vst [vmem:[#allocation163_spill] sm:$0xff] %v6432_v45  ;;  %v800_v49 = vsel %vm14313_vm3, %v798_v59, %v799_v47  ;;  %v6454_v36 = vsel %vm14313_vm3, %v807_v61, %v6443_v51  ;;  %v813_v55 = vrot.slane %v5712_v38, 2  ;;  %v810_v47 = vrot.slane %v5759_v60, 2 }
  0x7b   : > { %14553 = vst [vmem:[#allocation164_spill] sm:$0xff] %v6439_v2  ;;  %14555 = vst [vmem:[#allocation166_spill] sm:$0xff] %v6454_v36  ;;  %v6464_v59 = vsel %vm14313_vm3, %v804_v27, %v13717_v53  ;;  %v6468_v20 = vrot.slane %v5763_v63, 2  ;;  %v819_v51 = vrot.slane %v5765_v0, 2  ;;  %v816_v53 = vrot.slane %v5802_v34, 2 }
  0x7c   : > { %785 = vrot.lane.b32.xlu0 %v6396_v15, %s5593_s20  ;;  %14556 = vst [vmem:[#allocation167_spill] sm:$0xff] %v6458_v46  ;;  %14557 = vst [vmem:[#allocation168_spill] sm:$0xff] %v6464_v59  ;;  %v6474_v61 = vsel %vm14313_vm3, %v813_v55, %v6458_v46  ;;  %v6488_v21 = vrot.slane %v5811_v43, 2  ;;  %v825_v46 = vrot.slane %v5813_v44, 2  ;;  %v6552_v14 = vrot.slane %v5961_v17, 2 }
  0x7d   : > { %14558 = vst [vmem:[#allocation169_spill] sm:$0xff] %v6468_v20  ;;  %14559 = vst [vmem:[#allocation170_spill] sm:$0xff] %v6474_v61  ;;  %v6484_v27 = vsel %vm14313_vm3, %v810_v47, %v6468_v20  ;;  %v822_v20 = vrot.slane %v5849_v6, 2 }
  0x7e   : > { %791 = vrot.lane.b32.xlu1 %v6408_v31, %s5593_s20  ;;  %14561 = vst [vmem:[#allocation172_spill] sm:$0xff] %v6484_v27  ;;  %14562 = vst [vmem:[#allocation173_spill] sm:$0xff] %v6488_v21  ;;  %v6504_v47 = vsel %vm14313_vm3, %v816_v53, %v6488_v21  ;;  %v14569_v53 = vld [vmem:[#allocation56_spill] sm:$0xff] }
  0x7f   : > { %14565 = vst [vmem:[#allocation176_spill] sm:$0xff] %v6504_v47  ;;  %v828_v21 = vrot.slane %v14569_v53, 2  ;;  %14579 = vst [vmem:[#allocation187_spill] sm:$0xff] %v6552_v14  ;;  %v14593_v53 = vshrl.u32 %v5660_v9, 16 }
  0x80   : > { %789 = vrot.lane.b32.xlu0 %v6416_v57, %s5593_s20  ;;  %v6564_v57 = vrot.slane %v6016_v30, 2  ;;  %v14592_v30 = vld [vmem:[#allocation9_spill] sm:$0xff] }
  0x82   : > { %795 = vrot.lane.b32.xlu1 %v6424_v42, %s5593_s20  ;;  %14584 = vst [vmem:[#allocation190_spill] sm:$0xff] %v6564_v57 }
  0x84   : > { %793 = vrot.lane.b32.xlu0 %v6432_v45, %s5593_s20 }
  0x86   : > { %848 = vrot.lane.b32.xlu1 %v6439_v2, %s5594_s21  ;;  %v6524_v2 = vrot.slane %v5916_v58, 2  ;;  %v880_v58 = vrot.slane %v14592_v30, 3 }
  0x88   : > { %846 = vrot.lane.b32.xlu0 %v800_v49, %s5594_s21  ;;  %v6478_v49 = vrot.slane %v5777_v11, 2  ;;  %14570 = vst [vmem:[#allocation180_spill] sm:$0xff] %v6524_v2 }
  0x8a   : > { %852 = vrot.lane.b32.xlu1 %v6454_v36, %s5594_s21  ;;  %14560 = vst [vmem:[#allocation171_spill] sm:$0xff] %v6478_v49  ;;  %v6494_v55 = vsel %vm14313_vm3, %v819_v51, %v6478_v49  ;;  %v6498_v36 = vrot.slane %v5833_v1, 2  ;;  %v831_v49 = vrot.slane %v5882_v19, 2 }
  0x8b   : > { %14563 = vst [vmem:[#allocation174_spill] sm:$0xff] %v6494_v55 }
  0x8c   : > { %850 = vrot.lane.b32.xlu0 %v6464_v59, %s5594_s21  ;;  %14564 = vst [vmem:[#allocation175_spill] sm:$0xff] %v6498_v36  ;;  %v6514_v51 = vsel %vm14313_vm3, %v825_v46, %v6498_v36  ;;  %v14572_v59 = vld [vmem:[#allocation65_spill] sm:$0xff]  ;;  %v6532_v36 = vrot.slane %v5941_v62, 2 }
  0x8d   : > { %14567 = vst [vmem:[#allocation178_spill] sm:$0xff] %v6514_v51  ;;  %v837_v46 = vrot.slane %v14572_v59, 2 }
  0x8e   : > { %856 = vrot.lane.b32.xlu1 %v6474_v61, %s5594_s21  ;;  %v6508_v61 = vrot.slane %v5859_v50, 2  ;;  %14573 = vst [vmem:[#allocation182_spill] sm:$0xff] %v6532_v36  ;;  %v14603_v50 = vld [vmem:[#allocation6_spill] sm:$0xff] }
  0x8f   : > { %v6536_v42 = vpop.permute.xlu1 %479 }
  0x90   : > { %854 = vrot.lane.b32.xlu0 %v6484_v27, %s5594_s21  ;;  %14566 = vst [vmem:[#allocation177_spill] sm:$0xff] %v6508_v61  ;;  %v6518_v27 = vrot.slane %v5886_v26, 2  ;;  %14574 = vst [vmem:[#allocation183_spill] sm:$0xff] %v6536_v42  ;;  %v14594_v26 = vld [vmem:[#allocation10_spill] sm:$0xff] }
  0x92   : > { %860 = vrot.lane.b32.xlu1 %v6494_v55, %s5594_s21  ;;  %14568 = vst [vmem:[#allocation179_spill] sm:$0xff] %v6518_v27  ;;  %v6528_v55 = vsel %vm14313_vm3, %v822_v20, %v6508_v61  ;;  %v6542_v31 = vsel %vm14313_vm3, %v831_v49, %v6518_v27  ;;  %v6548_v20 = vsel %vm14313_vm3, %v828_v21, %v6524_v2  ;;  %v14578_v61 = vld [vmem:[#allocation72_spill] sm:$0xff]  ;;  %v6560_v49 = vrot.slane %v5994_v25, 2  ;;  %v14583_v27 = vld [vmem:[#allocation83_spill] sm:$0xff]  ;;  %v14586_v2 = vld [vmem:[#allocation17_spill] sm:$0xff] }
  0x93   : > { %14571 = vst [vmem:[#allocation181_spill] sm:$0xff] %v6528_v55  ;;  %14576 = vst [vmem:[#allocation185_spill] sm:$0xff] %v6542_v31  ;;  %v834_v45 = vrot.slane %v14578_v61, 2  ;;  %v6568_v21 = vpop.permute.xlu1 %481  ;;  %v886_v15 = vrot.slane %v14586_v2, 2  ;;  %v14589_v61 = vld [vmem:[#allocation20_spill] sm:$0xff]  ;;  %v900_v2 = vrot.slane %v5695_v28, 2 }
  0x94   : > { %858 = vrot.lane.b32.xlu0 %v6504_v47, %s5594_s21  ;;  %v6538_v47 = vpop.permute.xlu0 %475  ;;  %14577 = vst [vmem:[#allocation186_spill] sm:$0xff] %v6548_v20  ;;  %14582 = vst [vmem:[#allocation189_spill] sm:$0xff] %v6560_v49  ;;  %v890_v25 = vrot.slane %v14589_v61, 3  ;;  %v903_v61 = vrot.slane %v6189_v52, 2 }
  0x95   : > { %14575 = vst [vmem:[#allocation184_spill] sm:$0xff] %v6538_v47  ;;  %v6557_v47 = vsel %vm14313_vm3, %v837_v46, %v6532_v36  ;;  %14585 = vst [vmem:[#allocation191_spill] sm:$0xff] %v6568_v21  ;;  %v14588_v46 = vshrl.u32 %v5710_v37, 16  ;;  %v883_v21 = vrot.slane %v14594_v26, 3 }
  0x96   : > { %864 = vrot.lane.b32.xlu1 %v6514_v51, %s5594_s21  ;;  %v14580_v51 = vld [vmem:[#allocation75_spill] sm:$0xff]  ;;  %14581 = vst [vmem:[#allocation188_spill] sm:$0xff] %v6557_v47 }
  0x97   : > { %v843_v42 = vrot.slane %v14580_v51, 2  ;;  %v14587_v51 = vld [vmem:[#allocation18_spill] sm:$0xff]  ;;  %v889_v36 = vrot.slane %v14588_v46, 2  ;;  %v6594_v26 = vpop.permute.xlu1 %485 }
  0x98   : > { %862 = vrot.lane.b32.xlu0 %v6528_v55, %s5594_s21  ;;  %v840_v55 = vrot.slane %v14583_v27, 2  ;;  %v887_v17 = vrot.slane %v14587_v51, 3  ;;  %v6575_v62 = vpop.permute.xlu0 %477  ;;  %v14591_v27 = vld [vmem:[#allocation8_spill] sm:$0xff]  ;;  %v901_v51 = vrot.slane %v5698_v29, 3  ;;  %v14595_v46 = vld [vmem:[#allocation14_spill] sm:$0xff]  ;;  %14597 = vst [vmem:[#allocation20_spill] sm:$0xff] %v6594_v26 }
  0x99   : > { %14590 = vst [vmem:[#allocation17_spill] sm:$0xff] %v6575_v62  ;;  %v879_v59 = vrot.slane %v14591_v27, 2  ;;  %v904_v62 = vrot.slane %v14595_v46, 3  ;;  %v6590_v27 = vsel %vm14313_vm3, %v834_v45, %v6552_v14  ;;  %v6598_v30 = vsel %vm14313_vm3, %v843_v42, %v6560_v49  ;;  %v14600_v14 = vld [vmem:[#allocation5_spill] sm:$0xff]  ;;  %v14602_v49 = vld [vmem:[#allocation120_spill] sm:$0xff] }
  0x9a   : > { %868 = vrot.lane.b32.xlu1 %v6542_v31, %s5594_s21  ;;  %v882_v31 = vrot.slane %v14593_v53, 2  ;;  %14596 = vst [vmem:[#allocation18_spill] sm:$0xff] %v6590_v27  ;;  %14598 = vst [vmem:[#allocation8_spill] sm:$0xff] %v6598_v30  ;;  %v6602_v53 = vsel %vm14313_vm3, %v840_v55, %v6564_v57  ;;  %v888_v29 = vor.u32 %v887_v17, %v886_v15  ;;  %v893_v45 = vrot.slane %v5666_v13, 2  ;;  %v14604_v57 = vld [vmem:[#allocation22_spill] sm:$0xff]  ;;  %v14607_v13 = vld [vmem:[#allocation25_spill] sm:$0xff] }
  0x9b   : > { %14599 = vst [vmem:[#allocation9_spill] sm:$0xff] %v6602_v53  ;;  %v891_v28 = vor.u32 %v890_v25, %v889_v36  ;;  %v881_v52 = vor.u32 %v880_v58, %v879_v59  ;;  %v905_v42 = vor.u32 %v904_v62, %v903_v61  ;;  %v896_v19 = vrot.slane %v14602_v49, 2  ;;  %v14605_v25 = vld [vmem:[#allocation23_spill] sm:$0xff]  ;;  %v14606_v15 = vld [vmem:[#allocation122_spill] sm:$0xff]  ;;  %v14609_v59 = vld [vmem:[#allocation28_spill] sm:$0xff] }
  0x9c   : > { %866 = vrot.lane.b32.xlu0 %v6548_v20, %s5594_s21  ;;  %v884_v46 = vor.u32 %v883_v21, %v882_v31  ;;  %v894_v20 = vrot.slane %v14600_v14, 3  ;;  %v6608_v26 = vpop.permute.xlu0 %483  ;;  %v897_v55 = vrot.slane %v14603_v50, 3  ;;  %v914_v17 = vrot.slane %v14604_v57, 2  ;;  %v14610_v62 = vld [vmem:[#allocation29_spill] sm:$0xff] }
  0x9d   : > { %14601 = vst [vmem:[#allocation10_spill] sm:$0xff] %v6608_v26  ;;  %v915_v58 = vrot.slane %v14605_v25, 3  ;;  %v917_v31 = vrot.slane %v14606_v15, 2  ;;  %v918_v36 = vrot.slane %v14607_v13, 3  ;;  %v907_v21 = vrot.slane %v14609_v59, 2  ;;  %v14612_v26 = vld [vmem:[#allocation32_spill] sm:$0xff] }
  0x9e   : > { %872 = vrot.lane.b32.xlu1 %v6557_v47, %s5594_s21  ;;  %v902_v47 = vor.u32 %v901_v51, %v900_v2  ;;  %v6618_v14 = vpop.permute.xlu1 %489  ;;  %v908_v2 = vrot.slane %v14610_v62, 3  ;;  %v14611_v51 = vld [vmem:[#allocation124_spill] sm:$0xff]  ;;  %v911_v49 = vrot.slane %v14612_v26, 3  ;;  %v6625_v57 = vsel %vm878_vm4, %v888_v29, %v891_v28  ;;  %v14615_v62 = vld [vmem:[#allocation33_spill] sm:$0xff]  ;;  %v14617_v26 = vld [vmem:[#allocation127_spill] sm:$0xff] }
  0x9f   : > { %14608 = vst [vmem:[#allocation5_spill] sm:$0xff] %v6618_v14  ;;  %v910_v61 = vrot.slane %v14611_v51, 2  ;;  %14613 = vst [vmem:[#allocation192_spill] sm:$0xff] %v6625_v57  ;;  %v885_v25 = vsel %vm878_vm4, %v881_v52, %v884_v46  ;;  %v895_v14 = vor.u32 %v894_v20, %v893_v45  ;;  %v898_v13 = vor.u32 %v897_v55, %v896_v19  ;;  %v14616_v51 = vld [vmem:[#allocation34_spill] sm:$0xff]  ;;  %v14618_v28 = vld [vmem:[#allocation35_spill] sm:$0xff] }
  0xa0   : > { %870 = vrot.lane.b32.xlu0 %v6590_v27, %s5594_s21  ;;  %v6631_v15 = vsel %vm878_vm4, %v902_v47, %v905_v42  ;;  %v6633_v59 = vpop.permute.xlu0 %487  ;;  %v928_v50 = vrot.slane %v14615_v62, 2  ;;  %v931_v27 = vrot.slane %v14617_v26, 2  ;;  %v932_v29 = vrot.slane %v14618_v28, 3  ;;  %v14620_v45 = vld [vmem:[#allocation40_spill] sm:$0xff]  ;;  %v14621_v55 = vld [vmem:[#allocation41_spill] sm:$0xff] }
  0xa1   : > { %14614 = vst [vmem:[#allocation193_spill] sm:$0xff] %v6633_v59  ;;  %v916_v47 = vor.u32 %v915_v58, %v914_v17  ;;  %v919_v46 = vor.u32 %v918_v36, %v917_v31  ;;  %v909_v20 = vor.u32 %v908_v2, %v907_v21  ;;  %v912_v19 = vor.u32 %v911_v49, %v910_v61  ;;  %v14622_v62 = vld [vmem:[#allocation129_spill] sm:$0xff]  ;;  %v14625_v49 = vld [vmem:[#allocation44_spill] sm:$0xff]  ;;  %v14626_v31 = vld [vmem:[#allocation46_spill] sm:$0xff] }
  0xa2   : > { %876 = vrot.lane.b32.xlu1 %v6598_v30, %s5594_s21  ;;  %v929_v30 = vrot.slane %v14616_v51, 3  ;;  %v6641_v52 = vpop.permute.xlu1 %493  ;;  %v921_v42 = vrot.slane %v14620_v45, 2  ;;  %v922_v59 = vrot.slane %v14621_v55, 3  ;;  %v924_v51 = vrot.slane %v14622_v62, 2  ;;  %v14627_v21 = vld [vmem:[#allocation132_spill] sm:$0xff]  ;;  %v14636_v62 = vld [vmem:[#allocation59_spill] sm:$0xff] }
  0xa3   : > { %14619 = vst [vmem:[#allocation194_spill] sm:$0xff] %v6641_v52  ;;  %v933_v17 = vor.u32 %v932_v29, %v931_v27  ;;  %v942_v58 = vrot.slane %v14625_v49, 2  ;;  %v943_v36 = vrot.slane %v14626_v31, 3  ;;  %v945_v2 = vrot.slane %v14627_v21, 2  ;;  %v14628_v61 = vld [vmem:[#allocation48_spill] sm:$0xff]  ;;  %v14632_v31 = vld [vmem:[#allocation135_spill] sm:$0xff] }
  0xa4   : > { %874 = vrot.lane.b32.xlu0 %v6602_v53, %s5594_s21  ;;  %v14623_v53 = vld [vmem:[#allocation42_spill] sm:$0xff]  ;;  %v6648_v28 = vpop.permute.xlu0 %491  ;;  %v930_v52 = vor.u32 %v929_v30, %v928_v50  ;;  %v946_v55 = vrot.slane %v14628_v61, 3  ;;  %v923_v50 = vor.u32 %v922_v59, %v921_v42  ;;  %v14630_v30 = vld [vmem:[#allocation51_spill] sm:$0xff]  ;;  %v14631_v29 = vld [vmem:[#allocation52_spill] sm:$0xff]  ;;  %v938_v49 = vrot.slane %v14632_v31, 2 }
  0xa5   : > { %v925_v26 = vrot.slane %v14623_v53, 3  ;;  %14624 = vst [vmem:[#allocation195_spill] sm:$0xff] %v6648_v28  ;;  %v936_v28 = vrot.slane %v14631_v29, 3  ;;  %v14633_v21 = vld [vmem:[#allocation53_spill] sm:$0xff]  ;;  %v944_v29 = vor.u32 %v943_v36, %v942_v58  ;;  %v14641_v53 = vld [vmem:[#allocation67_spill] sm:$0xff] }
  0xa6   : > { %993 = vrot.lane.b32.xlu1 %v6625_v57, %s5595_s22  ;;  %v6651_v57 = vsel %vm878_vm4, %v895_v14, %v898_v13  ;;  %v6665_v13 = vsel %vm878_vm4, %v909_v20, %v912_v19  ;;  %v935_v14 = vrot.slane %v14630_v30, 2  ;;  %v939_v61 = vrot.slane %v14633_v21, 3  ;;  %v14637_v19 = vld [vmem:[#allocation137_spill] sm:$0xff]  ;;  %v14640_v21 = vld [vmem:[#allocation140_spill] sm:$0xff] }
  0xa7   : > { %v926_v27 = vor.u32 %v925_v26, %v924_v51  ;;  %v957_v20 = vrot.slane %v14636_v62, 3  ;;  %v959_v59 = vrot.slane %v14637_v19, 2  ;;  %v14638_v26 = vld [vmem:[#allocation61_spill] sm:$0xff]  ;;  %v6682_v42 = vsel %vm878_vm4, %v930_v52, %v933_v17 }
  0xa8   : > { %991 = vrot.lane.b32.xlu0 %v885_v25, %s5595_s22  ;;  %v6662_v25 = vsel %vm878_vm4, %v916_v47, %v919_v46  ;;  %v14635_v47 = vld [vmem:[#allocation58_spill] sm:$0xff]  ;;  %v960_v51 = vrot.slane %v14638_v26, 3  ;;  %v947_v30 = vor.u32 %v946_v55, %v945_v2  ;;  %v952_v62 = vrot.slane %v14640_v21, 2  ;;  %v14644_v21 = vld [vmem:[#allocation71_spill] sm:$0xff] }
  0xa9   : > { %v6659_v45 = vpop.permute.xlu1 %497  ;;  %v956_v46 = vrot.slane %v14635_v47, 2  ;;  %v950_v47 = vrot.slane %v14524_v33, 3  ;;  %v953_v19 = vrot.slane %v14641_v53, 3  ;;  %v6693_v26 = vsel %vm878_vm4, %v923_v50, %v926_v27  ;;  %v14643_v33 = vld [vmem:[#allocation144_spill] sm:$0xff] }
  0xaa   : > { %997 = vrot.lane.b32.xlu1 %v6631_v15, %s5595_s22  ;;  %14629 = vst [vmem:[#allocation196_spill] sm:$0xff] %v6659_v45  ;;  %v937_v52 = vor.u32 %v936_v28, %v935_v14  ;;  %v940_v17 = vor.u32 %v939_v61, %v938_v49  ;;  %v961_v55 = vor.u32 %v960_v51, %v959_v59  ;;  %v970_v2 = vrot.slane %v5948_v18, 2 }
  0xab   : > { %v958_v58 = vor.u32 %v957_v20, %v956_v46  ;;  %v974_v53 = vrot.slane %v14644_v21, 3  ;;  %v6704_v50 = vsel %vm878_vm4, %v944_v29, %v947_v30  ;;  %v954_v49 = vor.u32 %v953_v19, %v952_v62  ;;  %v14646_v20 = vld [vmem:[#allocation78_spill] sm:$0xff] }
  0xac   : > { %995 = vrot.lane.b32.xlu0 %v6651_v57, %s5595_s22  ;;  %v6673_v45 = vpop.permute.xlu0 %495  ;;  %v963_v27 = vrot.slane %v14535_v41, 2  ;;  %v964_v14 = vrot.slane %v14536_v32, 3  ;;  %v966_v46 = vrot.slane %v6348_v10, 2  ;;  %v967_v59 = vrot.slane %v14646_v20, 3  ;;  %v14725_v41 = vld [vmem:[#allocation66_spill] sm:$0xff] }
  0xad   : > { %14634 = vst [vmem:[#allocation197_spill] sm:$0xff] %v6673_v45  ;;  %v949_v45 = vrot.slane %v14523_v54, 2  ;;  %v973_v54 = vrot.slane %v14643_v33, 2  ;;  %v6715_v51 = vsel %vm878_vm4, %v937_v52, %v940_v17  ;;  %v6722_v62 = vsel %vm878_vm4, %v958_v58, %v961_v55  ;;  %v14737_v21 = vld [vmem:[#allocation74_spill] sm:$0xff] }
  0xae   : > { %1001 = vrot.lane.b32.xlu1 %v6662_v25, %s5595_s22  ;;  %v6684_v31 = vpop.permute.xlu1 %501  ;;  %v985_v19 = vrot.slane %v14541_v56, 3  ;;  %v965_v58 = vor.u32 %v964_v14, %v963_v27  ;;  %v968_v55 = vor.u32 %v967_v59, %v966_v46 }
  0xaf   : > { %14639 = vst [vmem:[#allocation198_spill] sm:$0xff] %v6684_v31  ;;  %v971_v31 = vrot.slane %v14530_v8, 3  ;;  %v951_v28 = vor.u32 %v950_v47, %v949_v45  ;;  %v975_v29 = vor.u32 %v974_v53, %v973_v54  ;;  %v984_v47 = vrot.slane %v5997_v40, 2  ;;  %v14684_v40 = vld [vmem:[#allocation80_spill] sm:$0xff] }
  0xb0   : > { %999 = vrot.lane.b32.xlu0 %v6665_v13, %s5595_s22  ;;  %v988_v8 = vrot.slane %v6014_v39, 3  ;;  %v977_v54 = vrot.slane %v6023_v7, 2  ;;  %v978_v53 = vrot.slane %v14544_v5, 3  ;;  %v6751_v14 = vsel %vm878_vm4, %v965_v58, %v968_v55  ;;  %v14733_v39 = vld [vmem:[#allocation60_spill] sm:$0xff] }
  0xb1   : > { %v972_v45 = vor.u32 %v971_v31, %v970_v2  ;;  %v6733_v17 = vsel %vm878_vm4, %v951_v28, %v954_v49  ;;  %v980_v31 = vrot.slane %v6378_v12, 2  ;;  %v981_v2 = vrot.slane %v6030_v24, 3 }
  0xb2   : > { %v6695_v36 = vpop.permute.xlu0 %499  ;;  %1005 = vrot.lane.b32.xlu1 %v6682_v42, %s5595_s22  ;;  %v986_v28 = vor.u32 %v985_v19, %v984_v47  ;;  %v979_v46 = vor.u32 %v978_v53, %v977_v54  ;;  %v1024_v19 = vrot.slane %v14552_v35, 3  ;;  %v1025_v58 = vrot.slane %v5660_v9, 3 }
  0xb3   : > { %14642 = vst [vmem:[#allocation199_spill] sm:$0xff] %v6695_v36  ;;  %v982_v59 = vor.u32 %v981_v2, %v980_v31  ;;  %v1033_v54 = vrot.slane %v5674_v16, 3  ;;  %v1034_v53 = vrot.slane %v5688_v23, 3  ;;  %v1030_v9 = vrot.slane %v5651_v3, 3 }
  0xb4   : > { %1003 = vrot.lane.b32.xlu0 %v6693_v26, %s5595_s22  ;;  %v6708_v61 = vpop.permute.xlu1 %505  ;;  %v1026_v2 = vsel %vm14312_vm5, %v1024_v19, %v1025_v58  ;;  %v1036_v58 = vrot.slane %v5759_v60, 3  ;;  %v1070_v7 = vrot.slane %v14684_v40, 3  ;;  %v14721_v40 = vld [vmem:[#allocation57_spill] sm:$0xff] }
  0xb5   : > { %14645 = vst [vmem:[#allocation200_spill] sm:$0xff] %v6708_v61  ;;  %v14648_v61 = vld [vmem:[#allocation150_spill] sm:$0xff]  ;;  %v6767_v47 = vsel %vm878_vm4, %v979_v46, %v982_v59  ;;  %v6792_v46 = vsel %vm14312_vm5, %v1033_v54, %v1034_v53  ;;  %v1039_v59 = vrot.slane %v5712_v38, 3  ;;  %v1045_v53 = vrot.slane %v5765_v0, 3 }
  0xb6   : > { %v6717_v30 = vpop.permute.xlu0 %503  ;;  %1009 = vrot.lane.b32.xlu1 %v6704_v50, %s5595_s22  ;;  %v987_v36 = vrot.slane %v14648_v61, 2 }
  0xb7   : > { %14647 = vst [vmem:[#allocation201_spill] sm:$0xff] %v6717_v30 }
  0xb8   : > { %1007 = vrot.lane.b32.xlu0 %v6715_v51, %s5595_s22  ;;  %v6730_v52 = vpop.permute.xlu1 %590  ;;  %v989_v49 = vor.u32 %v988_v8, %v987_v36  ;;  %v1027_v8 = vrot.slane %v14550_v22, 3  ;;  %v1028_v36 = vrot.slane %v5710_v37, 3 }
  0xb9   : > { %14649 = vst [vmem:[#allocation202_spill] sm:$0xff] %v6730_v52  ;;  %v6744_v52 = vsel %vm878_vm4, %v972_v45, %v975_v29 }
  0xba   : > { %v6739_v30 = vpop.permute.xlu0 %588  ;;  %1013 = vrot.lane.b32.xlu1 %v6722_v62, %s5595_s22  ;;  %v6758_v45 = vsel %vm878_vm4, %v986_v28, %v989_v49  ;;  %v6776_v37 = vsel %vm14312_vm5, %v1027_v8, %v1028_v36  ;;  %v1031_v28 = vrot.slane %v5653_v4, 3  ;;  %v1040_v8 = vrot.slane %v5733_v48, 3 }
  0xbb   : > { %14650 = vst [vmem:[#allocation203_spill] sm:$0xff] %v6739_v30  ;;  %v1037_v30 = vrot.slane %v5763_v63, 3 }
  0xbc   : > { %1011 = vrot.lane.b32.xlu0 %v6733_v17, %s5595_s22  ;;  %v6748_v27 = vpop.permute.xlu1 %594  ;;  %v6800_v19 = vsel %vm14312_vm5, %v1030_v9, %v1031_v28  ;;  %v6809_v54 = vsel %vm14312_vm5, %v1039_v59, %v1040_v8  ;;  %v1051_v8 = vrot.slane %v5813_v44, 3 }
  0xbd   : > { %14651 = vst [vmem:[#allocation204_spill] sm:$0xff] %v6748_v27  ;;  %v6818_v28 = vsel %vm14312_vm5, %v1036_v58, %v1037_v30  ;;  %v14668_v27 = vld [vmem:[#allocation55_spill] sm:$0xff] }
  0xbe   : > { %v6753_v56 = vpop.permute.xlu0 %592  ;;  %1017 = vrot.lane.b32.xlu1 %v6744_v52, %s5595_s22 }
  0xbf   : > { %14652 = vst [vmem:[#allocation205_spill] sm:$0xff] %v6753_v56 }
  0xc0   : > { %1015 = vrot.lane.b32.xlu0 %v6751_v14, %s5595_s22  ;;  %v6764_v29 = vpop.permute.xlu1 %598 }
  0xc1   : > { %14653 = vst [vmem:[#allocation206_spill] sm:$0xff] %v6764_v29 }
  0xc2   : > { %v6771_v55 = vpop.permute.xlu0 %596  ;;  %1021 = vrot.lane.b32.xlu1 %v6758_v45, %s5595_s22 }
  0xc3   : > { %14654 = vst [vmem:[#allocation207_spill] sm:$0xff] %v6771_v55 }
  0xc4   : > { %1019 = vrot.lane.b32.xlu0 %v6767_v47, %s5595_s22  ;;  %v6782_v31 = vpop.permute.xlu1 %602 }
  0xc5   : > { %14655 = vst [vmem:[#allocation208_spill] sm:$0xff] %v6782_v31  ;;  %v1052_v31 = vrot.slane %v5833_v1, 3  ;;  %v1058_v1 = vrot.slane %v14668_v27, 3 }
  0xc6   : > { %v6787_v49 = vpop.permute.xlu0 %600  ;;  %1074 = vrot.lane.b32.xlu1 %v6776_v37, %s5596_s23 }
  0xc7   : > { %14656 = vst [vmem:[#allocation209_spill] sm:$0xff] %v6787_v49 }
  0xc8   : > { %1072 = vrot.lane.b32.xlu0 %v1026_v2, %s5596_s23  ;;  %v6797_v36 = vpop.permute.xlu1 %606  ;;  %v1046_v2 = vrot.slane %v5777_v11, 3  ;;  %v14672_v11 = vld [vmem:[#allocation62_spill] sm:$0xff] }
  0xc9   : > { %14657 = vst [vmem:[#allocation210_spill] sm:$0xff] %v6797_v36  ;;  %v1043_v36 = vrot.slane %v5811_v43, 3  ;;  %v14676_v43 = vld [vmem:[#allocation68_spill] sm:$0xff] }
  0xca   : > { %v6804_v35 = vpop.permute.xlu0 %604  ;;  %1078 = vrot.lane.b32.xlu1 %v6792_v46, %s5596_s23  ;;  %v6827_v59 = vsel %vm14312_vm5, %v1045_v53, %v1046_v2  ;;  %v6845_v53 = vsel %vm14312_vm5, %v1051_v8, %v1052_v31  ;;  %v14667_v2 = vld [vmem:[#allocation54_spill] sm:$0xff]  ;;  %v14675_v8 = vld [vmem:[#allocation65_spill] sm:$0xff]  ;;  %v1064_v23 = vrot.slane %v14676_v43, 3 }
  0xcb   : > { %14658 = vst [vmem:[#allocation211_spill] sm:$0xff] %v6804_v35  ;;  %v1042_v35 = vrot.slane %v5802_v34, 3  ;;  %14661 = vst [vmem:[#allocation214_spill] sm:$0xff] %v6827_v59  ;;  %v1057_v56 = vrot.slane %v14667_v2, 3  ;;  %v1063_v27 = vrot.slane %v14675_v8, 3 }
  0xcc   : > { %1076 = vrot.lane.b32.xlu0 %v6800_v19, %s5596_s23  ;;  %v6815_v9 = vpop.permute.xlu1 %610  ;;  %14666 = vst [vmem:[#allocation218_spill] sm:$0xff] %v6845_v53 }
  0xcd   : > { %14659 = vst [vmem:[#allocation212_spill] sm:$0xff] %v6815_v9  ;;  %v6836_v58 = vsel %vm14312_vm5, %v1042_v35, %v1043_v36  ;;  %v14664_v9 = vld [vmem:[#allocation49_spill] sm:$0xff]  ;;  %v6863_v31 = vsel %vm14312_vm5, %v1057_v56, %v1058_v1  ;;  %v6881_v1 = vsel %vm14312_vm5, %v1063_v27, %v1064_v23  ;;  %v14683_v56 = vld [vmem:[#allocation75_spill] sm:$0xff] }
  0xce   : > { %v6822_v49 = vpop.permute.xlu0 %608  ;;  %1082 = vrot.lane.b32.xlu1 %v6809_v54, %s5596_s23  ;;  %14663 = vst [vmem:[#allocation216_spill] sm:$0xff] %v6836_v58  ;;  %v1049_v55 = vrot.slane %v14664_v9, 3  ;;  %v1055_v9 = vrot.slane %v14672_v11, 3  ;;  %14674 = vst [vmem:[#allocation222_spill] sm:$0xff] %v6863_v31  ;;  %v14680_v11 = vld [vmem:[#allocation73_spill] sm:$0xff]  ;;  %v1069_v43 = vrot.slane %v14683_v56, 3 }
  0xcf   : > { %14660 = vst [vmem:[#allocation213_spill] sm:$0xff] %v6822_v49  ;;  %v1048_v49 = vrot.slane %v5849_v6, 3  ;;  %v1061_v63 = vrot.slane %v14680_v11, 3  ;;  %14682 = vst [vmem:[#allocation226_spill] sm:$0xff] %v6881_v1  ;;  %v14688_v11 = vld [vmem:[#allocation86_spill] sm:$0xff] }
  0xd0   : > { %1080 = vrot.lane.b32.xlu0 %v6818_v28, %s5596_s23  ;;  %v6833_v30 = vpop.permute.xlu1 %614  ;;  %v1067_v32 = vrot.slane %v14688_v11, 3  ;;  %v6899_v23 = vsel %vm14312_vm5, %v1069_v43, %v1070_v7  ;;  %v14722_v11 = vld [vmem:[#allocation37_spill] sm:$0xff] }
  0xd1   : > { %14662 = vst [vmem:[#allocation215_spill] sm:$0xff] %v6833_v30  ;;  %v6854_v36 = vsel %vm14312_vm5, %v1048_v49, %v1049_v55  ;;  %v14671_v30 = vld [vmem:[#allocation56_spill] sm:$0xff]  ;;  %14690 = vst [vmem:[#allocation230_spill] sm:$0xff] %v6899_v23 }
  0xd2   : > { %v6840_v29 = vpop.permute.xlu0 %612  ;;  %1086 = vrot.lane.b32.xlu1 %v6827_v59, %s5596_s23  ;;  %14670 = vst [vmem:[#allocation220_spill] sm:$0xff] %v6854_v36 }
  0xd3   : > { %14665 = vst [vmem:[#allocation217_spill] sm:$0xff] %v6840_v29  ;;  %v1054_v29 = vrot.slane %v14671_v30, 3 }
  0xd4   : > { %1084 = vrot.lane.b32.xlu0 %v6836_v58, %s5596_s23  ;;  %v6851_v35 = vpop.permute.xlu1 %618 }
  0xd5   : > { %14669 = vst [vmem:[#allocation219_spill] sm:$0xff] %v6851_v35  ;;  %v6872_v49 = vsel %vm14312_vm5, %v1054_v29, %v1055_v9  ;;  %v14679_v35 = vld [vmem:[#allocation72_spill] sm:$0xff] }
  0xd6   : > { %v6858_v48 = vpop.permute.xlu0 %616  ;;  %1090 = vrot.lane.b32.xlu1 %v6845_v53, %s5596_s23  ;;  %14678 = vst [vmem:[#allocation224_spill] sm:$0xff] %v6872_v49 }
  0xd7   : > { %14673 = vst [vmem:[#allocation221_spill] sm:$0xff] %v6858_v48  ;;  %v1060_v48 = vrot.slane %v14679_v35, 3 }
  0xd8   : > { %1088 = vrot.lane.b32.xlu0 %v6854_v36, %s5596_s23  ;;  %v6869_v55 = vpop.permute.xlu1 %767 }
  0xd9   : > { %14677 = vst [vmem:[#allocation223_spill] sm:$0xff] %v6869_v55  ;;  %v6890_v9 = vsel %vm14312_vm5, %v1060_v48, %v1061_v63  ;;  %v14687_v55 = vld [vmem:[#allocation83_spill] sm:$0xff] }
  0xda   : > { %v6876_v5 = vpop.permute.xlu0 %765  ;;  %1094 = vrot.lane.b32.xlu1 %v6863_v31, %s5596_s23  ;;  %14686 = vst [vmem:[#allocation228_spill] sm:$0xff] %v6890_v9 }
  0xdb   : > { %14681 = vst [vmem:[#allocation225_spill] sm:$0xff] %v6876_v5  ;;  %v1066_v5 = vrot.slane %v14687_v55, 3 }
  0xdc   : > { %1092 = vrot.lane.b32.xlu0 %v6872_v49, %s5596_s23  ;;  %v6887_v29 = vpop.permute.xlu1 %771 }
  0xdd   : > { %14685 = vst [vmem:[#allocation227_spill] sm:$0xff] %v6887_v29  ;;  %v6906_v48 = vsel %vm14312_vm5, %v1066_v5, %v1067_v32  ;;  %v14718_v29 = vld [vmem:[#allocation24_spill] sm:$0xff] }
  0xde   : > { %v6894_v18 = vpop.permute.xlu0 %769  ;;  %1098 = vrot.lane.b32.xlu1 %v6881_v1, %s5596_s23  ;;  %14692 = vst [vmem:[#allocation232_spill] sm:$0xff] %v6906_v48 }
  0xdf   : > { %14689 = vst [vmem:[#allocation229_spill] sm:$0xff] %v6894_v18 }
  0xe0   : > { %1096 = vrot.lane.b32.xlu0 %v6890_v9, %s5596_s23  ;;  %v6903_v27 = vpop.permute.xlu1 %775 }
  0xe1   : > { %14691 = vst [vmem:[#allocation231_spill] sm:$0xff] %v6903_v27  ;;  %v14717_v27 = vld [vmem:[#allocation45_spill] sm:$0xff] }
  0xe2   : > { %v6908_v63 = vpop.permute.xlu0 %773  ;;  %1102 = vrot.lane.b32.xlu1 %v6899_v23, %s5596_s23 }
  0xe3   : > { %14693 = vst [vmem:[#allocation233_spill] sm:$0xff] %v6908_v63 }
  0xe4   : > { %1100 = vrot.lane.b32.xlu0 %v6906_v48, %s5596_s23  ;;  %v6914_v18 = vpop.permute.xlu1 %779 }
  0xe5   : > { %14694 = vst [vmem:[#allocation234_spill] sm:$0xff] %v6914_v18  ;;  %v221_v18 = vld [vmem:[%s5646_s17 + $0x188] sm:$0xff] }
  0xe6   : > { %v6916_v43 = vpop.permute.xlu0 %777  ;;  %1107 = vrot.lane.b32.xlu1 %v5651_v3, %s5597_s24 }
  0xe7   : > { %14695 = vst [vmem:[#allocation235_spill] sm:$0xff] %v6916_v43 }
  0xe8   : > { %1105 = vrot.lane.b32.xlu0 %v14550_v22, %s5597_s24  ;;  %v6922_v7 = vpop.permute.xlu1 %783 }
  0xe9   : > { %14696 = vst [vmem:[#allocation236_spill] sm:$0xff] %v6922_v7 }
  0xea   : > { %v6924_v32 = vpop.permute.xlu0 %781  ;;  %1111 = vrot.lane.b32.xlu1 %v5759_v60, %s5597_s24 }
  0xeb   : > { %14697 = vst [vmem:[#allocation237_spill] sm:$0xff] %v6924_v32 }
  0xec   : > { %1109 = vrot.lane.b32.xlu0 %v5674_v16, %s5597_s24  ;;  %v6930_v5 = vpop.permute.xlu1 %787 }
  0xed   : > { %14698 = vst [vmem:[#allocation238_spill] sm:$0xff] %v6930_v5 }
  0xee   : > { %v6932_v43 = vpop.permute.xlu0 %785  ;;  %1115 = vrot.lane.b32.xlu1 %v5802_v34, %s5597_s24 }
  0xef   : > { %14699 = vst [vmem:[#allocation239_spill] sm:$0xff] %v6932_v43 }
  0xf0   : > { %1113 = vrot.lane.b32.xlu0 %v5712_v38, %s5597_s24  ;;  %v6938_v22 = vpop.permute.xlu1 %791 }
  0xf1   : > { %14700 = vst [vmem:[#allocation240_spill] sm:$0xff] %v6938_v22 }
  0xf2   : > { %v6940_v32 = vpop.permute.xlu0 %789  ;;  %1119 = vrot.lane.b32.xlu1 %v5849_v6, %s5597_s24 }
  0xf3   : > { %14701 = vst [vmem:[#allocation241_spill] sm:$0xff] %v6940_v32  ;;  %v220_v32 = vld [vmem:[%s5646_s17 + $0x180] sm:$0xff] }
  0xf4   : > { %1117 = vrot.lane.b32.xlu0 %v5765_v0, %s5597_s24  ;;  %v6946_v5 = vpop.permute.xlu1 %795  ;;  %v6970_v63 = vpack.c.bf16 %v221_v18, %v220_v32  ;;  %v14713_v18 = vld [vmem:[#allocation19_spill] sm:$0xff] }
  0xf5   : > { %14702 = vst [vmem:[#allocation242_spill] sm:$0xff] %v6946_v5  ;;  %v14714_v32 = vld [vmem:[#allocation31_spill] sm:$0xff] }
  0xf6   : > { %v6948_v7 = vpop.permute.xlu0 %793  ;;  %1123 = vrot.lane.b32.xlu1 %v14671_v30, %s5597_s24  ;;  %14708 = vst [vmem:[#allocation248_spill] sm:$0xff] %v6970_v63 }
  0xf7   : > { %14703 = vst [vmem:[#allocation243_spill] sm:$0xff] %v6948_v7 }
  0xf8   : > { %1121 = vrot.lane.b32.xlu0 %v5813_v44, %s5597_s24  ;;  %v6954_v43 = vpop.permute.xlu1 %848 }
  0xf9   : > { %14704 = vst [vmem:[#allocation244_spill] sm:$0xff] %v6954_v43 }
  0xfa   : > { %v6956_v22 = vpop.permute.xlu0 %846  ;;  %1127 = vrot.lane.b32.xlu1 %v14679_v35, %s5597_s24 }
  0xfb   : > { %14705 = vst [vmem:[#allocation245_spill] sm:$0xff] %v6956_v22 }
  0xfc   : > { %1125 = vrot.lane.b32.xlu0 %v14667_v2, %s5597_s24  ;;  %v6964_v5 = vpop.permute.xlu1 %852 }
  0xfd   : > { %14706 = vst [vmem:[#allocation246_spill] sm:$0xff] %v6964_v5 }
  0xfe   : > { %v6966_v7 = vpop.permute.xlu0 %850  ;;  %1131 = vrot.lane.b32.xlu1 %v14687_v55, %s5597_s24 }
  0xff   : > { %14707 = vst [vmem:[#allocation247_spill] sm:$0xff] %v6966_v7 }
 0x100   : > { %1129 = vrot.lane.b32.xlu0 %v14675_v8, %s5597_s24  ;;  %v6974_v43 = vpop.permute.xlu1 %856 }
 0x101   : > { %14709 = vst [vmem:[#allocation249_spill] sm:$0xff] %v6974_v43 }
 0x102   : > { %v6976_v22 = vpop.permute.xlu0 %854  ;;  %1135 = vrot.lane.b32.xlu1 %v6970_v63, %s5597_s24 }
 0x103   : > { %14710 = vst [vmem:[#allocation250_spill] sm:$0xff] %v6976_v22 }
 0x104   : > { %1133 = vrot.lane.b32.xlu0 %v14683_v56, %s5597_s24  ;;  %v6982_v7 = vpop.permute.xlu1 %860 }
 0x105   : > { %14711 = vst [vmem:[#allocation251_spill] sm:$0xff] %v6982_v7 }
 0x106   : > { %v6984_v5 = vpop.permute.xlu0 %858  ;;  %1151 = vrot.lane.b32.xlu1 %v14713_v18, %s5598_s25  ;;  %v14806_v18 = vld [vmem:[#allocation163_spill] sm:$0xff] }
 0x107   : > { %14712 = vst [vmem:[#allocation252_spill] sm:$0xff] %v6984_v5 }
 0x108   : > { %1149 = vrot.lane.b32.xlu0 %v14714_v32, %s5598_s25  ;;  %v6990_v43 = vpop.permute.xlu1 %864 }
 0x109   : > { %14715 = vst [vmem:[#allocation31_spill] sm:$0xff] %v6990_v43  ;;  %v222_v43 = vld [vmem:[%s5646_s17 + $0x190] sm:$0x3f] }
 0x10a   : > { %v6992_v22 = vpop.permute.xlu0 %862  ;;  %1155 = vrot.lane.b32.xlu1 %v14717_v27, %s5598_s25  ;;  %v7013_v4 = vpack.c.bf16 %v222_v43, %v222_v43 }
 0x10b   : > { %14716 = vst [vmem:[#allocation253_spill] sm:$0xff] %v6992_v22 }
 0x10c   : > { %1153 = vrot.lane.b32.xlu0 %v14718_v29, %s5598_s25  ;;  %v6998_v7 = vpop.permute.xlu1 %868  ;;  %v7031_v43 = vshll.u32 %v7013_v4, 16 }
 0x10d   : > { %14719 = vst [vmem:[#allocation24_spill] sm:$0xff] %v6998_v7  ;;  %v7016_v7 = vshll.u32 %v6970_v63, 16 }
 0x10e   : > { %v7000_v5 = vpop.permute.xlu0 %866  ;;  %1159 = vrot.lane.b32.xlu1 %v14721_v40, %s5598_s25  ;;  %14732 = vst [vmem:[#allocation261_spill] sm:$0xff] %v7031_v43  ;;  %v13822_v33 = vrot.slane %v7031_v43, 1 }
 0x10f   : > { %14720 = vst [vmem:[#allocation254_spill] sm:$0xff] %v7000_v5  ;;  %14726 = vst [vmem:[#allocation257_spill] sm:$0xff] %v7016_v7  ;;  %v14727_v5 = vld [vmem:[#allocation50_spill] sm:$0xff]  ;;  %v1142_v61 = vrot.slane %v7016_v7, 1 }
 0x110   : > { %1157 = vrot.lane.b32.xlu0 %v14722_v11, %s5598_s25  ;;  %v7006_v32 = vpop.permute.xlu1 %872 }
 0x111   : > { %14723 = vst [vmem:[#allocation255_spill] sm:$0xff] %v7006_v32  ;;  %v14730_v32 = vld [vmem:[#allocation79_spill] sm:$0xff] }
 0x112   : > { %v7009_v22 = vpop.permute.xlu0 %870  ;;  %1163 = vrot.lane.b32.xlu1 %v14725_v41, %s5598_s25 }
 0x113   : > { %14724 = vst [vmem:[#allocation256_spill] sm:$0xff] %v7009_v22  ;;  %v7027_v22 = vshrl.u32 %v6970_v63, 16 }
 0x114   : > { %1161 = vrot.lane.b32.xlu0 %v14727_v5, %s5598_s25  ;;  %v7020_v12 = vpop.permute.xlu1 %876  ;;  %v14803_v5 = vld [vmem:[#allocation154_spill] sm:$0xff] }
 0x115   : > { %14728 = vst [vmem:[#allocation258_spill] sm:$0xff] %v7020_v12  ;;  %14731 = vst [vmem:[#allocation260_spill] sm:$0xff] %v7027_v22  ;;  %v1143_v12 = vor.u32 %v1142_v61, %v7027_v22 }
 0x116   : > { %v7022_v24 = vpop.permute.xlu0 %874  ;;  %1167 = vrot.lane.b32.xlu1 %v14730_v32, %s5598_s25 }
 0x117   : > { %14729 = vst [vmem:[#allocation259_spill] sm:$0xff] %v7022_v24  ;;  %v14736_v24 = vld [vmem:[#allocation90_spill] sm:$0xff] }
 0x118   : > { %1165 = vrot.lane.b32.xlu0 %v14733_v39, %s5598_s25  ;;  %v7035_v10 = vpop.permute.xlu1 %993  ;;  %v14740_v39 = vld [vmem:[#allocation92_spill] sm:$0xff] }
 0x119   : > { %14734 = vst [vmem:[#allocation262_spill] sm:$0xff] %v7035_v10  ;;  %v7054_v10 = vsel %vm282_vm0, %v1143_v12, %v13822_v33  ;;  %v14748_v12 = vld [vmem:[#allocation97_spill] sm:$0xff] }
 0x11a   : > { %v7037_v20 = vpop.permute.xlu0 %991  ;;  %1171 = vrot.lane.b32.xlu1 %v14736_v24, %s5598_s25  ;;  %14741 = vst [vmem:[#allocation266_spill] sm:$0xff] %v7054_v10  ;;  %v14749_v33 = vld [vmem:[#allocation93_spill] sm:$0xff] }
 0x11b   : > { %14735 = vst [vmem:[#allocation263_spill] sm:$0xff] %v7037_v20  ;;  %v14742_v20 = vld [vmem:[#allocation84_spill] sm:$0xff] }
 0x11c   : > { %1169 = vrot.lane.b32.xlu0 %v14737_v21, %s5598_s25  ;;  %v7045_v32 = vpop.permute.xlu1 %997 }
 0x11d   : > { %14738 = vst [vmem:[#allocation264_spill] sm:$0xff] %v7045_v32  ;;  %v14745_v32 = vld [vmem:[#allocation91_spill] sm:$0xff] }
 0x11e   : > { %v7047_v41 = vpop.permute.xlu0 %995  ;;  %1175 = vrot.lane.b32.xlu1 %v14740_v39, %s5598_s25 }
 0x11f   : > { %14739 = vst [vmem:[#allocation265_spill] sm:$0xff] %v7047_v41 }
 0x120   : > { %1173 = vrot.lane.b32.xlu0 %v14742_v20, %s5598_s25  ;;  %v7058_v61 = vpop.permute.xlu1 %1001  ;;  %v14756_v20 = vld [vmem:[#allocation105_spill] sm:$0xff] }
 0x121   : > { %14743 = vst [vmem:[#allocation267_spill] sm:$0xff] %v7058_v61 }
 0x122   : > { %v7060_v24 = vpop.permute.xlu0 %999  ;;  %1179 = vrot.lane.b32.xlu1 %v7054_v10, %s5598_s25  ;;  %v14752_v10 = vld [vmem:[#allocation101_spill] sm:$0xff] }
 0x123   : > { %14744 = vst [vmem:[#allocation268_spill] sm:$0xff] %v7060_v24 }
 0x124   : > { %1177 = vrot.lane.b32.xlu0 %v14745_v32, %s5598_s25  ;;  %v7066_v41 = vpop.permute.xlu1 %1005  ;;  %v14753_v32 = vld [vmem:[#allocation95_spill] sm:$0xff] }
 0x125   : > { %14746 = vst [vmem:[#allocation269_spill] sm:$0xff] %v7066_v41 }
 0x126   : > { %v7068_v39 = vpop.permute.xlu0 %1003  ;;  %1187 = vrot.lane.b32.xlu1 %v14748_v12, %s5599_s26  ;;  %v14757_v12 = vld [vmem:[#allocation99_spill] sm:$0xff] }
 0x127   : > { %14747 = vst [vmem:[#allocation270_spill] sm:$0xff] %v7068_v39 }
 0x128   : > { %1185 = vrot.lane.b32.xlu0 %v14749_v33, %s5599_s26  ;;  %v7074_v61 = vpop.permute.xlu1 %1009 }
 0x129   : > { %14750 = vst [vmem:[#allocation97_spill] sm:$0xff] %v7074_v61 }
 0x12a   : > { %v7076_v24 = vpop.permute.xlu0 %1007  ;;  %1191 = vrot.lane.b32.xlu1 %v14752_v10, %s5599_s26  ;;  %v14761_v10 = vld [vmem:[#allocation103_spill] sm:$0xff] }
 0x12b   : > { %14751 = vst [vmem:[#allocation93_spill] sm:$0xff] %v7076_v24  ;;  %v14760_v24 = vld [vmem:[#allocation109_spill] sm:$0xff] }
 0x12c   : > { %1189 = vrot.lane.b32.xlu0 %v14753_v32, %s5599_s26  ;;  %v7082_v41 = vpop.permute.xlu1 %1013 }
 0x12d   : > { %14754 = vst [vmem:[#allocation101_spill] sm:$0xff] %v7082_v41 }
 0x12e   : > { %v7084_v39 = vpop.permute.xlu0 %1011  ;;  %1195 = vrot.lane.b32.xlu1 %v14756_v20, %s5599_s26  ;;  %v14765_v20 = vld [vmem:[#allocation107_spill] sm:$0xff] }
 0x12f   : > { %14755 = vst [vmem:[#allocation95_spill] sm:$0xff] %v7084_v39  ;;  %v14764_v39 = vld [vmem:[#allocation113_spill] sm:$0xff] }
 0x130   : > { %1193 = vrot.lane.b32.xlu0 %v14757_v12, %s5599_s26  ;;  %v7090_v33 = vpop.permute.xlu1 %1017 }
 0x131   : > { %14758 = vst [vmem:[#allocation105_spill] sm:$0xff] %v7090_v33 }
 0x132   : > { %v7092_v61 = vpop.permute.xlu0 %1015  ;;  %1199 = vrot.lane.b32.xlu1 %v14760_v24, %s5599_s26  ;;  %v1182_v24 = vrot.slane %v6970_v63, 1 }
 0x133   : > { %14759 = vst [vmem:[#allocation99_spill] sm:$0xff] %v7092_v61  ;;  %v14768_v61 = vld [vmem:[#allocation119_spill] sm:$0xff] }
 0x134   : > { %1197 = vrot.lane.b32.xlu0 %v14761_v10, %s5599_s26  ;;  %v7098_v32 = vpop.permute.xlu1 %1021  ;;  %v7114_v10 = vrot.slane %v7013_v4, 1 }
 0x135   : > { %14762 = vst [vmem:[#allocation109_spill] sm:$0xff] %v7098_v32  ;;  %v14770_v32 = vld [vmem:[#allocation111_spill] sm:$0xff] }
 0x136   : > { %v7100_v41 = vpop.permute.xlu0 %1019  ;;  %1203 = vrot.lane.b32.xlu1 %v14764_v39, %s5599_s26  ;;  %14769 = vst [vmem:[#allocation119_spill] sm:$0xff] %v7114_v10 }
 0x137   : > { %14763 = vst [vmem:[#allocation103_spill] sm:$0xff] %v7100_v41 }
 0x138   : > { %1201 = vrot.lane.b32.xlu0 %v14765_v20, %s5599_s26  ;;  %v7106_v12 = vpop.permute.xlu1 %1074  ;;  %v14773_v20 = vld [vmem:[#allocation123_spill] sm:$0xff] }
 0x139   : > { %14766 = vst [vmem:[#allocation113_spill] sm:$0xff] %v7106_v12  ;;  %v7126_v12 = vsel %vm14339_vm1, %v1182_v24, %v7114_v10  ;;  %v14781_v24 = vld [vmem:[#allocation134_spill] sm:$0xff]  ;;  %v14799_v10 = vld [vmem:[#allocation149_spill] sm:$0xff] }
 0x13a   : > { %v7108_v33 = vpop.permute.xlu0 %1072  ;;  %1207 = vrot.lane.b32.xlu1 %v14768_v61, %s5599_s26  ;;  %14774 = vst [vmem:[#allocation123_spill] sm:$0xff] %v7126_v12  ;;  %v14775_v61 = vld [vmem:[#allocation116_spill] sm:$0xff] }
 0x13b   : > { %14767 = vst [vmem:[#allocation107_spill] sm:$0xff] %v7108_v33 }
 0x13c   : > { %1205 = vrot.lane.b32.xlu0 %v14770_v32, %s5599_s26  ;;  %v7118_v41 = vpop.permute.xlu1 %1078  ;;  %v14778_v32 = vld [vmem:[#allocation121_spill] sm:$0xff] }
 0x13d   : > { %14771 = vst [vmem:[#allocation111_spill] sm:$0xff] %v7118_v41 }
 0x13e   : > { %v7120_v39 = vpop.permute.xlu0 %1076  ;;  %1211 = vrot.lane.b32.xlu1 %v14773_v20, %s5599_s26 }
 0x13f   : > { %14772 = vst [vmem:[#allocation271_spill] sm:$0xff] %v7120_v39  ;;  %v14785_v39 = vld [vmem:[#allocation139_spill] sm:$0xff] }
 0x140   : > { %1209 = vrot.lane.b32.xlu0 %v14775_v61, %s5599_s26  ;;  %v7130_v33 = vpop.permute.xlu1 %1082  ;;  %v14782_v61 = vld [vmem:[#allocation125_spill] sm:$0xff] }
 0x141   : > { %14776 = vst [vmem:[#allocation116_spill] sm:$0xff] %v7130_v33 }
 0x142   : > { %v7132_v21 = vpop.permute.xlu0 %1080  ;;  %1215 = vrot.lane.b32.xlu1 %v7126_v12, %s5599_s26  ;;  %v14789_v12 = vld [vmem:[#allocation145_spill] sm:$0xff] }
 0x143   : > { %14777 = vst [vmem:[#allocation272_spill] sm:$0xff] %v7132_v21 }
 0x144   : > { %1213 = vrot.lane.b32.xlu0 %v14778_v32, %s5599_s26  ;;  %v7138_v41 = vpop.permute.xlu1 %1086  ;;  %v14786_v32 = vld [vmem:[#allocation131_spill] sm:$0xff] }
 0x145   : > { %14779 = vst [vmem:[#allocation121_spill] sm:$0xff] %v7138_v41 }
 0x146   : > { %v7140_v20 = vpop.permute.xlu0 %1084  ;;  %1228 = vrot.lane.b32.xlu1 %v14781_v24, %s5600_s27  ;;  %v14790_v24 = vld [vmem:[#allocation136_spill] sm:$0xff] }
 0x147   : > { %14780 = vst [vmem:[#allocation273_spill] sm:$0xff] %v7140_v20 }
 0x148   : > { %1226 = vrot.lane.b32.xlu0 %v14782_v61, %s5600_s27  ;;  %v7146_v33 = vpop.permute.xlu1 %1090 }
 0x149   : > { %14783 = vst [vmem:[#allocation134_spill] sm:$0xff] %v7146_v33 }
 0x14a   : > { %v7148_v21 = vpop.permute.xlu0 %1088  ;;  %1232 = vrot.lane.b32.xlu1 %v14785_v39, %s5600_s27  ;;  %v7169_v39 = vshrl.u32 %v7013_v4, 16 }
 0x14b   : > { %14784 = vst [vmem:[#allocation125_spill] sm:$0xff] %v7148_v21  ;;  %v14793_v21 = vld [vmem:[#allocation152_spill] sm:$0xff] }
 0x14c   : > { %1230 = vrot.lane.b32.xlu0 %v14786_v32, %s5600_s27  ;;  %v7154_v41 = vpop.permute.xlu1 %1094  ;;  %14794 = vst [vmem:[#allocation152_spill] sm:$0xff] %v7169_v39  ;;  %v14795_v32 = vld [vmem:[#allocation142_spill] sm:$0xff] }
 0x14d   : > { %14787 = vst [vmem:[#allocation139_spill] sm:$0xff] %v7154_v41 }
 0x14e   : > { %v7156_v20 = vpop.permute.xlu0 %1092  ;;  %1236 = vrot.lane.b32.xlu1 %v14789_v12, %s5600_s27  ;;  %v14798_v12 = vld [vmem:[#allocation156_spill] sm:$0xff] }
 0x14f   : > { %14788 = vst [vmem:[#allocation131_spill] sm:$0xff] %v7156_v20 }
 0x150   : > { %1234 = vrot.lane.b32.xlu0 %v14790_v24, %s5600_s27  ;;  %v7162_v61 = vpop.permute.xlu1 %1098  ;;  %v1217_v24 = vrot.slane %v7027_v22, 1 }
 0x151   : > { %14791 = vst [vmem:[#allocation145_spill] sm:$0xff] %v7162_v61  ;;  %v1218_v61 = vrot.slane %v7016_v7, 2 }
 0x152   : > { %v7164_v33 = vpop.permute.xlu0 %1096  ;;  %1240 = vrot.lane.b32.xlu1 %v14793_v21, %s5600_s27  ;;  %v1223_v21 = vrot.slane %v7031_v43, 2 }
 0x153   : > { %14792 = vst [vmem:[#allocation136_spill] sm:$0xff] %v7164_v33  ;;  %v1222_v33 = vrot.slane %v7169_v39, 1 }
 0x154   : > { %1238 = vrot.lane.b32.xlu0 %v14795_v32, %s5600_s27  ;;  %v7173_v41 = vpop.permute.xlu1 %1102 }
 0x155   : > { %14796 = vst [vmem:[#allocation142_spill] sm:$0xff] %v7173_v41  ;;  %v14802_v41 = vld [vmem:[#allocation160_spill] sm:$0xff] }
 0x156   : > { %v7175_v20 = vpop.permute.xlu0 %1100  ;;  %1244 = vrot.lane.b32.xlu1 %v14798_v12, %s5600_s27  ;;  %v7191_v12 = vor.u32 %v1223_v21, %v1222_v33 }
 0x157   : > { %14797 = vst [vmem:[#allocation274_spill] sm:$0xff] %v7175_v20  ;;  %v1219_v20 = vor.u32 %v1218_v61, %v1217_v24 }
 0x158   : > { %1242 = vrot.lane.b32.xlu0 %v14799_v10, %s5600_s27  ;;  %v7185_v40 = vpop.permute.xlu1 %1107 }
 0x159   : > { %14800 = vst [vmem:[#allocation156_spill] sm:$0xff] %v7185_v40  ;;  %v7203_v10 = vsel %vm620_vm2, %v1219_v20, %v7191_v12  ;;  %v14807_v40 = vld [vmem:[#allocation158_spill] sm:$0xff]  ;;  %v14813_v20 = vld [vmem:[#allocation168_spill] sm:$0xff] }
 0x15a   : > { %v7187_v32 = vpop.permute.xlu0 %1105  ;;  %1248 = vrot.lane.b32.xlu1 %v14802_v41, %s5600_s27 }
 0x15b   : > { %14801 = vst [vmem:[#allocation149_spill] sm:$0xff] %v7187_v32  ;;  %v14817_v32 = vld [vmem:[#allocation172_spill] sm:$0xff] }
 0x15c   : > { %1246 = vrot.lane.b32.xlu0 %v14803_v5, %s5600_s27  ;;  %v7195_v27 = vpop.permute.xlu1 %1111  ;;  %v14810_v5 = vld [vmem:[#allocation162_spill] sm:$0xff] }
 0x15d   : > { %14804 = vst [vmem:[#allocation160_spill] sm:$0xff] %v7195_v27 }
 0x15e   : > { %v7197_v11 = vpop.permute.xlu0 %1109  ;;  %1252 = vrot.lane.b32.xlu1 %v14806_v18, %s5600_s27 }
 0x15f   : > { %14805 = vst [vmem:[#allocation154_spill] sm:$0xff] %v7197_v11  ;;  %v14973_v11 = vld [vmem:[#allocation144_spill] sm:$0xff] }
 0x160   : > { %1250 = vrot.lane.b32.xlu0 %v14807_v40, %s5600_s27  ;;  %v7207_v41 = vpop.permute.xlu1 %1115  ;;  %v14814_v40 = vld [vmem:[#allocation164_spill] sm:$0xff] }
 0x161   : > { %14808 = vst [vmem:[#allocation163_spill] sm:$0xff] %v7207_v41  ;;  %v14821_v41 = vld [vmem:[#allocation176_spill] sm:$0xff] }
 0x162   : > { %v7209_v33 = vpop.permute.xlu0 %1113  ;;  %1256 = vrot.lane.b32.xlu1 %v7203_v10, %s5600_s27 }
 0x163   : > { %14809 = vst [vmem:[#allocation158_spill] sm:$0xff] %v7209_v33 }
 0x164   : > { %1254 = vrot.lane.b32.xlu0 %v14810_v5, %s5600_s27  ;;  %v7215_v61 = vpop.permute.xlu1 %1119  ;;  %v14818_v5 = vld [vmem:[#allocation166_spill] sm:$0xff] }
 0x165   : > { %14811 = vst [vmem:[#allocation162_spill] sm:$0xff] %v7215_v61 }
 0x166   : > { %v7217_v18 = vpop.permute.xlu0 %1117  ;;  %1263 = vrot.lane.b32.xlu1 %v14813_v20, %s5601_s28  ;;  %v14822_v20 = vld [vmem:[#allocation170_spill] sm:$0xff] }
 0x167   : > { %14812 = vst [vmem:[#allocation275_spill] sm:$0xff] %v7217_v18 }
 0x168   : > { %1261 = vrot.lane.b32.xlu0 %v14814_v40, %s5601_s28  ;;  %v7223_v24 = vpop.permute.xlu1 %1123 }
 0x169   : > { %14815 = vst [vmem:[#allocation168_spill] sm:$0xff] %v7223_v24 }
 0x16a   : > { %v7225_v21 = vpop.permute.xlu0 %1121  ;;  %1267 = vrot.lane.b32.xlu1 %v14817_v32, %s5601_s28  ;;  %v14826_v32 = vld [vmem:[#allocation174_spill] sm:$0xff] }
 0x16b   : > { %14816 = vst [vmem:[#allocation164_spill] sm:$0xff] %v7225_v21  ;;  %v14825_v21 = vld [vmem:[#allocation181_spill] sm:$0xff] }
 0x16c   : > { %1265 = vrot.lane.b32.xlu0 %v14818_v5, %s5601_s28  ;;  %v7231_v61 = vpop.permute.xlu1 %1127 }
 0x16d   : > { %14819 = vst [vmem:[#allocation172_spill] sm:$0xff] %v7231_v61 }
 0x16e   : > { %v7233_v18 = vpop.permute.xlu0 %1125  ;;  %1271 = vrot.lane.b32.xlu1 %v14821_v41, %s5601_s28  ;;  %v14830_v41 = vld [vmem:[#allocation178_spill] sm:$0xff] }
 0x16f   : > { %14820 = vst [vmem:[#allocation166_spill] sm:$0xff] %v7233_v18  ;;  %v14829_v18 = vld [vmem:[#allocation186_spill] sm:$0xff] }
 0x170   : > { %1269 = vrot.lane.b32.xlu0 %v14822_v20, %s5601_s28  ;;  %v7239_v40 = vpop.permute.xlu1 %1131 }
 0x171   : > { %14823 = vst [vmem:[#allocation176_spill] sm:$0xff] %v7239_v40 }
 0x172   : > { %v7241_v24 = vpop.permute.xlu0 %1129  ;;  %1275 = vrot.lane.b32.xlu1 %v14825_v21, %s5601_s28  ;;  %v1258_v21 = vrot.slane %v6970_v63, 2 }
 0x173   : > { %14824 = vst [vmem:[#allocation170_spill] sm:$0xff] %v7241_v24  ;;  %v14833_v24 = vld [vmem:[#allocation18_spill] sm:$0xff] }
 0x174   : > { %1273 = vrot.lane.b32.xlu0 %v14826_v32, %s5601_s28  ;;  %v7247_v5 = vpop.permute.xlu1 %1135  ;;  %v7263_v32 = vrot.slane %v7013_v4, 2 }
 0x175   : > { %14827 = vst [vmem:[#allocation181_spill] sm:$0xff] %v7247_v5  ;;  %v14835_v5 = vld [vmem:[#allocation185_spill] sm:$0xff] }
 0x176   : > { %v7249_v61 = vpop.permute.xlu0 %1133  ;;  %1279 = vrot.lane.b32.xlu1 %v14829_v18, %s5601_s28  ;;  %14834 = vst [vmem:[#allocation18_spill] sm:$0xff] %v7263_v32 }
 0x177   : > { %14828 = vst [vmem:[#allocation174_spill] sm:$0xff] %v7249_v61 }
 0x178   : > { %1277 = vrot.lane.b32.xlu0 %v14830_v41, %s5601_s28  ;;  %v7255_v20 = vpop.permute.xlu1 %1151  ;;  %v14838_v41 = vld [vmem:[#allocation9_spill] sm:$0xff] }
 0x179   : > { %14831 = vst [vmem:[#allocation186_spill] sm:$0xff] %v7255_v20  ;;  %v7275_v20 = vsel %vm14313_vm3, %v1258_v21, %v7263_v32  ;;  %v14845_v21 = vld [vmem:[#allocation192_spill] sm:$0xff] }
 0x17a   : > { %v7257_v40 = vpop.permute.xlu0 %1149  ;;  %1283 = vrot.lane.b32.xlu1 %v14833_v24, %s5601_s28  ;;  %v14839_v24 = vld [vmem:[#allocation188_spill] sm:$0xff] }
 0x17b   : > { %14832 = vst [vmem:[#allocation178_spill] sm:$0xff] %v7257_v40 }
 0x17c   : > { %1281 = vrot.lane.b32.xlu0 %v14835_v5, %s5601_s28  ;;  %v7267_v61 = vpop.permute.xlu1 %1155  ;;  %v14842_v5 = vld [vmem:[#allocation8_spill] sm:$0xff] }
 0x17d   : > { %14836 = vst [vmem:[#allocation185_spill] sm:$0xff] %v7267_v61 }
 0x17e   : > { %v7269_v18 = vpop.permute.xlu0 %1153  ;;  %1287 = vrot.lane.b32.xlu1 %v14838_v41, %s5601_s28 }
 0x17f   : > { %14837 = vst [vmem:[#allocation276_spill] sm:$0xff] %v7269_v18 }
 0x180   : > { %1285 = vrot.lane.b32.xlu0 %v14839_v24, %s5601_s28  ;;  %v7279_v40 = vpop.permute.xlu1 %1159 }
 0x181   : > { %14840 = vst [vmem:[#allocation9_spill] sm:$0xff] %v7279_v40 }
 0x182   : > { %v7281_v33 = vpop.permute.xlu0 %1157  ;;  %1291 = vrot.lane.b32.xlu1 %v7275_v20, %s5601_s28 }
 0x183   : > { %14841 = vst [vmem:[#allocation188_spill] sm:$0xff] %v7281_v33 }
 0x184   : > { %1289 = vrot.lane.b32.xlu0 %v14842_v5, %s5601_s28  ;;  %v7287_v61 = vpop.permute.xlu1 %1163 }
 0x185   : > { %14843 = vst [vmem:[#allocation8_spill] sm:$0xff] %v7287_v61 }
 0x186   : > { %v7289_v41 = vpop.permute.xlu0 %1161  ;;  %1302 = vrot.lane.b32.xlu1 %v6651_v57, %s5602_s29 }
 0x187   : > { %14844 = vst [vmem:[#allocation277_spill] sm:$0xff] %v7289_v41  ;;  %v14947_v41 = vld [vmem:[#allocation127_spill] sm:$0xff] }
 0x188   : > { %1300 = vrot.lane.b32.xlu0 %v14845_v21, %s5602_s29  ;;  %v7295_v24 = vpop.permute.xlu1 %1167 }
 0x189   : > { %14846 = vst [vmem:[#allocation192_spill] sm:$0xff] %v7295_v24 }
 0x18a   : > { %v7297_v40 = vpop.permute.xlu0 %1165  ;;  %1306 = vrot.lane.b32.xlu1 %v6665_v13, %s5602_s29 }
 0x18b   : > { %14847 = vst [vmem:[#allocation278_spill] sm:$0xff] %v7297_v40  ;;  %v14939_v40 = vld [vmem:[#allocation122_spill] sm:$0xff] }
 0x18c   : > { %1304 = vrot.lane.b32.xlu0 %v6631_v15, %s5602_s29  ;;  %v7303_v5 = vpop.permute.xlu1 %1171 }
 0x18d   : > { %14848 = vst [vmem:[#allocation279_spill] sm:$0xff] %v7303_v5 }
 0x18e   : > { %v7305_v61 = vpop.permute.xlu0 %1169  ;;  %1310 = vrot.lane.b32.xlu1 %v6693_v26, %s5602_s29  ;;  %v1293_v26 = vrot.slane %v7027_v22, 2 }
 0x18f   : > { %14849 = vst [vmem:[#allocation280_spill] sm:$0xff] %v7305_v61 }
 0x190   : > { %1308 = vrot.lane.b32.xlu0 %v6662_v25, %s5602_s29  ;;  %v7311_v57 = vpop.permute.xlu1 %1175  ;;  %v1294_v25 = vrot.slane %v7016_v7, 3 }
 0x191   : > { %14850 = vst [vmem:[#allocation281_spill] sm:$0xff] %v7311_v57  ;;  %v1296_v57 = vrot.slane %v7169_v39, 2 }
 0x192   : > { %v7313_v21 = vpop.permute.xlu0 %1173  ;;  %1314 = vrot.lane.b32.xlu1 %v6715_v51, %s5602_s29 }
 0x193   : > { %14851 = vst [vmem:[#allocation282_spill] sm:$0xff] %v7313_v21  ;;  %v1297_v21 = vrot.slane %v7031_v43, 3 }
 0x194   : > { %1312 = vrot.lane.b32.xlu0 %v6682_v42, %s5602_s29  ;;  %v7319_v15 = vpop.permute.xlu1 %1179 }
 0x195   : > { %14852 = vst [vmem:[#allocation283_spill] sm:$0xff] %v7319_v15  ;;  %v1295_v15 = vor.u32 %v1294_v25, %v1293_v26  ;;  %v1332_v26 = vrot.slane %v6970_v63, 3  ;;  %v1333_v25 = vrot.slane %v7013_v4, 3 }
 0x196   : > { %v7321_v13 = vpop.permute.xlu0 %1177  ;;  %1318 = vrot.lane.b32.xlu1 %v6733_v17, %s5602_s29  ;;  %v1298_v17 = vor.u32 %v1297_v21, %v1296_v57 }
 0x197   : > { %14853 = vst [vmem:[#allocation284_spill] sm:$0xff] %v7321_v13 }
 0x198   : > { %1316 = vrot.lane.b32.xlu0 %v6704_v50, %s5602_s29  ;;  %v7331_v51 = vpop.permute.xlu1 %1187  ;;  %v1299_v50 = vsel %vm878_vm4, %v1295_v15, %v1298_v17  ;;  %vm14314_vm4 = vcmask 220160  }
 0x199   : > { %14854 = vst [vmem:[#allocation285_spill] sm:$0xff] %v7331_v51 }
 0x19a   : > { %v7333_v42 = vpop.permute.xlu0 %1185  ;;  %1322 = vrot.lane.b32.xlu1 %v6751_v14, %s5602_s29 }
 0x19b   : > { %14855 = vst [vmem:[#allocation286_spill] sm:$0xff] %v7333_v42 }
 0x19c   : > { %1320 = vrot.lane.b32.xlu0 %v6722_v62, %s5602_s29  ;;  %v7339_v13 = vpop.permute.xlu1 %1191 }
 0x19d   : > { %14856 = vst [vmem:[#allocation287_spill] sm:$0xff] %v7339_v13 }
 0x19e   : > { %v7341_v5 = vpop.permute.xlu0 %1189  ;;  %1326 = vrot.lane.b32.xlu1 %v6767_v47, %s5602_s29 }
 0x19f   : > { %14857 = vst [vmem:[#allocation288_spill] sm:$0xff] %v7341_v5  ;;  %v14968_v5 = vld [vmem:[#allocation140_spill] sm:$0xff] }
 0x1a0   : > { %1324 = vrot.lane.b32.xlu0 %v6744_v52, %s5602_s29  ;;  %v7348_v51 = vpop.permute.xlu1 %1195 }
 0x1a1   : > { %14858 = vst [vmem:[#allocation289_spill] sm:$0xff] %v7348_v51 }
 0x1a2   : > { %v7350_v14 = vpop.permute.xlu0 %1193  ;;  %1330 = vrot.lane.b32.xlu1 %v1299_v50, %s5602_s29 }
 0x1a3   : > { %14859 = vst [vmem:[#allocation290_spill] sm:$0xff] %v7350_v14  ;;  %v14963_v14 = vld [vmem:[#allocation137_spill] sm:$0xff] }
 0x1a4   : > { %1328 = vrot.lane.b32.xlu0 %v6758_v45, %s5602_s29  ;;  %v7355_v62 = vpop.permute.xlu1 %1199 }
 0x1a5   : > { %14860 = vst [vmem:[#allocation291_spill] sm:$0xff] %v7355_v62 }
 0x1a6   : > { %v7357_v57 = vpop.permute.xlu0 %1197  ;;  %1337 = vrot.lane.b32.xlu1 %v6800_v19, %s5603_s30 }
 0x1a7   : > { %14861 = vst [vmem:[#allocation292_spill] sm:$0xff] %v7357_v57  ;;  %v14943_v57 = vld [vmem:[#allocation124_spill] sm:$0xff] }
 0x1a8   : > { %1335 = vrot.lane.b32.xlu0 %v6776_v37, %s5603_s30  ;;  %v7363_v52 = vpop.permute.xlu1 %1203 }
 0x1a9   : > { %14862 = vst [vmem:[#allocation293_spill] sm:$0xff] %v7363_v52 }
 0x1aa   : > { %v7365_v47 = vpop.permute.xlu0 %1201  ;;  %1341 = vrot.lane.b32.xlu1 %v6818_v28, %s5603_s30 }
 0x1ab   : > { %14863 = vst [vmem:[#allocation294_spill] sm:$0xff] %v7365_v47  ;;  %v14933_v47 = vld [vmem:[#allocation6_spill] sm:$0xff] }
 0x1ac   : > { %1339 = vrot.lane.b32.xlu0 %v6792_v46, %s5603_s30  ;;  %v7371_v45 = vpop.permute.xlu1 %1207 }
 0x1ad   : > { %14864 = vst [vmem:[#allocation295_spill] sm:$0xff] %v7371_v45  ;;  %v14920_v45 = vld [vmem:[#allocation90_spill] sm:$0xff] }
 0x1ae   : > { %v7373_v21 = vpop.permute.xlu0 %1205  ;;  %1345 = vrot.lane.b32.xlu1 %v6836_v58, %s5603_s30 }
 0x1af   : > { %14865 = vst [vmem:[#allocation296_spill] sm:$0xff] %v7373_v21 }
 0x1b0   : > { %1343 = vrot.lane.b32.xlu0 %v6809_v54, %s5603_s30  ;;  %v7379_v37 = vpop.permute.xlu1 %1211 }
 0x1b1   : > { %14866 = vst [vmem:[#allocation297_spill] sm:$0xff] %v7379_v37  ;;  %v14903_v37 = vld [vmem:[#allocation50_spill] sm:$0xff] }
 0x1b2   : > { %v7381_v19 = vpop.permute.xlu0 %1209  ;;  %1349 = vrot.lane.b32.xlu1 %v6854_v36, %s5603_s30 }
 0x1b3   : > { %14867 = vst [vmem:[#allocation298_spill] sm:$0xff] %v7381_v19 }
 0x1b4   : > { %1347 = vrot.lane.b32.xlu0 %v6827_v59, %s5603_s30  ;;  %v7387_v46 = vpop.permute.xlu1 %1215 }
 0x1b5   : > { %14868 = vst [vmem:[#allocation299_spill] sm:$0xff] %v7387_v46 }
 0x1b6   : > { %v7389_v28 = vpop.permute.xlu0 %1213  ;;  %1353 = vrot.lane.b32.xlu1 %v6872_v49, %s5603_s30 }
 0x1b7   : > { %14869 = vst [vmem:[#allocation300_spill] sm:$0xff] %v7389_v28  ;;  %v14900_v28 = vld [vmem:[#allocation45_spill] sm:$0xff] }
 0x1b8   : > { %1351 = vrot.lane.b32.xlu0 %v6845_v53, %s5603_s30  ;;  %v7395_v54 = vpop.permute.xlu1 %1228 }
 0x1b9   : > { %14870 = vst [vmem:[#allocation301_spill] sm:$0xff] %v7395_v54  ;;  %v7412_v54 = vsel %vm14312_vm5, %v1332_v26, %v1333_v25  ;;  %vm14348_vm5 = vcmask 293888  }
 0x1ba   : > { %v7397_v15 = vpop.permute.xlu0 %1226  ;;  %1357 = vrot.lane.b32.xlu1 %v6890_v9, %s5603_s30  ;;  %14874 = vst [vmem:[#allocation305_spill] sm:$0xff] %v7412_v54 }
 0x1bb   : > { %14871 = vst [vmem:[#allocation302_spill] sm:$0xff] %v7397_v15 }
 0x1bc   : > { %1355 = vrot.lane.b32.xlu0 %v6863_v31, %s5603_s30  ;;  %v7405_v17 = vpop.permute.xlu1 %1232 }
 0x1bd   : > { %14872 = vst [vmem:[#allocation303_spill] sm:$0xff] %v7405_v17  ;;  %v14959_v17 = vld [vmem:[#allocation135_spill] sm:$0xff] }
 0x1be   : > { %v7407_v50 = vpop.permute.xlu0 %1230  ;;  %1361 = vrot.lane.b32.xlu1 %v6906_v48, %s5603_s30  ;;  %v223_v48 = vld [vmem:[%s5646_s17 + $0x198] sm:$0xff] }
 0x1bf   : > { %14873 = vst [vmem:[#allocation304_spill] sm:$0xff] %v7407_v50 }
 0x1c0   : > { %1359 = vrot.lane.b32.xlu0 %v6881_v1, %s5603_s30  ;;  %v7416_v15 = vpop.permute.xlu1 %1236 }
 0x1c1   : > { %14875 = vst [vmem:[#allocation306_spill] sm:$0xff] %v7416_v15  ;;  %v14955_v15 = vld [vmem:[#allocation132_spill] sm:$0xff] }
 0x1c2   : > { %v7418_v42 = vpop.permute.xlu0 %1234  ;;  %1365 = vrot.lane.b32.xlu1 %v7412_v54, %s5603_s30 }
 0x1c3   : > { %14876 = vst [vmem:[#allocation307_spill] sm:$0xff] %v7418_v42 }
 0x1c4   : > { %1363 = vrot.lane.b32.xlu0 %v6899_v23, %s5603_s30  ;;  %v7424_v9 = vpop.permute.xlu1 %1240 }
 0x1c5   : > { %14877 = vst [vmem:[#allocation308_spill] sm:$0xff] %v7424_v9  ;;  %v14930_v9 = vld [vmem:[#allocation117_spill] sm:$0xff] }
 0x1c6   : > { %v7426_v31 = vpop.permute.xlu0 %1238  ;;  %1370 = vrot.lane.b32.xlu1 %v5674_v16, %s5604_s4 }
 0x1c7   : > { %14878 = vst [vmem:[#allocation309_spill] sm:$0xff] %v7426_v31  ;;  %v14934_v31 = vrot.slane %v14933_v47, 1 }
 0x1c8   : > { %1368 = vrot.lane.b32.xlu0 %v5651_v3, %s5604_s4  ;;  %v7432_v26 = vpop.permute.xlu1 %1244 }
 0x1c9   : > { %14879 = vst [vmem:[#allocation310_spill] sm:$0xff] %v7432_v26  ;;  %v14899_v26 = vld [vmem:[#allocation37_spill] sm:$0xff] }
 0x1ca   : > { %v7434_v25 = vpop.permute.xlu0 %1242  ;;  %1374 = vrot.lane.b32.xlu1 %v5712_v38, %s5604_s4 }
 0x1cb   : > { %14880 = vst [vmem:[#allocation311_spill] sm:$0xff] %v7434_v25 }
 0x1cc   : > { %1372 = vrot.lane.b32.xlu0 %v5759_v60, %s5604_s4  ;;  %v7440_v1 = vpop.permute.xlu1 %1248 }
 0x1cd   : > { %14881 = vst [vmem:[#allocation312_spill] sm:$0xff] %v7440_v1 }
 0x1ce   : > { %v7442_v49 = vpop.permute.xlu0 %1246  ;;  %1378 = vrot.lane.b32.xlu1 %v5765_v0, %s5604_s4 }
 0x1cf   : > { %14882 = vst [vmem:[#allocation313_spill] sm:$0xff] %v7442_v49 }
 0x1d0   : > { %1376 = vrot.lane.b32.xlu0 %v5802_v34, %s5604_s4  ;;  %v7448_v53 = vpop.permute.xlu1 %1252 }
 0x1d1   : > { %14883 = vst [vmem:[#allocation314_spill] sm:$0xff] %v7448_v53  ;;  %v224_v53 = vld [vmem:[%s5646_s17 + $0x1a0] sm:$0xff] }
 0x1d2   : > { %v7450_v36 = vpop.permute.xlu0 %1250  ;;  %1382 = vrot.lane.b32.xlu1 %v5813_v44, %s5604_s4 }
 0x1d3   : > { %14884 = vst [vmem:[#allocation315_spill] sm:$0xff] %v7450_v36  ;;  %v7480_v36 = vpack.c.bf16 %v224_v53, %v223_v48  ;;  %v14896_v53 = vld [vmem:[#allocation19_spill] sm:$0xff] }
 0x1d4   : > { %1380 = vrot.lane.b32.xlu0 %v5849_v6, %s5604_s4  ;;  %v7456_v54 = vpop.permute.xlu1 %1256 }
 0x1d5   : > { %14885 = vst [vmem:[#allocation316_spill] sm:$0xff] %v7456_v54  ;;  %14891 = vst [vmem:[#allocation322_spill] sm:$0xff] %v7480_v36 }
 0x1d6   : > { %v7458_v59 = vpop.permute.xlu0 %1254  ;;  %1386 = vrot.lane.b32.xlu1 %v14667_v2, %s5604_s4 }
 0x1d7   : > { %14886 = vst [vmem:[#allocation317_spill] sm:$0xff] %v7458_v59 }
 0x1d8   : > { %1384 = vrot.lane.b32.xlu0 %v14671_v30, %s5604_s4  ;;  %v7464_v23 = vpop.permute.xlu1 %1263 }
 0x1d9   : > { %14887 = vst [vmem:[#allocation318_spill] sm:$0xff] %v7464_v23 }
 0x1da   : > { %v7466_v58 = vpop.permute.xlu0 %1261  ;;  %1390 = vrot.lane.b32.xlu1 %v14675_v8, %s5604_s4 }
 0x1db   : > { %14888 = vst [vmem:[#allocation319_spill] sm:$0xff] %v7466_v58 }
 0x1dc   : > { %1388 = vrot.lane.b32.xlu0 %v14679_v35, %s5604_s4  ;;  %v7474_v54 = vpop.permute.xlu1 %1267 }
 0x1dd   : > { %14889 = vst [vmem:[#allocation320_spill] sm:$0xff] %v7474_v54 }
 0x1de   : > { %v7476_v59 = vpop.permute.xlu0 %1265  ;;  %1394 = vrot.lane.b32.xlu1 %v14683_v56, %s5604_s4 }
 0x1df   : > { %14890 = vst [vmem:[#allocation321_spill] sm:$0xff] %v7476_v59 }
 0x1e0   : > { %1392 = vrot.lane.b32.xlu0 %v14687_v55, %s5604_s4  ;;  %v7484_v23 = vpop.permute.xlu1 %1271 }
 0x1e1   : > { %14892 = vst [vmem:[#allocation323_spill] sm:$0xff] %v7484_v23 }
 0x1e2   : > { %v7486_v58 = vpop.permute.xlu0 %1269  ;;  %1398 = vrot.lane.b32.xlu1 %v7480_v36, %s5604_s4 }
 0x1e3   : > { %14893 = vst [vmem:[#allocation324_spill] sm:$0xff] %v7486_v58  ;;  %v14951_v58 = vld [vmem:[#allocation129_spill] sm:$0xff] }
 0x1e4   : > { %1396 = vrot.lane.b32.xlu0 %v6970_v63, %s5604_s4  ;;  %v7492_v1 = vpop.permute.xlu1 %1275 }
 0x1e5   : > { %14894 = vst [vmem:[#allocation325_spill] sm:$0xff] %v7492_v1 }
 0x1e6   : > { %v7494_v46 = vpop.permute.xlu0 %1273  ;;  %1414 = vrot.lane.b32.xlu1 %v14718_v29, %s5605_s5  ;;  %v14904_v29 = vld [vmem:[#allocation57_spill] sm:$0xff] }
 0x1e7   : > { %14895 = vst [vmem:[#allocation326_spill] sm:$0xff] %v7494_v46 }
 0x1e8   : > { %1412 = vrot.lane.b32.xlu0 %v14896_v53, %s5605_s5  ;;  %v7500_v48 = vpop.permute.xlu1 %1279 }
 0x1e9   : > { %14897 = vst [vmem:[#allocation19_spill] sm:$0xff] %v7500_v48  ;;  %v225_v48 = vld [vmem:[%s5646_s17 + $0x1a8] sm:$0x3f] }
 0x1ea   : > { %v7502_v49 = vpop.permute.xlu0 %1277  ;;  %1418 = vrot.lane.b32.xlu1 %v14899_v26, %s5605_s5  ;;  %v14907_v26 = vld [vmem:[#allocation60_spill] sm:$0xff]  ;;  %v7523_v19 = vpack.c.bf16 %v225_v48, %v225_v48 }
 0x1eb   : > { %14898 = vst [vmem:[#allocation327_spill] sm:$0xff] %v7502_v49 }
 0x1ec   : > { %1416 = vrot.lane.b32.xlu0 %v14900_v28, %s5605_s5  ;;  %v7508_v1 = vpop.permute.xlu1 %1283  ;;  %14908 = vst [vmem:[#allocation60_spill] sm:$0xff] %v7523_v19  ;;  %v7526_v28 = vshll.u32 %v7480_v36, 16  ;;  %v7541_v48 = vshll.u32 %v7523_v19, 16 }
 0x1ed   : > { %14901 = vst [vmem:[#allocation37_spill] sm:$0xff] %v7508_v1  ;;  %v14910_v1 = vld [vmem:[#allocation66_spill] sm:$0xff] }
 0x1ee   : > { %v7510_v25 = vpop.permute.xlu0 %1281  ;;  %1422 = vrot.lane.b32.xlu1 %v14903_v37, %s5605_s5  ;;  %14909 = vst [vmem:[#allocation328_spill] sm:$0xff] %v7526_v28  ;;  %14915 = vst [vmem:[#allocation330_spill] sm:$0xff] %v7541_v48 }
 0x1ef   : > { %14902 = vst [vmem:[#allocation45_spill] sm:$0xff] %v7510_v25 }
 0x1f0   : > { %1420 = vrot.lane.b32.xlu0 %v14904_v29, %s5605_s5  ;;  %v7516_v53 = vpop.permute.xlu1 %1287  ;;  %v14913_v29 = vld [vmem:[#allocation74_spill] sm:$0xff] }
 0x1f1   : > { %14905 = vst [vmem:[#allocation50_spill] sm:$0xff] %v7516_v53  ;;  %v7537_v53 = vshrl.u32 %v7480_v36, 16 }
 0x1f2   : > { %v7519_v49 = vpop.permute.xlu0 %1285  ;;  %1426 = vrot.lane.b32.xlu1 %v14907_v26, %s5605_s5  ;;  %v1405_v26 = vrot.slane %v7526_v28, 1 }
 0x1f3   : > { %14906 = vst [vmem:[#allocation57_spill] sm:$0xff] %v7519_v49  ;;  %14914 = vst [vmem:[#allocation74_spill] sm:$0xff] %v7537_v53  ;;  %v14916_v49 = vld [vmem:[#allocation79_spill] sm:$0xff] }
 0x1f4   : > { %1424 = vrot.lane.b32.xlu0 %v14910_v1, %s5605_s5  ;;  %v7530_v37 = vpop.permute.xlu1 %1291 }
 0x1f5   : > { %14911 = vst [vmem:[#allocation66_spill] sm:$0xff] %v7530_v37  ;;  %v14919_v37 = vld [vmem:[#allocation84_spill] sm:$0xff] }
 0x1f6   : > { %v7532_v25 = vpop.permute.xlu0 %1289  ;;  %1430 = vrot.lane.b32.xlu1 %v14913_v29, %s5605_s5  ;;  %v1406_v29 = vor.u32 %v1405_v26, %v7537_v53 }
 0x1f7   : > { %14912 = vst [vmem:[#allocation329_spill] sm:$0xff] %v7532_v25  ;;  %v1410_v25 = vrot.slane %v7541_v48, 1 }
 0x1f8   : > { %1428 = vrot.lane.b32.xlu0 %v14916_v49, %s5605_s5  ;;  %v7545_v46 = vpop.permute.xlu1 %1302  ;;  %v14923_v49 = vld [vmem:[#allocation91_spill] sm:$0xff] }
 0x1f9   : > { %14917 = vst [vmem:[#allocation79_spill] sm:$0xff] %v7545_v46  ;;  %v7562_v46 = vsel %vm282_vm0, %v1406_v29, %v1410_v25 }
 0x1fa   : > { %v7547_v1 = vpop.permute.xlu0 %1300  ;;  %1434 = vrot.lane.b32.xlu1 %v14919_v37, %s5605_s5  ;;  %14924 = vst [vmem:[#allocation91_spill] sm:$0xff] %v7562_v46 }
 0x1fb   : > { %14918 = vst [vmem:[#allocation331_spill] sm:$0xff] %v7547_v1  ;;  %v14925_v1 = vld [vmem:[#allocation92_spill] sm:$0xff] }
 0x1fc   : > { %1432 = vrot.lane.b32.xlu0 %v14920_v45, %s5605_s5  ;;  %v7555_v21 = vpop.permute.xlu1 %1306  ;;  %v14928_v45 = vld [vmem:[#allocation14_spill] sm:$0xff] }
 0x1fd   : > { %14921 = vst [vmem:[#allocation84_spill] sm:$0xff] %v7555_v21  ;;  %v14929_v21 = vrot.slane %v14928_v45, 1 }
 0x1fe   : > { %v7557_v52 = vpop.permute.xlu0 %1304  ;;  %1438 = vrot.lane.b32.xlu1 %v14923_v49, %s5605_s5  ;;  %v14931_v49 = vld [vmem:[#allocation266_spill] sm:$0xff] }
 0x1ff   : > { %14922 = vst [vmem:[#allocation90_spill] sm:$0xff] %v7557_v52  ;;  %v7575_v52 = vor.u32 %v14930_v9, %v14929_v21  ;;  %v14941_v21 = vld [vmem:[#allocation32_spill] sm:$0xff] }
 0x200   : > { %1436 = vrot.lane.b32.xlu0 %v14925_v1, %s5605_s5  ;;  %v7566_v37 = vpop.permute.xlu1 %1310  ;;  %v14935_v1 = vld [vmem:[#allocation120_spill] sm:$0xff] }
 0x201   : > { %14926 = vst [vmem:[#allocation92_spill] sm:$0xff] %v7566_v37  ;;  %v1939_v61 = vor.u32 %v14935_v1, %v14934_v31  ;;  %v14945_v1 = vld [vmem:[#allocation35_spill] sm:$0xff] }
 0x202   : > { %v7568_v26 = vpop.permute.xlu0 %1308  ;;  %1442 = vrot.lane.b32.xlu1 %v7562_v46, %s5605_s5 }
 0x203   : > { %14927 = vst [vmem:[#allocation332_spill] sm:$0xff] %v7568_v26  ;;  %v14937_v26 = vld [vmem:[#allocation25_spill] sm:$0xff] }
 0x204   : > { %1440 = vrot.lane.b32.xlu0 %v14931_v49, %s5605_s5  ;;  %v7579_v29 = vpop.permute.xlu1 %1314  ;;  %v14938_v24 = vrot.slane %v14937_v26, 1 }
 0x205   : > { %14932 = vst [vmem:[#allocation14_spill] sm:$0xff] %v7579_v29  ;;  %v14942_v29 = vrot.slane %v14941_v21, 1 }
 0x206   : > { %v7584_v37 = vpop.permute.xlu0 %1312  ;;  %1959 = vrot.lane.b32.xlu1 %v7575_v52, %s5591_s18  ;;  %v7591_v62 = vor.u32 %v14939_v40, %v14938_v24  ;;  %v14949_v24 = vld [vmem:[#allocation42_spill] sm:$0xff] }
 0x207   : > { %14936 = vst [vmem:[#allocation117_spill] sm:$0xff] %v7584_v37  ;;  %v7599_v47 = vor.u32 %v14943_v57, %v14942_v29  ;;  %v14946_v37 = vrot.slane %v14945_v1, 1 }
 0x208   : > { %1957 = vrot.lane.b32.xlu0 %v1939_v61, %s5591_s18  ;;  %v7594_v9 = vpop.permute.xlu1 %1318 }
 0x209   : > { %14940 = vst [vmem:[#allocation266_spill] sm:$0xff] %v7594_v9  ;;  %v7608_v23 = vor.u32 %v14947_v41, %v14946_v37  ;;  %v14950_v9 = vrot.slane %v14949_v24, 1  ;;  %v14983_v41 = vld [vmem:[#allocation150_spill] sm:$0xff] }
 0x20a   : > { %v7601_v31 = vpop.permute.xlu0 %1316  ;;  %1963 = vrot.lane.b32.xlu1 %v7591_v62, %s5591_s18 }
 0x20b   : > { %14944 = vst [vmem:[#allocation6_spill] sm:$0xff] %v7601_v31  ;;  %v7617_v57 = vor.u32 %v14951_v58, %v14950_v9  ;;  %v14953_v31 = vld [vmem:[#allocation48_spill] sm:$0xff] }
 0x20c   : > { %1961 = vrot.lane.b32.xlu0 %v7599_v47, %s5591_s18  ;;  %v7612_v61 = vpop.permute.xlu1 %1322  ;;  %v14954_v54 = vrot.slane %v14953_v31, 1 }
 0x20d   : > { %14948 = vst [vmem:[#allocation120_spill] sm:$0xff] %v7612_v61  ;;  %v14957_v61 = vld [vmem:[#allocation53_spill] sm:$0xff] }
 0x20e   : > { %v7619_v29 = vpop.permute.xlu0 %1320  ;;  %1967 = vrot.lane.b32.xlu1 %v7608_v23, %s5591_s18  ;;  %v7626_v37 = vor.u32 %v14955_v15, %v14954_v54  ;;  %v14958_v59 = vrot.slane %v14957_v61, 1  ;;  %v14978_v15 = vld [vmem:[#allocation147_spill] sm:$0xff] }
 0x20f   : > { %14952 = vst [vmem:[#allocation32_spill] sm:$0xff] %v7619_v29  ;;  %v14961_v29 = vld [vmem:[#allocation61_spill] sm:$0xff] }
 0x210   : > { %1965 = vrot.lane.b32.xlu0 %v7617_v57, %s5591_s18  ;;  %v7630_v42 = vpop.permute.xlu1 %1326  ;;  %v7635_v9 = vor.u32 %v14959_v17, %v14958_v59  ;;  %v14962_v51 = vrot.slane %v14961_v29, 1 }
 0x211   : > { %14956 = vst [vmem:[#allocation124_spill] sm:$0xff] %v7630_v42  ;;  %v14966_v42 = vld [vmem:[#allocation67_spill] sm:$0xff] }
 0x212   : > { %v7637_v50 = vpop.permute.xlu0 %1324  ;;  %1971 = vrot.lane.b32.xlu1 %v7626_v37, %s5591_s18  ;;  %v7644_v54 = vor.u32 %v14963_v14, %v14962_v51  ;;  %v14967_v33 = vrot.slane %v14966_v42, 1 }
 0x213   : > { %14960 = vst [vmem:[#allocation333_spill] sm:$0xff] %v7637_v50  ;;  %v14971_v50 = vld [vmem:[#allocation71_spill] sm:$0xff] }
 0x214   : > { %14964 = vst [vmem:[#allocation334_spill] sm:$0xff] %v7644_v54  ;;  %1969 = vrot.lane.b32.xlu0 %v7635_v9, %s5591_s18  ;;  %v7648_v13 = vpop.permute.xlu1 %1330  ;;  %v7653_v59 = vor.u32 %v14968_v5, %v14967_v33  ;;  %v14972_v27 = vrot.slane %v14971_v50, 1 }
 0x215   : > { %14965 = vst [vmem:[#allocation335_spill] sm:$0xff] %v7648_v13  ;;  %v14976_v13 = vld [vmem:[#allocation78_spill] sm:$0xff] }
 0x216   : > { %14969 = vst [vmem:[#allocation336_spill] sm:$0xff] %v7653_v59  ;;  %v7655_v18 = vpop.permute.xlu0 %1328  ;;  %1975 = vrot.lane.b32.xlu1 %v7644_v54, %s5591_s18  ;;  %v7662_v51 = vor.u32 %v14973_v11, %v14972_v27  ;;  %v14977_v3 = vrot.slane %v14976_v13, 1  ;;  %v14988_v11 = vld [vmem:[#allocation153_spill] sm:$0xff] }
 0x217   : > { %14970 = vst [vmem:[#allocation337_spill] sm:$0xff] %v7655_v18  ;;  %v14981_v18 = vld [vmem:[#allocation85_spill] sm:$0xff] }
 0x218   : > { %14974 = vst [vmem:[#allocation338_spill] sm:$0xff] %v7662_v51  ;;  %1973 = vrot.lane.b32.xlu0 %v7653_v59, %s5591_s18  ;;  %v7666_v14 = vpop.permute.xlu1 %1337  ;;  %v7671_v33 = vor.u32 %v14978_v15, %v14977_v3  ;;  %v14982_v17 = vrot.slane %v14981_v18, 1 }
 0x219   : > { %14975 = vst [vmem:[#allocation339_spill] sm:$0xff] %v7666_v14  ;;  %v14986_v14 = vld [vmem:[#allocation89_spill] sm:$0xff] }
 0x21a   : > { %14979 = vst [vmem:[#allocation340_spill] sm:$0xff] %v7671_v33  ;;  %v7673_v5 = vpop.permute.xlu0 %1335  ;;  %1979 = vrot.lane.b32.xlu1 %v7662_v51, %s5591_s18  ;;  %v7680_v27 = vor.u32 %v14983_v41, %v14982_v17  ;;  %v14987_v40 = vrot.slane %v14986_v14, 1  ;;  %v7701_v41 = vshrl.u32 %v7523_v19, 16 }
 0x21b   : > { %14980 = vst [vmem:[#allocation341_spill] sm:$0xff] %v7673_v5  ;;  %v14991_v5 = vrot.slane %v7031_v43, 1 }
 0x21c   : > { %14984 = vst [vmem:[#allocation342_spill] sm:$0xff] %v7680_v27  ;;  %1977 = vrot.lane.b32.xlu0 %v7671_v33, %s5591_s18  ;;  %v7684_v58 = vpop.permute.xlu1 %1341  ;;  %v7689_v3 = vor.u32 %v14988_v11, %v14987_v40  ;;  %14993 = vst [vmem:[#allocation347_spill] sm:$0xff] %v7701_v41  ;;  %v15002_v11 = vld [vmem:[#allocation3_spill] sm:$0xff] }
 0x21d   : > { %14985 = vst [vmem:[#allocation343_spill] sm:$0xff] %v7684_v58  ;;  %v7698_v17 = vor.u32 %v7169_v39, %v14991_v5 }
 0x21e   : > { %14989 = vst [vmem:[#allocation344_spill] sm:$0xff] %v7689_v3  ;;  %v7691_v15 = vpop.permute.xlu0 %1339  ;;  %1983 = vrot.lane.b32.xlu1 %v7680_v27, %s5591_s18  ;;  %v15011_v27 = vld [vmem:[#allocation102_spill] sm:$0xff] }
 0x21f   : > { %14990 = vst [vmem:[#allocation345_spill] sm:$0xff] %v7691_v15  ;;  %14992 = vst [vmem:[#allocation346_spill] sm:$0xff] %v7698_v17  ;;  %v7712_v15 = vor.u32 %v7701_v41, %v1410_v25  ;;  %v15001_v25 = vld [vmem:[#allocation94_spill] sm:$0xff] }
 0x220   : > { %1981 = vrot.lane.b32.xlu0 %v7689_v3, %s5591_s18  ;;  %v7705_v58 = vpop.permute.xlu1 %1345 }
 0x221   : > { %14994 = vst [vmem:[#allocation348_spill] sm:$0xff] %v7705_v58  ;;  %14996 = vst [vmem:[#allocation350_spill] sm:$0xff] %v7712_v15 }
 0x222   : > { %v7707_v40 = vpop.permute.xlu0 %1343  ;;  %1987 = vrot.lane.b32.xlu1 %v7698_v17, %s5591_s18 }
 0x223   : > { %14995 = vst [vmem:[#allocation349_spill] sm:$0xff] %v7707_v40 }
 0x224   : > { %1985 = vrot.lane.b32.xlu0 %v14931_v49, %s5591_s18  ;;  %v7716_v5 = vpop.permute.xlu1 %1349  ;;  %v15003_v49 = vrot.slane %v15002_v11, 1 }
 0x225   : > { %14997 = vst [vmem:[#allocation351_spill] sm:$0xff] %v7716_v5 }
 0x226   : > { %v7718_v39 = vpop.permute.xlu0 %1347  ;;  %1991 = vrot.lane.b32.xlu1 %v7712_v15, %s5591_s18  ;;  %v15006_v15 = vld [vmem:[#allocation96_spill] sm:$0xff] }
 0x227   : > { %14998 = vst [vmem:[#allocation352_spill] sm:$0xff] %v7718_v39 }
 0x228   : > { %1989 = vrot.lane.b32.xlu0 %v7562_v46, %s5591_s18  ;;  %v7724_v58 = vpop.permute.xlu1 %1353  ;;  %v15007_v46 = vld [vmem:[#allocation98_spill] sm:$0xff] }
 0x229   : > { %14999 = vst [vmem:[#allocation353_spill] sm:$0xff] %v7724_v58 }
 0x22a   : > { %v7726_v40 = vpop.permute.xlu0 %1351  ;;  %1999 = vrot.lane.b32.xlu1 %v15001_v25, %s5592_s19  ;;  %v15010_v25 = vld [vmem:[#allocation100_spill] sm:$0xff] }
 0x22b   : > { %15000 = vst [vmem:[#allocation354_spill] sm:$0xff] %v7726_v40 }
 0x22c   : > { %1997 = vrot.lane.b32.xlu0 %v15003_v49, %s5592_s19  ;;  %v7733_v5 = vpop.permute.xlu1 %1357 }
 0x22d   : > { %15004 = vst [vmem:[#allocation355_spill] sm:$0xff] %v7733_v5 }
 0x22e   : > { %v7735_v39 = vpop.permute.xlu0 %1355  ;;  %2003 = vrot.lane.b32.xlu1 %v15006_v15, %s5592_s19  ;;  %v15015_v15 = vld [vmem:[#allocation106_spill] sm:$0xff] }
 0x22f   : > { %15005 = vst [vmem:[#allocation356_spill] sm:$0xff] %v7735_v39  ;;  %v15014_v39 = vld [vmem:[#allocation104_spill] sm:$0xff] }
 0x230   : > { %2001 = vrot.lane.b32.xlu0 %v15007_v46, %s5592_s19  ;;  %v7741_v58 = vpop.permute.xlu1 %1361 }
 0x231   : > { %15008 = vst [vmem:[#allocation357_spill] sm:$0xff] %v7741_v58 }
 0x232   : > { %v7743_v40 = vpop.permute.xlu0 %1359  ;;  %2007 = vrot.lane.b32.xlu1 %v15010_v25, %s5592_s19  ;;  %v15019_v25 = vld [vmem:[#allocation110_spill] sm:$0xff] }
 0x233   : > { %15009 = vst [vmem:[#allocation358_spill] sm:$0xff] %v7743_v40  ;;  %v15018_v40 = vld [vmem:[#allocation108_spill] sm:$0xff] }
 0x234   : > { %2005 = vrot.lane.b32.xlu0 %v15011_v27, %s5592_s19  ;;  %v7749_v49 = vpop.permute.xlu1 %1365 }
 0x235   : > { %15012 = vst [vmem:[#allocation359_spill] sm:$0xff] %v7749_v49 }
 0x236   : > { %v7751_v5 = vpop.permute.xlu0 %1363  ;;  %2011 = vrot.lane.b32.xlu1 %v15014_v39, %s5592_s19  ;;  %v15023_v39 = vld [vmem:[#allocation114_spill] sm:$0xff] }
 0x237   : > { %15013 = vst [vmem:[#allocation360_spill] sm:$0xff] %v7751_v5  ;;  %v15022_v5 = vld [vmem:[#allocation112_spill] sm:$0xff] }
 0x238   : > { %2009 = vrot.lane.b32.xlu0 %v15015_v15, %s5592_s19  ;;  %v7757_v46 = vpop.permute.xlu1 %1370 }
 0x239   : > { %15016 = vst [vmem:[#allocation361_spill] sm:$0xff] %v7757_v46 }
 0x23a   : > { %v7759_v58 = vpop.permute.xlu0 %1368  ;;  %2015 = vrot.lane.b32.xlu1 %v15018_v40, %s5592_s19  ;;  %v15027_v40 = vld [vmem:[#allocation118_spill] sm:$0xff] }
 0x23b   : > { %15017 = vst [vmem:[#allocation362_spill] sm:$0xff] %v7759_v58  ;;  %v15026_v58 = vld [vmem:[#allocation115_spill] sm:$0xff] }
 0x23c   : > { %2013 = vrot.lane.b32.xlu0 %v15019_v25, %s5592_s19  ;;  %v7765_v27 = vpop.permute.xlu1 %1374 }
 0x23d   : > { %15020 = vst [vmem:[#allocation363_spill] sm:$0xff] %v7765_v27  ;;  %v7784_v27 = vrot.slane %v7523_v19, 1 }
 0x23e   : > { %v7767_v49 = vpop.permute.xlu0 %1372  ;;  %2019 = vrot.lane.b32.xlu1 %v15022_v5, %s5592_s19 }
 0x23f   : > { %15021 = vst [vmem:[#allocation364_spill] sm:$0xff] %v7767_v49  ;;  %15029 = vst [vmem:[#allocation368_spill] sm:$0xff] %v7784_v27  ;;  %v1994_v49 = vrot.slane %v7480_v36, 1 }
 0x240   : > { %2017 = vrot.lane.b32.xlu0 %v15023_v39, %s5592_s19  ;;  %v7773_v15 = vpop.permute.xlu1 %1378  ;;  %v15031_v39 = vld [vmem:[#allocation119_spill] sm:$0xff] }
 0x241   : > { %15024 = vst [vmem:[#allocation365_spill] sm:$0xff] %v7773_v15  ;;  %v15032_v15 = vld [vmem:[#allocation123_spill] sm:$0xff] }
 0x242   : > { %v7775_v46 = vpop.permute.xlu0 %1376  ;;  %2023 = vrot.lane.b32.xlu1 %v15026_v58, %s5592_s19  ;;  %v7797_v58 = vsel %vm14339_vm1, %v1994_v49, %v7784_v27 }
 0x243   : > { %15025 = vst [vmem:[#allocation366_spill] sm:$0xff] %v7775_v46  ;;  %15034 = vst [vmem:[#allocation370_spill] sm:$0xff] %v7797_v58 }
 0x244   : > { %2021 = vrot.lane.b32.xlu0 %v15027_v40, %s5592_s19  ;;  %v7781_v25 = vpop.permute.xlu1 %1382 }
 0x245   : > { %15028 = vst [vmem:[#allocation367_spill] sm:$0xff] %v7781_v25 }
 0x246   : > { %v7787_v5 = vpop.permute.xlu0 %1380  ;;  %2027 = vrot.lane.b32.xlu1 %v15031_v39, %s5592_s19 }
 0x247   : > { %15030 = vst [vmem:[#allocation369_spill] sm:$0xff] %v7787_v5 }
 0x248   : > { %2025 = vrot.lane.b32.xlu0 %v15032_v15, %s5592_s19  ;;  %v7793_v46 = vpop.permute.xlu1 %1386  ;;  %v15038_v15 = vld [vmem:[#allocation126_spill] sm:$0xff] }
 0x249   : > { %15033 = vst [vmem:[#allocation123_spill] sm:$0xff] %v7793_v46  ;;  %v15039_v46 = vld [vmem:[#allocation128_spill] sm:$0xff] }
 0x24a   : > { %v7799_v25 = vpop.permute.xlu0 %1384  ;;  %2031 = vrot.lane.b32.xlu1 %v7784_v27, %s5592_s19  ;;  %v15043_v27 = vld [vmem:[#allocation133_spill] sm:$0xff] }
 0x24b   : > { %15035 = vst [vmem:[#allocation371_spill] sm:$0xff] %v7799_v25  ;;  %v15042_v25 = vld [vmem:[#allocation130_spill] sm:$0xff] }
 0x24c   : > { %2029 = vrot.lane.b32.xlu0 %v7797_v58, %s5592_s19  ;;  %v7805_v5 = vpop.permute.xlu1 %1390 }
 0x24d   : > { %15036 = vst [vmem:[#allocation372_spill] sm:$0xff] %v7805_v5 }
 0x24e   : > { %v7807_v39 = vpop.permute.xlu0 %1388  ;;  %2042 = vrot.lane.b32.xlu1 %v15038_v15, %s5593_s20  ;;  %v15047_v15 = vld [vmem:[#allocation141_spill] sm:$0xff] }
 0x24f   : > { %15037 = vst [vmem:[#allocation373_spill] sm:$0xff] %v7807_v39  ;;  %v15046_v39 = vld [vmem:[#allocation138_spill] sm:$0xff] }
 0x250   : > { %2040 = vrot.lane.b32.xlu0 %v15039_v46, %s5593_s20  ;;  %v7813_v49 = vpop.permute.xlu1 %1394 }
 0x251   : > { %15040 = vst [vmem:[#allocation128_spill] sm:$0xff] %v7813_v49 }
 0x252   : > { %v7815_v40 = vpop.permute.xlu0 %1392  ;;  %2046 = vrot.lane.b32.xlu1 %v15042_v25, %s5593_s20  ;;  %v15051_v25 = vld [vmem:[#allocation146_spill] sm:$0xff] }
 0x253   : > { %15041 = vst [vmem:[#allocation374_spill] sm:$0xff] %v7815_v40  ;;  %v15050_v40 = vld [vmem:[#allocation143_spill] sm:$0xff] }
 0x254   : > { %2044 = vrot.lane.b32.xlu0 %v15043_v27, %s5593_s20  ;;  %v7821_v58 = vpop.permute.xlu1 %1398 }
 0x255   : > { %15044 = vst [vmem:[#allocation375_spill] sm:$0xff] %v7821_v58 }
 0x256   : > { %v7823_v5 = vpop.permute.xlu0 %1396  ;;  %2050 = vrot.lane.b32.xlu1 %v15046_v39, %s5593_s20  ;;  %v15055_v39 = vld [vmem:[#allocation151_spill] sm:$0xff] }
 0x257   : > { %15045 = vst [vmem:[#allocation376_spill] sm:$0xff] %v7823_v5  ;;  %v15054_v5 = vld [vmem:[#allocation148_spill] sm:$0xff] }
 0x258   : > { %2048 = vrot.lane.b32.xlu0 %v15047_v15, %s5593_s20  ;;  %v7829_v46 = vpop.permute.xlu1 %1414 }
 0x259   : > { %15048 = vst [vmem:[#allocation377_spill] sm:$0xff] %v7829_v46 }
 0x25a   : > { %v7831_v49 = vpop.permute.xlu0 %1412  ;;  %2054 = vrot.lane.b32.xlu1 %v15050_v40, %s5593_s20  ;;  %v15059_v40 = vld [vmem:[#allocation157_spill] sm:$0xff] }
 0x25b   : > { %15049 = vst [vmem:[#allocation378_spill] sm:$0xff] %v7831_v49  ;;  %v15058_v49 = vld [vmem:[#allocation155_spill] sm:$0xff] }
 0x25c   : > { %2052 = vrot.lane.b32.xlu0 %v15051_v25, %s5593_s20  ;;  %v7837_v27 = vpop.permute.xlu1 %1418 }
 0x25d   : > { %15052 = vst [vmem:[#allocation379_spill] sm:$0xff] %v7837_v27  ;;  %v2036_v27 = vrot.slane %v7701_v41, 1 }
 0x25e   : > { %v7839_v58 = vpop.permute.xlu0 %1416  ;;  %2058 = vrot.lane.b32.xlu1 %v15054_v5, %s5593_s20  ;;  %v2033_v5 = vrot.slane %v7537_v53, 1 }
 0x25f   : > { %15053 = vst [vmem:[#allocation380_spill] sm:$0xff] %v7839_v58  ;;  %v2037_v58 = vrot.slane %v7541_v48, 2 }
 0x260   : > { %2056 = vrot.lane.b32.xlu0 %v15055_v39, %s5593_s20  ;;  %v7845_v15 = vpop.permute.xlu1 %1422  ;;  %v2034_v39 = vrot.slane %v7526_v28, 2 }
 0x261   : > { %15056 = vst [vmem:[#allocation381_spill] sm:$0xff] %v7845_v15  ;;  %v15062_v15 = vld [vmem:[#allocation159_spill] sm:$0xff] }
 0x262   : > { %v7847_v46 = vpop.permute.xlu0 %1420  ;;  %2062 = vrot.lane.b32.xlu1 %v15058_v49, %s5593_s20 }
 0x263   : > { %15057 = vst [vmem:[#allocation382_spill] sm:$0xff] %v7847_v46  ;;  %v15063_v46 = vld [vmem:[#allocation161_spill] sm:$0xff] }
 0x264   : > { %2060 = vrot.lane.b32.xlu0 %v15059_v40, %s5593_s20  ;;  %v7853_v25 = vpop.permute.xlu1 %1426  ;;  %v7867_v40 = vor.u32 %v2037_v58, %v2036_v27  ;;  %v15071_v27 = vrot.slane %v15002_v11, 2  ;;  %v15083_v11 = vld [vmem:[#allocation177_spill] sm:$0xff] }
 0x265   : > { %15060 = vst [vmem:[#allocation383_spill] sm:$0xff] %v7853_v25  ;;  %v2035_v25 = vor.u32 %v2034_v39, %v2033_v5 }
 0x266   : > { %v7859_v17 = vpop.permute.xlu0 %1424  ;;  %2066 = vrot.lane.b32.xlu1 %v15062_v15, %s5593_s20 }
 0x267   : > { %15061 = vst [vmem:[#allocation384_spill] sm:$0xff] %v7859_v17  ;;  %v7879_v15 = vsel %vm620_vm2, %v2035_v25, %v7867_v40 }
 0x268   : > { %2064 = vrot.lane.b32.xlu0 %v15063_v46, %s5593_s20  ;;  %v7865_v49 = vpop.permute.xlu1 %1430 }
 0x269   : > { %15064 = vst [vmem:[#allocation385_spill] sm:$0xff] %v7865_v49  ;;  %v15074_v49 = vld [vmem:[#allocation167_spill] sm:$0xff] }
 0x26a   : > { %v7869_v41 = vpop.permute.xlu0 %1428  ;;  %2070 = vrot.lane.b32.xlu1 %v7191_v12, %s5593_s20 }
 0x26b   : > { %15065 = vst [vmem:[#allocation386_spill] sm:$0xff] %v7869_v41  ;;  %v15075_v41 = vld [vmem:[#allocation169_spill] sm:$0xff] }
 0x26c   : > { %2068 = vrot.lane.b32.xlu0 %v7203_v10, %s5593_s20  ;;  %v7875_v17 = vpop.permute.xlu1 %1434  ;;  %v15070_v10 = vld [vmem:[#allocation165_spill] sm:$0xff] }
 0x26d   : > { %15066 = vst [vmem:[#allocation387_spill] sm:$0xff] %v7875_v17  ;;  %v15078_v17 = vld [vmem:[#allocation171_spill] sm:$0xff] }
 0x26e   : > { %v7881_v46 = vpop.permute.xlu0 %1432  ;;  %2074 = vrot.lane.b32.xlu1 %v7867_v40, %s5593_s20 }
 0x26f   : > { %15067 = vst [vmem:[#allocation388_spill] sm:$0xff] %v7881_v46  ;;  %v15079_v46 = vld [vmem:[#allocation173_spill] sm:$0xff] }
 0x270   : > { %2072 = vrot.lane.b32.xlu0 %v7879_v15, %s5593_s20  ;;  %v7887_v58 = vpop.permute.xlu1 %1438 }
 0x271   : > { %15068 = vst [vmem:[#allocation389_spill] sm:$0xff] %v7887_v58 }
 0x272   : > { %v7889_v39 = vpop.permute.xlu0 %1436  ;;  %2081 = vrot.lane.b32.xlu1 %v15070_v10, %s5594_s21 }
 0x273   : > { %15069 = vst [vmem:[#allocation390_spill] sm:$0xff] %v7889_v39 }
 0x274   : > { %2079 = vrot.lane.b32.xlu0 %v15071_v27, %s5594_s21  ;;  %v7896_v5 = vpop.permute.xlu1 %1442 }
 0x275   : > { %15072 = vst [vmem:[#allocation165_spill] sm:$0xff] %v7896_v5 }
 0x276   : > { %v7898_v25 = vpop.permute.xlu0 %1440  ;;  %2085 = vrot.lane.b32.xlu1 %v15074_v49, %s5594_s21 }
 0x277   : > { %15073 = vst [vmem:[#allocation391_spill] sm:$0xff] %v7898_v25  ;;  %v15082_v25 = vld [vmem:[#allocation175_spill] sm:$0xff] }
 0x278   : > { %2083 = vrot.lane.b32.xlu0 %v15075_v41, %s5594_s21  ;;  %v7904_v58 = vpop.permute.xlu1 %1959 }
 0x279   : > { %15076 = vst [vmem:[#allocation169_spill] sm:$0xff] %v7904_v58 }
 0x27a   : > { %v7906_v39 = vpop.permute.xlu0 %1957  ;;  %2089 = vrot.lane.b32.xlu1 %v15078_v17, %s5594_s21  ;;  %v15087_v17 = vld [vmem:[#allocation180_spill] sm:$0xff] }
 0x27b   : > { %15077 = vst [vmem:[#allocation392_spill] sm:$0xff] %v7906_v39  ;;  %v15086_v39 = vld [vmem:[#allocation179_spill] sm:$0xff] }
 0x27c   : > { %2087 = vrot.lane.b32.xlu0 %v15079_v46, %s5594_s21  ;;  %v7912_v27 = vpop.permute.xlu1 %1963 }
 0x27d   : > { %15080 = vst [vmem:[#allocation393_spill] sm:$0xff] %v7912_v27 }
 0x27e   : > { %v7914_v5 = vpop.permute.xlu0 %1961  ;;  %2093 = vrot.lane.b32.xlu1 %v15082_v25, %s5594_s21  ;;  %v15091_v25 = vld [vmem:[#allocation187_spill] sm:$0xff] }
 0x27f   : > { %15081 = vst [vmem:[#allocation394_spill] sm:$0xff] %v7914_v5  ;;  %v15090_v5 = vld [vmem:[#allocation182_spill] sm:$0xff] }
 0x280   : > { %2091 = vrot.lane.b32.xlu0 %v15083_v11, %s5594_s21  ;;  %v7920_v49 = vpop.permute.xlu1 %1967 }
 0x281   : > { %15084 = vst [vmem:[#allocation395_spill] sm:$0xff] %v7920_v49 }
 0x282   : > { %v7922_v58 = vpop.permute.xlu0 %1965  ;;  %2097 = vrot.lane.b32.xlu1 %v15086_v39, %s5594_s21  ;;  %v15095_v39 = vld [vmem:[#allocation190_spill] sm:$0xff] }
 0x283   : > { %15085 = vst [vmem:[#allocation396_spill] sm:$0xff] %v7922_v58  ;;  %v15094_v58 = vld [vmem:[#allocation189_spill] sm:$0xff] }
 0x284   : > { %2095 = vrot.lane.b32.xlu0 %v15087_v17, %s5594_s21  ;;  %v7928_v46 = vpop.permute.xlu1 %1971 }
 0x285   : > { %15088 = vst [vmem:[#allocation397_spill] sm:$0xff] %v7928_v46  ;;  %v2076_v46 = vrot.slane %v7480_v36, 2 }
 0x286   : > { %v7930_v27 = vpop.permute.xlu0 %1969  ;;  %2101 = vrot.lane.b32.xlu1 %v15090_v5, %s5594_s21 }
 0x287   : > { %15089 = vst [vmem:[#allocation398_spill] sm:$0xff] %v7930_v27  ;;  %v7947_v27 = vrot.slane %v7523_v19, 2 }
 0x288   : > { %2099 = vrot.lane.b32.xlu0 %v15091_v25, %s5594_s21  ;;  %v7936_v11 = vpop.permute.xlu1 %1975 }
 0x289   : > { %15092 = vst [vmem:[#allocation187_spill] sm:$0xff] %v7936_v11  ;;  %v7960_v11 = vsel %vm14313_vm3, %v2076_v46, %v7947_v27  ;;  %v7978_v46 = vrot.slane %v5802_v34, 7 }
 0x28a   : > { %v7938_v49 = vpop.permute.xlu0 %1973  ;;  %2105 = vrot.lane.b32.xlu1 %v15094_v58, %s5594_s21  ;;  %15099 = vst [vmem:[#allocation402_spill] sm:$0xff] %v7960_v11  ;;  %v13952_v58 = vrot.slane %v5759_v60, 7 }
 0x28b   : > { %15093 = vst [vmem:[#allocation399_spill] sm:$0xff] %v7938_v49 }
 0x28c   : > { %2103 = vrot.lane.b32.xlu0 %v15095_v39, %s5594_s21  ;;  %v7944_v17 = vpop.permute.xlu1 %1979 }
 0x28d   : > { %15096 = vst [vmem:[#allocation190_spill] sm:$0xff] %v7944_v17 }
 0x28e   : > { %v7950_v5 = vpop.permute.xlu0 %1977  ;;  %2109 = vrot.lane.b32.xlu1 %v7263_v32, %s5594_s21 }
 0x28f   : > { %15097 = vst [vmem:[#allocation400_spill] sm:$0xff] %v7950_v5 }
 0x290   : > { %2107 = vrot.lane.b32.xlu0 %v7275_v20, %s5594_s21  ;;  %v7956_v49 = vpop.permute.xlu1 %1983  ;;  %v2116_v20 = vrot.slane %v5674_v16, 7 }
 0x291   : > { %15098 = vst [vmem:[#allocation401_spill] sm:$0xff] %v7956_v49  ;;  %v7984_v49 = vrot.slane %v5712_v38, 7 }
 0x292   : > { %v7962_v17 = vpop.permute.xlu0 %1981  ;;  %2113 = vrot.lane.b32.xlu1 %v7947_v27, %s5594_s21 }
 0x293   : > { %15100 = vst [vmem:[#allocation403_spill] sm:$0xff] %v7962_v17 }
 0x294   : > { %2111 = vrot.lane.b32.xlu0 %v7960_v11, %s5594_s21  ;;  %v7969_v5 = vpop.permute.xlu1 %1987 }
 0x295   : > { %15101 = vst [vmem:[#allocation404_spill] sm:$0xff] %v7969_v5 }
 0x296   : > { %v7972_v32 = vpop.permute.xlu0 %1985  ;;  %2134 = vrot.lane.b32.xlu1 %v13952_v58, %s5595_s22 }
 0x297   : > { %15102 = vst [vmem:[#allocation405_spill] sm:$0xff] %v7972_v32  ;;  %v7991_v32 = vrot.slane %v5849_v6, 7  ;;  %v227_v6 = vld [vmem:[%s5646_s17 + $0x1b8] sm:$0xff] }
 0x298   : > { %2132 = vrot.lane.b32.xlu0 %v2116_v20, %s5595_s22  ;;  %v7981_v17 = vpop.permute.xlu1 %1991  ;;  %v7998_v20 = vrot.slane %v5765_v0, 7  ;;  %v8026_v0 = vrot.slane %v14667_v2, 7 }
 0x299   : > { %15103 = vst [vmem:[#allocation406_spill] sm:$0xff] %v7981_v17 }
 0x29a   : > { %v7986_v11 = vpop.permute.xlu0 %1989  ;;  %2138 = vrot.lane.b32.xlu1 %v7978_v46, %s5595_s22  ;;  %15112 = vst [vmem:[#allocation415_spill] sm:$0xff] %v8026_v0 }
 0x29b   : > { %15104 = vst [vmem:[#allocation407_spill] sm:$0xff] %v7986_v11  ;;  %v8005_v11 = vrot.slane %v14671_v30, 7 }
 0x29c   : > { %2136 = vrot.lane.b32.xlu0 %v7984_v49, %s5595_s22  ;;  %v7995_v58 = vpop.permute.xlu1 %1999 }
 0x29d   : > { %15105 = vst [vmem:[#allocation408_spill] sm:$0xff] %v7995_v58  ;;  %15107 = vst [vmem:[#allocation410_spill] sm:$0xff] %v8005_v11  ;;  %v8012_v58 = vrot.slane %v5813_v44, 7  ;;  %v226_v44 = vld [vmem:[%s5646_s17 + $0x1b0] sm:$0xff] }
 0x29e   : > { %v8000_v17 = vpop.permute.xlu0 %1997  ;;  %2142 = vrot.lane.b32.xlu1 %v7991_v32, %s5595_s22 }
 0x29f   : > { %15106 = vst [vmem:[#allocation409_spill] sm:$0xff] %v8000_v17  ;;  %v8019_v17 = vrot.slane %v14679_v35, 7 }
 0x2a0   : > { %2140 = vrot.lane.b32.xlu0 %v7998_v20, %s5595_s22  ;;  %v8009_v5 = vpop.permute.xlu1 %2003 }
 0x2a1   : > { %15108 = vst [vmem:[#allocation411_spill] sm:$0xff] %v8009_v5  ;;  %15110 = vst [vmem:[#allocation413_spill] sm:$0xff] %v8019_v17 }
 0x2a2   : > { %v8014_v16 = vpop.permute.xlu0 %2001  ;;  %2146 = vrot.lane.b32.xlu1 %v8005_v11, %s5595_s22 }
 0x2a3   : > { %15109 = vst [vmem:[#allocation412_spill] sm:$0xff] %v8014_v16  ;;  %v8033_v16 = vrot.slane %v14687_v55, 7  ;;  %v8051_v55 = vpack.c.bf16 %v227_v6, %v226_v44  ;;  %v8073_v44 = vrot.slane %v7480_v36, 7 }
 0x2a4   : > { %2144 = vrot.lane.b32.xlu0 %v8012_v58, %s5595_s22  ;;  %v8023_v30 = vpop.permute.xlu1 %2007 }
 0x2a5   : > { %15111 = vst [vmem:[#allocation414_spill] sm:$0xff] %v8023_v30  ;;  %15114 = vst [vmem:[#allocation417_spill] sm:$0xff] %v8033_v16  ;;  %v8042_v30 = vrot.slane %v14675_v8, 7 }
 0x2a6   : > { %v8028_v5 = vpop.permute.xlu0 %2005  ;;  %2150 = vrot.lane.b32.xlu1 %v8019_v17, %s5595_s22  ;;  %15118 = vst [vmem:[#allocation421_spill] sm:$0xff] %v8051_v55  ;;  %15125 = vst [vmem:[#allocation426_spill] sm:$0xff] %v8073_v44 }
 0x2a7   : > { %15113 = vst [vmem:[#allocation416_spill] sm:$0xff] %v8028_v5  ;;  %v8049_v5 = vrot.slane %v6970_v63, 7  ;;  %v15123_v63 = vld [vmem:[#allocation12_spill] sm:$0xff] }
 0x2a8   : > { %2148 = vrot.lane.b32.xlu0 %v8026_v0, %s5595_s22  ;;  %v8039_v35 = vpop.permute.xlu1 %2011  ;;  %v2165_v34 = vrot.slane %v15123_v63, 7 }
 0x2a9   : > { %15115 = vst [vmem:[#allocation418_spill] sm:$0xff] %v8039_v35  ;;  %15117 = vst [vmem:[#allocation420_spill] sm:$0xff] %v8049_v5  ;;  %v8058_v35 = vrot.slane %v14683_v56, 7  ;;  %v15127_v56 = vld [vmem:[#allocation28_spill] sm:$0xff] }
 0x2aa   : > { %v8044_v2 = vpop.permute.xlu0 %2009  ;;  %2154 = vrot.lane.b32.xlu1 %v8033_v16, %s5595_s22 }
 0x2ab   : > { %15116 = vst [vmem:[#allocation419_spill] sm:$0xff] %v8044_v2  ;;  %15120 = vst [vmem:[#allocation423_spill] sm:$0xff] %v8058_v35  ;;  %v8065_v2 = vrot.slane %v8051_v55, 7 }
 0x2ac   : > { %2152 = vrot.lane.b32.xlu0 %v8042_v30, %s5595_s22  ;;  %v8055_v38 = vpop.permute.xlu1 %2015 }
 0x2ad   : > { %15119 = vst [vmem:[#allocation422_spill] sm:$0xff] %v8055_v38  ;;  %15122 = vst [vmem:[#allocation425_spill] sm:$0xff] %v8065_v2 }
 0x2ae   : > { %v8060_v8 = vpop.permute.xlu0 %2013  ;;  %2158 = vrot.lane.b32.xlu1 %v8049_v5, %s5595_s22  ;;  %v2168_v5 = vrot.slane %v15127_v56, 7 }
 0x2af   : > { %15121 = vst [vmem:[#allocation424_spill] sm:$0xff] %v8060_v8  ;;  %v2167_v8 = vsel %vm2164_vm6, %v2165_v34, %v14928_v45  ;;  %v15134_v45 = vld [vmem:[#allocation29_spill] sm:$0xff] }
 0x2b0   : > { %2156 = vrot.lane.b32.xlu0 %v8058_v35, %s5595_s22  ;;  %v8070_v6 = vpop.permute.xlu1 %2019 }
 0x2b1   : > { %15124 = vst [vmem:[#allocation12_spill] sm:$0xff] %v8070_v6  ;;  %v15129_v6 = vld [vmem:[#allocation13_spill] sm:$0xff] }
 0x2b2   : > { %v8075_v38 = vpop.permute.xlu0 %2017  ;;  %2162 = vrot.lane.b32.xlu1 %v8065_v2, %s5595_s22  ;;  %v2166_v16 = vor.u32 %v2165_v34, %v15129_v6  ;;  %v15131_v2 = vld [vmem:[#allocation22_spill] sm:$0xff] }
 0x2b3   : > { %15126 = vst [vmem:[#allocation427_spill] sm:$0xff] %v8075_v38  ;;  %v8092_v38 = vsel %vm2164_vm6, %v2168_v5, %v14941_v21  ;;  %v8095_v17 = vrot.slane %v15131_v2, 7 }
 0x2b4   : > { %2160 = vrot.lane.b32.xlu0 %v8073_v44, %s5595_s22  ;;  %v8084_v63 = vpop.permute.xlu1 %2023  ;;  %v8101_v44 = vor.u32 %v2168_v5, %v15134_v45  ;;  %v15139_v5 = vld [vmem:[#allocation23_spill] sm:$0xff] }
 0x2b5   : > { %15128 = vst [vmem:[#allocation28_spill] sm:$0xff] %v8084_v63  ;;  %15132 = vst [vmem:[#allocation428_spill] sm:$0xff] %v8095_v17  ;;  %v8110_v34 = vsel %vm2164_vm6, %v8095_v17, %v14937_v26  ;;  %v8121_v6 = vor.u32 %v8095_v17, %v15139_v5  ;;  %v15144_v17 = vld [vmem:[#allocation41_spill] sm:$0xff] }
 0x2b6   : > { %v8087_v35 = vpop.permute.xlu0 %2021  ;;  %2223 = vrot.lane.b32.xlu1 %v2167_v8, %s5596_s23  ;;  %v15136_v8 = vld [vmem:[#allocation40_spill] sm:$0xff] }
 0x2b7   : > { %15130 = vst [vmem:[#allocation13_spill] sm:$0xff] %v8087_v35  ;;  %v8113_v21 = vrot.slane %v15136_v8, 7 }
 0x2b8   : > { %2221 = vrot.lane.b32.xlu0 %v2166_v16, %s5596_s23  ;;  %v8098_v56 = vpop.permute.xlu1 %2027 }
 0x2b9   : > { %15133 = vst [vmem:[#allocation429_spill] sm:$0xff] %v8098_v56  ;;  %15137 = vst [vmem:[#allocation430_spill] sm:$0xff] %v8113_v21  ;;  %v15141_v56 = vld [vmem:[#allocation33_spill] sm:$0xff]  ;;  %v8141_v8 = vor.u32 %v8113_v21, %v15144_v17 }
 0x2ba   : > { %v8103_v63 = vpop.permute.xlu0 %2025  ;;  %2227 = vrot.lane.b32.xlu1 %v8092_v38, %s5596_s23  ;;  %v8133_v35 = vrot.slane %v15141_v56, 7  ;;  %v15146_v56 = vld [vmem:[#allocation51_spill] sm:$0xff] }
 0x2bb   : > { %15135 = vst [vmem:[#allocation29_spill] sm:$0xff] %v8103_v63  ;;  %v8130_v63 = vsel %vm2164_vm6, %v8113_v21, %v14949_v24  ;;  %v8153_v26 = vrot.slane %v15146_v56, 7  ;;  %v15149_v21 = vld [vmem:[#allocation34_spill] sm:$0xff]  ;;  %v15152_v56 = vld [vmem:[#allocation44_spill] sm:$0xff] }
 0x2bc   : > { %2225 = vrot.lane.b32.xlu0 %v8101_v44, %s5596_s23  ;;  %v8117_v16 = vpop.permute.xlu1 %2031  ;;  %15142 = vst [vmem:[#allocation433_spill] sm:$0xff] %v8133_v35  ;;  %v8150_v24 = vsel %vm2164_vm6, %v8133_v35, %v14945_v1  ;;  %v8161_v17 = vor.u32 %v8133_v35, %v15149_v21  ;;  %v8173_v5 = vrot.slane %v15152_v56, 7  ;;  %v15155_v35 = vld [vmem:[#allocation52_spill] sm:$0xff]  ;;  %v15158_v56 = vld [vmem:[#allocation63_spill] sm:$0xff] }
 0x2bd   : > { %15138 = vst [vmem:[#allocation431_spill] sm:$0xff] %v8117_v16  ;;  %15147 = vst [vmem:[#allocation436_spill] sm:$0xff] %v8153_v26  ;;  %v8170_v1 = vsel %vm2164_vm6, %v8153_v26, %v14957_v61  ;;  %v8181_v21 = vor.u32 %v8153_v26, %v15155_v35  ;;  %v8193_v2 = vrot.slane %v15158_v56, 7  ;;  %v15161_v26 = vld [vmem:[#allocation46_spill] sm:$0xff] }
 0x2be   : > { %v8123_v45 = vpop.permute.xlu0 %2029  ;;  %2231 = vrot.lane.b32.xlu1 %v8110_v34, %s5596_s23  ;;  %15151 = vst [vmem:[#allocation439_spill] sm:$0xff] %v8170_v1  ;;  %15153 = vst [vmem:[#allocation440_spill] sm:$0xff] %v8173_v5  ;;  %v8190_v61 = vsel %vm2164_vm6, %v8173_v5, %v14953_v31  ;;  %v8201_v35 = vor.u32 %v8173_v5, %v15161_v26  ;;  %v15164_v56 = vld [vmem:[#allocation58_spill] sm:$0xff]  ;;  %v15167_v5 = vld [vmem:[#allocation64_spill] sm:$0xff] }
 0x2bf   : > { %15140 = vst [vmem:[#allocation432_spill] sm:$0xff] %v8123_v45  ;;  %15157 = vst [vmem:[#allocation443_spill] sm:$0xff] %v8190_v61  ;;  %v8210_v31 = vsel %vm2164_vm6, %v8193_v2, %v14966_v42  ;;  %v8221_v26 = vor.u32 %v8193_v2, %v15167_v5 }
 0x2c0   : > { %2229 = vrot.lane.b32.xlu0 %v8121_v6, %s5596_s23  ;;  %v8137_v16 = vpop.permute.xlu1 %2042  ;;  %15159 = vst [vmem:[#allocation444_spill] sm:$0xff] %v8193_v2  ;;  %15163 = vst [vmem:[#allocation447_spill] sm:$0xff] %v8210_v31  ;;  %v15173_v2 = vld [vmem:[#allocation59_spill] sm:$0xff] }
 0x2c1   : > { %15143 = vst [vmem:[#allocation434_spill] sm:$0xff] %v8137_v16 }
 0x2c2   : > { %v8143_v45 = vpop.permute.xlu0 %2040  ;;  %2235 = vrot.lane.b32.xlu1 %v8130_v63, %s5596_s23 }
 0x2c3   : > { %15145 = vst [vmem:[#allocation435_spill] sm:$0xff] %v8143_v45 }
 0x2c4   : > { %2233 = vrot.lane.b32.xlu0 %v8141_v8, %s5596_s23  ;;  %v8157_v16 = vpop.permute.xlu1 %2046 }
 0x2c5   : > { %15148 = vst [vmem:[#allocation437_spill] sm:$0xff] %v8157_v16 }
 0x2c6   : > { %v8163_v45 = vpop.permute.xlu0 %2044  ;;  %2239 = vrot.lane.b32.xlu1 %v8150_v24, %s5596_s23 }
 0x2c7   : > { %15150 = vst [vmem:[#allocation438_spill] sm:$0xff] %v8163_v45 }
 0x2c8   : > { %2237 = vrot.lane.b32.xlu0 %v8161_v17, %s5596_s23  ;;  %v8177_v16 = vpop.permute.xlu1 %2050 }
 0x2c9   : > { %15154 = vst [vmem:[#allocation441_spill] sm:$0xff] %v8177_v16 }
 0x2ca   : > { %v8183_v45 = vpop.permute.xlu0 %2048  ;;  %2243 = vrot.lane.b32.xlu1 %v8170_v1, %s5596_s23  ;;  %v8213_v1 = vrot.slane %v15164_v56, 7  ;;  %v15170_v56 = vld [vmem:[#allocation76_spill] sm:$0xff] }
 0x2cb   : > { %15156 = vst [vmem:[#allocation442_spill] sm:$0xff] %v8183_v45 }
 0x2cc   : > { %2241 = vrot.lane.b32.xlu0 %v8181_v21, %s5596_s23  ;;  %v8197_v16 = vpop.permute.xlu1 %2054  ;;  %15165 = vst [vmem:[#allocation448_spill] sm:$0xff] %v8213_v1  ;;  %v8230_v42 = vsel %vm2164_vm6, %v8213_v1, %v14961_v29  ;;  %v8241_v5 = vor.u32 %v8213_v1, %v15173_v2  ;;  %v15179_v1 = vld [vmem:[#allocation77_spill] sm:$0xff] }
 0x2cd   : > { %15160 = vst [vmem:[#allocation445_spill] sm:$0xff] %v8197_v16  ;;  %15169 = vst [vmem:[#allocation451_spill] sm:$0xff] %v8230_v42 }
 0x2ce   : > { %v8203_v45 = vpop.permute.xlu0 %2052  ;;  %2247 = vrot.lane.b32.xlu1 %v8190_v61, %s5596_s23  ;;  %v8233_v61 = vrot.slane %v15170_v56, 7  ;;  %v15176_v56 = vld [vmem:[#allocation69_spill] sm:$0xff] }
 0x2cf   : > { %15162 = vst [vmem:[#allocation446_spill] sm:$0xff] %v8203_v45 }
 0x2d0   : > { %2245 = vrot.lane.b32.xlu0 %v8201_v35, %s5596_s23  ;;  %v8217_v16 = vpop.permute.xlu1 %2058  ;;  %15171 = vst [vmem:[#allocation452_spill] sm:$0xff] %v8233_v61  ;;  %v8250_v29 = vsel %vm2164_vm6, %v8233_v61, %v14976_v13  ;;  %v8261_v2 = vor.u32 %v8233_v61, %v15179_v1  ;;  %v15184_v61 = vld [vmem:[#allocation70_spill] sm:$0xff] }
 0x2d1   : > { %15166 = vst [vmem:[#allocation449_spill] sm:$0xff] %v8217_v16  ;;  %15175 = vst [vmem:[#allocation455_spill] sm:$0xff] %v8250_v29 }
 0x2d2   : > { %v8223_v45 = vpop.permute.xlu0 %2056  ;;  %2251 = vrot.lane.b32.xlu1 %v8210_v31, %s5596_s23  ;;  %v8253_v31 = vrot.slane %v15176_v56, 7  ;;  %v15181_v56 = vld [vmem:[#allocation87_spill] sm:$0xff] }
 0x2d3   : > { %15168 = vst [vmem:[#allocation450_spill] sm:$0xff] %v8223_v45 }
 0x2d4   : > { %2249 = vrot.lane.b32.xlu0 %v8221_v26, %s5596_s23  ;;  %v8237_v16 = vpop.permute.xlu1 %2062  ;;  %15177 = vst [vmem:[#allocation456_spill] sm:$0xff] %v8253_v31  ;;  %v8270_v13 = vsel %vm2164_vm6, %v8253_v31, %v14971_v50  ;;  %v15187_v50 = vld [vmem:[#allocation81_spill] sm:$0xff] }
 0x2d5   : > { %15172 = vst [vmem:[#allocation453_spill] sm:$0xff] %v8237_v16 }
 0x2d6   : > { %v8243_v45 = vpop.permute.xlu0 %2060  ;;  %2255 = vrot.lane.b32.xlu1 %v8230_v42, %s5596_s23  ;;  %v8273_v42 = vrot.slane %v15181_v56, 7 }
 0x2d7   : > { %15174 = vst [vmem:[#allocation454_spill] sm:$0xff] %v8243_v45 }
 0x2d8   : > { %2253 = vrot.lane.b32.xlu0 %v8241_v5, %s5596_s23  ;;  %v8257_v16 = vpop.permute.xlu1 %2066  ;;  %15182 = vst [vmem:[#allocation459_spill] sm:$0xff] %v8273_v42  ;;  %v8290_v56 = vsel %vm2164_vm6, %v8273_v42, %v14986_v14 }
 0x2d9   : > { %15178 = vst [vmem:[#allocation457_spill] sm:$0xff] %v8257_v16 }
 0x2da   : > { %v8263_v45 = vpop.permute.xlu0 %2064  ;;  %2259 = vrot.lane.b32.xlu1 %v8250_v29, %s5596_s23  ;;  %v8293_v29 = vrot.slane %v15187_v50, 7  ;;  %v8313_v50 = vrot.slane %v7027_v22, 7 }
 0x2db   : > { %15180 = vst [vmem:[#allocation458_spill] sm:$0xff] %v8263_v45  ;;  %v8281_v45 = vor.u32 %v8253_v31, %v15184_v61  ;;  %v15190_v31 = vld [vmem:[#allocation88_spill] sm:$0xff] }
 0x2dc   : > { %2257 = vrot.lane.b32.xlu0 %v8261_v2, %s5596_s23  ;;  %v8277_v16 = vpop.permute.xlu1 %2070  ;;  %15188 = vst [vmem:[#allocation463_spill] sm:$0xff] %v8293_v29  ;;  %v8301_v61 = vor.u32 %v8273_v42, %v15190_v31  ;;  %v8310_v14 = vsel %vm2164_vm6, %v8293_v29, %v14981_v18  ;;  %15193 = vst [vmem:[#allocation467_spill] sm:$0xff] %v8313_v50  ;;  %v15195_v42 = vld [vmem:[#allocation82_spill] sm:$0xff]  ;;  %v8331_v22 = vsel %vm2164_vm6, %v8313_v50, %v7031_v43 }
 0x2dd   : > { %15183 = vst [vmem:[#allocation460_spill] sm:$0xff] %v8277_v16  ;;  %15185 = vst [vmem:[#allocation461_spill] sm:$0xff] %v8281_v45  ;;  %v8321_v31 = vor.u32 %v8293_v29, %v15195_v42  ;;  %v8334_v18 = vrot.slane %v7537_v53, 7  ;;  %v8347_v29 = vor.u32 %v8313_v50, %v7016_v7  ;;  %v8373_v50 = vshll.u32 %v8051_v55, 16 }
 0x2de   : > { %v8283_v1 = vpop.permute.xlu0 %2068  ;;  %2263 = vrot.lane.b32.xlu1 %v8270_v13, %s5596_s23  ;;  %15191 = vst [vmem:[#allocation465_spill] sm:$0xff] %v8301_v61 }
 0x2df   : > { %15186 = vst [vmem:[#allocation462_spill] sm:$0xff] %v8283_v1  ;;  %15197 = vst [vmem:[#allocation470_spill] sm:$0xff] %v8334_v18 }
 0x2e0   : > { %2261 = vrot.lane.b32.xlu0 %v8281_v45, %s5596_s23  ;;  %v8297_v16 = vpop.permute.xlu1 %2074  ;;  %15200 = vst [vmem:[#allocation473_spill] sm:$0xff] %v8347_v29  ;;  %15207 = vst [vmem:[#allocation480_spill] sm:$0xff] %v8373_v50 }
 0x2e1   : > { %15189 = vst [vmem:[#allocation464_spill] sm:$0xff] %v8297_v16 }
 0x2e2   : > { %v8303_v1 = vpop.permute.xlu0 %2072  ;;  %2267 = vrot.lane.b32.xlu1 %v8290_v56, %s5596_s23 }
 0x2e3   : > { %15192 = vst [vmem:[#allocation466_spill] sm:$0xff] %v8303_v1  ;;  %v228_v1 = vld [vmem:[%s5646_s17 + $0x1c0] sm:$0x3f] }
 0x2e4   : > { %2265 = vrot.lane.b32.xlu0 %v8301_v61, %s5596_s23  ;;  %v8317_v16 = vpop.permute.xlu1 %2081  ;;  %v8336_v61 = vpack.c.bf16 %v228_v1, %v228_v1  ;;  %v8356_v1 = vsel %vm2164_vm6, %v8334_v18, %v7541_v48 }
 0x2e5   : > { %15194 = vst [vmem:[#allocation468_spill] sm:$0xff] %v8317_v16  ;;  %v8339_v16 = vshrl.u32 %v8051_v55, 16  ;;  %15202 = vst [vmem:[#allocation475_spill] sm:$0xff] %v8356_v1 }
 0x2e6   : > { %v8324_v45 = vpop.permute.xlu0 %2079  ;;  %2271 = vrot.lane.b32.xlu1 %v8310_v14, %s5596_s23  ;;  %15198 = vst [vmem:[#allocation471_spill] sm:$0xff] %v8336_v61  ;;  %v8362_v43 = vshll.u32 %v8336_v61, 16 }
 0x2e7   : > { %15196 = vst [vmem:[#allocation469_spill] sm:$0xff] %v8324_v45  ;;  %v8359_v53 = vrot.slane %v8339_v16, 7 }
 0x2e8   : > { %2269 = vrot.lane.b32.xlu0 %v8321_v31, %s5596_s23  ;;  %v8343_v45 = vpop.permute.xlu1 %2085  ;;  %15204 = vst [vmem:[#allocation477_spill] sm:$0xff] %v8362_v43 }
 0x2e9   : > { %15199 = vst [vmem:[#allocation472_spill] sm:$0xff] %v8343_v45  ;;  %15203 = vst [vmem:[#allocation476_spill] sm:$0xff] %v8359_v53  ;;  %v8382_v7 = vsel %vm2164_vm6, %v8359_v53, %v8362_v43 }
 0x2ea   : > { %v8349_v42 = vpop.permute.xlu0 %2083  ;;  %2275 = vrot.lane.b32.xlu1 %v8331_v22, %s5596_s23  ;;  %15209 = vst [vmem:[#allocation482_spill] sm:$0xff] %v8382_v7 }
 0x2eb   : > { %15201 = vst [vmem:[#allocation474_spill] sm:$0xff] %v8349_v42  ;;  %v8370_v42 = vor.u32 %v8334_v18, %v7526_v28  ;;  %v8390_v18 = vor.u32 %v8373_v50, %v8359_v53 }
 0x2ec   : > { %2273 = vrot.lane.b32.xlu0 %v8347_v29, %s5596_s23  ;;  %v8366_v45 = vpop.permute.xlu1 %2089 }
 0x2ed   : > { %15205 = vst [vmem:[#allocation478_spill] sm:$0xff] %v8366_v45  ;;  %15206 = vst [vmem:[#allocation479_spill] sm:$0xff] %v8370_v42 }
 0x2ee   : > { %v8375_v48 = vpop.permute.xlu0 %2087  ;;  %2279 = vrot.lane.b32.xlu1 %v8356_v1, %s5596_s23  ;;  %15211 = vst [vmem:[#allocation484_spill] sm:$0xff] %v8390_v18 }
 0x2ef   : > { %15208 = vst [vmem:[#allocation481_spill] sm:$0xff] %v8375_v48 }
 0x2f0   : > { %2277 = vrot.lane.b32.xlu0 %v8370_v42, %s5596_s23  ;;  %v8386_v45 = vpop.permute.xlu1 %2093  ;;  %v15215_v42 = vld [vmem:[#allocation26_spill] sm:$0xff] }
 0x2f1   : > { %15210 = vst [vmem:[#allocation483_spill] sm:$0xff] %v8386_v45  ;;  %v15216_v45 = vld [vmem:[#allocation11_spill] sm:$0xff] }
 0x2f2   : > { %v8392_v28 = vpop.permute.xlu0 %2091  ;;  %2283 = vrot.lane.b32.xlu1 %v8382_v7, %s5596_s23  ;;  %v15220_v7 = vld [vmem:[#allocation21_spill] sm:$0xff] }
 0x2f3   : > { %15212 = vst [vmem:[#allocation485_spill] sm:$0xff] %v8392_v28  ;;  %v15219_v28 = vld [vmem:[#allocation38_spill] sm:$0xff] }
 0x2f4   : > { %2281 = vrot.lane.b32.xlu0 %v8390_v18, %s5596_s23  ;;  %v8398_v48 = vpop.permute.xlu1 %2097 }
 0x2f5   : > { %15213 = vst [vmem:[#allocation486_spill] sm:$0xff] %v8398_v48 }
 0x2f6   : > { %v8400_v1 = vpop.permute.xlu0 %2095  ;;  %2288 = vrot.lane.b32.xlu1 %v15215_v42, %s5597_s24  ;;  %v15224_v42 = vld [vmem:[#allocation30_spill] sm:$0xff] }
 0x2f7   : > { %15214 = vst [vmem:[#allocation487_spill] sm:$0xff] %v8400_v1  ;;  %v15223_v1 = vld [vmem:[#allocation49_spill] sm:$0xff] }
 0x2f8   : > { %2286 = vrot.lane.b32.xlu0 %v15216_v45, %s5597_s24  ;;  %v8406_v53 = vpop.permute.xlu1 %2101 }
 0x2f9   : > { %15217 = vst [vmem:[#allocation488_spill] sm:$0xff] %v8406_v53 }
 0x2fa   : > { %v8408_v29 = vpop.permute.xlu0 %2099  ;;  %2292 = vrot.lane.b32.xlu1 %v15219_v28, %s5597_s24  ;;  %v15228_v28 = vld [vmem:[#allocation43_spill] sm:$0xff] }
 0x2fb   : > { %15218 = vst [vmem:[#allocation489_spill] sm:$0xff] %v8408_v29  ;;  %v15227_v29 = vld [vmem:[#allocation62_spill] sm:$0xff] }
 0x2fc   : > { %2290 = vrot.lane.b32.xlu0 %v15220_v7, %s5597_s24  ;;  %v8414_v18 = vpop.permute.xlu1 %2105 }
 0x2fd   : > { %15221 = vst [vmem:[#allocation490_spill] sm:$0xff] %v8414_v18 }
 0x2fe   : > { %v8416_v48 = vpop.permute.xlu0 %2103  ;;  %2296 = vrot.lane.b32.xlu1 %v15223_v1, %s5597_s24  ;;  %v15232_v1 = vld [vmem:[#allocation55_spill] sm:$0xff] }
 0x2ff   : > { %15222 = vst [vmem:[#allocation491_spill] sm:$0xff] %v8416_v48  ;;  %v15231_v48 = vld [vmem:[#allocation73_spill] sm:$0xff] }
 0x300   : > { %2294 = vrot.lane.b32.xlu0 %v15224_v42, %s5597_s24  ;;  %v8422_v45 = vpop.permute.xlu1 %2109 }
 0x301   : > { %15225 = vst [vmem:[#allocation492_spill] sm:$0xff] %v8422_v45 }
 0x302   : > { %v8424_v53 = vpop.permute.xlu0 %2107  ;;  %2300 = vrot.lane.b32.xlu1 %v15227_v29, %s5597_s24  ;;  %v15236_v29 = vld [vmem:[#allocation68_spill] sm:$0xff] }
 0x303   : > { %15226 = vst [vmem:[#allocation493_spill] sm:$0xff] %v8424_v53  ;;  %v15235_v53 = vld [vmem:[#allocation86_spill] sm:$0xff] }
 0x304   : > { %2298 = vrot.lane.b32.xlu0 %v15228_v28, %s5597_s24  ;;  %v8430_v7 = vpop.permute.xlu1 %2113 }
 0x305   : > { %15229 = vst [vmem:[#allocation494_spill] sm:$0xff] %v8430_v7 }
 0x306   : > { %v8432_v18 = vpop.permute.xlu0 %2111  ;;  %2304 = vrot.lane.b32.xlu1 %v15231_v48, %s5597_s24 }
 0x307   : > { %15230 = vst [vmem:[#allocation495_spill] sm:$0xff] %v8432_v18  ;;  %v15239_v18 = vld [vmem:[#allocation80_spill] sm:$0xff] }
 0x308   : > { %2302 = vrot.lane.b32.xlu0 %v15232_v1, %s5597_s24  ;;  %v8438_v42 = vpop.permute.xlu1 %2134 }
 0x309   : > { %15233 = vst [vmem:[#allocation496_spill] sm:$0xff] %v8438_v42 }
 0x30a   : > { %v8440_v45 = vpop.permute.xlu0 %2132  ;;  %2308 = vrot.lane.b32.xlu1 %v15235_v53, %s5597_s24 }
 0x30b   : > { %15234 = vst [vmem:[#allocation497_spill] sm:$0xff] %v8440_v45 }
 0x30c   : > { %2306 = vrot.lane.b32.xlu0 %v15236_v29, %s5597_s24  ;;  %v8446_v28 = vpop.permute.xlu1 %2138 }
 0x30d   : > { %15237 = vst [vmem:[#allocation86_spill] sm:$0xff] %v8446_v28 }
 0x30e   : > { %v8448_v7 = vpop.permute.xlu0 %2136  ;;  %2312 = vrot.lane.b32.xlu1 %v7013_v4, %s5597_s24 }
 0x30f   : > { %15238 = vst [vmem:[#allocation68_spill] sm:$0xff] %v8448_v7 }
 0x310   : > { %2310 = vrot.lane.b32.xlu0 %v15239_v18, %s5597_s24  ;;  %v8454_v48 = vpop.permute.xlu1 %2142 }
 0x311   : > { %15240 = vst [vmem:[#allocation80_spill] sm:$0xff] %v8454_v48 }
 0x312   : > { %v8456_v42 = vpop.permute.xlu0 %2140  ;;  %2316 = vrot.lane.b32.xlu1 %v7523_v19, %s5597_s24 }
 0x313   : > { %15241 = vst [vmem:[#allocation498_spill] sm:$0xff] %v8456_v42 }
 0x314   : > { %2314 = vrot.lane.b32.xlu0 %v7480_v36, %s5597_s24  ;;  %v8462_v45 = vpop.permute.xlu1 %2146  ;;  %v2324_v36 = vrot.slane %v8362_v43, 1 }
 0x315   : > { %15242 = vst [vmem:[#allocation499_spill] sm:$0xff] %v8462_v45 }
 0x316   : > { %v8464_v28 = vpop.permute.xlu0 %2144  ;;  %2320 = vrot.lane.b32.xlu1 %v8336_v61, %s5597_s24 }
 0x317   : > { %15243 = vst [vmem:[#allocation500_spill] sm:$0xff] %v8464_v28 }
 0x318   : > { %2318 = vrot.lane.b32.xlu0 %v8051_v55, %s5597_s24  ;;  %v8470_v7 = vpop.permute.xlu1 %2150 }
 0x319   : > { %15244 = vst [vmem:[#allocation501_spill] sm:$0xff] %v8470_v7 }
 0x31a   : > { %v8472_v48 = vpop.permute.xlu0 %2148  ;;  %2331 = vrot.lane.b32.xlu1 %v7599_v47, %s5598_s25 }
 0x31b   : > { %15245 = vst [vmem:[#allocation502_spill] sm:$0xff] %v8472_v48 }
 0x31c   : > { %2329 = vrot.lane.b32.xlu0 %v7575_v52, %s5598_s25  ;;  %v8478_v42 = vpop.permute.xlu1 %2154 }
 0x31d   : > { %15246 = vst [vmem:[#allocation503_spill] sm:$0xff] %v8478_v42 }
 0x31e   : > { %v8480_v45 = vpop.permute.xlu0 %2152  ;;  %2335 = vrot.lane.b32.xlu1 %v7617_v57, %s5598_s25 }
 0x31f   : > { %15247 = vst [vmem:[#allocation504_spill] sm:$0xff] %v8480_v45 }
 0x320   : > { %2333 = vrot.lane.b32.xlu0 %v7591_v62, %s5598_s25  ;;  %v8486_v28 = vpop.permute.xlu1 %2158 }
 0x321   : > { %15248 = vst [vmem:[#allocation505_spill] sm:$0xff] %v8486_v28 }
 0x322   : > { %v8488_v7 = vpop.permute.xlu0 %2156  ;;  %2339 = vrot.lane.b32.xlu1 %v7635_v9, %s5598_s25 }
 0x323   : > { %15249 = vst [vmem:[#allocation506_spill] sm:$0xff] %v8488_v7 }
 0x324   : > { %2337 = vrot.lane.b32.xlu0 %v7608_v23, %s5598_s25  ;;  %v8494_v52 = vpop.permute.xlu1 %2162 }
 0x325   : > { %15250 = vst [vmem:[#allocation507_spill] sm:$0xff] %v8494_v52 }
 0x326   : > { %v8496_v42 = vpop.permute.xlu0 %2160  ;;  %2343 = vrot.lane.b32.xlu1 %v7653_v59, %s5598_s25 }
 0x327   : > { %15251 = vst [vmem:[#allocation508_spill] sm:$0xff] %v8496_v42 }
 0x328   : > { %2341 = vrot.lane.b32.xlu0 %v7626_v37, %s5598_s25  ;;  %v8502_v45 = vpop.permute.xlu1 %2223 }
 0x329   : > { %15252 = vst [vmem:[#allocation509_spill] sm:$0xff] %v8502_v45  ;;  %v2322_v45 = vrot.slane %v8373_v50, 1 }
 0x32a   : > { %v8504_v28 = vpop.permute.xlu0 %2221  ;;  %2347 = vrot.lane.b32.xlu1 %v7671_v33, %s5598_s25 }
 0x32b   : > { %15253 = vst [vmem:[#allocation510_spill] sm:$0xff] %v8504_v28  ;;  %v15258_v28 = vld [vmem:[#allocation346_spill] sm:$0xff]  ;;  %v2323_v33 = vor.u32 %v2322_v45, %v8339_v16 }
 0x32c   : > { %2345 = vrot.lane.b32.xlu0 %v7644_v54, %s5598_s25  ;;  %v8510_v7 = vpop.permute.xlu1 %2227 }
 0x32d   : > { %15254 = vst [vmem:[#allocation511_spill] sm:$0xff] %v8510_v7  ;;  %v8527_v7 = vshrl.u32 %v8336_v61, 16  ;;  %v8546_v54 = vsel %vm282_vm0, %v2323_v33, %v2324_v36 }
 0x32e   : > { %v8512_v52 = vpop.permute.xlu0 %2225  ;;  %2351 = vrot.lane.b32.xlu1 %v7689_v3, %s5598_s25  ;;  %15267 = vst [vmem:[#allocation518_spill] sm:$0xff] %v8546_v54 }
 0x32f   : > { %15255 = vst [vmem:[#allocation512_spill] sm:$0xff] %v8512_v52  ;;  %15259 = vst [vmem:[#allocation515_spill] sm:$0xff] %v8527_v7  ;;  %v15260_v52 = vld [vmem:[#allocation342_spill] sm:$0xff] }
 0x330   : > { %2349 = vrot.lane.b32.xlu0 %v7662_v51, %s5598_s25  ;;  %v8518_v42 = vpop.permute.xlu1 %2231  ;;  %v15263_v51 = vld [vmem:[#allocation350_spill] sm:$0xff] }
 0x331   : > { %15256 = vst [vmem:[#allocation513_spill] sm:$0xff] %v8518_v42 }
 0x332   : > { %v8521_v48 = vpop.permute.xlu0 %2229  ;;  %2355 = vrot.lane.b32.xlu1 %v15258_v28, %s5598_s25  ;;  %v15265_v28 = vld [vmem:[#allocation91_spill] sm:$0xff] }
 0x333   : > { %15257 = vst [vmem:[#allocation514_spill] sm:$0xff] %v8521_v48  ;;  %v8539_v48 = vor.u32 %v8527_v7, %v2324_v36 }
 0x334   : > { %2353 = vrot.lane.b32.xlu0 %v15260_v52, %s5598_s25  ;;  %v8531_v3 = vpop.permute.xlu1 %2235 }
 0x335   : > { %15261 = vst [vmem:[#allocation516_spill] sm:$0xff] %v8531_v3  ;;  %15264 = vst [vmem:[#allocation350_spill] sm:$0xff] %v8539_v48 }
 0x336   : > { %v8534_v42 = vpop.permute.xlu0 %2233  ;;  %2359 = vrot.lane.b32.xlu1 %v15263_v51, %s5598_s25 }
 0x337   : > { %15262 = vst [vmem:[#allocation517_spill] sm:$0xff] %v8534_v42  ;;  %v15271_v42 = vld [vmem:[#allocation98_spill] sm:$0xff] }
 0x338   : > { %2357 = vrot.lane.b32.xlu0 %v15265_v28, %s5598_s25  ;;  %v8543_v59 = vpop.permute.xlu1 %2239  ;;  %v15272_v28 = vld [vmem:[#allocation94_spill] sm:$0xff] }
 0x339   : > { %15266 = vst [vmem:[#allocation91_spill] sm:$0xff] %v8543_v59  ;;  %v15275_v59 = vld [vmem:[#allocation102_spill] sm:$0xff] }
 0x33a   : > { %v8548_v52 = vpop.permute.xlu0 %2237  ;;  %2363 = vrot.lane.b32.xlu1 %v8539_v48, %s5598_s25 }
 0x33b   : > { %15268 = vst [vmem:[#allocation519_spill] sm:$0xff] %v8548_v52  ;;  %v15276_v52 = vld [vmem:[#allocation96_spill] sm:$0xff] }
 0x33c   : > { %2361 = vrot.lane.b32.xlu0 %v8546_v54, %s5598_s25  ;;  %v8554_v45 = vpop.permute.xlu1 %2243 }
 0x33d   : > { %15269 = vst [vmem:[#allocation520_spill] sm:$0xff] %v8554_v45 }
 0x33e   : > { %v8556_v3 = vpop.permute.xlu0 %2241  ;;  %2370 = vrot.lane.b32.xlu1 %v15271_v42, %s5599_s26  ;;  %v15280_v42 = vld [vmem:[#allocation100_spill] sm:$0xff] }
 0x33f   : > { %15270 = vst [vmem:[#allocation521_spill] sm:$0xff] %v8556_v3  ;;  %v15279_v3 = vld [vmem:[#allocation106_spill] sm:$0xff] }
 0x340   : > { %2368 = vrot.lane.b32.xlu0 %v15272_v28, %s5599_s26  ;;  %v8562_v36 = vpop.permute.xlu1 %2247 }
 0x341   : > { %15273 = vst [vmem:[#allocation98_spill] sm:$0xff] %v8562_v36 }
 0x342   : > { %v8564_v33 = vpop.permute.xlu0 %2245  ;;  %2374 = vrot.lane.b32.xlu1 %v15275_v59, %s5599_s26  ;;  %v15284_v59 = vld [vmem:[#allocation104_spill] sm:$0xff] }
 0x343   : > { %15274 = vst [vmem:[#allocation94_spill] sm:$0xff] %v8564_v33  ;;  %v15283_v33 = vld [vmem:[#allocation110_spill] sm:$0xff] }
 0x344   : > { %2372 = vrot.lane.b32.xlu0 %v15276_v52, %s5599_s26  ;;  %v8570_v54 = vpop.permute.xlu1 %2251 }
 0x345   : > { %15277 = vst [vmem:[#allocation102_spill] sm:$0xff] %v8570_v54 }
 0x346   : > { %v8572_v45 = vpop.permute.xlu0 %2249  ;;  %2378 = vrot.lane.b32.xlu1 %v15279_v3, %s5599_s26  ;;  %v15288_v3 = vld [vmem:[#allocation108_spill] sm:$0xff] }
 0x347   : > { %15278 = vst [vmem:[#allocation96_spill] sm:$0xff] %v8572_v45  ;;  %v15287_v45 = vld [vmem:[#allocation114_spill] sm:$0xff] }
 0x348   : > { %2376 = vrot.lane.b32.xlu0 %v15280_v42, %s5599_s26  ;;  %v8578_v28 = vpop.permute.xlu1 %2255 }
 0x349   : > { %15281 = vst [vmem:[#allocation106_spill] sm:$0xff] %v8578_v28 }
 0x34a   : > { %v8580_v36 = vpop.permute.xlu0 %2253  ;;  %2382 = vrot.lane.b32.xlu1 %v15283_v33, %s5599_s26  ;;  %v15292_v33 = vld [vmem:[#allocation112_spill] sm:$0xff] }
 0x34b   : > { %15282 = vst [vmem:[#allocation100_spill] sm:$0xff] %v8580_v36  ;;  %v15291_v36 = vld [vmem:[#allocation118_spill] sm:$0xff] }
 0x34c   : > { %2380 = vrot.lane.b32.xlu0 %v15284_v59, %s5599_s26  ;;  %v8586_v52 = vpop.permute.xlu1 %2259 }
 0x34d   : > { %15285 = vst [vmem:[#allocation110_spill] sm:$0xff] %v8586_v52 }
 0x34e   : > { %v8588_v54 = vpop.permute.xlu0 %2257  ;;  %2386 = vrot.lane.b32.xlu1 %v15287_v45, %s5599_s26  ;;  %v15296_v45 = vld [vmem:[#allocation115_spill] sm:$0xff] }
 0x34f   : > { %15286 = vst [vmem:[#allocation104_spill] sm:$0xff] %v8588_v54  ;;  %v15295_v54 = vld [vmem:[#allocation119_spill] sm:$0xff] }
 0x350   : > { %2384 = vrot.lane.b32.xlu0 %v15288_v3, %s5599_s26  ;;  %v8594_v42 = vpop.permute.xlu1 %2263 }
 0x351   : > { %15289 = vst [vmem:[#allocation114_spill] sm:$0xff] %v8594_v42  ;;  %v8613_v42 = vrot.slane %v8336_v61, 1 }
 0x352   : > { %v8596_v28 = vpop.permute.xlu0 %2261  ;;  %2390 = vrot.lane.b32.xlu1 %v15291_v36, %s5599_s26  ;;  %v2365_v36 = vrot.slane %v8051_v55, 1 }
 0x353   : > { %15290 = vst [vmem:[#allocation108_spill] sm:$0xff] %v8596_v28  ;;  %15298 = vst [vmem:[#allocation115_spill] sm:$0xff] %v8613_v42 }
 0x354   : > { %2388 = vrot.lane.b32.xlu0 %v15292_v33, %s5599_s26  ;;  %v8602_v59 = vpop.permute.xlu1 %2267  ;;  %v15300_v33 = vld [vmem:[#allocation368_spill] sm:$0xff] }
 0x355   : > { %15293 = vst [vmem:[#allocation118_spill] sm:$0xff] %v8602_v59  ;;  %v15301_v59 = vld [vmem:[#allocation370_spill] sm:$0xff] }
 0x356   : > { %v8604_v52 = vpop.permute.xlu0 %2265  ;;  %2394 = vrot.lane.b32.xlu1 %v15295_v54, %s5599_s26  ;;  %v8626_v54 = vsel %vm14339_vm1, %v2365_v36, %v8613_v42 }
 0x357   : > { %15294 = vst [vmem:[#allocation112_spill] sm:$0xff] %v8604_v52  ;;  %15303 = vst [vmem:[#allocation370_spill] sm:$0xff] %v8626_v54 }
 0x358   : > { %2392 = vrot.lane.b32.xlu0 %v15296_v45, %s5599_s26  ;;  %v8610_v3 = vpop.permute.xlu1 %2271 }
 0x359   : > { %15297 = vst [vmem:[#allocation119_spill] sm:$0xff] %v8610_v3 }
 0x35a   : > { %v8616_v28 = vpop.permute.xlu0 %2269  ;;  %2398 = vrot.lane.b32.xlu1 %v15300_v33, %s5599_s26 }
 0x35b   : > { %15299 = vst [vmem:[#allocation522_spill] sm:$0xff] %v8616_v28 }
 0x35c   : > { %2396 = vrot.lane.b32.xlu0 %v15301_v59, %s5599_s26  ;;  %v8622_v52 = vpop.permute.xlu1 %2275  ;;  %v15307_v59 = vld [vmem:[#allocation133_spill] sm:$0xff] }
 0x35d   : > { %15302 = vst [vmem:[#allocation368_spill] sm:$0xff] %v8622_v52  ;;  %v15308_v52 = vld [vmem:[#allocation126_spill] sm:$0xff] }
 0x35e   : > { %v8628_v45 = vpop.permute.xlu0 %2273  ;;  %2402 = vrot.lane.b32.xlu1 %v8613_v42, %s5599_s26  ;;  %v15312_v42 = vld [vmem:[#allocation130_spill] sm:$0xff] }
 0x35f   : > { %15304 = vst [vmem:[#allocation523_spill] sm:$0xff] %v8628_v45  ;;  %v15311_v45 = vld [vmem:[#allocation141_spill] sm:$0xff] }
 0x360   : > { %2400 = vrot.lane.b32.xlu0 %v8626_v54, %s5599_s26  ;;  %v8634_v3 = vpop.permute.xlu1 %2279 }
 0x361   : > { %15305 = vst [vmem:[#allocation524_spill] sm:$0xff] %v8634_v3 }
 0x362   : > { %v8636_v33 = vpop.permute.xlu0 %2277  ;;  %2413 = vrot.lane.b32.xlu1 %v15307_v59, %s5600_s27  ;;  %v15316_v59 = vld [vmem:[#allocation138_spill] sm:$0xff] }
 0x363   : > { %15306 = vst [vmem:[#allocation525_spill] sm:$0xff] %v8636_v33  ;;  %v15315_v33 = vld [vmem:[#allocation146_spill] sm:$0xff] }
 0x364   : > { %2411 = vrot.lane.b32.xlu0 %v15308_v52, %s5600_s27  ;;  %v8642_v36 = vpop.permute.xlu1 %2283 }
 0x365   : > { %15309 = vst [vmem:[#allocation133_spill] sm:$0xff] %v8642_v36 }
 0x366   : > { %v8644_v28 = vpop.permute.xlu0 %2281  ;;  %2417 = vrot.lane.b32.xlu1 %v15311_v45, %s5600_s27  ;;  %v15320_v45 = vld [vmem:[#allocation143_spill] sm:$0xff] }
 0x367   : > { %15310 = vst [vmem:[#allocation126_spill] sm:$0xff] %v8644_v28  ;;  %v15319_v28 = vld [vmem:[#allocation151_spill] sm:$0xff] }
 0x368   : > { %2415 = vrot.lane.b32.xlu0 %v15312_v42, %s5600_s27  ;;  %v8650_v54 = vpop.permute.xlu1 %2288 }
 0x369   : > { %15313 = vst [vmem:[#allocation141_spill] sm:$0xff] %v8650_v54 }
 0x36a   : > { %v8652_v3 = vpop.permute.xlu0 %2286  ;;  %2421 = vrot.lane.b32.xlu1 %v15315_v33, %s5600_s27  ;;  %v15324_v33 = vld [vmem:[#allocation148_spill] sm:$0xff] }
 0x36b   : > { %15314 = vst [vmem:[#allocation130_spill] sm:$0xff] %v8652_v3  ;;  %v15323_v3 = vld [vmem:[#allocation157_spill] sm:$0xff] }
 0x36c   : > { %2419 = vrot.lane.b32.xlu0 %v15316_v59, %s5600_s27  ;;  %v8658_v52 = vpop.permute.xlu1 %2292 }
 0x36d   : > { %15317 = vst [vmem:[#allocation146_spill] sm:$0xff] %v8658_v52 }
 0x36e   : > { %v8660_v36 = vpop.permute.xlu0 %2290  ;;  %2425 = vrot.lane.b32.xlu1 %v15319_v28, %s5600_s27  ;;  %v15328_v28 = vld [vmem:[#allocation155_spill] sm:$0xff] }
 0x36f   : > { %15318 = vst [vmem:[#allocation138_spill] sm:$0xff] %v8660_v36  ;;  %v15327_v36 = vld [vmem:[#allocation161_spill] sm:$0xff] }
 0x370   : > { %2423 = vrot.lane.b32.xlu0 %v15320_v45, %s5600_s27  ;;  %v8666_v42 = vpop.permute.xlu1 %2296 }
 0x371   : > { %15321 = vst [vmem:[#allocation151_spill] sm:$0xff] %v8666_v42  ;;  %v2408_v42 = vrot.slane %v8362_v43, 2 }
 0x372   : > { %v8668_v54 = vpop.permute.xlu0 %2294  ;;  %2429 = vrot.lane.b32.xlu1 %v15323_v3, %s5600_s27  ;;  %v2404_v3 = vrot.slane %v8339_v16, 1 }
 0x373   : > { %15322 = vst [vmem:[#allocation143_spill] sm:$0xff] %v8668_v54  ;;  %v2407_v54 = vrot.slane %v8527_v7, 1 }
 0x374   : > { %2427 = vrot.lane.b32.xlu0 %v15324_v33, %s5600_s27  ;;  %v8674_v59 = vpop.permute.xlu1 %2300  ;;  %v2405_v33 = vrot.slane %v8373_v50, 2 }
 0x375   : > { %15325 = vst [vmem:[#allocation157_spill] sm:$0xff] %v8674_v59 }
 0x376   : > { %v8676_v52 = vpop.permute.xlu0 %2298  ;;  %2433 = vrot.lane.b32.xlu1 %v15327_v36, %s5600_s27  ;;  %v15331_v36 = vld [vmem:[#allocation159_spill] sm:$0xff] }
 0x377   : > { %15326 = vst [vmem:[#allocation148_spill] sm:$0xff] %v8676_v52 }
 0x378   : > { %2431 = vrot.lane.b32.xlu0 %v15328_v28, %s5600_s27  ;;  %v8682_v45 = vpop.permute.xlu1 %2304  ;;  %v2409_v28 = vor.u32 %v2408_v42, %v2407_v54 }
 0x379   : > { %15329 = vst [vmem:[#allocation161_spill] sm:$0xff] %v8682_v45  ;;  %v2406_v45 = vor.u32 %v2405_v33, %v2404_v3  ;;  %v15341_v3 = vld [vmem:[#allocation167_spill] sm:$0xff] }
 0x37a   : > { %v8688_v48 = vpop.permute.xlu0 %2302  ;;  %2437 = vrot.lane.b32.xlu1 %v7191_v12, %s5600_s27 }
 0x37b   : > { %15330 = vst [vmem:[#allocation155_spill] sm:$0xff] %v8688_v48  ;;  %v2410_v48 = vsel %vm620_vm2, %v2406_v45, %v2409_v28  ;;  %v15340_v45 = vld [vmem:[#allocation173_spill] sm:$0xff]  ;;  %vm1675_vm2 = vcmask 195584  }
 0x37c   : > { %2435 = vrot.lane.b32.xlu0 %v15331_v36, %s5600_s27  ;;  %v8694_v52 = vpop.permute.xlu1 %2308  ;;  %v15344_v36 = vld [vmem:[#allocation177_spill] sm:$0xff] }
 0x37d   : > { %15332 = vst [vmem:[#allocation159_spill] sm:$0xff] %v8694_v52  ;;  %v15533_v52 = vld [vmem:[#allocation23_spill] sm:$0xff] }
 0x37e   : > { %v8696_v59 = vpop.permute.xlu0 %2306  ;;  %2441 = vrot.lane.b32.xlu1 %v7867_v40, %s5600_s27 }
 0x37f   : > { %15333 = vst [vmem:[#allocation526_spill] sm:$0xff] %v8696_v59 }
 0x380   : > { %2439 = vrot.lane.b32.xlu0 %v7879_v15, %s5600_s27  ;;  %v8702_v7 = vpop.permute.xlu1 %2312 }
 0x381   : > { %15334 = vst [vmem:[#allocation527_spill] sm:$0xff] %v8702_v7  ;;  %v15532_v7 = vld [vmem:[#allocation22_spill] sm:$0xff] }
 0x382   : > { %v8705_v12 = vpop.permute.xlu0 %2310  ;;  %2445 = vrot.lane.b32.xlu1 %v2409_v28, %s5600_s27  ;;  %v3462_v59 = vrot.slane %v15532_v7, 6  ;;  %v15537_v7 = vld [vmem:[#allocation25_spill] sm:$0xff] }
 0x383   : > { %15335 = vst [vmem:[#allocation528_spill] sm:$0xff] %v8705_v12 }
 0x384   : > { %2443 = vrot.lane.b32.xlu0 %v2410_v48, %s5600_s27  ;;  %v8709_v54 = vpop.permute.xlu1 %2316 }
 0x385   : > { %15336 = vst [vmem:[#allocation529_spill] sm:$0xff] %v8709_v54 }
 0x386   : > { %v8711_v42 = vpop.permute.xlu0 %2314  ;;  %2452 = vrot.lane.b32.xlu1 %v15075_v41, %s5601_s28  ;;  %v15345_v41 = vld [vmem:[#allocation171_spill] sm:$0xff] }
 0x387   : > { %15337 = vst [vmem:[#allocation530_spill] sm:$0xff] %v8711_v42  ;;  %v232_v42 = vld [vmem:[%s5646_s17 + $0x1e0] sm:$0xff] }
 0x388   : > { %2450 = vrot.lane.b32.xlu0 %v15070_v10, %s5601_s28  ;;  %v8717_v40 = vpop.permute.xlu1 %2320 }
 0x389   : > { %15338 = vst [vmem:[#allocation531_spill] sm:$0xff] %v8717_v40 }
 0x38a   : > { %v8719_v15 = vpop.permute.xlu0 %2318  ;;  %2456 = vrot.lane.b32.xlu1 %v15340_v45, %s5601_s28  ;;  %v15349_v45 = vld [vmem:[#allocation175_spill] sm:$0xff] }
 0x38b   : > { %15339 = vst [vmem:[#allocation532_spill] sm:$0xff] %v8719_v15  ;;  %v15348_v15 = vld [vmem:[#allocation180_spill] sm:$0xff] }
 0x38c   : > { %2454 = vrot.lane.b32.xlu0 %v15341_v3, %s5601_s28  ;;  %v8725_v48 = vpop.permute.xlu1 %2331 }
 0x38d   : > { %15342 = vst [vmem:[#allocation173_spill] sm:$0xff] %v8725_v48 }
 0x38e   : > { %v8727_v33 = vpop.permute.xlu0 %2329  ;;  %2460 = vrot.lane.b32.xlu1 %v15344_v36, %s5601_s28  ;;  %v15352_v36 = vld [vmem:[#allocation179_spill] sm:$0xff] }
 0x38f   : > { %15343 = vst [vmem:[#allocation167_spill] sm:$0xff] %v8727_v33 }
 0x390   : > { %2458 = vrot.lane.b32.xlu0 %v15345_v41, %s5601_s28  ;;  %v8733_v10 = vpop.permute.xlu1 %2335 }
 0x391   : > { %15346 = vst [vmem:[#allocation177_spill] sm:$0xff] %v8733_v10 }
 0x392   : > { %v8735_v28 = vpop.permute.xlu0 %2333  ;;  %2464 = vrot.lane.b32.xlu1 %v15348_v15, %s5601_s28  ;;  %v15355_v15 = vld [vmem:[#allocation182_spill] sm:$0xff] }
 0x393   : > { %15347 = vst [vmem:[#allocation171_spill] sm:$0xff] %v8735_v28  ;;  %v15384_v28 = vld [vmem:[#allocation426_spill] sm:$0xff] }
 0x394   : > { %2462 = vrot.lane.b32.xlu0 %v15349_v45, %s5601_s28  ;;  %v8741_v3 = vpop.permute.xlu1 %2339 }
 0x395   : > { %15350 = vst [vmem:[#allocation180_spill] sm:$0xff] %v8741_v3 }
 0x396   : > { %v8743_v48 = vpop.permute.xlu0 %2337  ;;  %2468 = vrot.lane.b32.xlu1 %v15091_v25, %s5601_s28  ;;  %v15359_v25 = vld [vmem:[#allocation189_spill] sm:$0xff] }
 0x397   : > { %15351 = vst [vmem:[#allocation175_spill] sm:$0xff] %v8743_v48  ;;  %v15358_v48 = vld [vmem:[#allocation18_spill] sm:$0xff] }
 0x398   : > { %2466 = vrot.lane.b32.xlu0 %v15352_v36, %s5601_s28  ;;  %v8749_v41 = vpop.permute.xlu1 %2343 }
 0x399   : > { %15353 = vst [vmem:[#allocation179_spill] sm:$0xff] %v8749_v41  ;;  %v2447_v41 = vrot.slane %v8051_v55, 2 }
 0x39a   : > { %v8751_v10 = vpop.permute.xlu0 %2341  ;;  %2472 = vrot.lane.b32.xlu1 %v15095_v39, %s5601_s28 }
 0x39b   : > { %15354 = vst [vmem:[#allocation533_spill] sm:$0xff] %v8751_v10  ;;  %v2448_v10 = vrot.slane %v8336_v61, 2 }
 0x39c   : > { %2470 = vrot.lane.b32.xlu0 %v15355_v15, %s5601_s28  ;;  %v8757_v45 = vpop.permute.xlu1 %2347  ;;  %v15362_v15 = vld [vmem:[#allocation402_spill] sm:$0xff] }
 0x39d   : > { %15356 = vst [vmem:[#allocation182_spill] sm:$0xff] %v8757_v45 }
 0x39e   : > { %v8759_v3 = vpop.permute.xlu0 %2345  ;;  %2476 = vrot.lane.b32.xlu1 %v15358_v48, %s5601_s28  ;;  %v2449_v48 = vsel %vm14313_vm3, %v2447_v41, %v2448_v10  ;;  %vm1840_vm3 = vcmask 318464  }
 0x39f   : > { %15357 = vst [vmem:[#allocation534_spill] sm:$0xff] %v8759_v3 }
 0x3a0   : > { %2474 = vrot.lane.b32.xlu0 %v15359_v25, %s5601_s28  ;;  %v8765_v36 = vpop.permute.xlu1 %2351 }
 0x3a1   : > { %15360 = vst [vmem:[#allocation18_spill] sm:$0xff] %v8765_v36 }
 0x3a2   : > { %v8769_v39 = vpop.permute.xlu0 %2349  ;;  %2480 = vrot.lane.b32.xlu1 %v7947_v27, %s5601_s28  ;;  %v15367_v27 = vrot.slane %v5759_v60, 7 }
 0x3a3   : > { %15361 = vst [vmem:[#allocation189_spill] sm:$0xff] %v8769_v39 }
 0x3a4   : > { %2478 = vrot.lane.b32.xlu0 %v15362_v15, %s5601_s28  ;;  %v8775_v3 = vpop.permute.xlu1 %2355 }
 0x3a5   : > { %15363 = vst [vmem:[#allocation402_spill] sm:$0xff] %v8775_v3 }
 0x3a6   : > { %v8778_v45 = vpop.permute.xlu0 %2353  ;;  %2484 = vrot.lane.b32.xlu1 %v2448_v10, %s5601_s28 }
 0x3a7   : > { %15364 = vst [vmem:[#allocation535_spill] sm:$0xff] %v8778_v45  ;;  %v15379_v45 = vld [vmem:[#allocation423_spill] sm:$0xff] }
 0x3a8   : > { %2482 = vrot.lane.b32.xlu0 %v2449_v48, %s5601_s28  ;;  %v8782_v25 = vpop.permute.xlu1 %2359 }
 0x3a9   : > { %15365 = vst [vmem:[#allocation536_spill] sm:$0xff] %v8782_v25  ;;  %v15376_v25 = vld [vmem:[#allocation413_spill] sm:$0xff] }
 0x3aa   : > { %v8784_v36 = vpop.permute.xlu0 %2357  ;;  %2490 = vrot.lane.b32.xlu1 %v7984_v49, %s5602_s29 }
 0x3ab   : > { %15366 = vst [vmem:[#allocation537_spill] sm:$0xff] %v8784_v36  ;;  %v230_v36 = vld [vmem:[%s5646_s17 + $0x1d0] sm:$0xff] }
 0x3ac   : > { %2488 = vrot.lane.b32.xlu0 %v15367_v27, %s5602_s29  ;;  %v8791_v15 = vpop.permute.xlu1 %2363 }
 0x3ad   : > { %15368 = vst [vmem:[#allocation538_spill] sm:$0xff] %v8791_v15 }
 0x3ae   : > { %v8793_v41 = vpop.permute.xlu0 %2361  ;;  %2494 = vrot.lane.b32.xlu1 %v7998_v20, %s5602_s29 }
 0x3af   : > { %15369 = vst [vmem:[#allocation539_spill] sm:$0xff] %v8793_v41 }
 0x3b0   : > { %2492 = vrot.lane.b32.xlu0 %v7978_v46, %s5602_s29  ;;  %v8799_v10 = vpop.permute.xlu1 %2370 }
 0x3b1   : > { %15370 = vst [vmem:[#allocation540_spill] sm:$0xff] %v8799_v10 }
 0x3b2   : > { %v8801_v48 = vpop.permute.xlu0 %2368  ;;  %2498 = vrot.lane.b32.xlu1 %v8012_v58, %s5602_s29 }
 0x3b3   : > { %15371 = vst [vmem:[#allocation541_spill] sm:$0xff] %v8801_v48  ;;  %v229_v48 = vld [vmem:[%s5646_s17 + $0x1c8] sm:$0xff] }
 0x3b4   : > { %2496 = vrot.lane.b32.xlu0 %v7991_v32, %s5602_s29  ;;  %v8807_v27 = vpop.permute.xlu1 %2374  ;;  %v8831_v3 = vpack.c.bf16 %v230_v36, %v229_v48  ;;  %v15389_v48 = vld [vmem:[#allocation425_spill] sm:$0xff] }
 0x3b5   : > { %15372 = vst [vmem:[#allocation542_spill] sm:$0xff] %v8807_v27 }
 0x3b6   : > { %v8809_v15 = vpop.permute.xlu0 %2372  ;;  %2502 = vrot.lane.b32.xlu1 %v8026_v0, %s5602_s29  ;;  %15380 = vst [vmem:[#allocation423_spill] sm:$0xff] %v8831_v3 }
 0x3b7   : > { %15373 = vst [vmem:[#allocation543_spill] sm:$0xff] %v8809_v15 }
 0x3b8   : > { %2500 = vrot.lane.b32.xlu0 %v8005_v11, %s5602_s29  ;;  %v8815_v41 = vpop.permute.xlu1 %2378 }
 0x3b9   : > { %15374 = vst [vmem:[#allocation544_spill] sm:$0xff] %v8815_v41  ;;  %v15381_v41 = vld [vmem:[#allocation417_spill] sm:$0xff] }
 0x3ba   : > { %v8817_v10 = vpop.permute.xlu0 %2376  ;;  %2506 = vrot.lane.b32.xlu1 %v8042_v30, %s5602_s29 }
 0x3bb   : > { %15375 = vst [vmem:[#allocation545_spill] sm:$0xff] %v8817_v10 }
 0x3bc   : > { %2504 = vrot.lane.b32.xlu0 %v15376_v25, %s5602_s29  ;;  %v8825_v27 = vpop.permute.xlu1 %2382  ;;  %v8842_v25 = vrot.slane %v8831_v3, 7 }
 0x3bd   : > { %15377 = vst [vmem:[#allocation546_spill] sm:$0xff] %v8825_v27 }
 0x3be   : > { %v8827_v15 = vpop.permute.xlu0 %2380  ;;  %2510 = vrot.lane.b32.xlu1 %v15379_v45, %s5602_s29  ;;  %15385 = vst [vmem:[#allocation426_spill] sm:$0xff] %v8842_v25 }
 0x3bf   : > { %15378 = vst [vmem:[#allocation547_spill] sm:$0xff] %v8827_v15  ;;  %v15386_v15 = vld [vmem:[#allocation420_spill] sm:$0xff] }
 0x3c0   : > { %2508 = vrot.lane.b32.xlu0 %v15381_v41, %s5602_s29  ;;  %v8835_v10 = vpop.permute.xlu1 %2386 }
 0x3c1   : > { %15382 = vst [vmem:[#allocation417_spill] sm:$0xff] %v8835_v10 }
 0x3c2   : > { %v8837_v39 = vpop.permute.xlu0 %2384  ;;  %2514 = vrot.lane.b32.xlu1 %v15384_v28, %s5602_s29 }
 0x3c3   : > { %15383 = vst [vmem:[#allocation548_spill] sm:$0xff] %v8837_v39 }
 0x3c4   : > { %2512 = vrot.lane.b32.xlu0 %v15386_v15, %s5602_s29  ;;  %v8846_v27 = vpop.permute.xlu1 %2390 }
 0x3c5   : > { %15387 = vst [vmem:[#allocation420_spill] sm:$0xff] %v8846_v27 }
 0x3c6   : > { %v8848_v36 = vpop.permute.xlu0 %2388  ;;  %2518 = vrot.lane.b32.xlu1 %v8842_v25, %s5602_s29 }
 0x3c7   : > { %15388 = vst [vmem:[#allocation549_spill] sm:$0xff] %v8848_v36 }
 0x3c8   : > { %2516 = vrot.lane.b32.xlu0 %v15389_v48, %s5602_s29  ;;  %v8854_v39 = vpop.permute.xlu1 %2394  ;;  %v15559_v48 = vld [vmem:[#allocation64_spill] sm:$0xff] }
 0x3c9   : > { %15390 = vst [vmem:[#allocation550_spill] sm:$0xff] %v8854_v39 }
 0x3ca   : > { %v8856_v10 = vpop.permute.xlu0 %2392  ;;  %2533 = vrot.lane.b32.xlu1 %v8092_v38, %s5603_s30 }
 0x3cb   : > { %15391 = vst [vmem:[#allocation551_spill] sm:$0xff] %v8856_v10 }
 0x3cc   : > { %2531 = vrot.lane.b32.xlu0 %v8101_v44, %s5603_s30  ;;  %v8862_v33 = vpop.permute.xlu1 %2398 }
 0x3cd   : > { %15392 = vst [vmem:[#allocation552_spill] sm:$0xff] %v8862_v33 }
 0x3ce   : > { %v8864_v27 = vpop.permute.xlu0 %2396  ;;  %2537 = vrot.lane.b32.xlu1 %v8110_v34, %s5603_s30 }
 0x3cf   : > { %15393 = vst [vmem:[#allocation553_spill] sm:$0xff] %v8864_v27 }
 0x3d0   : > { %2535 = vrot.lane.b32.xlu0 %v8121_v6, %s5603_s30  ;;  %v8870_v36 = vpop.permute.xlu1 %2402 }
 0x3d1   : > { %15394 = vst [vmem:[#allocation554_spill] sm:$0xff] %v8870_v36 }
 0x3d2   : > { %v8872_v39 = vpop.permute.xlu0 %2400  ;;  %2541 = vrot.lane.b32.xlu1 %v8130_v63, %s5603_s30 }
 0x3d3   : > { %15395 = vst [vmem:[#allocation555_spill] sm:$0xff] %v8872_v39  ;;  %v15400_v39 = vld [vmem:[#allocation439_spill] sm:$0xff] }
 0x3d4   : > { %2539 = vrot.lane.b32.xlu0 %v8141_v8, %s5603_s30  ;;  %v8878_v38 = vpop.permute.xlu1 %2413 }
 0x3d5   : > { %15396 = vst [vmem:[#allocation556_spill] sm:$0xff] %v8878_v38 }
 0x3d6   : > { %v8880_v44 = vpop.permute.xlu0 %2411  ;;  %2545 = vrot.lane.b32.xlu1 %v8150_v24, %s5603_s30 }
 0x3d7   : > { %15397 = vst [vmem:[#allocation557_spill] sm:$0xff] %v8880_v44  ;;  %v15403_v44 = vld [vmem:[#allocation443_spill] sm:$0xff] }
 0x3d8   : > { %2543 = vrot.lane.b32.xlu0 %v8161_v17, %s5603_s30  ;;  %v8886_v34 = vpop.permute.xlu1 %2417 }
 0x3d9   : > { %15398 = vst [vmem:[#allocation558_spill] sm:$0xff] %v8886_v34 }
 0x3da   : > { %v8888_v6 = vpop.permute.xlu0 %2415  ;;  %2549 = vrot.lane.b32.xlu1 %v15400_v39, %s5603_s30 }
 0x3db   : > { %15399 = vst [vmem:[#allocation559_spill] sm:$0xff] %v8888_v6  ;;  %v15406_v6 = vld [vmem:[#allocation447_spill] sm:$0xff] }
 0x3dc   : > { %2547 = vrot.lane.b32.xlu0 %v8181_v21, %s5603_s30  ;;  %v8894_v63 = vpop.permute.xlu1 %2421 }
 0x3dd   : > { %15401 = vst [vmem:[#allocation439_spill] sm:$0xff] %v8894_v63 }
 0x3de   : > { %v8896_v8 = vpop.permute.xlu0 %2419  ;;  %2553 = vrot.lane.b32.xlu1 %v15403_v44, %s5603_s30 }
 0x3df   : > { %15402 = vst [vmem:[#allocation560_spill] sm:$0xff] %v8896_v8  ;;  %v15409_v8 = vld [vmem:[#allocation451_spill] sm:$0xff] }
 0x3e0   : > { %2551 = vrot.lane.b32.xlu0 %v8201_v35, %s5603_s30  ;;  %v8902_v24 = vpop.permute.xlu1 %2425 }
 0x3e1   : > { %15404 = vst [vmem:[#allocation443_spill] sm:$0xff] %v8902_v24  ;;  %v15451_v24 = vld [vmem:[#allocation49_spill] sm:$0xff] }
 0x3e2   : > { %v8904_v17 = vpop.permute.xlu0 %2423  ;;  %2557 = vrot.lane.b32.xlu1 %v15406_v6, %s5603_s30 }
 0x3e3   : > { %15405 = vst [vmem:[#allocation561_spill] sm:$0xff] %v8904_v17  ;;  %v15412_v17 = vld [vmem:[#allocation455_spill] sm:$0xff] }
 0x3e4   : > { %2555 = vrot.lane.b32.xlu0 %v8221_v26, %s5603_s30  ;;  %v8910_v21 = vpop.permute.xlu1 %2429 }
 0x3e5   : > { %15407 = vst [vmem:[#allocation447_spill] sm:$0xff] %v8910_v21 }
 0x3e6   : > { %v8912_v39 = vpop.permute.xlu0 %2427  ;;  %2561 = vrot.lane.b32.xlu1 %v15409_v8, %s5603_s30 }
 0x3e7   : > { %15408 = vst [vmem:[#allocation562_spill] sm:$0xff] %v8912_v39 }
 0x3e8   : > { %2559 = vrot.lane.b32.xlu0 %v8241_v5, %s5603_s30  ;;  %v8918_v35 = vpop.permute.xlu1 %2433  ;;  %v15415_v5 = vld [vmem:[#allocation461_spill] sm:$0xff] }
 0x3e9   : > { %15410 = vst [vmem:[#allocation451_spill] sm:$0xff] %v8918_v35  ;;  %v15442_v35 = vld [vmem:[#allocation21_spill] sm:$0xff] }
 0x3ea   : > { %v8920_v44 = vpop.permute.xlu0 %2431  ;;  %2565 = vrot.lane.b32.xlu1 %v15412_v17, %s5603_s30  ;;  %v15418_v17 = vld [vmem:[#allocation465_spill] sm:$0xff] }
 0x3eb   : > { %15411 = vst [vmem:[#allocation563_spill] sm:$0xff] %v8920_v44 }
 0x3ec   : > { %2563 = vrot.lane.b32.xlu0 %v8261_v2, %s5603_s30  ;;  %v8926_v26 = vpop.permute.xlu1 %2437 }
 0x3ed   : > { %15413 = vst [vmem:[#allocation455_spill] sm:$0xff] %v8926_v26 }
 0x3ee   : > { %v8928_v6 = vpop.permute.xlu0 %2435  ;;  %2569 = vrot.lane.b32.xlu1 %v8270_v13, %s5603_s30 }
 0x3ef   : > { %15414 = vst [vmem:[#allocation564_spill] sm:$0xff] %v8928_v6 }
 0x3f0   : > { %2567 = vrot.lane.b32.xlu0 %v15415_v5, %s5603_s30  ;;  %v8934_v8 = vpop.permute.xlu1 %2441  ;;  %v231_v5 = vld [vmem:[%s5646_s17 + $0x1d8] sm:$0x3f] }
 0x3f1   : > { %15416 = vst [vmem:[#allocation461_spill] sm:$0xff] %v8934_v8  ;;  %v15436_v8 = vld [vmem:[#allocation484_spill] sm:$0xff] }
 0x3f2   : > { %v8936_v44 = vpop.permute.xlu0 %2439  ;;  %2573 = vrot.lane.b32.xlu1 %v8290_v56, %s5603_s30  ;;  %v8957_v56 = vpack.c.bf16 %v231_v5, %v231_v5  ;;  %v15431_v5 = vld [vmem:[#allocation479_spill] sm:$0xff] }
 0x3f3   : > { %15417 = vst [vmem:[#allocation565_spill] sm:$0xff] %v8936_v44 }
 0x3f4   : > { %2571 = vrot.lane.b32.xlu0 %v15418_v17, %s5603_s30  ;;  %v8942_v2 = vpop.permute.xlu1 %2445  ;;  %15423 = vst [vmem:[#allocation569_spill] sm:$0xff] %v8957_v56  ;;  %v8960_v17 = vshrl.u32 %v8831_v3, 16 }
 0x3f5   : > { %15419 = vst [vmem:[#allocation465_spill] sm:$0xff] %v8942_v2 }
 0x3f6   : > { %v8944_v26 = vpop.permute.xlu0 %2443  ;;  %2577 = vrot.lane.b32.xlu1 %v8310_v14, %s5603_s30  ;;  %15424 = vst [vmem:[#allocation570_spill] sm:$0xff] %v8960_v17 }
 0x3f7   : > { %15420 = vst [vmem:[#allocation566_spill] sm:$0xff] %v8944_v26  ;;  %v15425_v26 = vld [vmem:[#allocation473_spill] sm:$0xff] }
 0x3f8   : > { %2575 = vrot.lane.b32.xlu0 %v8321_v31, %s5603_s30  ;;  %v8950_v13 = vpop.permute.xlu1 %2452  ;;  %v15428_v31 = vld [vmem:[#allocation475_spill] sm:$0xff] }
 0x3f9   : > { %15421 = vst [vmem:[#allocation567_spill] sm:$0xff] %v8950_v13 }
 0x3fa   : > { %v8953_v44 = vpop.permute.xlu0 %2450  ;;  %2581 = vrot.lane.b32.xlu1 %v8331_v22, %s5603_s30  ;;  %v8974_v22 = vshll.u32 %v8957_v56, 16 }
 0x3fb   : > { %15422 = vst [vmem:[#allocation568_spill] sm:$0xff] %v8953_v44  ;;  %v8971_v44 = vrot.slane %v8960_v17, 7 }
 0x3fc   : > { %2579 = vrot.lane.b32.xlu0 %v15425_v26, %s5603_s30  ;;  %v8964_v14 = vpop.permute.xlu1 %2456  ;;  %15430 = vst [vmem:[#allocation572_spill] sm:$0xff] %v8974_v22  ;;  %v8981_v26 = vshll.u32 %v8831_v3, 16 }
 0x3fd   : > { %15426 = vst [vmem:[#allocation473_spill] sm:$0xff] %v8964_v14  ;;  %15429 = vst [vmem:[#allocation475_spill] sm:$0xff] %v8971_v44 }
 0x3fe   : > { %v8966_v2 = vpop.permute.xlu0 %2454  ;;  %2585 = vrot.lane.b32.xlu1 %v15428_v31, %s5603_s30  ;;  %15433 = vst [vmem:[#allocation573_spill] sm:$0xff] %v8981_v26  ;;  %v2530_v31 = vsel %vm2164_vm6, %v8971_v44, %v8974_v22 }
 0x3ff   : > { %15427 = vst [vmem:[#allocation571_spill] sm:$0xff] %v8966_v2  ;;  %v15435_v2 = vld [vmem:[#allocation482_spill] sm:$0xff] }
 0x400   : > { %2583 = vrot.lane.b32.xlu0 %v15431_v5, %s5603_s30  ;;  %v8978_v13 = vpop.permute.xlu1 %2460  ;;  %v8996_v5 = vor.u32 %v8981_v26, %v8971_v44  ;;  %v3463_v44 = vrot.slane %v15533_v52, 7  ;;  %v15538_v52 = vld [vmem:[#allocation40_spill] sm:$0xff] }
 0x401   : > { %15432 = vst [vmem:[#allocation479_spill] sm:$0xff] %v8978_v13  ;;  %v3467_v25 = vrot.slane %v15538_v52, 6  ;;  %v15542_v52 = vld [vmem:[#allocation42_spill] sm:$0xff] }
 0x402   : > { %v8983_v14 = vpop.permute.xlu0 %2458  ;;  %2589 = vrot.lane.b32.xlu1 %v15435_v2, %s5603_s30  ;;  %15438 = vst [vmem:[#allocation484_spill] sm:$0xff] %v8996_v5 }
 0x403   : > { %15434 = vst [vmem:[#allocation574_spill] sm:$0xff] %v8983_v14 }
 0x404   : > { %2587 = vrot.lane.b32.xlu0 %v15436_v8, %s5603_s30  ;;  %v8992_v6 = vpop.permute.xlu1 %2464  ;;  %v15443_v8 = vld [vmem:[#allocation26_spill] sm:$0xff] }
 0x405   : > { %15437 = vst [vmem:[#allocation482_spill] sm:$0xff] %v8992_v6 }
 0x406   : > { %v8998_v13 = vpop.permute.xlu0 %2462  ;;  %2593 = vrot.lane.b32.xlu1 %v2530_v31, %s5603_s30  ;;  %v15447_v31 = vld [vmem:[#allocation38_spill] sm:$0xff] }
 0x407   : > { %15439 = vst [vmem:[#allocation575_spill] sm:$0xff] %v8998_v13  ;;  %v15446_v13 = vld [vmem:[#allocation30_spill] sm:$0xff] }
 0x408   : > { %2591 = vrot.lane.b32.xlu0 %v8996_v5, %s5603_s30  ;;  %v9003_v2 = vpop.permute.xlu1 %2468  ;;  %v15525_v5 = vld [vmem:[#allocation65_spill] sm:$0xff] }
 0x409   : > { %15440 = vst [vmem:[#allocation576_spill] sm:$0xff] %v9003_v2 }
 0x40a   : > { %v9005_v14 = vpop.permute.xlu0 %2466  ;;  %2598 = vrot.lane.b32.xlu1 %v15442_v35, %s5604_s4 }
 0x40b   : > { %15441 = vst [vmem:[#allocation577_spill] sm:$0xff] %v9005_v14  ;;  %v15450_v14 = vld [vmem:[#allocation43_spill] sm:$0xff] }
 0x40c   : > { %2596 = vrot.lane.b32.xlu0 %v15443_v8, %s5604_s4  ;;  %v9011_v6 = vpop.permute.xlu1 %2472 }
 0x40d   : > { %15444 = vst [vmem:[#allocation21_spill] sm:$0xff] %v9011_v6 }
 0x40e   : > { %v9013_v39 = vpop.permute.xlu0 %2470  ;;  %2602 = vrot.lane.b32.xlu1 %v15446_v13, %s5604_s4 }
 0x40f   : > { %15445 = vst [vmem:[#allocation578_spill] sm:$0xff] %v9013_v39  ;;  %v15454_v39 = vld [vmem:[#allocation62_spill] sm:$0xff] }
 0x410   : > { %2600 = vrot.lane.b32.xlu0 %v15447_v31, %s5604_s4  ;;  %v9019_v21 = vpop.permute.xlu1 %2476 }
 0x411   : > { %15448 = vst [vmem:[#allocation30_spill] sm:$0xff] %v9019_v21 }
 0x412   : > { %v9021_v2 = vpop.permute.xlu0 %2474  ;;  %2606 = vrot.lane.b32.xlu1 %v15450_v14, %s5604_s4 }
 0x413   : > { %15449 = vst [vmem:[#allocation38_spill] sm:$0xff] %v9021_v2  ;;  %v15457_v2 = vld [vmem:[#allocation73_spill] sm:$0xff] }
 0x414   : > { %2604 = vrot.lane.b32.xlu0 %v15451_v24, %s5604_s4  ;;  %v9027_v63 = vpop.permute.xlu1 %2480 }
 0x415   : > { %15452 = vst [vmem:[#allocation43_spill] sm:$0xff] %v9027_v63 }
 0x416   : > { %v9029_v6 = vpop.permute.xlu0 %2478  ;;  %2610 = vrot.lane.b32.xlu1 %v15232_v1, %s5604_s4 }
 0x417   : > { %15453 = vst [vmem:[#allocation49_spill] sm:$0xff] %v9029_v6 }
 0x418   : > { %2608 = vrot.lane.b32.xlu0 %v15454_v39, %s5604_s4  ;;  %v9035_v34 = vpop.permute.xlu1 %2484 }
 0x419   : > { %15455 = vst [vmem:[#allocation579_spill] sm:$0xff] %v9035_v34 }
 0x41a   : > { %v9037_v21 = vpop.permute.xlu0 %2482  ;;  %2614 = vrot.lane.b32.xlu1 %v15236_v29, %s5604_s4 }
 0x41b   : > { %15456 = vst [vmem:[#allocation580_spill] sm:$0xff] %v9037_v21 }
 0x41c   : > { %2612 = vrot.lane.b32.xlu0 %v15457_v2, %s5604_s4  ;;  %v9043_v38 = vpop.permute.xlu1 %2490 }
 0x41d   : > { %15458 = vst [vmem:[#allocation581_spill] sm:$0xff] %v9043_v38 }
 0x41e   : > { %v9045_v63 = vpop.permute.xlu0 %2488  ;;  %2618 = vrot.lane.b32.xlu1 %v15239_v18, %s5604_s4 }
 0x41f   : > { %15459 = vst [vmem:[#allocation582_spill] sm:$0xff] %v9045_v63 }
 0x420   : > { %2616 = vrot.lane.b32.xlu0 %v15235_v53, %s5604_s4  ;;  %v9051_v6 = vpop.permute.xlu1 %2494 }
 0x421   : > { %15460 = vst [vmem:[#allocation583_spill] sm:$0xff] %v9051_v6 }
 0x422   : > { %v9053_v34 = vpop.permute.xlu0 %2492  ;;  %2622 = vrot.lane.b32.xlu1 %v7523_v19, %s5604_s4 }
 0x423   : > { %15461 = vst [vmem:[#allocation584_spill] sm:$0xff] %v9053_v34 }
 0x424   : > { %2620 = vrot.lane.b32.xlu0 %v7013_v4, %s5604_s4  ;;  %v9059_v21 = vpop.permute.xlu1 %2498 }
 0x425   : > { %15462 = vst [vmem:[#allocation585_spill] sm:$0xff] %v9059_v21 }
 0x426   : > { %v9061_v38 = vpop.permute.xlu0 %2496  ;;  %2626 = vrot.lane.b32.xlu1 %v8336_v61, %s5604_s4  ;;  %v3488_v61 = vrot.slane %v15559_v48, 7  ;;  %v15564_v48 = vld [vmem:[#allocation67_spill] sm:$0xff] }
 0x427   : > { %15463 = vst [vmem:[#allocation586_spill] sm:$0xff] %v9061_v38  ;;  %v3490_v1 = vrot.slane %v15564_v48, 7  ;;  %v15570_v48 = vld [vmem:[#allocation77_spill] sm:$0xff] }
 0x428   : > { %2624 = vrot.lane.b32.xlu0 %v8051_v55, %s5604_s4  ;;  %v9067_v63 = vpop.permute.xlu1 %2502  ;;  %v3498_v43 = vrot.slane %v15570_v48, 7 }
 0x429   : > { %15464 = vst [vmem:[#allocation587_spill] sm:$0xff] %v9067_v63 }
 0x42a   : > { %v9069_v6 = vpop.permute.xlu0 %2500  ;;  %2630 = vrot.lane.b32.xlu1 %v8957_v56, %s5604_s4 }
 0x42b   : > { %15465 = vst [vmem:[#allocation588_spill] sm:$0xff] %v9069_v6 }
 0x42c   : > { %2628 = vrot.lane.b32.xlu0 %v8831_v3, %s5604_s4  ;;  %v9075_v34 = vpop.permute.xlu1 %2506 }
 0x42d   : > { %15466 = vst [vmem:[#allocation589_spill] sm:$0xff] %v9075_v34 }
 0x42e   : > { %v9077_v21 = vpop.permute.xlu0 %2504  ;;  %2641 = vrot.lane.b32.xlu1 %v7591_v62, %s5605_s5 }
 0x42f   : > { %15467 = vst [vmem:[#allocation590_spill] sm:$0xff] %v9077_v21 }
 0x430   : > { %2639 = vrot.lane.b32.xlu0 %v7599_v47, %s5605_s5  ;;  %v9083_v38 = vpop.permute.xlu1 %2510 }
 0x431   : > { %15468 = vst [vmem:[#allocation591_spill] sm:$0xff] %v9083_v38  ;;  %v15474_v38 = vld [vmem:[#allocation334_spill] sm:$0xff] }
 0x432   : > { %v9085_v63 = vpop.permute.xlu0 %2508  ;;  %2645 = vrot.lane.b32.xlu1 %v7608_v23, %s5605_s5  ;;  %v15475_v23 = vld [vmem:[#allocation336_spill] sm:$0xff] }
 0x433   : > { %15469 = vst [vmem:[#allocation592_spill] sm:$0xff] %v9085_v63 }
 0x434   : > { %2643 = vrot.lane.b32.xlu0 %v7617_v57, %s5605_s5  ;;  %v9091_v6 = vpop.permute.xlu1 %2514 }
 0x435   : > { %15470 = vst [vmem:[#allocation593_spill] sm:$0xff] %v9091_v6 }
 0x436   : > { %v9093_v34 = vpop.permute.xlu0 %2512  ;;  %2649 = vrot.lane.b32.xlu1 %v7626_v37, %s5605_s5  ;;  %v15479_v37 = vld [vmem:[#allocation340_spill] sm:$0xff] }
 0x437   : > { %15471 = vst [vmem:[#allocation594_spill] sm:$0xff] %v9093_v34  ;;  %v15478_v34 = vld [vmem:[#allocation338_spill] sm:$0xff] }
 0x438   : > { %2647 = vrot.lane.b32.xlu0 %v7635_v9, %s5605_s5  ;;  %v9099_v62 = vpop.permute.xlu1 %2518 }
 0x439   : > { %15472 = vst [vmem:[#allocation595_spill] sm:$0xff] %v9099_v62 }
 0x43a   : > { %v9101_v47 = vpop.permute.xlu0 %2516  ;;  %2653 = vrot.lane.b32.xlu1 %v15474_v38, %s5605_s5  ;;  %v15483_v38 = vld [vmem:[#allocation344_spill] sm:$0xff] }
 0x43b   : > { %15473 = vst [vmem:[#allocation596_spill] sm:$0xff] %v9101_v47  ;;  %v15482_v47 = vld [vmem:[#allocation342_spill] sm:$0xff] }
 0x43c   : > { %2651 = vrot.lane.b32.xlu0 %v15475_v23, %s5605_s5  ;;  %v9107_v57 = vpop.permute.xlu1 %2533 }
 0x43d   : > { %15476 = vst [vmem:[#allocation334_spill] sm:$0xff] %v9107_v57  ;;  %v2632_v57 = vrot.slane %v8981_v26, 1 }
 0x43e   : > { %v9109_v6 = vpop.permute.xlu0 %2531  ;;  %2657 = vrot.lane.b32.xlu1 %v15478_v34, %s5605_s5  ;;  %v2634_v34 = vrot.slane %v8974_v22, 1 }
 0x43f   : > { %15477 = vst [vmem:[#allocation336_spill] sm:$0xff] %v9109_v6 }
 0x440   : > { %2655 = vrot.lane.b32.xlu0 %v15479_v37, %s5605_s5  ;;  %v9115_v9 = vpop.permute.xlu1 %2537  ;;  %v14127_v37 = vshrl.u32 %v8957_v56, 16 }
 0x441   : > { %15480 = vst [vmem:[#allocation338_spill] sm:$0xff] %v9115_v9  ;;  %v15486_v9 = vld [vmem:[#allocation346_spill] sm:$0xff] }
 0x442   : > { %v9117_v62 = vpop.permute.xlu0 %2535  ;;  %2661 = vrot.lane.b32.xlu1 %v15482_v47, %s5605_s5 }
 0x443   : > { %15481 = vst [vmem:[#allocation340_spill] sm:$0xff] %v9117_v62 }
 0x444   : > { %2659 = vrot.lane.b32.xlu0 %v15483_v38, %s5605_s5  ;;  %v9123_v23 = vpop.permute.xlu1 %2541  ;;  %v2633_v38 = vor.u32 %v2632_v57, %v8960_v17  ;;  %v15544_v17 = vld [vmem:[#allocation34_spill] sm:$0xff] }
 0x445   : > { %15484 = vst [vmem:[#allocation342_spill] sm:$0xff] %v9123_v23  ;;  %v15489_v23 = vld [vmem:[#allocation350_spill] sm:$0xff] }
 0x446   : > { %v9126_v63 = vpop.permute.xlu0 %2539  ;;  %2665 = vrot.lane.b32.xlu1 %v15263_v51, %s5605_s5  ;;  %v15491_v51 = vld [vmem:[#allocation518_spill] sm:$0xff] }
 0x447   : > { %15485 = vst [vmem:[#allocation344_spill] sm:$0xff] %v9126_v63  ;;  %v9143_v63 = vor.u32 %v14127_v37, %v2634_v34 }
 0x448   : > { %2663 = vrot.lane.b32.xlu0 %v15486_v9, %s5605_s5  ;;  %v9134_v47 = vpop.permute.xlu1 %2545  ;;  %v9150_v9 = vsel %vm282_vm0, %v2633_v38, %v2634_v34 }
 0x449   : > { %15487 = vst [vmem:[#allocation346_spill] sm:$0xff] %v9134_v47  ;;  %15490 = vst [vmem:[#allocation350_spill] sm:$0xff] %v9143_v63 }
 0x44a   : > { %v9137_v21 = vpop.permute.xlu0 %2543  ;;  %2669 = vrot.lane.b32.xlu1 %v15489_v23, %s5605_s5  ;;  %15493 = vst [vmem:[#allocation598_spill] sm:$0xff] %v9150_v9 }
 0x44b   : > { %15488 = vst [vmem:[#allocation597_spill] sm:$0xff] %v9137_v21  ;;  %v15507_v21 = vld [vmem:[#allocation36_spill] sm:$0xff] }
 0x44c   : > { %2667 = vrot.lane.b32.xlu0 %v15491_v51, %s5605_s5  ;;  %v9147_v62 = vpop.permute.xlu1 %2549  ;;  %v14139_v6 = vrot.slane %v15507_v21, 6 }
 0x44d   : > { %15492 = vst [vmem:[#allocation518_spill] sm:$0xff] %v9147_v62 }
 0x44e   : > { %v9152_v47 = vpop.permute.xlu0 %2547  ;;  %2673 = vrot.lane.b32.xlu1 %v9143_v63, %s5605_s5 }
 0x44f   : > { %15494 = vst [vmem:[#allocation599_spill] sm:$0xff] %v9152_v47 }
 0x450   : > { %2671 = vrot.lane.b32.xlu0 %v9150_v9, %s5605_s5  ;;  %v9158_v57 = vpop.permute.xlu1 %2553 }
 0x451   : > { %15495 = vst [vmem:[#allocation600_spill] sm:$0xff] %v9158_v57  ;;  %v9177_v57 = vrot.slane %v8957_v56, 1  ;;  %v15539_v56 = vld [vmem:[#allocation41_spill] sm:$0xff] }
 0x452   : > { %v9160_v37 = vpop.permute.xlu0 %2551  ;;  %3395 = vrot.lane.b32.xlu1 %v15489_v23, %s5591_s18  ;;  %v3401_v23 = vrot.slane %v8831_v3, 1 }
 0x453   : > { %15496 = vst [vmem:[#allocation601_spill] sm:$0xff] %v9160_v37  ;;  %15500 = vst [vmem:[#allocation605_spill] sm:$0xff] %v9177_v57 }
 0x454   : > { %3393 = vrot.lane.b32.xlu0 %v15491_v51, %s5591_s18  ;;  %v9166_v34 = vpop.permute.xlu1 %2557  ;;  %v15502_v51 = vld [vmem:[#allocation115_spill] sm:$0xff]  ;;  %v9190_v47 = vsel %vm14339_vm1, %v3401_v23, %v9177_v57 }
 0x455   : > { %15497 = vst [vmem:[#allocation602_spill] sm:$0xff] %v9166_v34  ;;  %v15503_v34 = vld [vmem:[#allocation370_spill] sm:$0xff]  ;;  %v15511_v23 = vld [vmem:[#allocation47_spill] sm:$0xff] }
 0x456   : > { %v9168_v38 = vpop.permute.xlu0 %2555  ;;  %3399 = vrot.lane.b32.xlu1 %v9143_v63, %s5591_s18  ;;  %15505 = vst [vmem:[#allocation370_spill] sm:$0xff] %v9190_v47 }
 0x457   : > { %15498 = vst [vmem:[#allocation603_spill] sm:$0xff] %v9168_v38 }
 0x458   : > { %3397 = vrot.lane.b32.xlu0 %v9150_v9, %s5591_s18  ;;  %v9174_v62 = vpop.permute.xlu1 %2561 }
 0x459   : > { %15499 = vst [vmem:[#allocation604_spill] sm:$0xff] %v9174_v62 }
 0x45a   : > { %v9180_v37 = vpop.permute.xlu0 %2559  ;;  %3406 = vrot.lane.b32.xlu1 %v15502_v51, %s5592_s19 }
 0x45b   : > { %15501 = vst [vmem:[#allocation606_spill] sm:$0xff] %v9180_v37  ;;  %v15509_v37 = vld [vmem:[#allocation16_spill] sm:$0xff] }
 0x45c   : > { %3404 = vrot.lane.b32.xlu0 %v15503_v34, %s5592_s19  ;;  %v9186_v38 = vpop.permute.xlu1 %2565  ;;  %v3413_v34 = vrot.slane %v15509_v37, 6 }
 0x45d   : > { %15504 = vst [vmem:[#allocation115_spill] sm:$0xff] %v9186_v38  ;;  %v14142_v38 = vrot.slane %v15511_v23, 6 }
 0x45e   : > { %v9192_v62 = vpop.permute.xlu0 %2563  ;;  %3410 = vrot.lane.b32.xlu1 %v9177_v57, %s5592_s19  ;;  %v15513_v57 = vld [vmem:[#allocation27_spill] sm:$0xff] }
 0x45f   : > { %15506 = vst [vmem:[#allocation607_spill] sm:$0xff] %v9192_v62  ;;  %v14144_v27 = vrot.slane %v15513_v57, 6 }
 0x460   : > { %3408 = vrot.lane.b32.xlu0 %v9190_v47, %s5592_s19  ;;  %v9199_v51 = vpop.permute.xlu1 %2569  ;;  %v15517_v47 = vld [vmem:[#allocation39_spill] sm:$0xff] }
 0x461   : > { %15508 = vst [vmem:[#allocation36_spill] sm:$0xff] %v9199_v51  ;;  %v15515_v51 = vld [vmem:[#allocation56_spill] sm:$0xff] }
 0x462   : > { %v9202_v36 = vpop.permute.xlu0 %2567  ;;  %3431 = vrot.lane.b32.xlu1 %v14139_v6, %s5593_s20 }
 0x463   : > { %15510 = vst [vmem:[#allocation16_spill] sm:$0xff] %v9202_v36  ;;  %v14148_v36 = vrot.slane %v15515_v51, 6 }
 0x464   : > { %3429 = vrot.lane.b32.xlu0 %v3413_v34, %s5593_s20  ;;  %v9209_v62 = vpop.permute.xlu1 %2573  ;;  %v14150_v34 = vrot.slane %v15517_v47, 6 }
 0x465   : > { %15512 = vst [vmem:[#allocation47_spill] sm:$0xff] %v9209_v62 }
 0x466   : > { %v9212_v33 = vpop.permute.xlu0 %2571  ;;  %3435 = vrot.lane.b32.xlu1 %v14142_v38, %s5593_s20 }
 0x467   : > { %15514 = vst [vmem:[#allocation27_spill] sm:$0xff] %v9212_v33  ;;  %v15519_v33 = vld [vmem:[#allocation72_spill] sm:$0xff] }
 0x468   : > { %3433 = vrot.lane.b32.xlu0 %v14144_v27, %s5593_s20  ;;  %v9221_v6 = vpop.permute.xlu1 %2577  ;;  %v14154_v38 = vrot.slane %v15519_v33, 6  ;;  %v15521_v27 = vld [vmem:[#allocation54_spill] sm:$0xff] }
 0x469   : > { %15516 = vst [vmem:[#allocation56_spill] sm:$0xff] %v9221_v6  ;;  %v14156_v6 = vrot.slane %v15521_v27, 6 }
 0x46a   : > { %v9224_v62 = vpop.permute.xlu0 %2575  ;;  %3439 = vrot.lane.b32.xlu1 %v14148_v36, %s5593_s20 }
 0x46b   : > { %15518 = vst [vmem:[#allocation39_spill] sm:$0xff] %v9224_v62  ;;  %v15523_v62 = vld [vmem:[#allocation83_spill] sm:$0xff] }
 0x46c   : > { %3437 = vrot.lane.b32.xlu0 %v14150_v34, %s5593_s20  ;;  %v9233_v9 = vpop.permute.xlu1 %2581  ;;  %v14158_v63 = vrot.slane %v15523_v62, 6  ;;  %v14164_v34 = vrot.slane %v15525_v5, 6 }
 0x46d   : > { %15520 = vst [vmem:[#allocation72_spill] sm:$0xff] %v9233_v9  ;;  %v15527_v9 = vld [vmem:[#allocation248_spill] sm:$0xff] }
 0x46e   : > { %v9236_v10 = vpop.permute.xlu0 %2579  ;;  %3443 = vrot.lane.b32.xlu1 %v14154_v38, %s5593_s20  ;;  %v233_v38 = vld [vmem:[%s5646_s17 + $0x1e8] sm:$0xff] }
 0x46f   : > { %15522 = vst [vmem:[#allocation54_spill] sm:$0xff] %v9236_v10  ;;  %v14167_v10 = vrot.slane %v15527_v9, 6 }
 0x470   : > { %3441 = vrot.lane.b32.xlu0 %v14156_v6, %s5593_s20  ;;  %v9245_v36 = vpop.permute.xlu1 %2585  ;;  %v15529_v6 = vld [vmem:[#allocation75_spill] sm:$0xff] }
 0x471   : > { %15524 = vst [vmem:[#allocation83_spill] sm:$0xff] %v9245_v36  ;;  %v14172_v36 = vrot.slane %v15529_v6, 6 }
 0x472   : > { %v9248_v40 = vpop.permute.xlu0 %2583  ;;  %3447 = vrot.lane.b32.xlu1 %v14158_v63, %s5593_s20  ;;  %v14176_v63 = vrot.slane %v8051_v55, 6  ;;  %v15577_v55 = vld [vmem:[#allocation70_spill] sm:$0xff] }
 0x473   : > { %15526 = vst [vmem:[#allocation608_spill] sm:$0xff] %v9248_v40  ;;  %v9268_v40 = vpack.c.bf16 %v233_v38, %v232_v42  ;;  %v3464_v38 = vor.u32 %v3463_v44, %v3462_v59  ;;  %v3503_v50 = vrot.slane %v15577_v55, 7 }
 0x474   : > { %3445 = vrot.lane.b32.xlu0 %v14164_v34, %s5593_s20  ;;  %v9259_v54 = vpop.permute.xlu1 %2589 }
 0x475   : > { %15528 = vst [vmem:[#allocation248_spill] sm:$0xff] %v9259_v54  ;;  %15531 = vst [vmem:[#allocation609_spill] sm:$0xff] %v9268_v40  ;;  %v15535_v54 = vld [vmem:[#allocation322_spill] sm:$0xff]  ;;  %v14180_v42 = vrot.slane %v9268_v40, 6 }
 0x476   : > { %v9262_v12 = vpop.permute.xlu0 %2587  ;;  %3451 = vrot.lane.b32.xlu1 %v14167_v10, %s5593_s20  ;;  %v3465_v10 = vrot.slane %v15537_v7, 7 }
 0x477   : > { %15530 = vst [vmem:[#allocation75_spill] sm:$0xff] %v9262_v12  ;;  %v14179_v12 = vrot.slane %v15535_v54, 6 }
 0x478   : > { %3449 = vrot.lane.b32.xlu0 %v14172_v36, %s5593_s20  ;;  %v9275_v34 = vpop.permute.xlu1 %2593  ;;  %v3468_v36 = vrot.slane %v15539_v56, 7  ;;  %v3466_v59 = vsel %vm3461_vm7, %v3464_v38, %v3465_v10  ;;  %v3470_v56 = vrot.slane %v15542_v52, 7 }
 0x479   : > { %15534 = vst [vmem:[#allocation22_spill] sm:$0xff] %v9275_v34 }
 0x47a   : > { %v9278_v0 = vpop.permute.xlu0 %2591  ;;  %3455 = vrot.lane.b32.xlu1 %v14176_v63, %s5593_s20  ;;  %v9299_v44 = vor.u32 %v3468_v36, %v3467_v25  ;;  %v15543_v63 = vld [vmem:[#allocation33_spill] sm:$0xff]  ;;  %v15548_v25 = vld [vmem:[#allocation52_spill] sm:$0xff] }
 0x47b   : > { %15536 = vst [vmem:[#allocation23_spill] sm:$0xff] %v9278_v0  ;;  %v14184_v0 = vrot.slane %v8831_v3, 6  ;;  %v3472_v26 = vrot.slane %v15543_v63, 6  ;;  %v3478_v36 = vrot.slane %v15548_v25, 7 }
 0x47c   : > { %3453 = vrot.lane.b32.xlu0 %v14179_v12, %s5593_s20  ;;  %v9290_v34 = vpop.permute.xlu1 %2598  ;;  %v3473_v12 = vrot.slane %v15544_v17, 7  ;;  %v9316_v40 = vsel %vm3461_vm7, %v9299_v44, %v3470_v56  ;;  %v15549_v17 = vld [vmem:[#allocation35_spill] sm:$0xff] }
 0x47d   : > { %15540 = vst [vmem:[#allocation25_spill] sm:$0xff] %v9290_v34  ;;  %v3475_v11 = vrot.slane %v15549_v17, 7 }
 0x47e   : > { %v9293_v22 = vpop.permute.xlu0 %2596  ;;  %3459 = vrot.lane.b32.xlu1 %v14180_v42, %s5593_s20  ;;  %v15547_v42 = vld [vmem:[#allocation51_spill] sm:$0xff]  ;;  %v9318_v63 = vor.u32 %v3473_v12, %v3472_v26  ;;  %v15553_v12 = vld [vmem:[#allocation44_spill] sm:$0xff] }
 0x47f   : > { %15541 = vst [vmem:[#allocation40_spill] sm:$0xff] %v9293_v22  ;;  %v3477_v10 = vrot.slane %v15547_v42, 6  ;;  %v3482_v26 = vrot.slane %v15553_v12, 6 }
 0x480   : > { %3457 = vrot.lane.b32.xlu0 %v14184_v0, %s5593_s20  ;;  %v9307_v34 = vpop.permute.xlu1 %2602  ;;  %v9333_v56 = vsel %vm3461_vm7, %v9318_v63, %v3475_v11 }
 0x481   : > { %15545 = vst [vmem:[#allocation41_spill] sm:$0xff] %v9307_v34  ;;  %v9328_v42 = vor.u32 %v3478_v36, %v3477_v10  ;;  %v15557_v36 = vld [vmem:[#allocation48_spill] sm:$0xff] }
 0x482   : > { %v9309_v22 = vpop.permute.xlu0 %2600  ;;  %3552 = vrot.lane.b32.xlu1 %v3466_v59, %s5594_s21  ;;  %v15552_v59 = vld [vmem:[#allocation53_spill] sm:$0xff]  ;;  %v3485_v12 = vrot.slane %v15557_v36, 7 }
 0x483   : > { %15546 = vst [vmem:[#allocation42_spill] sm:$0xff] %v9309_v22  ;;  %v3480_v25 = vrot.slane %v15552_v59, 7  ;;  %v15554_v22 = vld [vmem:[#allocation46_spill] sm:$0xff] }
 0x484   : > { %3550 = vrot.lane.b32.xlu0 %v3464_v38, %s5594_s21  ;;  %v9322_v0 = vpop.permute.xlu1 %2606  ;;  %v3483_v3 = vrot.slane %v15554_v22, 7 }
 0x485   : > { %15550 = vst [vmem:[#allocation33_spill] sm:$0xff] %v9322_v0  ;;  %v9347_v10 = vsel %vm3461_vm7, %v9328_v42, %v3480_v25  ;;  %v15558_v0 = vld [vmem:[#allocation63_spill] sm:$0xff]  ;;  %v15562_v25 = vld [vmem:[#allocation58_spill] sm:$0xff] }
 0x486   : > { %v9324_v34 = vpop.permute.xlu0 %2604  ;;  %3556 = vrot.lane.b32.xlu1 %v9316_v40, %s5594_s21  ;;  %v9349_v11 = vor.u32 %v3483_v3, %v3482_v26  ;;  %v3487_v22 = vrot.slane %v15558_v0, 6  ;;  %v3492_v2 = vrot.slane %v15562_v25, 6  ;;  %v15563_v3 = vld [vmem:[#allocation59_spill] sm:$0xff] }
 0x487   : > { %15551 = vst [vmem:[#allocation34_spill] sm:$0xff] %v9324_v34  ;;  %v3493_v26 = vrot.slane %v15563_v3, 7  ;;  %v15568_v3 = vld [vmem:[#allocation61_spill] sm:$0xff] }
 0x488   : > { %3554 = vrot.lane.b32.xlu0 %v9299_v44, %s5594_s21  ;;  %v9339_v38 = vpop.permute.xlu1 %2610  ;;  %v9366_v39 = vsel %vm3461_vm7, %v9349_v11, %v3485_v12  ;;  %v9368_v0 = vor.u32 %v3488_v61, %v3487_v22  ;;  %v3495_v8 = vrot.slane %v15568_v3, 7  ;;  %v15569_v12 = vld [vmem:[#allocation76_spill] sm:$0xff]  ;;  %v15576_v3 = vld [vmem:[#allocation69_spill] sm:$0xff] }
 0x489   : > { %15555 = vst [vmem:[#allocation51_spill] sm:$0xff] %v9339_v38  ;;  %v9379_v25 = vor.u32 %v3493_v26, %v3492_v2  ;;  %v3497_v22 = vrot.slane %v15569_v12, 6  ;;  %v15575_v26 = vld [vmem:[#allocation78_spill] sm:$0xff]  ;;  %v3502_v48 = vrot.slane %v15576_v3, 6 }
 0x48a   : > { %v9341_v34 = vpop.permute.xlu0 %2608  ;;  %3560 = vrot.lane.b32.xlu1 %v9333_v56, %s5594_s21  ;;  %v9384_v61 = vsel %vm3461_vm7, %v9368_v0, %v3490_v1  ;;  %v3500_v12 = vrot.slane %v15575_v26, 7 }
 0x48b   : > { %15556 = vst [vmem:[#allocation52_spill] sm:$0xff] %v9341_v34  ;;  %15567 = vst [vmem:[#allocation48_spill] sm:$0xff] %v9379_v25  ;;  %v9398_v2 = vsel %vm3461_vm7, %v9379_v25, %v3495_v8  ;;  %v9400_v1 = vor.u32 %v3498_v43, %v3497_v22  ;;  %v9417_v8 = vor.u32 %v3503_v50, %v3502_v48  ;;  %v15581_v22 = vld [vmem:[#allocation71_spill] sm:$0xff]  ;;  %v15585_v50 = vld [vmem:[#allocation144_spill] sm:$0xff] }
 0x48c   : > { %3558 = vrot.lane.b32.xlu0 %v9318_v63, %s5594_s21  ;;  %v9356_v38 = vpop.permute.xlu1 %2614  ;;  %15573 = vst [vmem:[#allocation58_spill] sm:$0xff] %v9398_v2  ;;  %v3505_v3 = vrot.slane %v15581_v22, 7  ;;  %v3709_v48 = vrot.slane %v15585_v50, 7 }
 0x48d   : > { %15560 = vst [vmem:[#allocation35_spill] sm:$0xff] %v9356_v38  ;;  %15574 = vst [vmem:[#allocation59_spill] sm:$0xff] %v9400_v1  ;;  %v9415_v43 = vsel %vm3461_vm7, %v9400_v1, %v3500_v12  ;;  %v3632_v12 = vrot.slane %v15236_v29, 7 }
 0x48e   : > { %v9358_v34 = vpop.permute.xlu0 %2612  ;;  %3564 = vrot.lane.b32.xlu1 %v9347_v10, %s5594_s21  ;;  %15580 = vst [vmem:[#allocation69_spill] sm:$0xff] %v9417_v8  ;;  %v3710_v50 = vor.u32 %v3709_v48, %v15581_v22 }
 0x48f   : > { %15561 = vst [vmem:[#allocation53_spill] sm:$0xff] %v9358_v34 }
 0x490   : > { %3562 = vrot.lane.b32.xlu0 %v9328_v42, %s5594_s21  ;;  %v9373_v38 = vpop.permute.xlu1 %2618 }
 0x491   : > { %15565 = vst [vmem:[#allocation44_spill] sm:$0xff] %v9373_v38 }
 0x492   : > { %v9375_v34 = vpop.permute.xlu0 %2616  ;;  %3568 = vrot.lane.b32.xlu1 %v9366_v39, %s5594_s21 }
 0x493   : > { %15566 = vst [vmem:[#allocation46_spill] sm:$0xff] %v9375_v34 }
 0x494   : > { %3566 = vrot.lane.b32.xlu0 %v9349_v11, %s5594_s21  ;;  %v9390_v38 = vpop.permute.xlu1 %2622 }
 0x495   : > { %15571 = vst [vmem:[#allocation63_spill] sm:$0xff] %v9390_v38 }
 0x496   : > { %v9392_v34 = vpop.permute.xlu0 %2620  ;;  %3572 = vrot.lane.b32.xlu1 %v9384_v61, %s5594_s21 }
 0x497   : > { %15572 = vst [vmem:[#allocation64_spill] sm:$0xff] %v9392_v34 }
 0x498   : > { %3570 = vrot.lane.b32.xlu0 %v9368_v0, %s5594_s21  ;;  %v9407_v38 = vpop.permute.xlu1 %2626 }
 0x499   : > { %15578 = vst [vmem:[#allocation76_spill] sm:$0xff] %v9407_v38 }
 0x49a   : > { %v9409_v34 = vpop.permute.xlu0 %2624  ;;  %3576 = vrot.lane.b32.xlu1 %v9398_v2, %s5594_s21 }
 0x49b   : > { %15579 = vst [vmem:[#allocation77_spill] sm:$0xff] %v9409_v34  ;;  %v9430_v34 = vsel %vm3461_vm7, %v9417_v8, %v3505_v3  ;;  %v9446_v3 = vsel %vm3615_vm8, %v8042_v30, %v3632_v12  ;;  %v15594_v12 = vld [vmem:[#allocation428_spill] sm:$0xff] }
 0x49c   : > { %3574 = vrot.lane.b32.xlu0 %v9379_v25, %s5594_s21  ;;  %v9422_v55 = vpop.permute.xlu1 %2630  ;;  %15584 = vst [vmem:[#allocation610_spill] sm:$0xff] %v9430_v34  ;;  %15589 = vst [vmem:[#allocation611_spill] sm:$0xff] %v9446_v3 }
 0x49d   : > { %15582 = vst [vmem:[#allocation70_spill] sm:$0xff] %v9422_v55  ;;  %v3616_v55 = vrot.slane %v15442_v35, 7 }
 0x49e   : > { %v9424_v26 = vpop.permute.xlu0 %2628  ;;  %3580 = vrot.lane.b32.xlu1 %v9415_v43, %s5594_s21 }
 0x49f   : > { %15583 = vst [vmem:[#allocation71_spill] sm:$0xff] %v9424_v26  ;;  %v15587_v26 = vld [vmem:[#allocation122_spill] sm:$0xff] }
 0x4a0   : > { %3578 = vrot.lane.b32.xlu0 %v9400_v1, %s5594_s21  ;;  %v9436_v38 = vpop.permute.xlu1 %2641  ;;  %v3685_v25 = vrot.slane %v15587_v26, 7  ;;  %v3617_v1 = vsel %vm3615_vm8, %v7984_v49, %v3616_v55  ;;  %v15596_v49 = vld [vmem:[#allocation87_spill] sm:$0xff] }
 0x4a1   : > { %15586 = vst [vmem:[#allocation144_spill] sm:$0xff] %v9436_v38 }
 0x4a2   : > { %v9440_v2 = vpop.permute.xlu0 %2639  ;;  %3584 = vrot.lane.b32.xlu1 %v9430_v34, %s5594_s21  ;;  %v3686_v26 = vor.u32 %v3685_v25, %v15537_v7  ;;  %v15591_v34 = vld [vmem:[#allocation456_spill] sm:$0xff]  ;;  %v3507_v7 = vrot.slane %v15596_v49, 6 }
 0x4a3   : > { %15588 = vst [vmem:[#allocation122_spill] sm:$0xff] %v9440_v2  ;;  %v9462_v30 = vsel %vm2164_vm6, %v15591_v34, %v3710_v50  ;;  %v15597_v25 = vld [vmem:[#allocation88_spill] sm:$0xff] }
 0x4a4   : > { %3582 = vrot.lane.b32.xlu0 %v9417_v8, %s5594_s21  ;;  %v9451_v38 = vpop.permute.xlu1 %2645  ;;  %15592 = vst [vmem:[#allocation456_spill] sm:$0xff] %v9462_v30  ;;  %v3687_v48 = vsel %vm2164_vm6, %v15594_v12, %v3686_v26  ;;  %v3508_v55 = vrot.slane %v15597_v25, 7  ;;  %v15601_v12 = vld [vmem:[#allocation89_spill] sm:$0xff] }
 0x4a5   : > { %15590 = vst [vmem:[#allocation612_spill] sm:$0xff] %v9451_v38 }
 0x4a6   : > { %v9456_v2 = vpop.permute.xlu0 %2643  ;;  %3665 = vrot.lane.b32.xlu1 %v9446_v3, %s5595_s22  ;;  %v3509_v26 = vor.u32 %v3508_v55, %v3507_v7  ;;  %v3510_v3 = vrot.slane %v15601_v12, 7 }
 0x4a8   : > { %3649 = vrot.lane.b32.xlu0 %v3617_v1, %s5595_s22  ;;  %v9465_v22 = vpop.permute.xlu1 %2649  ;;  %v15600_v1 = vrot.slane %v15523_v62, 6 }
 0x4a9   : > { %15593 = vst [vmem:[#allocation613_spill] sm:$0xff] %v9465_v22 }
 0x4aa   : > { %v9469_v8 = vpop.permute.xlu0 %2647  ;;  %3753 = vrot.lane.b32.xlu1 %v9462_v30, %s5596_s23  ;;  %v15602_v30 = vrot.slane %v15507_v21, 6 }
 0x4ab   : > { %15595 = vst [vmem:[#allocation428_spill] sm:$0xff] %v9469_v8 }
 0x4ac   : > { %3737 = vrot.lane.b32.xlu0 %v3687_v48, %s5596_s23  ;;  %v9476_v34 = vpop.permute.xlu1 %2653  ;;  %v3511_v48 = vsel %vm3461_vm7, %v3509_v26, %v3510_v3  ;;  %v15609_v3 = vld [vmem:[#allocation153_spill] sm:$0xff] }
 0x4ad   : > { %15598 = vst [vmem:[#allocation87_spill] sm:$0xff] %v9476_v34  ;;  %v3618_v34 = vrot.slane %v15447_v31, 7 }
 0x4ae   : > { %v9478_v50 = vpop.permute.xlu0 %2651  ;;  %3823 = vrot.lane.b32.xlu1 %v15600_v1, %s5600_s27 }
 0x4af   : > { %15599 = vst [vmem:[#allocation88_spill] sm:$0xff] %v9478_v50  ;;  %v3712_v50 = vrot.slane %v15609_v3, 7  ;;  %v15615_v3 = vld [vmem:[#allocation459_spill] sm:$0xff] }
 0x4b0   : > { %3807 = vrot.lane.b32.xlu0 %v15602_v30, %s5600_s27  ;;  %v9487_v49 = vpop.permute.xlu1 %2657  ;;  %v3634_v30 = vrot.slane %v15235_v53, 7 }
 0x4b1   : > { %15603 = vst [vmem:[#allocation89_spill] sm:$0xff] %v9487_v49 }
 0x4b2   : > { %v9489_v25 = vpop.permute.xlu0 %2655  ;;  %3854 = vrot.lane.b32.xlu1 %v9316_v40, %s5601_s28 }
 0x4b3   : > { %15604 = vst [vmem:[#allocation614_spill] sm:$0xff] %v9489_v25 }
 0x4b4   : > { %3852 = vrot.lane.b32.xlu0 %v9299_v44, %s5601_s28  ;;  %v9496_v1 = vpop.permute.xlu1 %2661  ;;  %v3635_v44 = vsel %vm3615_vm8, %v15381_v41, %v3634_v30 }
 0x4b5   : > { %15605 = vst [vmem:[#allocation615_spill] sm:$0xff] %v9496_v1  ;;  %v15611_v1 = vld [vmem:[#allocation129_spill] sm:$0xff] }
 0x4b6   : > { %v9498_v7 = vpop.permute.xlu0 %2659  ;;  %3886 = vrot.lane.b32.xlu1 %v3511_v48, %s5601_s28 }
 0x4b7   : > { %15606 = vst [vmem:[#allocation616_spill] sm:$0xff] %v9498_v7  ;;  %v3619_v7 = vsel %vm3615_vm8, %v7978_v46, %v3618_v34 }
 0x4b8   : > { %3884 = vrot.lane.b32.xlu0 %v3509_v26, %s5601_s28  ;;  %v9503_v55 = vpop.permute.xlu1 %2665 }
 0x4b9   : > { %15607 = vst [vmem:[#allocation617_spill] sm:$0xff] %v9503_v55  ;;  %v3688_v55 = vrot.slane %v15611_v1, 7  ;;  %v15617_v1 = vld [vmem:[#allocation430_spill] sm:$0xff] }
 0x4ba   : > { %v9506_v40 = vpop.permute.xlu0 %2663  ;;  %3588 = vrot.lane.b32.xlu1 %v3511_v48, %s5594_s21  ;;  %v3713_v48 = vor.u32 %v3712_v50, %v15601_v12 }
 0x4bb   : > { %15608 = vst [vmem:[#allocation618_spill] sm:$0xff] %v9506_v40  ;;  %v3689_v30 = vor.u32 %v3688_v55, %v15542_v52 }
 0x4bc   : > { %3586 = vrot.lane.b32.xlu0 %v3509_v26, %s5594_s21  ;;  %v9513_v22 = vpop.permute.xlu1 %2669  ;;  %v3714_v46 = vsel %vm2164_vm6, %v15615_v3, %v3713_v48 }
 0x4bd   : > { %15610 = vst [vmem:[#allocation153_spill] sm:$0xff] %v9513_v22  ;;  %v3690_v50 = vsel %vm2164_vm6, %v15617_v1, %v3689_v30  ;;  %v15625_v1 = vrot.slane %v15529_v6, 6 }
 0x4be   : > { %v9518_v25 = vpop.permute.xlu0 %2667  ;;  %3936 = vrot.lane.b32.xlu1 %v3635_v44, %s5602_s29 }
 0x4bf   : > { %15612 = vst [vmem:[#allocation129_spill] sm:$0xff] %v9518_v25 }
 0x4c0   : > { %3920 = vrot.lane.b32.xlu0 %v3619_v7, %s5602_s29  ;;  %v9523_v41 = vpop.permute.xlu1 %2673 }
 0x4c1   : > { %15613 = vst [vmem:[#allocation619_spill] sm:$0xff] %v9523_v41 }
 0x4c2   : > { %v9526_v26 = vpop.permute.xlu0 %2671  ;;  %3667 = vrot.lane.b32.xlu1 %v3635_v44, %s5595_s22  ;;  %v15621_v44 = vld [vmem:[#allocation81_spill] sm:$0xff] }
 0x4c3   : > { %15614 = vst [vmem:[#allocation620_spill] sm:$0xff] %v9526_v26  ;;  %v3512_v48 = vrot.slane %v15621_v44, 6 }
 0x4c4   : > { %3651 = vrot.lane.b32.xlu0 %v3619_v7, %s5595_s22  ;;  %v9532_v34 = vpop.permute.xlu1 %3395  ;;  %v15622_v7 = vld [vmem:[#allocation82_spill] sm:$0xff] }
 0x4c5   : > { %15616 = vst [vmem:[#allocation459_spill] sm:$0xff] %v9532_v34  ;;  %v3513_v3 = vrot.slane %v15622_v7, 7 }
 0x4c6   : > { %v9536_v12 = vpop.permute.xlu0 %3393  ;;  %3979 = vrot.lane.b32.xlu1 %v3714_v46, %s5603_s30 }
 0x4c7   : > { %15618 = vst [vmem:[#allocation430_spill] sm:$0xff] %v9536_v12  ;;  %v3514_v41 = vor.u32 %v3513_v3, %v3512_v48  ;;  %v3636_v3 = vrot.slane %v15239_v18, 7 }
 0x4c8   : > { %3963 = vrot.lane.b32.xlu0 %v3690_v50, %s5603_s30  ;;  %v9540_v52 = vpop.permute.xlu1 %3399 }
 0x4c9   : > { %15619 = vst [vmem:[#allocation621_spill] sm:$0xff] %v9540_v52  ;;  %v15626_v52 = vld [vmem:[#allocation85_spill] sm:$0xff] }
 0x4ca   : > { %v9542_v55 = vpop.permute.xlu0 %3397  ;;  %3755 = vrot.lane.b32.xlu1 %v3714_v46, %s5596_s23  ;;  %v3515_v12 = vrot.slane %v15626_v52, 7  ;;  %v15627_v46 = vrot.slane %v15513_v57, 6 }
 0x4cb   : > { %15620 = vst [vmem:[#allocation622_spill] sm:$0xff] %v9542_v55 }
 0x4cc   : > { %3739 = vrot.lane.b32.xlu0 %v3690_v50, %s5596_s23  ;;  %v9548_v26 = vpop.permute.xlu1 %3406  ;;  %v3516_v50 = vsel %vm3461_vm7, %v3514_v41, %v3515_v12  ;;  %v15633_v12 = vld [vmem:[#allocation150_spill] sm:$0xff] }
 0x4cd   : > { %15623 = vst [vmem:[#allocation81_spill] sm:$0xff] %v9548_v26  ;;  %v3715_v55 = vrot.slane %v15633_v12, 7  ;;  %v15635_v26 = vld [vmem:[#allocation127_spill] sm:$0xff] }
 0x4ce   : > { %v9550_v30 = vpop.permute.xlu0 %3404  ;;  %3825 = vrot.lane.b32.xlu1 %v15625_v1, %s5600_s27  ;;  %v3691_v34 = vrot.slane %v15635_v26, 7  ;;  %v15639_v12 = vld [vmem:[#allocation463_spill] sm:$0xff] }
 0x4cf   : > { %15624 = vst [vmem:[#allocation82_spill] sm:$0xff] %v9550_v30 }
 0x4d0   : > { %3809 = vrot.lane.b32.xlu0 %v15627_v46, %s5600_s27  ;;  %v9559_v44 = vpop.permute.xlu1 %3410 }
 0x4d1   : > { %15628 = vst [vmem:[#allocation85_spill] sm:$0xff] %v9559_v44 }
 0x4d2   : > { %v9561_v7 = vpop.permute.xlu0 %3408  ;;  %3858 = vrot.lane.b32.xlu1 %v9333_v56, %s5601_s28 }
 0x4d3   : > { %15629 = vst [vmem:[#allocation623_spill] sm:$0xff] %v9561_v7  ;;  %v3620_v7 = vrot.slane %v15446_v13, 7 }
 0x4d4   : > { %3856 = vrot.lane.b32.xlu0 %v9318_v63, %s5601_s28  ;;  %v9568_v1 = vpop.permute.xlu1 %3431  ;;  %v3637_v63 = vsel %vm3615_vm8, %v15379_v45, %v3636_v3  ;;  %v3692_v3 = vor.u32 %v3691_v34, %v15549_v17 }
 0x4d5   : > { %v3621_v30 = vsel %vm3615_vm8, %v7998_v20, %v3620_v7  ;;  %v15641_v7 = vld [vmem:[#allocation433_spill] sm:$0xff] }
 0x4d6   : > { %v9570_v48 = vpop.permute.xlu0 %3429  ;;  %3890 = vrot.lane.b32.xlu1 %v3516_v50, %s5601_s28 }
 0x4d7   : > { %15630 = vst [vmem:[#allocation624_spill] sm:$0xff] %v9570_v48  ;;  %v16002_v48 = vld [vmem:[#allocation308_spill] sm:$0xff] }
 0x4d8   : > { %3888 = vrot.lane.b32.xlu0 %v3514_v41, %s5601_s28  ;;  %v9575_v46 = vpop.permute.xlu1 %3435 }
 0x4d9   : > { %15631 = vst [vmem:[#allocation625_spill] sm:$0xff] %v9575_v46  ;;  %v15861_v46 = vld [vmem:[#allocation445_spill] sm:$0xff] }
 0x4da   : > { %v9578_v56 = vpop.permute.xlu0 %3433  ;;  %3592 = vrot.lane.b32.xlu1 %v3516_v50, %s5594_s21  ;;  %v3716_v50 = vor.u32 %v3715_v55, %v15626_v52  ;;  %v3693_v52 = vsel %vm2164_vm6, %v15641_v7, %v3692_v3  ;;  %v15649_v7 = vrot.slane %v15527_v9, 6 }
 0x4db   : > { %15632 = vst [vmem:[#allocation626_spill] sm:$0xff] %v9578_v56  ;;  %v15810_v56 = vld [vmem:[#allocation406_spill] sm:$0xff] }
 0x4dc   : > { %3590 = vrot.lane.b32.xlu0 %v3514_v41, %s5594_s21  ;;  %v9585_v44 = vpop.permute.xlu1 %3439  ;;  %v3717_v20 = vsel %vm2164_vm6, %v15639_v12, %v3716_v50 }
 0x4dd   : > { %15634 = vst [vmem:[#allocation150_spill] sm:$0xff] %v9585_v44 }
 0x4de   : > { %v9590_v25 = vpop.permute.xlu0 %3437  ;;  %3938 = vrot.lane.b32.xlu1 %v3637_v63, %s5602_s29 }
 0x4df   : > { %15636 = vst [vmem:[#allocation127_spill] sm:$0xff] %v9590_v25  ;;  %v15792_v25 = vld [vmem:[#allocation26_spill] sm:$0xff] }
 0x4e0   : > { %3922 = vrot.lane.b32.xlu0 %v3621_v30, %s5602_s29  ;;  %v9595_v45 = vpop.permute.xlu1 %3443 }
 0x4e1   : > { %15637 = vst [vmem:[#allocation627_spill] sm:$0xff] %v9595_v45 }
 0x4e2   : > { %v9598_v41 = vpop.permute.xlu0 %3441  ;;  %3669 = vrot.lane.b32.xlu1 %v3637_v63, %s5595_s22  ;;  %v15645_v63 = vld [vmem:[#allocation260_spill] sm:$0xff] }
 0x4e3   : > { %15638 = vst [vmem:[#allocation628_spill] sm:$0xff] %v9598_v41  ;;  %v3517_v50 = vrot.slane %v15645_v63, 6  ;;  %v15745_v41 = vld [vmem:[#allocation238_spill] sm:$0xff] }
 0x4e4   : > { %3653 = vrot.lane.b32.xlu0 %v3621_v30, %s5595_s22  ;;  %v9604_v26 = vpop.permute.xlu1 %3447  ;;  %v15646_v30 = vld [vmem:[#allocation257_spill] sm:$0xff] }
 0x4e5   : > { %15640 = vst [vmem:[#allocation463_spill] sm:$0xff] %v9604_v26  ;;  %v3518_v12 = vrot.slane %v15646_v30, 7 }
 0x4e6   : > { %v9608_v55 = vpop.permute.xlu0 %3445  ;;  %3981 = vrot.lane.b32.xlu1 %v3717_v20, %s5603_s30 }
 0x4e7   : > { %15642 = vst [vmem:[#allocation433_spill] sm:$0xff] %v9608_v55  ;;  %v3519_v22 = vor.u32 %v3518_v12, %v3517_v50  ;;  %v3638_v12 = vrot.slane %v7013_v4, 7 }
 0x4e8   : > { %3965 = vrot.lane.b32.xlu0 %v3693_v52, %s5603_s30  ;;  %v9612_v17 = vpop.permute.xlu1 %3451 }
 0x4e9   : > { %15643 = vst [vmem:[#allocation629_spill] sm:$0xff] %v9612_v17  ;;  %v15650_v17 = vld [vmem:[#allocation261_spill] sm:$0xff] }
 0x4ea   : > { %v9614_v34 = vpop.permute.xlu0 %3449  ;;  %3757 = vrot.lane.b32.xlu1 %v3717_v20, %s5596_s23  ;;  %v3520_v26 = vrot.slane %v15650_v17, 7  ;;  %v15651_v20 = vrot.slane %v15511_v23, 6 }
 0x4eb   : > { %15644 = vst [vmem:[#allocation630_spill] sm:$0xff] %v9614_v34 }
 0x4ec   : > { %3741 = vrot.lane.b32.xlu0 %v3693_v52, %s5596_s23  ;;  %v9620_v45 = vpop.permute.xlu1 %3455  ;;  %v3521_v52 = vsel %vm3461_vm7, %v3519_v22, %v3520_v26  ;;  %v15658_v26 = vld [vmem:[#allocation152_spill] sm:$0xff] }
 0x4ed   : > { %15647 = vst [vmem:[#allocation260_spill] sm:$0xff] %v9620_v45  ;;  %v15660_v45 = vld [vmem:[#allocation135_spill] sm:$0xff] }
 0x4ee   : > { %v9622_v3 = vpop.permute.xlu0 %3453  ;;  %3827 = vrot.lane.b32.xlu1 %v15649_v7, %s5600_s27 }
 0x4ef   : > { %15648 = vst [vmem:[#allocation257_spill] sm:$0xff] %v9622_v3 }
 0x4f0   : > { %3811 = vrot.lane.b32.xlu0 %v15651_v20, %s5600_s27  ;;  %v9631_v63 = vpop.permute.xlu1 %3459 }
 0x4f1   : > { %15652 = vst [vmem:[#allocation261_spill] sm:$0xff] %v9631_v63  ;;  %v3622_v63 = vrot.slane %v15451_v24, 7 }
 0x4f2   : > { %v9633_v30 = vpop.permute.xlu0 %3457  ;;  %3862 = vrot.lane.b32.xlu1 %v9347_v10, %s5601_s28 }
 0x4f3   : > { %15653 = vst [vmem:[#allocation631_spill] sm:$0xff] %v9633_v30  ;;  %v3718_v30 = vrot.slane %v15658_v26, 7  ;;  %v3623_v3 = vsel %vm3615_vm8, %v7991_v32, %v3622_v63  ;;  %v15664_v26 = vld [vmem:[#allocation467_spill] sm:$0xff]  ;;  %v15666_v63 = vld [vmem:[#allocation436_spill] sm:$0xff] }
 0x4f4   : > { %3860 = vrot.lane.b32.xlu0 %v9328_v42, %s5601_s28  ;;  %v9640_v7 = vpop.permute.xlu1 %3552  ;;  %v3639_v42 = vsel %vm3615_vm8, %v15386_v15, %v3638_v12 }
 0x4f5   : > { %15654 = vst [vmem:[#allocation632_spill] sm:$0xff] %v9640_v7 }
 0x4f6   : > { %v9642_v50 = vpop.permute.xlu0 %3550  ;;  %3894 = vrot.lane.b32.xlu1 %v3521_v52, %s5601_s28 }
 0x4f7   : > { %15655 = vst [vmem:[#allocation633_spill] sm:$0xff] %v9642_v50 }
 0x4f8   : > { %3892 = vrot.lane.b32.xlu0 %v3519_v22, %s5601_s28  ;;  %v9647_v20 = vpop.permute.xlu1 %3556 }
 0x4f9   : > { %15656 = vst [vmem:[#allocation634_spill] sm:$0xff] %v9647_v20  ;;  %v3694_v20 = vrot.slane %v15660_v45, 7 }
 0x4fa   : > { %v9650_v10 = vpop.permute.xlu0 %3554  ;;  %3596 = vrot.lane.b32.xlu1 %v3521_v52, %s5594_s21  ;;  %v3719_v52 = vor.u32 %v3718_v30, %v15650_v17 }
 0x4fb   : > { %15657 = vst [vmem:[#allocation635_spill] sm:$0xff] %v9650_v10  ;;  %v3695_v12 = vor.u32 %v3694_v20, %v15552_v59  ;;  %v15750_v10 = vld [vmem:[#allocation242_spill] sm:$0xff] }
 0x4fc   : > { %3594 = vrot.lane.b32.xlu0 %v3519_v22, %s5594_s21  ;;  %v9657_v7 = vpop.permute.xlu1 %3560  ;;  %v3720_v32 = vsel %vm2164_vm6, %v15664_v26, %v3719_v52 }
 0x4fd   : > { %15659 = vst [vmem:[#allocation152_spill] sm:$0xff] %v9657_v7  ;;  %v3696_v17 = vsel %vm2164_vm6, %v15666_v63, %v3695_v12  ;;  %v15674_v63 = vrot.slane %v15535_v54, 6 }
 0x4fe   : > { %v9662_v34 = vpop.permute.xlu0 %3558  ;;  %3940 = vrot.lane.b32.xlu1 %v3639_v42, %s5602_s29 }
 0x4ff   : > { %15661 = vst [vmem:[#allocation135_spill] sm:$0xff] %v9662_v34 }
 0x500   : > { %3924 = vrot.lane.b32.xlu0 %v3623_v3, %s5602_s29  ;;  %v9667_v15 = vpop.permute.xlu1 %3564 }
 0x501   : > { %15662 = vst [vmem:[#allocation636_spill] sm:$0xff] %v9667_v15 }
 0x502   : > { %v9670_v22 = vpop.permute.xlu0 %3562  ;;  %3671 = vrot.lane.b32.xlu1 %v3639_v42, %s5595_s22  ;;  %v15670_v42 = vld [vmem:[#allocation74_spill] sm:$0xff] }
 0x503   : > { %15663 = vst [vmem:[#allocation637_spill] sm:$0xff] %v9670_v22  ;;  %v3522_v52 = vrot.slane %v15670_v42, 6 }
 0x504   : > { %3655 = vrot.lane.b32.xlu0 %v3623_v3, %s5595_s22  ;;  %v9676_v45 = vpop.permute.xlu1 %3568  ;;  %v15671_v3 = vld [vmem:[#allocation328_spill] sm:$0xff] }
 0x505   : > { %15665 = vst [vmem:[#allocation467_spill] sm:$0xff] %v9676_v45  ;;  %v3523_v26 = vrot.slane %v15671_v3, 7 }
 0x506   : > { %v9680_v30 = vpop.permute.xlu0 %3566  ;;  %3983 = vrot.lane.b32.xlu1 %v3720_v32, %s5603_s30 }
 0x507   : > { %15667 = vst [vmem:[#allocation436_spill] sm:$0xff] %v9680_v30  ;;  %v3524_v30 = vor.u32 %v3523_v26, %v3522_v52  ;;  %v3640_v26 = vrot.slane %v7523_v19, 7 }
 0x508   : > { %3967 = vrot.lane.b32.xlu0 %v3696_v17, %s5603_s30  ;;  %v9684_v59 = vpop.permute.xlu1 %3572 }
 0x509   : > { %15668 = vst [vmem:[#allocation638_spill] sm:$0xff] %v9684_v59  ;;  %v15675_v59 = vld [vmem:[#allocation330_spill] sm:$0xff] }
 0x50a   : > { %v9686_v20 = vpop.permute.xlu0 %3570  ;;  %3759 = vrot.lane.b32.xlu1 %v3720_v32, %s5596_s23  ;;  %v3525_v15 = vrot.slane %v15675_v59, 7  ;;  %v15676_v32 = vrot.slane %v15517_v47, 6 }
 0x50b   : > { %15669 = vst [vmem:[#allocation639_spill] sm:$0xff] %v9686_v20  ;;  %v15685_v20 = vld [vmem:[#allocation132_spill] sm:$0xff] }
 0x50c   : > { %3743 = vrot.lane.b32.xlu0 %v3696_v17, %s5596_s23  ;;  %v9692_v45 = vpop.permute.xlu1 %3576  ;;  %v3526_v17 = vsel %vm3461_vm7, %v3524_v30, %v3525_v15  ;;  %v15683_v15 = vld [vmem:[#allocation347_spill] sm:$0xff]  ;;  %v3697_v7 = vrot.slane %v15685_v20, 7 }
 0x50d   : > { %15672 = vst [vmem:[#allocation74_spill] sm:$0xff] %v9692_v45  ;;  %v15691_v20 = vld [vmem:[#allocation7_spill] sm:$0xff] }
 0x50e   : > { %v9694_v12 = vpop.permute.xlu0 %3574  ;;  %3829 = vrot.lane.b32.xlu1 %v15674_v63, %s5600_s27 }
 0x50f   : > { %15673 = vst [vmem:[#allocation328_spill] sm:$0xff] %v9694_v12 }
 0x510   : > { %3813 = vrot.lane.b32.xlu0 %v15676_v32, %s5600_s27  ;;  %v9703_v42 = vpop.permute.xlu1 %3580 }
 0x511   : > { %15677 = vst [vmem:[#allocation330_spill] sm:$0xff] %v9703_v42  ;;  %v3624_v42 = vrot.slane %v15450_v14, 7 }
 0x512   : > { %v9705_v3 = vpop.permute.xlu0 %3578  ;;  %3866 = vrot.lane.b32.xlu1 %v9366_v39, %s5601_s28 }
 0x513   : > { %15678 = vst [vmem:[#allocation640_spill] sm:$0xff] %v9705_v3  ;;  %v3721_v3 = vrot.slane %v15683_v15, 7  ;;  %v3625_v12 = vsel %vm3615_vm8, %v8012_v58, %v3624_v42  ;;  %v15689_v15 = vld [vmem:[#allocation2_spill] sm:$0xff]  ;;  %v15690_v42 = vld [vmem:[#allocation191_spill] sm:$0xff] }
 0x514   : > { %3864 = vrot.lane.b32.xlu0 %v9349_v11, %s5601_s28  ;;  %v9712_v63 = vpop.permute.xlu1 %3584  ;;  %v3641_v11 = vsel %vm3615_vm8, %v15384_v28, %v3640_v26  ;;  %v15688_v26 = vld [vmem:[#allocation183_spill] sm:$0xff] }
 0x515   : > { %15679 = vst [vmem:[#allocation641_spill] sm:$0xff] %v9712_v63  ;;  %v1450_v58 = vsel %vm14282_vm9, %v15689_v15, %v15688_v26  ;;  %v15696_v15 = vld [vmem:[#allocation193_spill] sm:$0xff] }
 0x516   : > { %v9714_v52 = vpop.permute.xlu0 %3582  ;;  %3898 = vrot.lane.b32.xlu1 %v3526_v17, %s5601_s28  ;;  %v15709_v63 = vld [vmem:[#allocation205_spill] sm:$0xff] }
 0x517   : > { %15680 = vst [vmem:[#allocation642_spill] sm:$0xff] %v9714_v52  ;;  %v15747_v52 = vld [vmem:[#allocation240_spill] sm:$0xff] }
 0x518   : > { %3896 = vrot.lane.b32.xlu0 %v3524_v30, %s5601_s28  ;;  %v9719_v32 = vpop.permute.xlu1 %3665 }
 0x519   : > { %15681 = vst [vmem:[#allocation643_spill] sm:$0xff] %v9719_v32 }
 0x51a   : > { %v9722_v39 = vpop.permute.xlu0 %3649  ;;  %3600 = vrot.lane.b32.xlu1 %v3526_v17, %s5594_s21  ;;  %v3722_v17 = vor.u32 %v3721_v3, %v15675_v59  ;;  %v15694_v3 = vld [vmem:[#allocation10_spill] sm:$0xff] }
 0x51b   : > { %15682 = vst [vmem:[#allocation644_spill] sm:$0xff] %v9722_v39 }
 0x51c   : > { %3598 = vrot.lane.b32.xlu0 %v3524_v30, %s5594_s21  ;;  %v9729_v45 = vpop.permute.xlu1 %3753  ;;  %v3698_v30 = vor.u32 %v3697_v7, %v15557_v36  ;;  %v1454_v36 = vsel %vm14282_vm9, %v5759_v60, %v15694_v3  ;;  %v15695_v7 = vld [vmem:[#allocation5_spill] sm:$0xff]  ;;  %v15700_v60 = vld [vmem:[#allocation196_spill] sm:$0xff] }
 0x51d   : > { %15684 = vst [vmem:[#allocation347_spill] sm:$0xff] %v9729_v45  ;;  %v15692_v45 = vld [vmem:[#allocation20_spill] sm:$0xff]  ;;  %v1460_v26 = vsel %vm14282_vm9, %v15513_v57, %v15695_v7  ;;  %v1468_v3 = vsel %vm14282_vm9, %v15521_v27, %v15700_v60  ;;  %v15701_v57 = vld [vmem:[#allocation197_spill] sm:$0xff] }
 0x51e   : > { %v9734_v32 = vpop.permute.xlu0 %3737  ;;  %3942 = vrot.lane.b32.xlu1 %v3641_v11, %s5602_s29  ;;  %v1456_v39 = vsel %vm14282_vm9, %v15509_v37, %v15692_v45  ;;  %v15698_v45 = vld [vmem:[#allocation194_spill] sm:$0xff]  ;;  %v1466_v7 = vsel %vm14282_vm9, %v15515_v51, %v15701_v57  ;;  %v15707_v57 = vld [vmem:[#allocation201_spill] sm:$0xff] }
 0x51f   : > { %15686 = vst [vmem:[#allocation132_spill] sm:$0xff] %v9734_v32  ;;  %v1452_v32 = vsel %vm14282_vm9, %v15691_v20, %v15690_v42  ;;  %v1458_v42 = vsel %vm14282_vm9, %v15507_v21, %v15696_v15  ;;  %v15697_v20 = vld [vmem:[#allocation470_spill] sm:$0xff]  ;;  %v15704_v15 = vld [vmem:[#allocation199_spill] sm:$0xff] }
 0x520   : > { %3926 = vrot.lane.b32.xlu0 %v3625_v12, %s5602_s29  ;;  %v9739_v28 = vpop.permute.xlu1 %3823  ;;  %v3723_v37 = vsel %vm2164_vm6, %v15697_v20, %v3722_v17  ;;  %v15703_v17 = vld [vmem:[#allocation198_spill] sm:$0xff]  ;;  %v15705_v20 = vld [vmem:[#allocation200_spill] sm:$0xff] }
 0x521   : > { %15687 = vst [vmem:[#allocation645_spill] sm:$0xff] %v9739_v28  ;;  %v1464_v28 = vsel %vm14282_vm9, %v15517_v47, %v15698_v45  ;;  %v1472_v47 = vsel %vm14282_vm9, %v15525_v5, %v15703_v17  ;;  %v1476_v45 = vsel %vm14282_vm9, %v15529_v6, %v15705_v20  ;;  %v1483_v17 = vsel %vm14276_vm10, %v1450_v58, %v15709_v63  ;;  %v15710_v5 = vld [vmem:[#allocation206_spill] sm:$0xff]  ;;  %v15712_v6 = vld [vmem:[#allocation207_spill] sm:$0xff]  ;;  %v15714_v20 = vld [vmem:[#allocation208_spill] sm:$0xff] }
 0x522   : > { %v9751_v59 = vpop.permute.xlu0 %3807  ;;  %3673 = vrot.lane.b32.xlu1 %v3641_v11, %s5595_s22  ;;  %v15699_v11 = vld [vmem:[#allocation195_spill] sm:$0xff]  ;;  %v15718_v63 = vld [vmem:[#allocation210_spill] sm:$0xff] }
 0x523   : > { %15693 = vst [vmem:[#allocation183_spill] sm:$0xff] %v9751_v59  ;;  %v1462_v59 = vsel %vm14282_vm9, %v15511_v23, %v15699_v11  ;;  %v1470_v23 = vsel %vm14282_vm9, %v15519_v33, %v15704_v15  ;;  %v15706_v11 = vld [vmem:[#allocation440_spill] sm:$0xff]  ;;  %v9800_v15 = vsel %vm14276_vm10, %v1456_v39, %v15710_v5  ;;  %v9819_v5 = vsel %vm14276_vm10, %v1464_v28, %v15718_v63  ;;  %v15720_v39 = vld [vmem:[#allocation211_spill] sm:$0xff]  ;;  %v15733_v63 = vld [vmem:[#allocation221_spill] sm:$0xff] }
 0x524   : > { %3657 = vrot.lane.b32.xlu0 %v3625_v12, %s5595_s22  ;;  %v9778_v21 = vpop.permute.xlu1 %3854  ;;  %v3699_v60 = vsel %vm2164_vm6, %v15706_v11, %v3698_v30  ;;  %v1474_v12 = vsel %vm14282_vm9, %v15523_v62, %v15707_v57  ;;  %v9807_v30 = vsel %vm14276_vm10, %v1454_v36, %v15712_v6  ;;  %v9811_v62 = vsel %vm14276_vm10, %v1460_v26, %v15714_v20  ;;  %v15722_v11 = vld [vmem:[#allocation212_spill] sm:$0xff]  ;;  %v15724_v57 = vld [vmem:[#allocation213_spill] sm:$0xff]  ;;  %v15726_v6 = vld [vmem:[#allocation215_spill] sm:$0xff] }
 0x525   : > { %15702 = vst [vmem:[#allocation2_spill] sm:$0xff] %v9778_v21  ;;  %v15708_v21 = vld [vmem:[#allocation204_spill] sm:$0xff]  ;;  %15713 = vst [vmem:[#allocation7_spill] sm:$0xff] %v9807_v30  ;;  %v9823_v58 = vsel %vm14276_vm10, %v1462_v59, %v15720_v39  ;;  %v9827_v36 = vsel %vm14276_vm10, %v1468_v3, %v15722_v11  ;;  %v9831_v26 = vsel %vm14276_vm10, %v1466_v7, %v15724_v57  ;;  %v15729_v20 = vld [vmem:[#allocation217_spill] sm:$0xff] }
 0x526   : > { %v1485_v22 = vsel %vm14276_vm10, %v1452_v32, %v15708_v21  ;;  %v9802_v34 = vpop.permute.xlu0 %3852  ;;  %3985 = vrot.lane.b32.xlu1 %v3723_v37, %s5603_s30  ;;  %15715 = vst [vmem:[#allocation20_spill] sm:$0xff] %v9811_v62  ;;  %v15716_v32 = vld [vmem:[#allocation209_spill] sm:$0xff]  ;;  %15719 = vst [vmem:[#allocation5_spill] sm:$0xff] %v9819_v5  ;;  %v9842_v59 = vsel %vm14276_vm10, %v1470_v23, %v15729_v20  ;;  %v9850_v7 = vsel %vm14276_vm10, %v1474_v12, %v15733_v63  ;;  %v15735_v39 = vld [vmem:[#allocation227_spill] sm:$0xff] }
 0x527   : > { %15711 = vst [vmem:[#allocation191_spill] sm:$0xff] %v9802_v34  ;;  %v9815_v21 = vsel %vm14276_vm10, %v1458_v42, %v15716_v32  ;;  %15721 = vst [vmem:[#allocation193_spill] sm:$0xff] %v9823_v58  ;;  %v9835_v42 = vsel %vm14276_vm10, %v1472_v47, %v15726_v6  ;;  %v15731_v32 = vld [vmem:[#allocation219_spill] sm:$0xff]  ;;  %v1518_v47 = vsel %vm14340_vm11, %v1485_v22, %v15735_v39  ;;  %v15736_v11 = vld [vmem:[#allocation229_spill] sm:$0xff] }
 0x528   : > { %15717 = vst [vmem:[#allocation10_spill] sm:$0xff] %v9815_v21  ;;  %15723 = vst [vmem:[#allocation470_spill] sm:$0xff] %v9827_v36  ;;  %3969 = vrot.lane.b32.xlu0 %v3699_v60, %s5603_s30  ;;  %v9838_v28 = vpop.permute.xlu1 %3886  ;;  %v9846_v3 = vsel %vm14276_vm10, %v1476_v45, %v15731_v32  ;;  %v1516_v57 = vsel %vm14340_vm11, %v1483_v17, %v15736_v11  ;;  %v15737_v6 = vld [vmem:[#allocation231_spill] sm:$0xff]  ;;  %v15738_v23 = vld [vmem:[#allocation233_spill] sm:$0xff]  ;;  %v3527_v11 = vrot.slane %v8339_v16, 6 }
 0x529   : > { %15725 = vst [vmem:[#allocation194_spill] sm:$0xff] %v9831_v26  ;;  %15727 = vst [vmem:[#allocation195_spill] sm:$0xff] %v9835_v42  ;;  %v1520_v20 = vsel %vm14340_vm11, %v9807_v30, %v15738_v23  ;;  %v15739_v45 = vld [vmem:[#allocation234_spill] sm:$0xff]  ;;  %v15741_v22 = vld [vmem:[#allocation235_spill] sm:$0xff] }
 0x52a   : > { %15728 = vst [vmem:[#allocation196_spill] sm:$0xff] %v9838_v28  ;;  %15730 = vst [vmem:[#allocation197_spill] sm:$0xff] %v9842_v59  ;;  %v1522_v28 = vsel %vm14340_vm11, %v9800_v15, %v15737_v6  ;;  %v1526_v32 = vsel %vm14340_vm11, %v9811_v62, %v15739_v45  ;;  %v9865_v12 = vpop.permute.xlu0 %3884  ;;  %3761 = vrot.lane.b32.xlu1 %v3723_v37, %s5596_s23  ;;  %v1524_v17 = vsel %vm14340_vm11, %v9815_v21, %v15741_v22  ;;  %v15742_v63 = vld [vmem:[#allocation236_spill] sm:$0xff]  ;;  %v15744_v34 = vld [vmem:[#allocation237_spill] sm:$0xff] }
 0x52b   : > { %15732 = vst [vmem:[#allocation198_spill] sm:$0xff] %v9846_v3  ;;  %15734 = vst [vmem:[#allocation199_spill] sm:$0xff] %v9850_v7  ;;  %v1530_v39 = vsel %vm14340_vm11, %v9819_v5, %v15742_v63  ;;  %v15743_v6 = vld [vmem:[#allocation480_spill] sm:$0xff]  ;;  %v1528_v45 = vsel %vm14340_vm11, %v9823_v58, %v15744_v34  ;;  %v1534_v37 = vsel %vm14340_vm11, %v9827_v36, %v15745_v41  ;;  %v15751_v36 = vld [vmem:[#allocation243_spill] sm:$0xff] }
 0x52c   : > { %15740 = vst [vmem:[#allocation200_spill] sm:$0xff] %v9865_v12  ;;  %v3528_v23 = vrot.slane %v15743_v6, 7  ;;  %v15746_v12 = vld [vmem:[#allocation239_spill] sm:$0xff]  ;;  %v1538_v63 = vsel %vm14340_vm11, %v9835_v42, %v15747_v52  ;;  %3745 = vrot.lane.b32.xlu0 %v3699_v60, %s5596_s23  ;;  %v9889_v16 = vpop.permute.xlu1 %3588  ;;  %v15749_v6 = vld [vmem:[#allocation241_spill] sm:$0xff]  ;;  %v1542_v41 = vsel %vm14340_vm11, %v9846_v3, %v15750_v10  ;;  %v15808_v21 = vld [vmem:[#allocation404_spill] sm:$0xff] }
 0x52d   : > { %v1532_v22 = vsel %vm14340_vm11, %v9831_v26, %v15746_v12  ;;  %15748 = vst [vmem:[#allocation440_spill] sm:$0xff] %v9889_v16  ;;  %v1536_v34 = vsel %vm14340_vm11, %v9842_v59, %v15749_v6  ;;  %v1540_v12 = vsel %vm14340_vm11, %v9850_v7, %v15751_v36  ;;  %v15752_v26 = vld [vmem:[#allocation246_spill] sm:$0xff]  ;;  %v15754_v52 = vld [vmem:[#allocation247_spill] sm:$0xff]  ;;  %v15756_v16 = vld [vmem:[#allocation249_spill] sm:$0xff] }
 0x52e   : > { %v9902_v55 = vsel %vm1543_vm12, %v1518_v47, %v15752_v26  ;;  %v9906_v60 = vsel %vm1543_vm12, %v1516_v57, %v15754_v52  ;;  %v9910_v42 = vsel %vm1543_vm12, %v1522_v28, %v15756_v16  ;;  %v15758_v6 = vld [vmem:[#allocation250_spill] sm:$0xff]  ;;  %v15760_v10 = vld [vmem:[#allocation251_spill] sm:$0xff]  ;;  %v9920_v36 = vpop.permute.xlu0 %3586  ;;  %v15763_v26 = vld [vmem:[#allocation421_spill] sm:$0xff] }
 0x52f   : > { %15753 = vst [vmem:[#allocation201_spill] sm:$0xff] %v9902_v55  ;;  %15755 = vst [vmem:[#allocation204_spill] sm:$0xff] %v9906_v60  ;;  %v9914_v59 = vsel %vm1543_vm12, %v1520_v20, %v15758_v6  ;;  %v9918_v3 = vsel %vm1543_vm12, %v1526_v32, %v15760_v10  ;;  %v15764_v47 = vrot.slane %v15763_v26, 6  ;;  %v15765_v57 = vld [vmem:[#allocation252_spill] sm:$0xff]  ;;  %v15767_v28 = vld [vmem:[#allocation31_spill] sm:$0xff]  ;;  %v9933_v20 = vor.u32 %v3528_v23, %v3527_v11 }
 0x530   : > { %15757 = vst [vmem:[#allocation205_spill] sm:$0xff] %v9910_v42  ;;  %15759 = vst [vmem:[#allocation206_spill] sm:$0xff] %v9914_v59  ;;  %v9927_v52 = vsel %vm1543_vm12, %v1524_v17, %v15765_v57  ;;  %v9931_v16 = vsel %vm1543_vm12, %v1530_v39, %v15767_v28  ;;  %v15769_v6 = vld [vmem:[#allocation477_spill] sm:$0xff]  ;;  %v15776_v57 = vld [vmem:[#allocation255_spill] sm:$0xff]  ;;  %v15778_v11 = vrot.slane %v15515_v51, 6  ;;  %v9955_v23 = vpop.permute.xlu1 %3936 }
 0x531   : > { %15761 = vst [vmem:[#allocation207_spill] sm:$0xff] %v9918_v3  ;;  %15762 = vst [vmem:[#allocation208_spill] sm:$0xff] %v9920_v36  ;;  %3831 = vrot.lane.b32.xlu1 %v15764_v47, %s5600_s27  ;;  %v3530_v7 = vrot.slane %v15769_v6, 7  ;;  %v15770_v32 = vld [vmem:[#allocation253_spill] sm:$0xff]  ;;  %v15772_v36 = vld [vmem:[#allocation24_spill] sm:$0xff]  ;;  %v9950_v39 = vsel %vm1543_vm12, %v1538_v63, %v15776_v57 }
 0x532   : > { %15766 = vst [vmem:[#allocation209_spill] sm:$0xff] %v9927_v52  ;;  %15768 = vst [vmem:[#allocation210_spill] sm:$0xff] %v9931_v16  ;;  %v9938_v10 = vsel %vm1543_vm12, %v1528_v45, %v15770_v32  ;;  %v9942_v26 = vsel %vm1543_vm12, %v1534_v37, %v15772_v36  ;;  %v15774_v47 = vld [vmem:[#allocation254_spill] sm:$0xff]  ;;  %3815 = vrot.lane.b32.xlu0 %v15778_v11, %s5600_s27  ;;  %v15780_v45 = vld [vmem:[#allocation256_spill] sm:$0xff] }
 0x533   : > { %15771 = vst [vmem:[#allocation211_spill] sm:$0xff] %v9938_v10  ;;  %15773 = vst [vmem:[#allocation212_spill] sm:$0xff] %v9942_v26  ;;  %v9946_v17 = vsel %vm1543_vm12, %v1532_v22, %v15774_v47  ;;  %v9959_v28 = vsel %vm1543_vm12, %v1536_v34, %v15780_v45  ;;  %v15782_v37 = vld [vmem:[#allocation258_spill] sm:$0xff]  ;;  %v15784_v22 = vld [vmem:[#allocation259_spill] sm:$0xff] }
 0x534   : > { %15775 = vst [vmem:[#allocation213_spill] sm:$0xff] %v9946_v17  ;;  %15777 = vst [vmem:[#allocation215_spill] sm:$0xff] %v9950_v39  ;;  %v9963_v36 = vsel %vm1543_vm12, %v1542_v41, %v15782_v37  ;;  %v9967_v32 = vsel %vm1543_vm12, %v1540_v12, %v15784_v22  ;;  %v15786_v63 = vld [vmem:[#allocation169_spill] sm:$0xff]  ;;  %v15787_v47 = vld [vmem:[#allocation11_spill] sm:$0xff]  ;;  %v9984_v22 = vpop.permute.xlu0 %3920 }
 0x535   : > { %15779 = vst [vmem:[#allocation217_spill] sm:$0xff] %v9955_v23  ;;  %15781 = vst [vmem:[#allocation219_spill] sm:$0xff] %v9959_v28  ;;  %v2678_v57 = vsel %vm14282_vm9, %v15787_v47, %v15786_v63  ;;  %v15788_v51 = vld [vmem:[#allocation392_spill] sm:$0xff]  ;;  %v15789_v11 = vld [vmem:[#allocation3_spill] sm:$0xff]  ;;  %3870 = vrot.lane.b32.xlu1 %v9384_v61, %s5601_s28 }
 0x536   : > { %15783 = vst [vmem:[#allocation221_spill] sm:$0xff] %v9963_v36  ;;  %15785 = vst [vmem:[#allocation227_spill] sm:$0xff] %v9967_v32  ;;  %v2676_v23 = vsel %vm14282_vm9, %v15789_v11, %v15788_v51  ;;  %v15790_v58 = vld [vmem:[#allocation393_spill] sm:$0xff]  ;;  %v15791_v45 = vld [vmem:[#allocation394_spill] sm:$0xff]  ;;  %3868 = vrot.lane.b32.xlu0 %v9368_v0, %s5601_s28  ;;  %v2710_v0 = vsel %vm14282_vm9, %v7523_v19, %v15810_v56 }
 0x537   : > { %v2682_v34 = vsel %vm14282_vm9, %v15442_v35, %v15790_v58  ;;  %v2680_v41 = vsel %vm14282_vm9, %v15792_v25, %v15791_v45  ;;  %v15793_v37 = vld [vmem:[#allocation395_spill] sm:$0xff]  ;;  %15794 = vst [vmem:[#allocation229_spill] sm:$0xff] %v9984_v22  ;;  %v15795_v63 = vld [vmem:[#allocation396_spill] sm:$0xff]  ;;  %v15796_v51 = vld [vmem:[#allocation397_spill] sm:$0xff] }
 0x538   : > { %v2686_v12 = vsel %vm14282_vm9, %v15446_v13, %v15793_v37  ;;  %v2684_v47 = vsel %vm14282_vm9, %v15447_v31, %v15795_v63  ;;  %v2690_v35 = vsel %vm14282_vm9, %v15450_v14, %v15796_v51  ;;  %v15797_v58 = vld [vmem:[#allocation398_spill] sm:$0xff]  ;;  %v3531_v13 = vsel %vm3461_vm7, %v9933_v20, %v3530_v7  ;;  %v15798_v11 = vld [vmem:[#allocation187_spill] sm:$0xff]  ;;  %v15803_v14 = vld [vmem:[#allocation400_spill] sm:$0xff]  ;;  %v10037_v62 = vpop.permute.xlu0 %3651 }
 0x539   : > { %v2688_v25 = vsel %vm14282_vm9, %v15451_v24, %v15797_v58  ;;  %v15799_v45 = vld [vmem:[#allocation55_spill] sm:$0xff]  ;;  %v15801_v22 = vld [vmem:[#allocation62_spill] sm:$0xff]  ;;  %v15804_v51 = vld [vmem:[#allocation73_spill] sm:$0xff]  ;;  %v10013_v24 = vpop.permute.xlu1 %3667  ;;  %15814 = vst [vmem:[#allocation233_spill] sm:$0xff] %v10037_v62  ;;  %3902 = vrot.lane.b32.xlu1 %v3531_v13, %s5601_s28 }
 0x53a   : > { %v2694_v37 = vsel %vm14282_vm9, %v15799_v45, %v15798_v11  ;;  %v15800_v61 = vld [vmem:[#allocation399_spill] sm:$0xff]  ;;  %v15802_v31 = vld [vmem:[#allocation190_spill] sm:$0xff]  ;;  %v2696_v44 = vsel %vm14282_vm9, %v15804_v51, %v15803_v14  ;;  %15805 = vst [vmem:[#allocation231_spill] sm:$0xff] %v10013_v24  ;;  %v15806_v7 = vld [vmem:[#allocation401_spill] sm:$0xff]  ;;  %3900 = vrot.lane.b32.xlu0 %v9933_v20, %s5601_s28 }
 0x53b   : > { %v2692_v5 = vsel %vm14282_vm9, %v15801_v22, %v15800_v61  ;;  %v2698_v63 = vsel %vm14282_vm9, %v15236_v29, %v15802_v31  ;;  %v2702_v58 = vsel %vm14282_vm9, %v15239_v18, %v15806_v7  ;;  %v15807_v11 = vld [vmem:[#allocation403_spill] sm:$0xff]  ;;  %v2706_v29 = vsel %vm14282_vm9, %v7013_v4, %v15808_v21  ;;  %v15809_v31 = vld [vmem:[#allocation405_spill] sm:$0xff]  ;;  %v15812_v7 = vld [vmem:[#allocation408_spill] sm:$0xff] }
 0x53c   : > { %v2700_v61 = vsel %vm14282_vm9, %v15235_v53, %v15807_v11  ;;  %v2704_v14 = vsel %vm14282_vm9, %v15527_v9, %v15809_v31  ;;  %v15811_v24 = vld [vmem:[#allocation407_spill] sm:$0xff]  ;;  %v2714_v50 = vsel %vm14276_vm10, %v2678_v57, %v15812_v7  ;;  %v15813_v53 = vld [vmem:[#allocation409_spill] sm:$0xff]  ;;  %v15817_v21 = vld [vmem:[#allocation412_spill] sm:$0xff] }
 0x53d   : > { %v2708_v18 = vsel %vm14282_vm9, %v15535_v54, %v15811_v24  ;;  %v2712_v11 = vsel %vm14276_vm10, %v2676_v23, %v15813_v53  ;;  %v15815_v4 = vld [vmem:[#allocation411_spill] sm:$0xff]  ;;  %v10046_v56 = vsel %vm14276_vm10, %v2680_v41, %v15817_v21  ;;  %v15819_v31 = vld [vmem:[#allocation414_spill] sm:$0xff]  ;;  %v15822_v19 = vld [vmem:[#allocation416_spill] sm:$0xff]  ;;  %3604 = vrot.lane.b32.xlu1 %v3531_v13, %s5594_s21  ;;  %vm1774_vm9 = vcmask 269312  }
 0x53e   : > { %v10042_v9 = vsel %vm14276_vm10, %v2682_v34, %v15815_v4  ;;  %15818 = vst [vmem:[#allocation235_spill] sm:$0xff] %v10046_v56  ;;  %v10050_v24 = vsel %vm14276_vm10, %v2686_v12, %v15819_v31  ;;  %v15821_v57 = vld [vmem:[#allocation471_spill] sm:$0xff]  ;;  %v10055_v23 = vsel %vm14276_vm10, %v2684_v47, %v15822_v19  ;;  %v15824_v53 = vld [vmem:[#allocation418_spill] sm:$0xff]  ;;  %v10071_v12 = vpop.permute.xlu1 %3979  ;;  %v15831_v31 = vld [vmem:[#allocation424_spill] sm:$0xff]  ;;  %3602 = vrot.lane.b32.xlu0 %v9933_v20, %s5594_s21 }
 0x53f   : > { %15816 = vst [vmem:[#allocation234_spill] sm:$0xff] %v10042_v9  ;;  %15820 = vst [vmem:[#allocation236_spill] sm:$0xff] %v10050_v24  ;;  %v3642_v7 = vrot.slane %v15821_v57, 7  ;;  %v10059_v54 = vsel %vm14276_vm10, %v2690_v35, %v15824_v53  ;;  %v15826_v34 = vld [vmem:[#allocation419_spill] sm:$0xff]  ;;  %v15828_v41 = vld [vmem:[#allocation422_spill] sm:$0xff]  ;;  %v10075_v19 = vsel %vm14276_vm10, %v2692_v5, %v15831_v31 }
 0x540   : > { %15823 = vst [vmem:[#allocation480_spill] sm:$0xff] %v10055_v23  ;;  %15825 = vst [vmem:[#allocation237_spill] sm:$0xff] %v10059_v54  ;;  %v10063_v4 = vsel %vm14276_vm10, %v2688_v25, %v15826_v34  ;;  %v10067_v21 = vsel %vm14276_vm10, %v2694_v37, %v15828_v41  ;;  %v15833_v47 = vld [vmem:[#allocation12_spill] sm:$0xff]  ;;  %v15835_v53 = vld [vmem:[#allocation427_spill] sm:$0xff]  ;;  %v3626_v37 = vrot.slane %v15801_v22, 7 }
 0x541   : > { %15827 = vst [vmem:[#allocation238_spill] sm:$0xff] %v10063_v4  ;;  %15829 = vst [vmem:[#allocation239_spill] sm:$0xff] %v10067_v21  ;;  %v10079_v35 = vsel %vm14276_vm10, %v2698_v63, %v15833_v47  ;;  %v10083_v25 = vsel %vm14276_vm10, %v2696_v44, %v15835_v53  ;;  %v15837_v34 = vld [vmem:[#allocation28_spill] sm:$0xff]  ;;  %v15839_v57 = vld [vmem:[#allocation13_spill] sm:$0xff]  ;;  %v10102_v44 = vpop.permute.xlu0 %3963 }
 0x542   : > { %15830 = vst [vmem:[#allocation240_spill] sm:$0xff] %v10071_v12  ;;  %15832 = vst [vmem:[#allocation241_spill] sm:$0xff] %v10075_v19  ;;  %v10088_v41 = vsel %vm14276_vm10, %v2702_v58, %v15837_v34  ;;  %v10092_v12 = vsel %vm14276_vm10, %v2700_v61, %v15839_v57  ;;  %v15841_v5 = vld [vmem:[#allocation429_spill] sm:$0xff]  ;;  %v15846_v22 = vld [vmem:[#allocation431_spill] sm:$0xff] }
 0x543   : > { %15834 = vst [vmem:[#allocation242_spill] sm:$0xff] %v10079_v35  ;;  %15836 = vst [vmem:[#allocation243_spill] sm:$0xff] %v10083_v25  ;;  %v10096_v31 = vsel %vm14276_vm10, %v2706_v29, %v15841_v5  ;;  %v15843_v63 = vld [vmem:[#allocation29_spill] sm:$0xff]  ;;  %v10107_v58 = vsel %vm14276_vm10, %v2710_v0, %v15846_v22  ;;  %v15848_v53 = vld [vmem:[#allocation432_spill] sm:$0xff] }
 0x544   : > { %15838 = vst [vmem:[#allocation246_spill] sm:$0xff] %v10088_v41  ;;  %15840 = vst [vmem:[#allocation247_spill] sm:$0xff] %v10092_v12  ;;  %v10100_v47 = vsel %vm14276_vm10, %v2704_v14, %v15843_v63  ;;  %v10111_v61 = vsel %vm14276_vm10, %v2708_v18, %v15848_v53  ;;  %v15850_v57 = vld [vmem:[#allocation425_spill] sm:$0xff]  ;;  %v15851_v34 = vld [vmem:[#allocation515_spill] sm:$0xff]  ;;  %vm14316_vm10 = vcmask 244736  }
 0x545   : > { %15842 = vst [vmem:[#allocation249_spill] sm:$0xff] %v10096_v31  ;;  %15844 = vst [vmem:[#allocation250_spill] sm:$0xff] %v10100_v47  ;;  %v3643_v29 = vsel %vm3615_vm8, %v15850_v57, %v3642_v7  ;;  %v3724_v5 = vrot.slane %v15851_v34, 7  ;;  %v15852_v14 = vld [vmem:[#allocation434_spill] sm:$0xff]  ;;  %v15854_v62 = vld [vmem:[#allocation437_spill] sm:$0xff]  ;;  %v10128_v7 = vpop.permute.xlu1 %3755 }
 0x546   : > { %15845 = vst [vmem:[#allocation251_spill] sm:$0xff] %v10102_v44  ;;  %15847 = vst [vmem:[#allocation252_spill] sm:$0xff] %v10107_v58  ;;  %v2750_v63 = vsel %vm14340_vm11, %v2714_v50, %v15852_v14  ;;  %v15853_v44 = vld [vmem:[#allocation435_spill] sm:$0xff]  ;;  %v2754_v0 = vsel %vm14340_vm11, %v10042_v9, %v15854_v62  ;;  %v15855_v22 = vld [vmem:[#allocation438_spill] sm:$0xff]  ;;  %3944 = vrot.lane.b32.xlu1 %v3643_v29, %s5602_s29 }
 0x547   : > { %15849 = vst [vmem:[#allocation31_spill] sm:$0xff] %v10111_v61  ;;  %v2748_v13 = vsel %vm14340_vm11, %v2712_v11, %v15853_v44  ;;  %v2752_v18 = vsel %vm14340_vm11, %v10046_v56, %v15855_v22  ;;  %15856 = vst [vmem:[#allocation477_spill] sm:$0xff] %v10128_v7  ;;  %v15857_v53 = vld [vmem:[#allocation441_spill] sm:$0xff]  ;;  %v15858_v57 = vld [vmem:[#allocation442_spill] sm:$0xff]  ;;  %v2762_v22 = vsel %vm14340_vm11, %v10059_v54, %v15861_v46 }
 0x548   : > { %v2758_v50 = vsel %vm14340_vm11, %v10050_v24, %v15857_v53  ;;  %v2756_v11 = vsel %vm14340_vm11, %v10055_v23, %v15858_v57  ;;  %v15859_v44 = vld [vmem:[#allocation410_spill] sm:$0xff]  ;;  %v15860_v34 = vld [vmem:[#allocation140_spill] sm:$0xff]  ;;  %v15863_v56 = vld [vmem:[#allocation449_spill] sm:$0xff]  ;;  %v10151_v23 = vpop.permute.xlu0 %3739 }
 0x549   : > { %v3627_v62 = vsel %vm3615_vm8, %v15859_v44, %v3626_v37  ;;  %v3700_v14 = vrot.slane %v15860_v34, 7  ;;  %v15862_v20 = vld [vmem:[#allocation446_spill] sm:$0xff]  ;;  %v2766_v53 = vsel %vm14340_vm11, %v10067_v21, %v15863_v56  ;;  %15865 = vst [vmem:[#allocation253_spill] sm:$0xff] %v10151_v23  ;;  %v15866_v37 = vld [vmem:[#allocation453_spill] sm:$0xff]  ;;  %v3725_v21 = vor.u32 %v3724_v5, %v15769_v6  ;;  %v15870_v23 = vld [vmem:[#allocation460_spill] sm:$0xff] }
 0x54a   : > { %v2760_v7 = vsel %vm14340_vm11, %v10063_v4, %v15862_v20  ;;  %v15864_v24 = vld [vmem:[#allocation450_spill] sm:$0xff]  ;;  %v2770_v46 = vsel %vm14340_vm11, %v10079_v35, %v15866_v37  ;;  %v15868_v20 = vld [vmem:[#allocation457_spill] sm:$0xff]  ;;  %v2778_v4 = vsel %vm14340_vm11, %v10096_v31, %v15870_v23  ;;  %v15872_v35 = vld [vmem:[#allocation464_spill] sm:$0xff]  ;;  %3928 = vrot.lane.b32.xlu0 %v3627_v62, %s5602_s29  ;;  %3675 = vrot.lane.b32.xlu1 %v3643_v29, %s5595_s22 }
 0x54b   : > { %v2764_v57 = vsel %vm14340_vm11, %v10075_v19, %v15864_v24  ;;  %v15867_v44 = vld [vmem:[#allocation454_spill] sm:$0xff]  ;;  %v2774_v56 = vsel %vm14340_vm11, %v10088_v41, %v15868_v20  ;;  %v10177_v20 = vpop.permute.xlu1 %3825  ;;  %v15876_v23 = vld [vmem:[#allocation469_spill] sm:$0xff]  ;;  %v15877_v41 = vld [vmem:[#allocation67_spill] sm:$0xff] }
 0x54c   : > { %v2768_v34 = vsel %vm14340_vm11, %v10083_v25, %v15867_v44  ;;  %v15869_v24 = vld [vmem:[#allocation458_spill] sm:$0xff]  ;;  %v2782_v44 = vsel %vm14340_vm11, %v10107_v58, %v15872_v35  ;;  %15873 = vst [vmem:[#allocation24_spill] sm:$0xff] %v10177_v20  ;;  %v2784_v31 = vsel %vm1543_vm12, %v2748_v13, %v15876_v23  ;;  %v15881_v30 = vld [vmem:[#allocation481_spill] sm:$0xff] }
 0x54d   : > { %v2772_v19 = vsel %vm14340_vm11, %v10092_v12, %v15869_v24  ;;  %v15871_v54 = vld [vmem:[#allocation462_spill] sm:$0xff]  ;;  %v15875_v24 = vld [vmem:[#allocation468_spill] sm:$0xff]  ;;  %v15884_v13 = vld [vmem:[#allocation485_spill] sm:$0xff] }
 0x54e   : > { %v2776_v37 = vsel %vm14340_vm11, %v10100_v47, %v15871_v54  ;;  %v15874_v6 = vld [vmem:[#allocation466_spill] sm:$0xff]  ;;  %v2786_v12 = vsel %vm1543_vm12, %v2750_v63, %v15875_v24  ;;  %v3701_v54 = vor.u32 %v3700_v14, %v15877_v41  ;;  %v15878_v47 = vld [vmem:[#allocation472_spill] sm:$0xff]  ;;  %v15883_v63 = vld [vmem:[#allocation483_spill] sm:$0xff]  ;;  %v2796_v14 = vsel %vm1543_vm12, %v2760_v7, %v15884_v13  ;;  %3659 = vrot.lane.b32.xlu0 %v3627_v62, %s5595_s22 }
 0x54f   : > { %v2780_v5 = vsel %vm14340_vm11, %v10111_v61, %v15874_v6  ;;  %v2790_v35 = vsel %vm1543_vm12, %v2754_v0, %v15878_v47  ;;  %v15879_v58 = vld [vmem:[#allocation474_spill] sm:$0xff]  ;;  %v2792_v6 = vsel %vm1543_vm12, %v2756_v11, %v15881_v30  ;;  %v10195_v61 = vpop.permute.xlu0 %3809  ;;  %v2798_v41 = vsel %vm1543_vm12, %v2762_v22, %v15883_v63  ;;  %v15888_v30 = vld [vmem:[#allocation488_spill] sm:$0xff]  ;;  %v15889_v24 = vld [vmem:[#allocation489_spill] sm:$0xff] }
 0x550   : > { %v2788_v25 = vsel %vm1543_vm12, %v2752_v18, %v15879_v58  ;;  %v15880_v20 = vld [vmem:[#allocation478_spill] sm:$0xff]  ;;  %15882 = vst [vmem:[#allocation254_spill] sm:$0xff] %v10195_v61  ;;  %v15886_v58 = vld [vmem:[#allocation476_spill] sm:$0xff]  ;;  %v2806_v11 = vsel %vm1543_vm12, %v2770_v46, %v15888_v30  ;;  %v10212_v29 = vsel %vm1543_vm12, %v2768_v34, %v15889_v24  ;;  %v15890_v22 = vld [vmem:[#allocation497_spill] sm:$0xff] }
 0x551   : > { %v2794_v9 = vsel %vm1543_vm12, %v2758_v50, %v15880_v20  ;;  %v15885_v47 = vld [vmem:[#allocation486_spill] sm:$0xff]  ;;  %v3726_v18 = vsel %vm2164_vm6, %v15886_v58, %v3725_v21  ;;  %v15887_v50 = vld [vmem:[#allocation487_spill] sm:$0xff]  ;;  %v2820_v7 = vsel %vm1576_vm13, %v9906_v60, %v15890_v22  ;;  %v15895_v13 = vld [vmem:[#allocation444_spill] sm:$0xff] }
 0x552   : > { %v2802_v0 = vsel %vm1543_vm12, %v2766_v53, %v15885_v47  ;;  %v2800_v20 = vsel %vm1543_vm12, %v2764_v57, %v15887_v50  ;;  %v10218_v53 = vpop.permute.xlu1 %3858  ;;  %v15892_v21 = vld [vmem:[#allocation490_spill] sm:$0xff]  ;;  %v15893_v57 = vld [vmem:[#allocation491_spill] sm:$0xff]  ;;  %v3702_v47 = vsel %vm2164_vm6, %v15895_v13, %v3701_v54  ;;  %v15896_v58 = vld [vmem:[#allocation492_spill] sm:$0xff]  ;;  %3987 = vrot.lane.b32.xlu1 %v3726_v18, %s5603_s30 }
 0x553   : > { %15891 = vst [vmem:[#allocation255_spill] sm:$0xff] %v10218_v53  ;;  %v10222_v23 = vsel %vm1543_vm12, %v2774_v56, %v15892_v21  ;;  %v2808_v46 = vsel %vm1543_vm12, %v2772_v19, %v15893_v57  ;;  %v15894_v63 = vld [vmem:[#allocation510_spill] sm:$0xff]  ;;  %v10232_v50 = vsel %vm1543_vm12, %v2778_v4, %v15896_v58  ;;  %v15897_v62 = vld [vmem:[#allocation493_spill] sm:$0xff]  ;;  %v15899_v21 = vld [vmem:[#allocation496_spill] sm:$0xff]  ;;  %3971 = vrot.lane.b32.xlu0 %v3702_v47, %s5603_s30 }
 0x554   : > { %v2868_v34 = vsel %vm1609_vm14, %v2820_v7, %v15894_v63  ;;  %v10236_v30 = vsel %vm1543_vm12, %v2776_v37, %v15897_v62  ;;  %v15898_v24 = vld [vmem:[#allocation494_spill] sm:$0xff]  ;;  %v2823_v19 = vsel %vm1576_vm13, %v9902_v55, %v15899_v21  ;;  %v10245_v7 = vpop.permute.xlu0 %3856  ;;  %v15901_v54 = vld [vmem:[#allocation495_spill] sm:$0xff]  ;;  %v10254_v37 = vsel %vm1576_vm13, %v2786_v12, %v15899_v21  ;;  %v15902_v57 = vld [vmem:[#allocation512_spill] sm:$0xff] }
 0x555   : > { %v10240_v56 = vsel %vm1543_vm12, %v2782_v44, %v15898_v24  ;;  %15900 = vst [vmem:[#allocation256_spill] sm:$0xff] %v10245_v7  ;;  %v10250_v4 = vsel %vm1543_vm12, %v2780_v5, %v15901_v54  ;;  %v10258_v44 = vsel %vm1576_vm13, %v2784_v31, %v15890_v22  ;;  %v2872_v63 = vsel %vm1609_vm14, %v2823_v19, %v15902_v57  ;;  %v15903_v13 = vld [vmem:[#allocation154_spill] sm:$0xff]  ;;  %v15904_v62 = vld [vmem:[#allocation68_spill] sm:$0xff]  ;;  %v15908_v19 = vld [vmem:[#allocation517_spill] sm:$0xff] }
 0x556   : > { %v2931_v58 = vsel %vm14349_vm15, %v2868_v34, %v15903_v13  ;;  %v2826_v24 = vsel %vm1576_vm13, %v9914_v59, %v15904_v62  ;;  %v15905_v5 = vld [vmem:[#allocation86_spill] sm:$0xff]  ;;  %v10275_v31 = vpop.permute.xlu1 %3890  ;;  %v10279_v22 = vsel %vm1576_vm13, %v2788_v25, %v15904_v62  ;;  %v15909_v57 = vld [vmem:[#allocation80_spill] sm:$0xff]  ;;  %3763 = vrot.lane.b32.xlu1 %v3726_v18, %s5596_s23  ;;  %v15916_v7 = vld [vmem:[#allocation573_spill] sm:$0xff] }
 0x557   : > { %v10269_v54 = vsel %vm1576_vm13, %v2790_v35, %v15905_v5  ;;  %v2829_v12 = vsel %vm1576_vm13, %v9910_v42, %v15905_v5  ;;  %15906 = vst [vmem:[#allocation258_spill] sm:$0xff] %v10275_v31  ;;  %v15907_v34 = vld [vmem:[#allocation514_spill] sm:$0xff]  ;;  %v10287_v59 = vsel %vm1576_vm13, %v2794_v9, %v15909_v57  ;;  %v15910_v42 = vld [vmem:[#allocation160_spill] sm:$0xff]  ;;  %v3533_v61 = vrot.slane %v15916_v7, 7  ;;  %3747 = vrot.lane.b32.xlu0 %v3702_v47, %s5596_s23  ;;  %v15921_v7 = vld [vmem:[#allocation185_spill] sm:$0xff] }
 0x558   : > { %v2876_v21 = vsel %vm1609_vm14, %v2826_v24, %v15907_v34  ;;  %v2880_v35 = vsel %vm1609_vm14, %v2829_v12, %v15908_v19  ;;  %v2934_v55 = vsel %vm14349_vm15, %v2872_v63, %v15910_v42  ;;  %v15911_v13 = vld [vmem:[#allocation498_spill] sm:$0xff]  ;;  %v2835_v24 = vsel %vm1576_vm13, %v9918_v3, %v15909_v57  ;;  %v10301_v12 = vpop.permute.xlu0 %3888  ;;  %v15913_v9 = vld [vmem:[#allocation276_spill] sm:$0xff]  ;;  %v15914_v63 = vld [vmem:[#allocation499_spill] sm:$0xff] }
 0x559   : > { %v10293_v60 = vsel %vm1576_vm13, %v2792_v6, %v15911_v13  ;;  %v2832_v25 = vsel %vm1576_vm13, %v9927_v52, %v15911_v13  ;;  %15912 = vst [vmem:[#allocation259_spill] sm:$0xff] %v10301_v12  ;;  %v2981_v31 = vsel %vm1675_vm2, %v2931_v58, %v15913_v9  ;;  %v10308_v42 = vsel %vm1576_vm13, %v2798_v41, %v15914_v63  ;;  %v15915_v6 = vld [vmem:[#allocation570_spill] sm:$0xff]  ;;  %v15918_v3 = vld [vmem:[#allocation163_spill] sm:$0xff]  ;;  %v15919_v57 = vld [vmem:[#allocation500_spill] sm:$0xff] }
 0x55a   : > { %v3532_v53 = vrot.slane %v15915_v6, 6  ;;  %v15917_v52 = vld [vmem:[#allocation158_spill] sm:$0xff]  ;;  %v2940_v12 = vsel %vm14349_vm15, %v2880_v35, %v15918_v3  ;;  %v10318_v18 = vsel %vm1576_vm13, %v2796_v14, %v15919_v57  ;;  %v2841_v41 = vsel %vm1576_vm13, %v9931_v16, %v15914_v63  ;;  %v10324_v58 = vpop.permute.xlu1 %3592  ;;  %v15922_v35 = vld [vmem:[#allocation501_spill] sm:$0xff]  ;;  %v15923_v16 = vld [vmem:[#allocation288_spill] sm:$0xff] }
 0x55b   : > { %v2937_v13 = vsel %vm14349_vm15, %v2876_v21, %v15917_v52  ;;  %15920 = vst [vmem:[#allocation169_spill] sm:$0xff] %v10324_v58  ;;  %v2984_v6 = vsel %vm1675_vm2, %v2934_v55, %v15921_v7  ;;  %v2838_v21 = vsel %vm1576_vm13, %v9938_v10, %v15919_v57  ;;  %v10333_v9 = vsel %vm1576_vm13, %v2802_v0, %v15922_v35  ;;  %v15924_v63 = vld [vmem:[#allocation502_spill] sm:$0xff]  ;;  %v15925_v7 = vld [vmem:[#allocation503_spill] sm:$0xff]  ;;  %v15931_v19 = vld [vmem:[#allocation572_spill] sm:$0xff] }
 0x55c   : > { %v2847_v14 = vsel %vm1576_vm13, %v9942_v26, %v15922_v35  ;;  %v3031_v47 = vsel %vm14314_vm4, %v2981_v31, %v15923_v16  ;;  %v10342_v58 = vsel %vm1576_vm13, %v2800_v20, %v15924_v63  ;;  %v2844_v55 = vsel %vm1576_vm13, %v9946_v17, %v15924_v63  ;;  %v10351_v0 = vpop.permute.xlu0 %3590  ;;  %v15927_v57 = vld [vmem:[#allocation423_spill] sm:$0xff]  ;;  %v15929_v35 = vld [vmem:[#allocation188_spill] sm:$0xff]  ;;  %v15930_v16 = vld [vmem:[#allocation9_spill] sm:$0xff] }
 0x55d   : > { %v10349_v10 = vsel %vm1576_vm13, %v2806_v11, %v15925_v7  ;;  %15926 = vst [vmem:[#allocation11_spill] sm:$0xff] %v10351_v0  ;;  %v15928_v26 = vrot.slane %v15927_v57, 6  ;;  %v2987_v31 = vsel %vm1675_vm2, %v2937_v13, %v15929_v35  ;;  %v2990_v20 = vsel %vm1675_vm2, %v2940_v12, %v15930_v16  ;;  %v15932_v63 = vld [vmem:[#allocation287_spill] sm:$0xff]  ;;  %v15933_v52 = vld [vmem:[#allocation504_spill] sm:$0xff]  ;;  %v15936_v12 = vld [vmem:[#allocation506_spill] sm:$0xff] }
 0x55e   : > { %v10360_v3 = vor.u32 %v3533_v61, %v3532_v53  ;;  %v3535_v17 = vrot.slane %v15931_v19, 7  ;;  %v3034_v11 = vsel %vm14314_vm4, %v2984_v6, %v15932_v63  ;;  %v10368_v0 = vsel %vm1576_vm13, %v10212_v29, %v15933_v52  ;;  %v10379_v53 = vpop.permute.xlu1 %3938  ;;  %v15937_v63 = vld [vmem:[#allocation505_spill] sm:$0xff]  ;;  %v15943_v35 = vld [vmem:[#allocation58_spill] sm:$0xff]  ;;  %v15974_v34 = vld [vmem:[#allocation108_spill] sm:$0xff] }
 0x55f   : > { %3833 = vrot.lane.b32.xlu1 %v15928_v26, %s5600_s27  ;;  %v2850_v26 = vsel %vm1576_vm13, %v9959_v28, %v15933_v52  ;;  %v2853_v13 = vsel %vm1576_vm13, %v9950_v39, %v15925_v7  ;;  %v15934_v61 = vrot.slane %v15521_v27, 6  ;;  %15935 = vst [vmem:[#allocation392_spill] sm:$0xff] %v10379_v53  ;;  %v10383_v6 = vsel %vm1576_vm13, %v2808_v46, %v15936_v12  ;;  %v15939_v53 = vld [vmem:[#allocation289_spill] sm:$0xff]  ;;  %v15940_v7 = vld [vmem:[#allocation507_spill] sm:$0xff]  ;;  %v15975_v62 = vld [vmem:[#allocation112_spill] sm:$0xff] }
 0x560   : > { %v2856_v29 = vsel %vm1576_vm13, %v9967_v32, %v15936_v12  ;;  %v10391_v28 = vsel %vm1576_vm13, %v10222_v23, %v15937_v63  ;;  %v2859_v27 = vsel %vm1576_vm13, %v9963_v36, %v15937_v63  ;;  %v3040_v46 = vsel %vm14314_vm4, %v2990_v20, %v15939_v53  ;;  %v15941_v32 = vld [vmem:[#allocation304_spill] sm:$0xff]  ;;  %v10407_v23 = vpop.permute.xlu0 %3922  ;;  %v15944_v36 = vld [vmem:[#allocation519_spill] sm:$0xff]  ;;  %v15947_v52 = vld [vmem:[#allocation509_spill] sm:$0xff] }
 0x561   : > { %3817 = vrot.lane.b32.xlu0 %v15934_v61, %s5600_s27  ;;  %v15938_v61 = vld [vmem:[#allocation290_spill] sm:$0xff]  ;;  %v10403_v16 = vsel %vm1576_vm13, %v10240_v56, %v15940_v7  ;;  %v3081_v12 = vsel %vm14316_vm10, %v3031_v47, %v15941_v32  ;;  %15942 = vst [vmem:[#allocation3_spill] sm:$0xff] %v10407_v23  ;;  %v2884_v63 = vsel %vm1609_vm14, %v2832_v25, %v15944_v36  ;;  %v15946_v20 = vld [vmem:[#allocation303_spill] sm:$0xff]  ;;  %v15948_v32 = vld [vmem:[#allocation508_spill] sm:$0xff] }
 0x562   : > { %v3037_v39 = vsel %vm14314_vm4, %v2987_v31, %v15938_v61  ;;  %v15945_v31 = vld [vmem:[#allocation521_spill] sm:$0xff]  ;;  %v3084_v53 = vsel %vm14316_vm10, %v3034_v11, %v15946_v20  ;;  %v3536_v56 = vsel %vm3461_vm7, %v10360_v3, %v3535_v17  ;;  %v10422_v47 = vsel %vm1609_vm14, %v10258_v44, %v15947_v52  ;;  %v15949_v17 = vld [vmem:[#allocation48_spill] sm:$0xff]  ;;  %v10441_v52 = vpop.permute.xlu1 %3669  ;;  %v15951_v44 = vld [vmem:[#allocation511_spill] sm:$0xff] }
 0x563   : > { %3874 = vrot.lane.b32.xlu1 %v15943_v35, %s5601_s28  ;;  %v2888_v61 = vsel %vm1609_vm14, %v2835_v24, %v15945_v31  ;;  %v10427_v35 = vsel %vm1576_vm13, %v10232_v50, %v15948_v32  ;;  %v10432_v25 = vsel %vm1576_vm13, %v10236_v30, %v15948_v32  ;;  %v10437_v24 = vsel %vm1576_vm13, %v10250_v4, %v15940_v7  ;;  %v15952_v11 = vld [vmem:[#allocation321_spill] sm:$0xff]  ;;  %v15953_v30 = vld [vmem:[#allocation307_spill] sm:$0xff]  ;;  %v15954_v23 = vld [vmem:[#allocation306_spill] sm:$0xff] }
 0x564   : > { %15950 = vst [vmem:[#allocation393_spill] sm:$0xff] %v10441_v52  ;;  %v10446_v50 = vsel %vm1609_vm14, %v10254_v37, %v15951_v44  ;;  %v10450_v20 = vsel %vm1774_vm9, %v3081_v12, %v15952_v11  ;;  %v3087_v32 = vsel %vm14316_vm10, %v3037_v39, %v15953_v30  ;;  %v3090_v4 = vsel %vm14316_vm10, %v3040_v46, %v15954_v23  ;;  %v15955_v7 = vld [vmem:[#allocation513_spill] sm:$0xff]  ;;  %v15956_v52 = vld [vmem:[#allocation275_spill] sm:$0xff]  ;;  %v15957_v37 = vld [vmem:[#allocation162_spill] sm:$0xff]  ;;  %v10469_v11 = vpop.permute.xlu0 %3653 }
 0x565   : > { %3872 = vrot.lane.b32.xlu0 %v15949_v17, %s5601_s28  ;;  %v10459_v17 = vsel %vm1609_vm14, %v10279_v22, %v15955_v7  ;;  %v2943_v31 = vsel %vm14349_vm15, %v2884_v63, %v15956_v52  ;;  %v2946_v44 = vsel %vm14349_vm15, %v2888_v61, %v15957_v37  ;;  %v15958_v36 = vld [vmem:[#allocation320_spill] sm:$0xff]  ;;  %15959 = vst [vmem:[#allocation394_spill] sm:$0xff] %v10469_v11  ;;  %v15961_v22 = vld [vmem:[#allocation94_spill] sm:$0xff]  ;;  %v15963_v61 = vld [vmem:[#allocation569_spill] sm:$0xff] }
 0x566   : > { %v10467_v12 = vsel %vm1774_vm9, %v3084_v53, %v15958_v36  ;;  %v15960_v39 = vld [vmem:[#allocation516_spill] sm:$0xff]  ;;  %v2892_v7 = vsel %vm1609_vm14, %v2838_v21, %v15961_v22  ;;  %v3644_v30 = vrot.slane %v15963_v61, 7  ;;  %v15964_v37 = vld [vmem:[#allocation91_spill] sm:$0xff] }
 0x567   : > { %3906 = vrot.lane.b32.xlu1 %v3536_v56, %s5601_s28  ;;  %v10475_v46 = vsel %vm1609_vm14, %v10269_v54, %v15960_v39  ;;  %v15962_v63 = vld [vmem:[#allocation96_spill] sm:$0xff]  ;;  %v10485_v53 = vsel %vm1609_vm14, %v10293_v60, %v15964_v37  ;;  %v15967_v39 = vld [vmem:[#allocation323_spill] sm:$0xff] }
 0x568   : > { %v2896_v23 = vsel %vm1609_vm14, %v2841_v41, %v15962_v63  ;;  %v15965_v36 = vld [vmem:[#allocation100_spill] sm:$0xff]  ;;  %v10495_v21 = vsel %vm1774_vm9, %v3090_v4, %v15967_v39  ;;  %v10499_v41 = vpop.permute.xlu1 %3981  ;;  %v15969_v63 = vld [vmem:[#allocation277_spill] sm:$0xff] }
 0x569   : > { %v2900_v11 = vsel %vm1609_vm14, %v2844_v55, %v15965_v36  ;;  %v15966_v52 = vld [vmem:[#allocation324_spill] sm:$0xff]  ;;  %3904 = vrot.lane.b32.xlu0 %v10360_v3, %s5601_s28  ;;  %15968 = vst [vmem:[#allocation26_spill] sm:$0xff] %v10499_v41  ;;  %v2993_v60 = vsel %vm1675_vm2, %v2943_v31, %v15969_v63  ;;  %v2908_v41 = vsel %vm1609_vm14, %v2850_v26, %v15974_v34  ;;  %v10516_v63 = vpop.permute.xlu0 %3965  ;;  %v15984_v34 = vld [vmem:[#allocation523_spill] sm:$0xff] }
 0x56a   : > { %v10491_v54 = vsel %vm1774_vm9, %v3087_v32, %v15966_v52  ;;  %v15970_v37 = vld [vmem:[#allocation8_spill] sm:$0xff]  ;;  %v3628_v32 = vrot.slane %v15799_v45, 7  ;;  %v2912_v31 = vsel %vm1609_vm14, %v2853_v13, %v15975_v62  ;;  %15976 = vst [vmem:[#allocation395_spill] sm:$0xff] %v10516_v63  ;;  %v15978_v45 = vld [vmem:[#allocation522_spill] sm:$0xff]  ;;  %v15982_v13 = vld [vmem:[#allocation291_spill] sm:$0xff] }
 0x56b   : > { %v2996_v22 = vsel %vm1675_vm2, %v2946_v44, %v15970_v37  ;;  %v15971_v55 = vld [vmem:[#allocation104_spill] sm:$0xff]  ;;  %3608 = vrot.lane.b32.xlu1 %v3536_v56, %s5594_s21  ;;  %v15977_v44 = vld [vmem:[#allocation166_spill] sm:$0xff] }
 0x56c   : > { %v2904_v36 = vsel %vm1609_vm14, %v2847_v14, %v15971_v55  ;;  %v15972_v52 = vld [vmem:[#allocation164_spill] sm:$0xff]  ;;  %v2955_v14 = vsel %vm14349_vm15, %v2900_v11, %v15977_v44  ;;  %v2916_v55 = vsel %vm1609_vm14, %v2856_v29, %v15978_v45  ;;  %v3046_v63 = vsel %vm14314_vm4, %v2996_v22, %v15982_v13  ;;  %v10538_v29 = vpop.permute.xlu1 %3757  ;;  %v15987_v44 = vld [vmem:[#allocation170_spill] sm:$0xff]  ;;  %v15989_v13 = vld [vmem:[#allocation415_spill] sm:$0xff] }
 0x56d   : > { %v2949_v4 = vsel %vm14349_vm15, %v2892_v7, %v15972_v52  ;;  %v15973_v39 = vld [vmem:[#allocation168_spill] sm:$0xff]  ;;  %v15979_v7 = vld [vmem:[#allocation426_spill] sm:$0xff]  ;;  %v2920_v11 = vsel %vm1609_vm14, %v2859_v27, %v15984_v34  ;;  %3606 = vrot.lane.b32.xlu0 %v10360_v3, %s5594_s21  ;;  %15985 = vst [vmem:[#allocation396_spill] sm:$0xff] %v10538_v29 }
 0x56e   : > { %v2952_v5 = vsel %vm14349_vm15, %v2896_v23, %v15973_v39  ;;  %v10525_v52 = vsel %vm3615_vm8, %v15979_v7, %v3644_v30  ;;  %v15980_v23 = vld [vmem:[#allocation137_spill] sm:$0xff]  ;;  %v15981_v26 = vld [vmem:[#allocation292_spill] sm:$0xff]  ;;  %v15986_v30 = vld [vmem:[#allocation278_spill] sm:$0xff] }
 0x56f   : > { %v3703_v39 = vrot.slane %v15980_v23, 7  ;;  %v3043_v37 = vsel %vm14314_vm4, %v2993_v60, %v15981_v26  ;;  %v15983_v62 = vld [vmem:[#allocation172_spill] sm:$0xff]  ;;  %v2999_v23 = vsel %vm1675_vm2, %v2949_v4, %v15986_v30  ;;  %v2961_v60 = vsel %vm14349_vm15, %v2908_v41, %v15987_v44  ;;  %v15993_v30 = vld [vmem:[#allocation174_spill] sm:$0xff]  ;;  %v10559_v26 = vpop.permute.xlu0 %3741  ;;  %3946 = vrot.lane.b32.xlu1 %v10525_v52, %s5602_s29 }
 0x570   : > { %v2958_v56 = vsel %vm14349_vm15, %v2904_v36, %v15983_v62  ;;  %v15988_v45 = vld [vmem:[#allocation176_spill] sm:$0xff]  ;;  %v3629_v36 = vsel %vm3615_vm8, %v15989_v13, %v3628_v32  ;;  %v2967_v41 = vsel %vm14349_vm15, %v2916_v55, %v15993_v30  ;;  %15994 = vst [vmem:[#allocation397_spill] sm:$0xff] %v10559_v26  ;;  %v15995_v32 = vld [vmem:[#allocation279_spill] sm:$0xff]  ;;  %v15996_v13 = vld [vmem:[#allocation181_spill] sm:$0xff] }
 0x571   : > { %v2964_v22 = vsel %vm14349_vm15, %v2912_v31, %v15988_v45  ;;  %v15990_v62 = vld [vmem:[#allocation520_spill] sm:$0xff]  ;;  %v3008_v31 = vsel %vm1675_vm2, %v2958_v56, %v15995_v32  ;;  %v16000_v55 = vld [vmem:[#allocation282_spill] sm:$0xff]  ;;  %v16001_v30 = vld [vmem:[#allocation281_spill] sm:$0xff]  ;;  %v3096_v56 = vsel %vm14316_vm10, %v3046_v63, %v16002_v48  ;;  %3930 = vrot.lane.b32.xlu0 %v3629_v36, %s5602_s29 }
 0x572   : > { %v10551_v27 = vsel %vm1609_vm14, %v10287_v59, %v15990_v62  ;;  %v15991_v3 = vld [vmem:[#allocation192_spill] sm:$0xff]  ;;  %v2970_v59 = vsel %vm14349_vm15, %v2920_v11, %v15996_v13  ;;  %v15997_v62 = vld [vmem:[#allocation309_spill] sm:$0xff]  ;;  %v3011_v26 = vsel %vm1675_vm2, %v2961_v60, %v16000_v55  ;;  %v3014_v44 = vsel %vm1675_vm2, %v2964_v22, %v16001_v30  ;;  %v10579_v11 = vpop.permute.xlu1 %3827  ;;  %v16008_v22 = vld [vmem:[#allocation98_spill] sm:$0xff] }
 0x573   : > { %v3002_v34 = vsel %vm1675_vm2, %v2952_v5, %v15991_v3  ;;  %v15992_v29 = vld [vmem:[#allocation280_spill] sm:$0xff]  ;;  %v3093_v5 = vsel %vm14316_vm10, %v3043_v37, %v15997_v62  ;;  %v15998_v3 = vld [vmem:[#allocation61_spill] sm:$0xff]  ;;  %16003 = vst [vmem:[#allocation398_spill] sm:$0xff] %v10579_v11  ;;  %v16007_v60 = vshrl.u32 %v15963_v61, 16  ;;  %v2894_v63 = vsel %vm1609_vm14, %v10318_v18, %v16008_v22  ;;  %v16009_v48 = vld [vmem:[#allocation295_spill] sm:$0xff]  ;;  %3677 = vrot.lane.b32.xlu1 %v15979_v7, %s5595_s22 }
 0x574   : > { %v3005_v4 = vsel %vm1675_vm2, %v2955_v14, %v15992_v29  ;;  %v3704_v45 = vor.u32 %v3703_v39, %v15998_v3  ;;  %v15999_v14 = vld [vmem:[#allocation294_spill] sm:$0xff]  ;;  %v16004_v32 = vld [vmem:[#allocation293_spill] sm:$0xff]  ;;  %v16005_v39 = vld [vmem:[#allocation296_spill] sm:$0xff]  ;;  %v3058_v13 = vsel %vm14314_vm4, %v3008_v31, %v16009_v48 }
 0x575   : > { %v3049_v29 = vsel %vm14314_vm4, %v2999_v23, %v15999_v14  ;;  %v3052_v37 = vsel %vm14314_vm4, %v3002_v34, %v16004_v32  ;;  %v3055_v3 = vsel %vm14314_vm4, %v3005_v4, %v16005_v39  ;;  %v16006_v23 = vld [vmem:[#allocation284_spill] sm:$0xff]  ;;  %v3727_v14 = vrot.slane %v16007_v60, 7  ;;  %v16010_v11 = vld [vmem:[#allocation283_spill] sm:$0xff]  ;;  %v16011_v34 = vld [vmem:[#allocation326_spill] sm:$0xff]  ;;  %v10600_v4 = vpop.permute.xlu0 %3811  ;;  %3661 = vrot.lane.b32.xlu0 %v3629_v36, %s5595_s22 }
 0x576   : > { %v3017_v62 = vsel %vm1675_vm2, %v2967_v41, %v16006_v23  ;;  %v3020_v30 = vsel %vm1675_vm2, %v2970_v59, %v16010_v11  ;;  %v10598_v32 = vsel %vm1774_vm9, %v3093_v5, %v16011_v34  ;;  %16012 = vst [vmem:[#allocation187_spill] sm:$0xff] %v10600_v4  ;;  %v16013_v41 = vld [vmem:[#allocation298_spill] sm:$0xff]  ;;  %v16014_v39 = vld [vmem:[#allocation297_spill] sm:$0xff]  ;;  %v16015_v22 = vld [vmem:[#allocation311_spill] sm:$0xff] }
 0x577   : > { %v3061_v60 = vsel %vm14314_vm4, %v3011_v26, %v16013_v41  ;;  %v3064_v18 = vsel %vm14314_vm4, %v3014_v44, %v16014_v39  ;;  %v3099_v31 = vsel %vm14316_vm10, %v3049_v29, %v16015_v22  ;;  %v16016_v48 = vld [vmem:[#allocation448_spill] sm:$0xff]  ;;  %v16018_v34 = vld [vmem:[#allocation325_spill] sm:$0xff]  ;;  %v16019_v7 = vld [vmem:[#allocation310_spill] sm:$0xff]  ;;  %v10623_v44 = vpop.permute.xlu1 %3862 }
 0x578   : > { %v3705_v59 = vsel %vm2164_vm6, %v16016_v48, %v3704_v45  ;;  %v16017_v11 = vld [vmem:[#allocation300_spill] sm:$0xff]  ;;  %v10616_v4 = vsel %vm1774_vm9, %v3096_v56, %v16018_v34  ;;  %v3102_v23 = vsel %vm14316_vm10, %v3052_v37, %v16019_v7  ;;  %v16020_v26 = vld [vmem:[#allocation313_spill] sm:$0xff]  ;;  %16021 = vst [vmem:[#allocation55_spill] sm:$0xff] %v10623_v44  ;;  %v16022_v29 = vld [vmem:[#allocation102_spill] sm:$0xff]  ;;  %v3728_v34 = vor.u32 %v3727_v14, %v15931_v19 }
 0x579   : > { %v3067_v5 = vsel %vm14314_vm4, %v3017_v62, %v16017_v11  ;;  %v3105_v41 = vsel %vm14316_vm10, %v3055_v3, %v16020_v26  ;;  %v2898_v48 = vsel %vm1609_vm14, %v10308_v42, %v16022_v29  ;;  %v16023_v45 = vld [vmem:[#allocation299_spill] sm:$0xff]  ;;  %v16024_v22 = vld [vmem:[#allocation312_spill] sm:$0xff]  ;;  %v16025_v37 = vld [vmem:[#allocation106_spill] sm:$0xff]  ;;  %3973 = vrot.lane.b32.xlu1 %v3705_v59, %s5603_s30  ;;  %3679 = vrot.lane.b32.xlu0 %v10525_v52, %s5595_s22 }
 0x57a   : > { %v3070_v62 = vsel %vm14314_vm4, %v3020_v30, %v16023_v45  ;;  %v3108_v56 = vsel %vm14316_vm10, %v3058_v13, %v16024_v22  ;;  %v2902_v3 = vsel %vm1609_vm14, %v10342_v58, %v16025_v37  ;;  %v16026_v26 = vld [vmem:[#allocation327_spill] sm:$0xff]  ;;  %v16028_v42 = vld [vmem:[#allocation314_spill] sm:$0xff]  ;;  %v10644_v30 = vpop.permute.xlu0 %3860  ;;  %v16060_v45 = vld [vmem:[#allocation161_spill] sm:$0xff] }
 0x57b   : > { %v10638_v36 = vsel %vm1774_vm9, %v3099_v31, %v16026_v26  ;;  %v16027_v7 = vld [vmem:[#allocation315_spill] sm:$0xff]  ;;  %v3114_v29 = vsel %vm14316_vm10, %v3064_v18, %v16028_v42  ;;  %16029 = vst [vmem:[#allocation399_spill] sm:$0xff] %v10644_v30  ;;  %v16030_v13 = vld [vmem:[#allocation110_spill] sm:$0xff]  ;;  %v16032_v31 = vld [vmem:[#allocation45_spill] sm:$0xff] }
 0x57c   : > { %v3111_v44 = vsel %vm14316_vm10, %v3061_v60, %v16027_v7  ;;  %v2906_v19 = vsel %vm1609_vm14, %v10333_v9, %v16030_v13  ;;  %v16031_v14 = vld [vmem:[#allocation19_spill] sm:$0xff]  ;;  %v10656_v37 = vsel %vm1774_vm9, %v3105_v41, %v16032_v31  ;;  %v16033_v60 = vld [vmem:[#allocation317_spill] sm:$0xff]  ;;  %v16034_v18 = vld [vmem:[#allocation114_spill] sm:$0xff]  ;;  %v10674_v41 = vpop.permute.xlu1 %3894 }
 0x57d   : > { %v10652_v58 = vsel %vm1774_vm9, %v3102_v23, %v16031_v14  ;;  %v3117_v7 = vsel %vm14316_vm10, %v3067_v5, %v16033_v60  ;;  %v2910_v42 = vsel %vm1609_vm14, %v10368_v0, %v16034_v18  ;;  %v16035_v22 = vld [vmem:[#allocation118_spill] sm:$0xff]  ;;  %v16036_v9 = vld [vmem:[#allocation37_spill] sm:$0xff]  ;;  %v16037_v23 = vld [vmem:[#allocation316_spill] sm:$0xff]  ;;  %16038 = vst [vmem:[#allocation62_spill] sm:$0xff] %v10674_v41  ;;  %3749 = vrot.lane.b32.xlu1 %v3705_v59, %s5596_s23 }
 0x57e   : > { %v2914_v26 = vsel %vm1609_vm14, %v10349_v10, %v16035_v22  ;;  %v10668_v13 = vsel %vm1774_vm9, %v3108_v56, %v16036_v9  ;;  %v3120_v14 = vsel %vm14316_vm10, %v3070_v62, %v16037_v23  ;;  %v16039_v5 = vld [vmem:[#allocation119_spill] sm:$0xff]  ;;  %v16040_v18 = vld [vmem:[#allocation57_spill] sm:$0xff]  ;;  %v16041_v10 = vld [vmem:[#allocation50_spill] sm:$0xff] }
 0x57f   : > { %v2918_v0 = vsel %vm1609_vm14, %v10383_v6, %v16039_v5  ;;  %v10681_v60 = vsel %vm1774_vm9, %v3111_v44, %v16040_v18  ;;  %v10685_v22 = vsel %vm1774_vm9, %v3114_v29, %v16041_v10  ;;  %v16042_v56 = vld [vmem:[#allocation475_spill] sm:$0xff]  ;;  %v16043_v23 = vld [vmem:[#allocation368_spill] sm:$0xff]  ;;  %v16045_v6 = vld [vmem:[#allocation525_spill] sm:$0xff]  ;;  %v10702_v29 = vpop.permute.xlu0 %3892 }
 0x580   : > { %v3729_v62 = vsel %vm2164_vm6, %v16042_v56, %v3728_v34  ;;  %v2922_v52 = vsel %vm1609_vm14, %v10391_v28, %v16043_v23  ;;  %v16044_v9 = vld [vmem:[#allocation524_spill] sm:$0xff]  ;;  %v2924_v44 = vsel %vm1609_vm14, %v10432_v25, %v16045_v6  ;;  %v16046_v5 = vld [vmem:[#allocation329_spill] sm:$0xff]  ;;  %16047 = vst [vmem:[#allocation190_spill] sm:$0xff] %v10702_v29  ;;  %v16049_v23 = vld [vmem:[#allocation126_spill] sm:$0xff] }
 0x581   : > { %v2926_v31 = vsel %vm1609_vm14, %v10427_v35, %v16044_v9  ;;  %v10700_v18 = vsel %vm1774_vm9, %v3117_v7, %v16046_v5  ;;  %v16048_v34 = vld [vmem:[#allocation133_spill] sm:$0xff]  ;;  %v2928_v35 = vsel %vm1609_vm14, %v10437_v24, %v16049_v23  ;;  %v16051_v56 = vld [vmem:[#allocation66_spill] sm:$0xff]  ;;  %v16055_v23 = vld [vmem:[#allocation151_spill] sm:$0xff]  ;;  %3989 = vrot.lane.b32.xlu0 %v3729_v62, %s5603_s30  ;;  %3767 = vrot.lane.b32.xlu1 %v3729_v62, %s5596_s23 }
 0x582   : > { %v2930_v28 = vsel %vm1609_vm14, %v10403_v16, %v16048_v34  ;;  %v16050_v9 = vld [vmem:[#allocation141_spill] sm:$0xff]  ;;  %v10716_v7 = vsel %vm1774_vm9, %v3120_v14, %v16051_v56  ;;  %v16052_v5 = vld [vmem:[#allocation130_spill] sm:$0xff]  ;;  %v10731_v14 = vpop.permute.xlu1 %3596  ;;  %v16061_v41 = vld [vmem:[#allocation155_spill] sm:$0xff] }
 0x583   : > { %v2936_v25 = vsel %vm14349_vm15, %v10446_v50, %v16050_v9  ;;  %v2933_v59 = vsel %vm14349_vm15, %v10422_v47, %v16052_v5  ;;  %v16053_v10 = vld [vmem:[#allocation146_spill] sm:$0xff]  ;;  %v2948_v50 = vsel %vm14349_vm15, %v10551_v27, %v16055_v23  ;;  %16056 = vst [vmem:[#allocation400_spill] sm:$0xff] %v10731_v14  ;;  %v16057_v9 = vld [vmem:[#allocation143_spill] sm:$0xff]  ;;  %v16058_v5 = vld [vmem:[#allocation157_spill] sm:$0xff]  ;;  %v2957_v27 = vsel %vm14349_vm15, %v2902_v3, %v16061_v41 }
 0x584   : > { %v2942_v16 = vsel %vm14349_vm15, %v10475_v46, %v16053_v10  ;;  %v16054_v34 = vld [vmem:[#allocation138_spill] sm:$0xff]  ;;  %v2945_v47 = vsel %vm14349_vm15, %v10485_v53, %v16057_v9  ;;  %v2954_v56 = vsel %vm14349_vm15, %v2898_v48, %v16058_v5  ;;  %v16059_v46 = vld [vmem:[#allocation148_spill] sm:$0xff]  ;;  %v16062_v23 = vld [vmem:[#allocation159_spill] sm:$0xff]  ;;  %v10750_v9 = vpop.permute.xlu0 %3594 }
 0x585   : > { %v2939_v24 = vsel %vm14349_vm15, %v10459_v17, %v16054_v34  ;;  %v2951_v6 = vsel %vm14349_vm15, %v2894_v63, %v16059_v46  ;;  %v2960_v17 = vsel %vm14349_vm15, %v2906_v19, %v16060_v45  ;;  %v2966_v29 = vsel %vm14349_vm15, %v2914_v26, %v16062_v23  ;;  %v16063_v14 = vld [vmem:[#allocation526_spill] sm:$0xff]  ;;  %v16064_v11 = vld [vmem:[#allocation527_spill] sm:$0xff]  ;;  %16065 = vst [vmem:[#allocation73_spill] sm:$0xff] %v10750_v9  ;;  %v16066_v63 = vld [vmem:[#allocation528_spill] sm:$0xff] }
 0x586   : > { %v2963_v30 = vsel %vm14349_vm15, %v2910_v42, %v16063_v14  ;;  %v2972_v53 = vsel %vm14349_vm15, %v2922_v52, %v16064_v11  ;;  %v2969_v48 = vsel %vm14349_vm15, %v2918_v0, %v16066_v63  ;;  %v16067_v19 = vld [vmem:[#allocation529_spill] sm:$0xff]  ;;  %v16068_v3 = vld [vmem:[#allocation530_spill] sm:$0xff]  ;;  %v16069_v26 = vld [vmem:[#allocation531_spill] sm:$0xff]  ;;  %3775 = vrot.lane.b32.xlu1 %v15963_v61, %s5597_s24 }
 0x587   : > { %v2976_v45 = vsel %vm14349_vm15, %v2926_v31, %v16067_v19  ;;  %v2974_v41 = vsel %vm14349_vm15, %v2924_v44, %v16068_v3  ;;  %v2980_v5 = vsel %vm14349_vm15, %v2930_v28, %v16069_v26  ;;  %v16070_v42 = vld [vmem:[#allocation532_spill] sm:$0xff]  ;;  %v16071_v52 = vld [vmem:[#allocation173_spill] sm:$0xff]  ;;  %v16072_v9 = vld [vmem:[#allocation167_spill] sm:$0xff]  ;;  %v10771_v19 = vpop.permute.xlu1 %3940 }
 0x588   : > { %v2978_v46 = vsel %vm14349_vm15, %v2928_v35, %v16070_v42  ;;  %v2986_v11 = vsel %vm1675_vm2, %v2936_v25, %v16071_v52  ;;  %v2983_v62 = vsel %vm1675_vm2, %v2933_v59, %v16072_v9  ;;  %v16073_v39 = vld [vmem:[#allocation177_spill] sm:$0xff]  ;;  %v16074_v31 = vld [vmem:[#allocation484_spill] sm:$0xff]  ;;  %16075 = vst [vmem:[#allocation401_spill] sm:$0xff] %v10771_v19  ;;  %v16076_v44 = vld [vmem:[#allocation171_spill] sm:$0xff] }
 0x589   : > { %v2992_v0 = vsel %vm1675_vm2, %v2942_v16, %v16073_v39  ;;  %3765 = vrot.lane.b32.xlu0 %v16074_v31, %s5596_s23  ;;  %v2989_v28 = vsel %vm1675_vm2, %v2939_v24, %v16076_v44  ;;  %v16077_v26 = vld [vmem:[#allocation180_spill] sm:$0xff]  ;;  %v16078_v42 = vld [vmem:[#allocation175_spill] sm:$0xff]  ;;  %v16080_v9 = vld [vmem:[#allocation533_spill] sm:$0xff] }
 0x58a   : > { %v2998_v35 = vsel %vm1675_vm2, %v2948_v50, %v16077_v26  ;;  %v2995_v25 = vsel %vm1675_vm2, %v2945_v47, %v16078_v42  ;;  %v16079_v52 = vld [vmem:[#allocation179_spill] sm:$0xff]  ;;  %v3001_v16 = vsel %vm1675_vm2, %v2951_v6, %v16080_v9  ;;  %v16081_v3 = vld [vmem:[#allocation182_spill] sm:$0xff]  ;;  %v10789_v50 = vpop.permute.xlu0 %3924  ;;  %v16085_v47 = vld [vmem:[#allocation189_spill] sm:$0xff] }
 0x58b   : > { %v3004_v59 = vsel %vm1675_vm2, %v2954_v56, %v16079_v52  ;;  %v3010_v31 = vsel %vm1675_vm2, %v2960_v17, %v16081_v3  ;;  %v16082_v19 = vld [vmem:[#allocation534_spill] sm:$0xff]  ;;  %16084 = vst [vmem:[#allocation403_spill] sm:$0xff] %v10789_v50  ;;  %v3013_v56 = vsel %vm1675_vm2, %v2963_v30, %v16085_v47  ;;  %v16087_v9 = vld [vmem:[#allocation535_spill] sm:$0xff]  ;;  %v16088_v3 = vld [vmem:[#allocation536_spill] sm:$0xff] }
 0x58c   : > { %v3007_v63 = vsel %vm1675_vm2, %v2957_v27, %v16082_v19  ;;  %v16083_v24 = vld [vmem:[#allocation18_spill] sm:$0xff]  ;;  %v3019_v17 = vsel %vm1675_vm2, %v2969_v48, %v16087_v9  ;;  %v3026_v27 = vsel %vm1675_vm2, %v2976_v45, %v16088_v3  ;;  %v16089_v19 = vld [vmem:[#allocation537_spill] sm:$0xff]  ;;  %v16091_v42 = vld [vmem:[#allocation539_spill] sm:$0xff] }
 0x58d   : > { %v3016_v39 = vsel %vm1675_vm2, %v2966_v29, %v16083_v24  ;;  %v16086_v52 = vld [vmem:[#allocation402_spill] sm:$0xff]  ;;  %v3024_v29 = vsel %vm1675_vm2, %v2974_v41, %v16089_v19  ;;  %v3028_v61 = vsel %vm1675_vm2, %v2978_v46, %v16091_v42  ;;  %v16092_v24 = vld [vmem:[#allocation540_spill] sm:$0xff]  ;;  %3773 = vrot.lane.b32.xlu0 %v15927_v57, %s5597_s24  ;;  %v16096_v19 = vld [vmem:[#allocation543_spill] sm:$0xff] }
 0x58e   : > { %v3022_v6 = vsel %vm1675_vm2, %v2972_v53, %v16086_v52  ;;  %v16090_v26 = vld [vmem:[#allocation538_spill] sm:$0xff]  ;;  %v3036_v30 = vsel %vm14314_vm4, %v2986_v11, %v16092_v24  ;;  %v10811_v53 = vpop.permute.xlu1 %3671  ;;  %v234_v48 = vld [vmem:[%s5646_s17 + $0x1f0] sm:$0x3f]  ;;  %v16094_v52 = vld [vmem:[#allocation541_spill] sm:$0xff] }
 0x58f   : > { %v3030_v50 = vsel %vm1675_vm2, %v2980_v5, %v16090_v26  ;;  %16093 = vst [vmem:[#allocation404_spill] sm:$0xff] %v10811_v53  ;;  %v3033_v45 = vsel %vm14314_vm4, %v2983_v62, %v16094_v52  ;;  %v16095_v3 = vld [vmem:[#allocation542_spill] sm:$0xff]  ;;  %v3039_v5 = vsel %vm14314_vm4, %v2989_v28, %v16096_v19  ;;  %v16097_v26 = vld [vmem:[#allocation544_spill] sm:$0xff]  ;;  %v16098_v42 = vld [vmem:[#allocation545_spill] sm:$0xff]  ;;  %v10830_v52 = vpop.permute.xlu0 %3655 }
 0x590   : > { %v3042_v41 = vsel %vm14314_vm4, %v2992_v0, %v16095_v3  ;;  %v3048_v46 = vsel %vm14314_vm4, %v2998_v35, %v16097_v26  ;;  %v3045_v11 = vsel %vm14314_vm4, %v2995_v25, %v16098_v42  ;;  %v16099_v24 = vld [vmem:[#allocation546_spill] sm:$0xff]  ;;  %v16100_v53 = vld [vmem:[#allocation547_spill] sm:$0xff]  ;;  %v16101_v10 = vld [vmem:[#allocation417_spill] sm:$0xff]  ;;  %16102 = vst [vmem:[#allocation405_spill] sm:$0xff] %v10830_v52  ;;  %v10836_v26 = vpack.c.bf16 %v234_v48, %v234_v48 }
 0x591   : > { %v3054_v57 = vsel %vm14314_vm4, %v3004_v59, %v16099_v24  ;;  %v3051_v9 = vsel %vm14314_vm4, %v3001_v16, %v16100_v53  ;;  %v3060_v62 = vsel %vm14314_vm4, %v3010_v31, %v16101_v10  ;;  %v16103_v0 = vld [vmem:[#allocation350_spill] sm:$0xff]  ;;  %v16104_v28 = vld [vmem:[#allocation548_spill] sm:$0xff]  ;;  %v16106_v25 = vld [vmem:[#allocation609_spill] sm:$0xff] }
 0x592   : > { %3788 = vrot.lane.b32.xlu1 %v16103_v0, %s5598_s25  ;;  %v3057_v35 = vsel %vm14314_vm4, %v3007_v63, %v16104_v28  ;;  %16105 = vst [vmem:[#allocation406_spill] sm:$0xff] %v10836_v26  ;;  %v10839_v42 = vshrl.u32 %v16106_v25, 16  ;;  %v10842_v59 = vshll.u32 %v16106_v25, 16  ;;  %v16107_v16 = vld [vmem:[#allocation420_spill] sm:$0xff]  ;;  %v16108_v31 = vld [vmem:[#allocation549_spill] sm:$0xff]  ;;  %v16109_v53 = vld [vmem:[#allocation550_spill] sm:$0xff]  ;;  %v10854_v28 = vpop.permute.xlu1 %3983 }
 0x593   : > { %v3066_v24 = vsel %vm14314_vm4, %v3016_v39, %v16107_v16  ;;  %v3063_v10 = vsel %vm14314_vm4, %v3013_v56, %v16108_v31  ;;  %v3072_v0 = vsel %vm14314_vm4, %v3022_v6, %v16109_v53  ;;  %v16110_v52 = vld [vmem:[#allocation551_spill] sm:$0xff]  ;;  %v16111_v48 = vld [vmem:[#allocation598_spill] sm:$0xff]  ;;  %16112 = vst [vmem:[#allocation407_spill] sm:$0xff] %v10854_v28  ;;  %v16113_v3 = vld [vmem:[#allocation552_spill] sm:$0xff] }
 0x594   : > { %v3069_v63 = vsel %vm14314_vm4, %v3019_v17, %v16110_v52  ;;  %3786 = vrot.lane.b32.xlu0 %v16111_v48, %s5598_s25  ;;  %v3076_v23 = vsel %vm14314_vm4, %v3026_v27, %v16113_v3  ;;  %v16114_v19 = vld [vmem:[#allocation553_spill] sm:$0xff]  ;;  %v16115_v16 = vld [vmem:[#allocation554_spill] sm:$0xff]  ;;  %v16116_v31 = vld [vmem:[#allocation555_spill] sm:$0xff]  ;;  %v10872_v3 = vpop.permute.xlu0 %3967 }
 0x595   : > { %v3074_v39 = vsel %vm14314_vm4, %v3024_v29, %v16114_v19  ;;  %v3080_v56 = vsel %vm14314_vm4, %v3030_v50, %v16115_v16  ;;  %v3078_v6 = vsel %vm14314_vm4, %v3028_v61, %v16116_v31  ;;  %v16117_v53 = vld [vmem:[#allocation556_spill] sm:$0xff]  ;;  %v16118_v52 = vld [vmem:[#allocation557_spill] sm:$0xff]  ;;  %v16119_v44 = vld [vmem:[#allocation558_spill] sm:$0xff]  ;;  %16121 = vst [vmem:[#allocation408_spill] sm:$0xff] %v10872_v3  ;;  %vm1873_vm4 = vcmask 343040  }
 0x596   : > { %v3086_v17 = vsel %vm14316_vm10, %v3036_v30, %v16117_v53  ;;  %v3083_v48 = vsel %vm14316_vm10, %v3033_v45, %v16118_v52  ;;  %v3092_v28 = vsel %vm14316_vm10, %v3042_v41, %v16119_v44  ;;  %v16120_v47 = vld [vmem:[#allocation559_spill] sm:$0xff]  ;;  %v16122_v29 = vld [vmem:[#allocation605_spill] sm:$0xff]  ;;  %v3540_v30 = vrot.slane %v10839_v42, 6  ;;  %v16124_v44 = vld [vmem:[#allocation560_spill] sm:$0xff] }
 0x597   : > { %v3089_v27 = vsel %vm14316_vm10, %v3039_v5, %v16120_v47  ;;  %3799 = vrot.lane.b32.xlu1 %v16122_v29, %s5599_s26  ;;  %v16123_v50 = vld [vmem:[#allocation439_spill] sm:$0xff]  ;;  %v3543_v53 = vrot.slane %v10842_v59, 7  ;;  %v10881_v45 = vshll.u32 %v10836_v26, 16  ;;  %v3095_v41 = vsel %vm14316_vm10, %v3045_v11, %v16124_v44  ;;  %v16126_v52 = vld [vmem:[#allocation561_spill] sm:$0xff]  ;;  %v16130_v19 = vld [vmem:[#allocation562_spill] sm:$0xff] }
 0x598   : > { %v3098_v61 = vsel %vm14316_vm10, %v3048_v46, %v16123_v50  ;;  %v16125_v47 = vld [vmem:[#allocation443_spill] sm:$0xff]  ;;  %v3101_v29 = vsel %vm14316_vm10, %v3051_v9, %v16126_v52  ;;  %v16128_v46 = vld [vmem:[#allocation370_spill] sm:$0xff]  ;;  %v10893_v50 = vpop.permute.xlu1 %3759  ;;  %v3107_v3 = vsel %vm14316_vm10, %v3057_v35, %v16130_v19  ;;  %v16134_v52 = vld [vmem:[#allocation564_spill] sm:$0xff]  ;;  %v10911_v35 = vpop.permute.xlu0 %3743 }
 0x599   : > { %v3104_v5 = vsel %vm14316_vm10, %v3054_v57, %v16125_v47  ;;  %v16127_v31 = vld [vmem:[#allocation447_spill] sm:$0xff]  ;;  %3797 = vrot.lane.b32.xlu0 %v16128_v46, %s5599_s26  ;;  %16129 = vst [vmem:[#allocation409_spill] sm:$0xff] %v10893_v50  ;;  %v16136_v50 = vld [vmem:[#allocation565_spill] sm:$0xff]  ;;  %16138 = vst [vmem:[#allocation411_spill] sm:$0xff] %v10911_v35 }
 0x59a   : > { %v3110_v16 = vsel %vm14316_vm10, %v3060_v62, %v16127_v31  ;;  %v16131_v34 = vld [vmem:[#allocation451_spill] sm:$0xff]  ;;  %v3119_v62 = vsel %vm14316_vm10, %v3069_v63, %v16134_v52  ;;  %v16135_v31 = vld [vmem:[#allocation461_spill] sm:$0xff]  ;;  %v3124_v14 = vsel %vm14316_vm10, %v3074_v39, %v16136_v50  ;;  %v16142_v39 = vld [vmem:[#allocation568_spill] sm:$0xff] }
 0x59b   : > { %v3116_v11 = vsel %vm14316_vm10, %v3066_v24, %v16131_v34  ;;  %v16132_v44 = vld [vmem:[#allocation563_spill] sm:$0xff]  ;;  %v3126_v46 = vsel %vm14316_vm10, %v3076_v23, %v16135_v31  ;;  %v16137_v55 = vld [vmem:[#allocation465_spill] sm:$0xff]  ;;  %v16140_v34 = vld [vmem:[#allocation566_spill] sm:$0xff]  ;;  %v3548_v23 = vrot.slane %v10881_v45, 7 }
 0x59c   : > { %v3113_v57 = vsel %vm14316_vm10, %v3063_v10, %v16132_v44  ;;  %v16133_v47 = vld [vmem:[#allocation455_spill] sm:$0xff]  ;;  %v3130_v19 = vsel %vm14316_vm10, %v3080_v56, %v16137_v55  ;;  %v16139_v10 = vrot.slane %v16106_v25, 6  ;;  %v3128_v24 = vsel %vm14316_vm10, %v3078_v6, %v16140_v34  ;;  %v16143_v56 = vld [vmem:[#allocation473_spill] sm:$0xff]  ;;  %v16149_v34 = vld [vmem:[#allocation482_spill] sm:$0xff] }
 0x59d   : > { %v3122_v9 = vsel %vm14316_vm10, %v3072_v0, %v16133_v47  ;;  %v16141_v0 = vld [vmem:[#allocation567_spill] sm:$0xff]  ;;  %v10920_v44 = vor.u32 %v3543_v53, %v3540_v30  ;;  %v3133_v55 = vsel %vm1774_vm9, %v3083_v48, %v16142_v39  ;;  %v3142_v50 = vsel %vm1774_vm9, %v3092_v28, %v16143_v56  ;;  %v10934_v30 = vpop.permute.xlu1 %3829  ;;  %v16148_v53 = vld [vmem:[#allocation574_spill] sm:$0xff]  ;;  %v16151_v39 = vld [vmem:[#allocation576_spill] sm:$0xff] }
 0x59e   : > { %3835 = vrot.lane.b32.xlu1 %v16139_v10, %s5600_s27  ;;  %v3136_v63 = vsel %vm1774_vm9, %v3086_v17, %v16141_v0  ;;  %v16144_v47 = vld [vmem:[#allocation571_spill] sm:$0xff]  ;;  %v16146_v17 = vrot.slane %v15519_v33, 6  ;;  %16147 = vst [vmem:[#allocation412_spill] sm:$0xff] %v10934_v30  ;;  %v3145_v10 = vsel %vm1774_vm9, %v3095_v41, %v16148_v53  ;;  %v3154_v48 = vsel %vm1774_vm9, %v3104_v5, %v16149_v34  ;;  %v16152_v56 = vld [vmem:[#allocation577_spill] sm:$0xff]  ;;  %v16155_v30 = vld [vmem:[#allocation30_spill] sm:$0xff]  ;;  %v10952_v53 = vpop.permute.xlu0 %3813 }
 0x59f   : > { %v3139_v52 = vsel %vm1774_vm9, %v3089_v27, %v16144_v47  ;;  %v16145_v31 = vld [vmem:[#allocation479_spill] sm:$0xff]  ;;  %v3160_v27 = vsel %vm1774_vm9, %v3110_v16, %v16151_v39  ;;  %v16153_v47 = vld [vmem:[#allocation21_spill] sm:$0xff]  ;;  %v3172_v41 = vsel %vm1774_vm9, %v3122_v9, %v16155_v30  ;;  %16156 = vst [vmem:[#allocation414_spill] sm:$0xff] %v10952_v53  ;;  %vm1906_vm10 = vcmask 367616   ;;  %v16157_v5 = vld [vmem:[#allocation38_spill] sm:$0xff] }
 0x5a0   : > { %v3148_v6 = vsel %vm1774_vm9, %v3098_v61, %v16145_v31  ;;  %3819 = vrot.lane.b32.xlu0 %v16146_v17, %s5600_s27  ;;  %v16150_v0 = vld [vmem:[#allocation575_spill] sm:$0xff]  ;;  %v3157_v61 = vsel %vm1774_vm9, %v3107_v3, %v16152_v56  ;;  %v3166_v33 = vsel %vm1774_vm9, %v3116_v11, %v16153_v47  ;;  %v16154_v31 = vld [vmem:[#allocation578_spill] sm:$0xff]  ;;  %v3169_v16 = vsel %vm1774_vm9, %v3119_v62, %v16157_v5  ;;  %v16159_v34 = vld [vmem:[#allocation49_spill] sm:$0xff] }
 0x5a1   : > { %v3151_v28 = vsel %vm1774_vm9, %v3101_v29, %v16150_v0  ;;  %v3163_v17 = vsel %vm1774_vm9, %v3113_v57, %v16154_v31  ;;  %v16158_v29 = vld [vmem:[#allocation43_spill] sm:$0xff]  ;;  %v3174_v11 = vsel %vm1774_vm9, %v3124_v14, %v16159_v34  ;;  %v3549_v57 = vsel %vm3461_vm7, %v10920_v44, %v3548_v23  ;;  %v16162_v30 = vld [vmem:[#allocation580_spill] sm:$0xff]  ;;  %v16164_v39 = vld [vmem:[#allocation581_spill] sm:$0xff]  ;;  %v10979_v56 = vpop.permute.xlu1 %3866 }
 0x5a2   : > { %3878 = vrot.lane.b32.xlu1 %v9415_v43, %s5601_s28  ;;  %v3176_v3 = vsel %vm1774_vm9, %v3126_v46, %v16158_v29  ;;  %v16160_v0 = vld [vmem:[#allocation579_spill] sm:$0xff]  ;;  %v10970_v43 = vsel %vm1774_vm9, %v3128_v24, %v16162_v30  ;;  %v3185_v62 = vsel %vm14348_vm5, %v10467_v12, %v16164_v39  ;;  %v3186_v46 = vsel %vm14348_vm5, %v3136_v63, %v16164_v39  ;;  %v16167_v23 = vld [vmem:[#allocation582_spill] sm:$0xff]  ;;  %v16169_v63 = vld [vmem:[#allocation336_spill] sm:$0xff] }
 0x5a3   : > { %v10966_v9 = vsel %vm1774_vm9, %v3130_v19, %v16160_v0  ;;  %16163 = vst [vmem:[#allocation418_spill] sm:$0xff] %v10970_v43  ;;  %v16165_v14 = vld [vmem:[#allocation59_spill] sm:$0xff]  ;;  %16166 = vst [vmem:[#allocation419_spill] sm:$0xff] %v10979_v56  ;;  %v3182_v19 = vsel %vm14348_vm5, %v10450_v20, %v16167_v23  ;;  %v3183_v24 = vsel %vm14348_vm5, %v3133_v55, %v16167_v23  ;;  %v16170_v29 = vld [vmem:[#allocation584_spill] sm:$0xff] }
 0x5a4   : > { %16161 = vst [vmem:[#allocation416_spill] sm:$0xff] %v10966_v9  ;;  %3876 = vrot.lane.b32.xlu0 %v16165_v14, %s5601_s28  ;;  %v16168_v47 = vld [vmem:[#allocation583_spill] sm:$0xff]  ;;  %v3230_v5 = vsel %vm1840_vm3, %v3182_v19, %v16169_v63  ;;  %v3189_v34 = vsel %vm14348_vm5, %v3139_v52, %v16170_v29  ;;  %v3188_v20 = vsel %vm14348_vm5, %v10491_v54, %v16170_v29  ;;  %v16171_v0 = vld [vmem:[#allocation585_spill] sm:$0xff]  ;;  %v16173_v30 = vld [vmem:[#allocation586_spill] sm:$0xff] }
 0x5a5   : > { %v10988_v31 = vsel %vm14348_vm5, %v3142_v50, %v16168_v47  ;;  %v3191_v12 = vsel %vm14348_vm5, %v10495_v21, %v16168_v47  ;;  %v11002_v55 = vsel %vm14348_vm5, %v3148_v6, %v16171_v0  ;;  %v11004_v50 = vpop.permute.xlu0 %3864  ;;  %v11009_v21 = vsel %vm14348_vm5, %v3145_v10, %v16173_v30  ;;  %v16174_v39 = vld [vmem:[#allocation587_spill] sm:$0xff]  ;;  %v16176_v14 = vld [vmem:[#allocation340_spill] sm:$0xff]  ;;  %v16183_v43 = vld [vmem:[#allocation590_spill] sm:$0xff] }
 0x5a6   : > { %16172 = vst [vmem:[#allocation422_spill] sm:$0xff] %v11004_v50  ;;  %3910 = vrot.lane.b32.xlu1 %v3549_v57, %s5601_s28  ;;  %v3194_v52 = vsel %vm14348_vm5, %v10598_v32, %v16173_v30  ;;  %v3197_v54 = vsel %vm14348_vm5, %v10616_v4, %v16171_v0  ;;  %v11019_v6 = vsel %vm14348_vm5, %v3154_v48, %v16174_v39  ;;  %v16177_v19 = vld [vmem:[#allocation588_spill] sm:$0xff]  ;;  %v11037_v4 = vpop.permute.xlu1 %3898  ;;  %v16194_v0 = vld [vmem:[#allocation379_spill] sm:$0xff]  ;;  %v16201_v53 = vld [vmem:[#allocation342_spill] sm:$0xff] }
 0x5a7   : > { %16175 = vst [vmem:[#allocation424_spill] sm:$0xff] %v11019_v6  ;;  %v3234_v23 = vsel %vm1840_vm3, %v3185_v62, %v16176_v14  ;;  %v11025_v63 = vsel %vm14348_vm5, %v3151_v28, %v16177_v19  ;;  %v3200_v10 = vsel %vm14348_vm5, %v10638_v36, %v16177_v19  ;;  %v11033_v32 = vsel %vm14348_vm5, %v10652_v58, %v16174_v39  ;;  %v16180_v48 = vld [vmem:[#allocation364_spill] sm:$0xff]  ;;  %v16181_v14 = vld [vmem:[#allocation589_spill] sm:$0xff]  ;;  %v16191_v19 = vld [vmem:[#allocation366_spill] sm:$0xff] }
 0x5a8   : > { %16178 = vst [vmem:[#allocation12_spill] sm:$0xff] %v11033_v32  ;;  %3908 = vrot.lane.b32.xlu0 %v10920_v44, %s5601_s28  ;;  %16179 = vst [vmem:[#allocation427_spill] sm:$0xff] %v11037_v4  ;;  %v3293_v62 = vsel %vm1873_vm4, %v3230_v5, %v16180_v48  ;;  %v11043_v28 = vsel %vm14348_vm5, %v3160_v27, %v16181_v14  ;;  %v3209_v36 = vsel %vm14348_vm5, %v10668_v13, %v16181_v14  ;;  %v16182_v58 = vld [vmem:[#allocation344_spill] sm:$0xff]  ;;  %v16185_v13 = vld [vmem:[#allocation363_spill] sm:$0xff] }
 0x5a9   : > { %v3630_v6 = vrot.slane %v15804_v51, 7  ;;  %v3238_v32 = vsel %vm1840_vm3, %v3188_v20, %v16182_v58  ;;  %v11053_v9 = vsel %vm14348_vm5, %v3157_v61, %v16183_v43  ;;  %v3206_v5 = vsel %vm14348_vm5, %v10656_v37, %v16183_v43  ;;  %v11058_v48 = vpop.permute.xlu0 %3896  ;;  %v16186_v14 = vld [vmem:[#allocation592_spill] sm:$0xff]  ;;  %v16187_v61 = vld [vmem:[#allocation591_spill] sm:$0xff]  ;;  %v16202_v35 = vld [vmem:[#allocation382_spill] sm:$0xff] }
 0x5aa   : > { %16184 = vst [vmem:[#allocation28_spill] sm:$0xff] %v11058_v48  ;;  %3612 = vrot.lane.b32.xlu1 %v3549_v57, %s5594_s21  ;;  %v11062_v27 = vrot.slane %v16106_v25, 7  ;;  %v3296_v51 = vsel %vm1873_vm4, %v3234_v23, %v16185_v13  ;;  %v11068_v20 = vsel %vm14348_vm5, %v3163_v17, %v16186_v14  ;;  %v11072_v39 = vsel %vm14348_vm5, %v3166_v33, %v16187_v61  ;;  %v16188_v43 = vld [vmem:[#allocation380_spill] sm:$0xff]  ;;  %v16189_v13 = vld [vmem:[#allocation593_spill] sm:$0xff]  ;;  %v16205_v50 = vld [vmem:[#allocation147_spill] sm:$0xff] }
 0x5ab   : > { %v3215_v37 = vsel %vm14348_vm5, %v10685_v22, %v16187_v61  ;;  %v11079_v57 = vsel %vm1906_vm10, %v3293_v62, %v16188_v43  ;;  %v3212_v23 = vsel %vm14348_vm5, %v10681_v60, %v16186_v14  ;;  %v11086_v17 = vsel %vm14348_vm5, %v3172_v41, %v16189_v13  ;;  %v11093_v22 = vpop.permute.xlu1 %3600  ;;  %v16192_v43 = vld [vmem:[#allocation597_spill] sm:$0xff] }
 0x5ac   : > { %v3221_v33 = vsel %vm14348_vm5, %v10716_v7, %v16189_v13  ;;  %3610 = vrot.lane.b32.xlu0 %v10920_v44, %s5594_s21  ;;  %16190 = vst [vmem:[#allocation13_spill] sm:$0xff] %v11093_v22  ;;  %v3299_v62 = vsel %vm1873_vm4, %v3238_v32, %v16191_v19  ;;  %v3242_v56 = vsel %vm1840_vm3, %v3191_v12, %v16192_v43  ;;  %v16193_v60 = vld [vmem:[#allocation413_spill] sm:$0xff]  ;;  %v3647_v41 = vrot.slane %v10836_v26, 7  ;;  %v16195_v7 = vld [vmem:[#allocation594_spill] sm:$0xff]  ;;  %v16196_v22 = vld [vmem:[#allocation596_spill] sm:$0xff] }
 0x5ad   : > { %v3631_v4 = vsel %vm3615_vm8, %v16193_v60, %v3630_v6  ;;  %v11104_v48 = vsel %vm1906_vm10, %v3296_v51, %v16194_v0  ;;  %v11108_v44 = vsel %vm14348_vm5, %v3169_v16, %v16195_v7  ;;  %v3218_v32 = vsel %vm14348_vm5, %v10700_v18, %v16195_v7  ;;  %v11117_v13 = vpop.permute.xlu0 %3598  ;;  %v16198_v6 = vld [vmem:[#allocation334_spill] sm:$0xff]  ;;  %v16200_v0 = vld [vmem:[#allocation599_spill] sm:$0xff]  ;;  %v16208_v7 = vld [vmem:[#allocation601_spill] sm:$0xff] }
 0x5ae   : > { %v11115_v12 = vsel %vm14348_vm5, %v3176_v3, %v16196_v22  ;;  %16197 = vst [vmem:[#allocation429_spill] sm:$0xff] %v11117_v13  ;;  %3948 = vrot.lane.b32.xlu1 %v11062_v27, %s5602_s29  ;;  %v11123_v51 = vsel %vm1840_vm3, %v3183_v24, %v16198_v6  ;;  %v16199_v60 = vld [vmem:[#allocation338_spill] sm:$0xff]  ;;  %v3246_v18 = vsel %vm1840_vm3, %v3194_v52, %v16200_v0  ;;  %v16203_v6 = vld [vmem:[#allocation365_spill] sm:$0xff] }
 0x5af   : > { %v11127_v16 = vsel %vm1840_vm3, %v3186_v46, %v16199_v60  ;;  %v11133_v3 = vsel %vm14348_vm5, %v3174_v11, %v16196_v22  ;;  %v11138_v13 = vsel %vm1840_vm3, %v3189_v34, %v16201_v53  ;;  %v11142_v24 = vsel %vm1906_vm10, %v3299_v62, %v16202_v35  ;;  %v11147_v52 = vpop.permute.xlu1 %3942  ;;  %v16206_v34 = vld [vmem:[#allocation346_spill] sm:$0xff]  ;;  %v16207_v0 = vld [vmem:[#allocation369_spill] sm:$0xff]  ;;  %v16211_v53 = vld [vmem:[#allocation607_spill] sm:$0xff] }
 0x5b0   : > { %v3302_v46 = vsel %vm1873_vm4, %v3242_v56, %v16203_v6  ;;  %3932 = vrot.lane.b32.xlu0 %v3631_v4, %s5602_s29  ;;  %16204 = vst [vmem:[#allocation29_spill] sm:$0xff] %v11147_v52  ;;  %v3648_v60 = vsel %vm3615_vm8, %v11062_v27, %v3647_v41  ;;  %v3706_v22 = vrot.slane %v16205_v50, 7  ;;  %v11157_v62 = vsel %vm1840_vm3, %v10988_v31, %v16206_v34  ;;  %v16210_v50 = vld [vmem:[#allocation381_spill] sm:$0xff]  ;;  %v16212_v34 = vld [vmem:[#allocation16_spill] sm:$0xff] }
 0x5b1   : > { %v3305_v56 = vsel %vm1873_vm4, %v3246_v18, %v16207_v0  ;;  %v3250_v52 = vsel %vm1840_vm3, %v3197_v54, %v16208_v7  ;;  %v11163_v30 = vpop.permute.xlu0 %3926  ;;  %v3730_v41 = vrot.slane %v10839_v42, 7  ;;  %v11169_v11 = vsel %vm1906_vm10, %v3302_v46, %v16210_v50  ;;  %v16213_v0 = vld [vmem:[#allocation518_spill] sm:$0xff]  ;;  %v16215_v7 = vld [vmem:[#allocation27_spill] sm:$0xff] }
 0x5b2   : > { %16209 = vst [vmem:[#allocation431_spill] sm:$0xff] %v11163_v30  ;;  %3663 = vrot.lane.b32.xlu1 %v3631_v4, %s5595_s22  ;;  %v3262_v31 = vsel %vm1840_vm3, %v3206_v5, %v16211_v53  ;;  %v3266_v6 = vsel %vm1840_vm3, %v3209_v36, %v16212_v34  ;;  %v11179_v54 = vsel %vm1840_vm3, %v11009_v21, %v16213_v0  ;;  %v16214_v4 = vld [vmem:[#allocation603_spill] sm:$0xff]  ;;  %v16218_v36 = vld [vmem:[#allocation384_spill] sm:$0xff]  ;;  %v16220_v21 = vld [vmem:[#allocation78_spill] sm:$0xff] }
 0x5b3   : > { %v3254_v30 = vsel %vm1840_vm3, %v3200_v10, %v16214_v4  ;;  %v3270_v46 = vsel %vm1840_vm3, %v3212_v23, %v16215_v7  ;;  %v16216_v50 = vld [vmem:[#allocation39_spill] sm:$0xff]  ;;  %v11188_v5 = vpop.permute.xlu1 %3673  ;;  %v11192_v18 = vsel %vm1906_vm10, %v3305_v56, %v16218_v36  ;;  %v3707_v53 = vor.u32 %v3706_v22, %v16220_v21  ;;  %v16222_v23 = vld [vmem:[#allocation373_spill] sm:$0xff]  ;;  %v16231_v36 = vld [vmem:[#allocation608_spill] sm:$0xff] }
 0x5b4   : > { %v3274_v61 = vsel %vm1840_vm3, %v3215_v37, %v16216_v50  ;;  %3950 = vrot.lane.b32.xlu0 %v3648_v60, %s5602_s29  ;;  %16217 = vst [vmem:[#allocation432_spill] sm:$0xff] %v11188_v5  ;;  %v16219_v34 = vld [vmem:[#allocation367_spill] sm:$0xff]  ;;  %v16221_v10 = vshrl.u32 %v10836_v26, 16  ;;  %v3317_v43 = vsel %vm1873_vm4, %v3262_v31, %v16222_v23  ;;  %v16223_v37 = vld [vmem:[#allocation372_spill] sm:$0xff]  ;;  %v11207_v56 = vor.u32 %v3730_v41, %v10842_v59  ;;  %v16227_v31 = vld [vmem:[#allocation374_spill] sm:$0xff] }
 0x5b5   : > { %v3308_v0 = vsel %vm1873_vm4, %v3250_v52, %v16219_v34  ;;  %v3320_v50 = vsel %vm1873_vm4, %v3266_v6, %v16223_v37  ;;  %v11203_v47 = vpop.permute.xlu0 %3657  ;;  %v16225_v34 = vld [vmem:[#allocation600_spill] sm:$0xff]  ;;  %v16226_v21 = vld [vmem:[#allocation371_spill] sm:$0xff]  ;;  %v3323_v23 = vsel %vm1873_vm4, %v3270_v46, %v16227_v31  ;;  %v16230_v5 = vld [vmem:[#allocation54_spill] sm:$0xff]  ;;  %v3282_v35 = vsel %vm1840_vm3, %v3221_v33, %v16231_v36 }
 0x5b6   : > { %v3734_v4 = vrot.slane %v16221_v10, 7  ;;  %16224 = vst [vmem:[#allocation425_spill] sm:$0xff] %v11203_v47  ;;  %3683 = vrot.lane.b32.xlu1 %v3648_v60, %s5595_s22  ;;  %v3252_v22 = vsel %vm1840_vm3, %v11002_v55, %v16225_v34  ;;  %v3311_v10 = vsel %vm1873_vm4, %v3254_v30, %v16226_v21  ;;  %v16228_v6 = vld [vmem:[#allocation128_spill] sm:$0xff]  ;;  %v16229_v47 = vld [vmem:[#allocation383_spill] sm:$0xff]  ;;  %v3278_v52 = vsel %vm1840_vm3, %v3218_v32, %v16230_v5  ;;  %v16239_v36 = vld [vmem:[#allocation390_spill] sm:$0xff] }
 0x5b7   : > { %v3326_v37 = vsel %vm1873_vm4, %v3274_v61, %v16228_v6  ;;  %v11221_v60 = vsel %vm1906_vm10, %v3308_v0, %v16229_v47  ;;  %v11229_v55 = vpop.permute.xlu1 %3985  ;;  %v16233_v34 = vld [vmem:[#allocation388_spill] sm:$0xff]  ;;  %v16234_v46 = vld [vmem:[#allocation387_spill] sm:$0xff]  ;;  %v16236_v47 = vld [vmem:[#allocation602_spill] sm:$0xff] }
 0x5b8   : > { %3681 = vrot.lane.b32.xlu0 %v11062_v27, %s5595_s22  ;;  %16232 = vst [vmem:[#allocation515_spill] sm:$0xff] %v11229_v55  ;;  %v11234_v61 = vsel %vm1906_vm10, %v3317_v43, %v16233_v34  ;;  %v11238_v0 = vsel %vm1906_vm10, %v3320_v50, %v16234_v46  ;;  %v16235_v21 = vld [vmem:[#allocation452_spill] sm:$0xff]  ;;  %v3735_v33 = vor.u32 %v3734_v4, %v10881_v45  ;;  %v16237_v55 = vld [vmem:[#allocation386_spill] sm:$0xff]  ;;  %v16240_v34 = vld [vmem:[#allocation389_spill] sm:$0xff] }
 0x5b9   : > { %v3708_v32 = vsel %vm2164_vm6, %v16235_v21, %v3707_v53  ;;  %v3256_v27 = vsel %vm1840_vm3, %v11025_v63, %v16236_v47  ;;  %v11248_v30 = vsel %vm1906_vm10, %v3311_v10, %v16237_v55  ;;  %v11252_v43 = vsel %vm1906_vm10, %v3323_v23, %v16239_v36  ;;  %v11258_v46 = vpop.permute.xlu0 %3969  ;;  %v16242_v53 = vld [vmem:[#allocation115_spill] sm:$0xff]  ;;  %v16243_v63 = vld [vmem:[#allocation36_spill] sm:$0xff] }
 0x5ba   : > { %16238 = vst [vmem:[#allocation434_spill] sm:$0xff] %v11248_v30  ;;  %v11256_v50 = vsel %vm1906_vm10, %v3326_v37, %v16240_v34  ;;  %16241 = vst [vmem:[#allocation435_spill] sm:$0xff] %v11258_v46  ;;  %3991 = vrot.lane.b32.xlu1 %v11207_v56, %s5603_s30  ;;  %v3264_v47 = vsel %vm1840_vm3, %v11053_v9, %v16242_v53  ;;  %v3268_v4 = vsel %vm1840_vm3, %v11043_v28, %v16243_v63  ;;  %v16244_v21 = vld [vmem:[#allocation376_spill] sm:$0xff]  ;;  %v16245_v10 = vld [vmem:[#allocation375_spill] sm:$0xff] }
 0x5bb   : > { %v3329_v23 = vsel %vm1873_vm4, %v3278_v52, %v16244_v21  ;;  %v3332_v37 = vsel %vm1873_vm4, %v3282_v35, %v16245_v10  ;;  %v16246_v30 = vld [vmem:[#allocation47_spill] sm:$0xff]  ;;  %v16247_v46 = vld [vmem:[#allocation56_spill] sm:$0xff]  ;;  %v11279_v9 = vpop.permute.xlu1 %3761  ;;  %v3736_v63 = vsel %vm2164_vm6, %v3730_v41, %v3735_v33 }
 0x5bc   : > { %v3272_v55 = vsel %vm1840_vm3, %v11068_v20, %v16246_v30  ;;  %v3276_v5 = vsel %vm1840_vm3, %v11072_v39, %v16247_v46  ;;  %3975 = vrot.lane.b32.xlu0 %v3708_v32, %s5603_s30  ;;  %16248 = vst [vmem:[#allocation437_spill] sm:$0xff] %v11279_v9  ;;  %v16249_v52 = vld [vmem:[#allocation72_spill] sm:$0xff]  ;;  %v16250_v10 = vld [vmem:[#allocation391_spill] sm:$0xff]  ;;  %v16252_v9 = vld [vmem:[#allocation165_spill] sm:$0xff] }
 0x5bd   : > { %v3280_v35 = vsel %vm1840_vm3, %v11108_v44, %v16249_v52  ;;  %v11291_v39 = vsel %vm1906_vm10, %v3329_v23, %v16250_v10  ;;  %v16251_v46 = vld [vmem:[#allocation83_spill] sm:$0xff]  ;;  %v11298_v53 = vsel %vm1906_vm10, %v3332_v37, %v16252_v9  ;;  %v16253_v21 = vld [vmem:[#allocation248_spill] sm:$0xff]  ;;  %v11303_v41 = vpop.permute.xlu0 %3745  ;;  %v16256_v52 = vld [vmem:[#allocation25_spill] sm:$0xff] }
 0x5be   : > { %v3284_v28 = vsel %vm1840_vm3, %v11086_v17, %v16251_v46  ;;  %v3288_v44 = vsel %vm1840_vm3, %v11115_v12, %v16253_v21  ;;  %16254 = vst [vmem:[#allocation438_spill] sm:$0xff] %v11303_v41  ;;  %3751 = vrot.lane.b32.xlu1 %v3708_v32, %s5596_s23  ;;  %v16255_v33 = vld [vmem:[#allocation75_spill] sm:$0xff]  ;;  %v3298_v17 = vsel %vm1873_vm4, %v11127_v16, %v16256_v52  ;;  %v16257_v46 = vld [vmem:[#allocation40_spill] sm:$0xff]  ;;  %v16258_v20 = vld [vmem:[#allocation41_spill] sm:$0xff] }
 0x5bf   : > { %v3286_v23 = vsel %vm1840_vm3, %v11133_v3, %v16255_v33  ;;  %v3295_v37 = vsel %vm1873_vm4, %v11123_v51, %v16257_v46  ;;  %v3304_v12 = vsel %vm1873_vm4, %v11157_v62, %v16258_v20  ;;  %v16259_v21 = vld [vmem:[#allocation42_spill] sm:$0xff]  ;;  %v16260_v30 = vld [vmem:[#allocation33_spill] sm:$0xff]  ;;  %v16262_v16 = vld [vmem:[#allocation35_spill] sm:$0xff]  ;;  %v11329_v51 = vpop.permute.xlu1 %3831 }
 0x5c0   : > { %v3301_v32 = vsel %vm1873_vm4, %v11138_v13, %v16259_v21  ;;  %v3310_v9 = vsel %vm1873_vm4, %v3252_v22, %v16260_v30  ;;  %v16261_v3 = vld [vmem:[#allocation34_spill] sm:$0xff]  ;;  %v3322_v52 = vsel %vm1873_vm4, %v3268_v4, %v16262_v16  ;;  %3993 = vrot.lane.b32.xlu0 %v3736_v63, %s5603_s30  ;;  %16263 = vst [vmem:[#allocation441_spill] sm:$0xff] %v11329_v51  ;;  %v16264_v46 = vld [vmem:[#allocation53_spill] sm:$0xff]  ;;  %v16265_v41 = vld [vmem:[#allocation144_spill] sm:$0xff] }
 0x5c1   : > { %v3307_v33 = vsel %vm1873_vm4, %v11179_v54, %v16261_v3  ;;  %v3319_v62 = vsel %vm1873_vm4, %v3264_v47, %v16264_v46  ;;  %v3348_v13 = vsel %vm1906_vm10, %v3298_v17, %v16265_v41  ;;  %v16266_v10 = vld [vmem:[#allocation122_spill] sm:$0xff]  ;;  %v3354_v30 = vsel %vm1906_vm10, %v3304_v12, %v9451_v38  ;;  %v16267_v54 = vld [vmem:[#allocation44_spill] sm:$0xff]  ;;  %v11347_v46 = vpop.permute.xlu0 %3815 }
 0x5c2   : > { %v3345_v22 = vsel %vm1906_vm10, %v3295_v37, %v16266_v10  ;;  %v3328_v3 = vsel %vm1873_vm4, %v3276_v5, %v16267_v54  ;;  %v3351_v4 = vsel %vm1906_vm10, %v3301_v32, %v9456_v2  ;;  %v3357_v16 = vsel %vm1906_vm10, %v3307_v33, %v9469_v8  ;;  %16268 = vst [vmem:[#allocation442_spill] sm:$0xff] %v11347_v46  ;;  %v16269_v10 = vld [vmem:[#allocation52_spill] sm:$0xff]  ;;  %v16271_v17 = vld [vmem:[#allocation46_spill] sm:$0xff]  ;;  %v16273_v32 = vld [vmem:[#allocation615_spill] sm:$0xff] }
 0x5c3   : > { %v3372_v47 = vsel %vm1906_vm10, %v3322_v52, %v9487_v49  ;;  %3771 = vrot.lane.b32.xlu1 %v3736_v63, %s5596_s23  ;;  %v11352_v41 = vsel %vm1873_vm4, %v3256_v27, %v16269_v10  ;;  %v3325_v5 = vsel %vm1873_vm4, %v3272_v55, %v16271_v17  ;;  %v16272_v37 = vld [vmem:[#allocation614_spill] sm:$0xff]  ;;  %v3378_v33 = vsel %vm1906_vm10, %v3328_v3, %v16273_v32  ;;  %v16274_v49 = vld [vmem:[#allocation616_spill] sm:$0xff]  ;;  %v11364_v27 = vpop.permute.xlu1 %3870 }
 0x5c4   : > { %16270 = vst [vmem:[#allocation410_spill] sm:$0xff] %v11352_v41  ;;  %v3369_v12 = vsel %vm1906_vm10, %v3319_v62, %v16272_v37  ;;  %v4676_v51 = vrot.slane %v3348_v13, 1  ;;  %v4673_v8 = vrot.slane %v3345_v22, 1  ;;  %v4682_v52 = vrot.slane %v3354_v30, 1  ;;  %3769 = vrot.lane.b32.xlu0 %v11207_v56, %s5596_s23  ;;  %16275 = vst [vmem:[#allocation140_spill] sm:$0xff] %v11364_v27  ;;  %v16276_v62 = vld [vmem:[#allocation63_spill] sm:$0xff] }
 0x5c5   : > { %v3375_v46 = vsel %vm1906_vm10, %v3325_v5, %v16274_v49  ;;  %v4679_v63 = vrot.slane %v3351_v4, 1  ;;  %v4685_v41 = vrot.slane %v3357_v16, 1  ;;  %v4700_v55 = vrot.slane %v3372_v47, 1  ;;  %v11369_v22 = vpop.permute.xlu0 %3868  ;;  %v16278_v56 = vld [vmem:[#allocation64_spill] sm:$0xff] }
 0x5c6   : > { %v3781_v10 = vrot.slane %v10842_v59, 1  ;;  %v3334_v37 = vsel %vm1873_vm4, %v3284_v28, %v16276_v62  ;;  %v4697_v3 = vrot.slane %v3369_v12, 1  ;;  %v4706_v13 = vrot.slane %v3378_v33, 1  ;;  %16277 = vst [vmem:[#allocation445_spill] sm:$0xff] %v11369_v22  ;;  %v16279_v4 = vld [vmem:[#allocation76_spill] sm:$0xff]  ;;  %v16281_v59 = vld [vmem:[#allocation77_spill] sm:$0xff] }
 0x5c7   : > { %4001 = vrot.lane.b32.xlu1 %v10836_v26, %s5604_s4  ;;  %v3783_v30 = vrot.slane %v10881_v45, 1  ;;  %v3331_v5 = vsel %vm1873_vm4, %v3280_v35, %v16278_v56  ;;  %v11378_v16 = vsel %vm1873_vm4, %v3288_v44, %v16279_v4  ;;  %v11382_v47 = vsel %vm1873_vm4, %v3286_v23, %v16281_v59  ;;  %v16283_v12 = vld [vmem:[#allocation613_spill] sm:$0xff]  ;;  %v11390_v45 = vpop.permute.xlu1 %3902  ;;  %v16334_v62 = vld [vmem:[#allocation195_spill] sm:$0xff]  ;;  %v16373_v32 = vld [vmem:[#allocation188_spill] sm:$0xff] }
 0x5c8   : > { %16280 = vst [vmem:[#allocation446_spill] sm:$0xff] %v11378_v16  ;;  %16282 = vst [vmem:[#allocation449_spill] sm:$0xff] %v11382_v47  ;;  %v4703_v28 = vrot.slane %v3375_v46, 1  ;;  %v11386_v33 = vsel %vm1906_vm10, %v3310_v9, %v16283_v12  ;;  %3999 = vrot.lane.b32.xlu0 %v16106_v25, %s5604_s4  ;;  %v16285_v35 = vrot.slane %v11079_v57, 1  ;;  %v16286_v44 = vrot.slane %v11104_v48, 1  ;;  %v16322_v4 = vld [vmem:[#allocation193_spill] sm:$0xff] }
 0x5c9   : > { %16284 = vst [vmem:[#allocation450_spill] sm:$0xff] %v11390_v45  ;;  %v16288_v46 = vrot.slane %v11169_v11, 1  ;;  %v3782_v47 = vor.u32 %v3781_v10, %v10839_v42  ;;  %v16290_v16 = vrot.slane %v11238_v0, 1  ;;  %v16294_v48 = vrot.slane %v11192_v18, 1  ;;  %v16296_v11 = vld [vmem:[#allocation617_spill] sm:$0xff]  ;;  %v11427_v42 = vpop.permute.xlu0 %3900  ;;  %v16329_v12 = vld [vmem:[#allocation642_spill] sm:$0xff] }
 0x5ca   : > { %v11395_v27 = vsel %vm14339_vm1, %v16285_v35, %v4673_v8  ;;  %v11400_v23 = vsel %vm14339_vm1, %v16286_v44, %v4676_v51  ;;  %v16292_v8 = vrot.slane %v11142_v24, 1  ;;  %16297 = vst [vmem:[#allocation462_spill] sm:$0xff] %v11427_v42  ;;  %v16298_v0 = vshrl.u32 %v10836_v26, 16  ;;  %v16303_v35 = vld [vmem:[#allocation7_spill] sm:$0xff]  ;;  %v16331_v42 = vld [vmem:[#allocation194_spill] sm:$0xff] }
 0x5cb   : > { %16287 = vst [vmem:[#allocation453_spill] sm:$0xff] %v11400_v23  ;;  %v11405_v9 = vsel %vm14339_vm1, %v16288_v46, %v4682_v52  ;;  %v11411_v59 = vsel %vm14339_vm1, %v16290_v16, %v4700_v55  ;;  %v11421_v51 = vsel %vm14339_vm1, %v16294_v48, %v4685_v41  ;;  %v11425_v52 = vsel %vm1906_vm10, %v3334_v37, %v16296_v11  ;;  %v16302_v16 = vld [vmem:[#allocation624_spill] sm:$0xff]  ;;  %v16359_v23 = vld [vmem:[#allocation517_spill] sm:$0xff] }
 0x5cc   : > { %16289 = vst [vmem:[#allocation454_spill] sm:$0xff] %v11405_v9  ;;  %16291 = vst [vmem:[#allocation457_spill] sm:$0xff] %v11411_v59  ;;  %v11416_v57 = vsel %vm14339_vm1, %v16292_v8, %v4679_v63  ;;  %3779 = vrot.lane.b32.xlu1 %v10836_v26, %s5597_s24  ;;  %v3785_v24 = vor.u32 %v3783_v30, %v16298_v0  ;;  %v16299_v10 = vrot.slane %v11234_v61, 1  ;;  %v16300_v18 = vrot.slane %v11256_v50, 1  ;;  %v16306_v50 = vld [vmem:[#allocation234_spill] sm:$0xff]  ;;  %v16309_v8 = vld [vmem:[#allocation20_spill] sm:$0xff] }
 0x5cd   : > { %16293 = vst [vmem:[#allocation458_spill] sm:$0xff] %v11416_v57  ;;  %16295 = vst [vmem:[#allocation460_spill] sm:$0xff] %v11421_v51  ;;  %v11445_v37 = vsel %vm1906_vm10, %v3331_v5, %v9506_v40  ;;  %v4040_v55 = vsel %vm14340_vm11, %v9800_v15, %v9568_v1  ;;  %v4037_v61 = vsel %vm14340_vm11, %v16303_v35, %v16302_v16  ;;  %v16307_v5 = vld [vmem:[#allocation235_spill] sm:$0xff]  ;;  %v16308_v15 = vld [vmem:[#allocation625_spill] sm:$0xff]  ;;  %3777 = vrot.lane.b32.xlu0 %v16106_v25, %s5597_s24 }
 0x5ce   : > { %v11436_v63 = vsel %vm14339_vm1, %v16299_v10, %v4697_v3  ;;  %v11441_v41 = vsel %vm14339_vm1, %v16300_v18, %v4706_v13  ;;  %v16304_v3 = vrot.slane %v11252_v43, 1  ;;  %v11461_v13 = vsel %vm14340_vm11, %v16306_v50, %v9568_v1  ;;  %v16310_v43 = vld [vmem:[#allocation633_spill] sm:$0xff]  ;;  %v11477_v1 = vpop.permute.xlu1 %3604  ;;  %v16312_v0 = vld [vmem:[#allocation236_spill] sm:$0xff]  ;;  %v16313_v18 = vld [vmem:[#allocation626_spill] sm:$0xff] }
 0x5cf   : > { %16301 = vst [vmem:[#allocation464_spill] sm:$0xff] %v11441_v41  ;;  %v11466_v46 = vsel %vm14340_vm11, %v16307_v5, %v16302_v16  ;;  %v11471_v48 = vsel %vm14340_vm11, %v16309_v8, %v16308_v15  ;;  %16311 = vst [vmem:[#allocation468_spill] sm:$0xff] %v11477_v1  ;;  %v11482_v10 = vsel %vm14340_vm11, %v16312_v0, %v16308_v15  ;;  %v16314_v16 = vld [vmem:[#allocation10_spill] sm:$0xff]  ;;  %v16317_v8 = vld [vmem:[#allocation5_spill] sm:$0xff] }
 0x5d0   : > { %v11456_v44 = vsel %vm14339_vm1, %v16304_v3, %v4703_v28  ;;  %v4085_v28 = vsel %vm1543_vm12, %v4037_v61, %v16310_v43  ;;  %v4043_v35 = vsel %vm14340_vm11, %v16314_v16, %v16313_v18  ;;  %v16315_v3 = vld [vmem:[#allocation480_spill] sm:$0xff]  ;;  %v3784_v61 = vsel %vm282_vm0, %v3782_v47, %v3783_v30  ;;  %v16316_v5 = vld [vmem:[#allocation150_spill] sm:$0xff]  ;;  %v16319_v51 = vld [vmem:[#allocation237_spill] sm:$0xff]  ;;  %v11511_v47 = vpop.permute.xlu0 %3602  ;;  %4014 = vrot.lane.b32.xlu1 %v3785_v24, %s5605_s5 }
 0x5d1   : > { %16305 = vst [vmem:[#allocation466_spill] sm:$0xff] %v11456_v44  ;;  %v11490_v50 = vsel %vm14340_vm11, %v16315_v3, %v16313_v18  ;;  %v11496_v43 = vsel %vm14340_vm11, %v16317_v8, %v16316_v5  ;;  %v11501_v15 = vsel %vm14340_vm11, %v16319_v51, %v16316_v5  ;;  %v16321_v0 = vld [vmem:[#allocation127_spill] sm:$0xff]  ;;  %v16323_v18 = vld [vmem:[#allocation433_spill] sm:$0xff]  ;;  %16325 = vst [vmem:[#allocation472_spill] sm:$0xff] %v11511_v47  ;;  %4012 = vrot.lane.b32.xlu0 %v3784_v61, %s5605_s5 }
 0x5d2   : > { %16318 = vst [vmem:[#allocation469_spill] sm:$0xff] %v11496_v43  ;;  %16320 = vst [vmem:[#allocation67_spill] sm:$0xff] %v11501_v15  ;;  %v11506_v16 = vsel %vm14340_vm11, %v16322_v4, %v16321_v0  ;;  %v16324_v3 = vld [vmem:[#allocation197_spill] sm:$0xff]  ;;  %v236_v9 = vld [vmem:[%s5646_s17 + $0x200] sm:$0xff] }
 0x5d3   : > { %v4061_v30 = vsel %vm14340_vm11, %v16324_v3, %v16323_v18  ;;  %v235_v8 = vld [vmem:[%s5646_s17 + $0x1f8] sm:$0xff]  ;;  %v16326_v41 = vld [vmem:[#allocation238_spill] sm:$0xff]  ;;  %v16327_v5 = vld [vmem:[#allocation68_spill] sm:$0xff] }
 0x5d4   : > { %v11519_v51 = vsel %vm14340_vm11, %v16326_v41, %v16321_v0  ;;  %v4148_v45 = vsel %vm1576_vm13, %v4085_v28, %v16327_v5  ;;  %v16328_v4 = vld [vmem:[#allocation635_spill] sm:$0xff]  ;;  %v4117_v3 = vsel %vm1543_vm12, %v4061_v30, %v16329_v12  ;;  %v16330_v1 = vld [vmem:[#allocation628_spill] sm:$0xff]  ;;  %v16335_v41 = vld [vmem:[#allocation242_spill] sm:$0xff]  ;;  %v3794_v5 = vrot.slane %v16106_v25, 1  ;;  %3792 = vrot.lane.b32.xlu1 %v3785_v24, %s5598_s25 }
 0x5d5   : > { %v4089_v22 = vsel %vm1543_vm12, %v4040_v55, %v16328_v4  ;;  %v11530_v11 = vsel %vm14340_vm11, %v16331_v42, %v16330_v1  ;;  %v16333_v47 = vld [vmem:[#allocation463_spill] sm:$0xff]  ;;  %v11543_v55 = vpop.permute.xlu1 %3944  ;;  %v5573_v42 = vld [vmem:[%s13493_s1] sm:$0xff]   ;;  %v11554_v4 = vpack.c.bf16 %v236_v9, %v235_v8  ;;  %v16341_v44 = vld [vmem:[#allocation504_spill] sm:$0xff]  ;;  %3790 = vrot.lane.b32.xlu0 %v3784_v61, %s5598_s25 }
 0x5d6   : > { %16332 = vst [vmem:[#allocation474_spill] sm:$0xff] %v11530_v11  ;;  %v11535_v57 = vsel %vm14340_vm11, %v16334_v62, %v16333_v47  ;;  %v11540_v28 = vsel %vm14340_vm11, %v16335_v41, %v16333_v47  ;;  %16336 = vst [vmem:[#allocation478_spill] sm:$0xff] %v11543_v55  ;;  %v237_v12 = vld [vmem:[%s5646_s17 + $0x208] sm:$0x3f]  ;;  %v3795_v62 = vrot.slane %v10836_v26, 1  ;;  %v14334_v47 = vmov 0  }
 0x5d7   : > { %v16337_v0 = vld [vmem:[#allocation243_spill] sm:$0xff]  ;;  %16338 = vst [vmem:[#allocation481_spill] sm:$0xff] %v11554_v4  ;;  %5149 = vmatprep.subr.bf16.mxu0 %v14334_v47  ;;  %5522 = vmatprep.subr.bf16.mxu1 %v14334_v47  ;;  %v16339_v41 = vld [vmem:[#allocation514_spill] sm:$0xff]  ;;  %v11569_v26 = vpack.c.bf16 %v237_v12, %v237_v12  ;;  %v11572_v47 = vshrl.u32 %v11554_v4, 16  ;;  %v16357_v40 = vld [vmem:[#allocation108_spill] sm:$0xff] }
 0x5d8   : > { %v4062_v30 = vsel %vm14340_vm11, %v16337_v0, %v16323_v18  ;;  %v4198_v1 = vsel %vm1609_vm14, %v4148_v45, %v16339_v41  ;;  %v16340_v55 = vld [vmem:[#allocation86_spill] sm:$0xff]  ;;  %v4172_v18 = vsel %vm1576_vm13, %v4117_v3, %v16341_v44  ;;  %v11564_v0 = vpop.permute.xlu0 %3928  ;;  %5150 = vmatpush1.bf16.msra.mxu0 %v5573_v42  ;;  %v16343_v9 = vld [vmem:[#allocation135_spill] sm:$0xff]  ;;  %v11575_v45 = vshll.u32 %v11554_v4, 16  ;;  %5532 = vmatpush1.bf16.msra.mxu1 %v5573_v42  ;;  %v16346_v44 = vld [vmem:[#allocation629_spill] sm:$0xff] }
 0x5d9   : > { %v4151_v11 = vsel %vm1576_vm13, %v4089_v22, %v16340_v55  ;;  %16342 = vst [vmem:[#allocation483_spill] sm:$0xff] %v11564_v0  ;;  %v4093_v8 = vsel %vm1543_vm12, %v4043_v35, %v16343_v9  ;;  %16344 = vst [vmem:[#allocation485_spill] sm:$0xff] %v11569_v26  ;;  %v16345_v22 = vmov 0   ;;  %v16347_v3 = vld [vmem:[#allocation198_spill] sm:$0xff]  ;;  %v16351_v41 = vld [vmem:[#allocation199_spill] sm:$0xff]  ;;  %v11594_v42 = vpop.permute.xlu1 %3675  ;;  %v4222_v61 = vsel %vm1609_vm14, %v4172_v18, %v16357_v40  ;;  %3803 = vrot.lane.b32.xlu1 %v3795_v62, %s5599_s26 }
 0x5da   : > { %5151 = vmatprep.subr.bf16.mxu0 %v16345_v22  ;;  %v11581_v55 = vsel %vm14340_vm11, %v16347_v3, %v16346_v44  ;;  %v16348_v24 = vld [vmem:[#allocation246_spill] sm:$0xff]  ;;  %16352 = vst [vmem:[#allocation476_spill] sm:$0xff] %v11594_v42  ;;  %5523 = vmatprep.subr.bf16.mxu1 %v16345_v22  ;;  %v5574_v3 = vld [vmem:[%s13493_s1 + $0x8] sm:$0xff]   ;;  %v3796_v42 = vsel %vm14339_vm1, %v3794_v5, %v3795_v62  ;;  %v16362_v40 = vld [vmem:[#allocation252_spill] sm:$0xff]  ;;  %v3845_v18 = vrot.slane %v11575_v45, 7  ;;  %vm16389_vm1 = vcmask 220160  }
 0x5db   : > { %v11586_v35 = vsel %vm14340_vm11, %v16348_v24, %v16346_v44  ;;  %v16350_v12 = vld [vmem:[#allocation630_spill] sm:$0xff]  ;;  %v16353_v25 = vld [vmem:[#allocation247_spill] sm:$0xff]  ;;  %v16354_v24 = vld [vmem:[#allocation260_spill] sm:$0xff]  ;;  %v4201_v43 = vsel %vm1609_vm14, %v4151_v11, %v16359_v23  ;;  %v11631_v23 = vshll.u32 %v11569_v26, 16  ;;  %3801 = vrot.lane.b32.xlu0 %v3796_v42, %s5599_s26 }
 0x5dc   : > { %16349 = vst [vmem:[#allocation486_spill] sm:$0xff] %v11586_v35  ;;  %v11591_v9 = vsel %vm14340_vm11, %v16351_v41, %v16350_v12  ;;  %v11603_v44 = vsel %vm14340_vm11, %v16353_v25, %v16350_v12  ;;  %v16355_v0 = vld [vmem:[#allocation31_spill] sm:$0xff]  ;;  %v16358_v15 = vld [vmem:[#allocation158_spill] sm:$0xff]  ;;  %v11619_v12 = vpop.permute.xlu0 %3659  ;;  %5152 = vmatpush1.bf16.msra.mxu0 %v5574_v3  ;;  %v11626_v5 = vsel %vm14340_vm11, %v16362_v40, %v16354_v24  ;;  %v16364_v11 = vld [vmem:[#allocation257_spill] sm:$0xff] }
 0x5dd   : > { %v11608_v41 = vsel %vm14340_vm11, %v16355_v0, %v16354_v24  ;;  %v4248_v56 = vsel %vm14349_vm15, %v4198_v1, %v16358_v15  ;;  %v16360_v59 = vld [vmem:[#allocation498_spill] sm:$0xff]  ;;  %16361 = vst [vmem:[#allocation488_spill] sm:$0xff] %v11619_v12  ;;  %v3806_v0 = vrot.slane %v11554_v4, 6  ;;  %16363 = vst [vmem:[#allocation489_spill] sm:$0xff] %v11626_v5  ;;  %v3842_v1 = vrot.slane %v11572_v47, 6  ;;  %5533 = vmatpush1.bf16.msra.mxu1 %v5574_v3  ;;  %v16367_v24 = vld [vmem:[#allocation632_spill] sm:$0xff]  ;;  %v11648_v3 = vpop.permute.xlu1 %3987 }
 0x5de   : > { %16356 = vst [vmem:[#allocation487_spill] sm:$0xff] %v11608_v41  ;;  %v4154_v25 = vsel %vm1576_vm13, %v4093_v8, %v16360_v59  ;;  %5153 = vmatprep.subr.bf16.mxu0 %v16345_v22  ;;  %v5575_v59 = vld [vmem:[%s13493_s1 + $0x10] sm:$0xff]   ;;  %v16365_v62 = vld [vmem:[#allocation250_spill] sm:$0xff]  ;;  %v4087_v40 = vsel %vm1543_vm12, %v11466_v46, %v16367_v24  ;;  %16369 = vst [vmem:[#allocation490_spill] sm:$0xff] %v11648_v3  ;;  %5524 = vmatprep.subr.bf16.mxu1 %v16345_v22 }
 0x5df   : > { %v11640_v8 = vsel %vm14340_vm11, %v16365_v62, %v16364_v11  ;;  %v16368_v15 = vld [vmem:[#allocation170_spill] sm:$0xff]  ;;  %v16370_v5 = vld [vmem:[#allocation163_spill] sm:$0xff]  ;;  %v4284_v46 = vsel %vm1675_vm2, %v4248_v56, %v16373_v32  ;;  %v16374_v24 = vld [vmem:[#allocation637_spill] sm:$0xff]  ;;  %3837 = vrot.lane.b32.xlu1 %v3806_v0, %s5600_s27 }
 0x5e0   : > { %16366 = vst [vmem:[#allocation497_spill] sm:$0xff] %v11640_v8  ;;  %v4264_v12 = vsel %vm14349_vm15, %v4222_v61, %v16368_v15  ;;  %v4250_v41 = vsel %vm14349_vm15, %v4201_v43, %v16370_v5  ;;  %v16371_v35 = vld [vmem:[#allocation519_spill] sm:$0xff]  ;;  %v16372_v8 = vld [vmem:[#allocation641_spill] sm:$0xff]  ;;  %v4097_v42 = vsel %vm1543_vm12, %v11471_v48, %v16374_v24  ;;  %v16376_v3 = vld [vmem:[#allocation644_spill] sm:$0xff]  ;;  %v11666_v43 = vpop.permute.xlu0 %3971  ;;  %5154 = vmatpush1.bf16.msra.mxu0 %v5575_v59  ;;  %v3850_v48 = vrot.slane %v11631_v23, 7 }
 0x5e1   : > { %v4204_v62 = vsel %vm1609_vm14, %v4154_v25, %v16371_v35  ;;  %v4119_v38 = vsel %vm1543_vm12, %v4062_v30, %v16372_v8  ;;  %v16375_v61 = vld [vmem:[#allocation643_spill] sm:$0xff]  ;;  %v4150_v34 = vsel %vm1576_vm13, %v4087_v40, %v16376_v3  ;;  %16377 = vst [vmem:[#allocation491_spill] sm:$0xff] %v11666_v43  ;;  %v16379_v25 = vld [vmem:[#allocation282_spill] sm:$0xff]  ;;  %v3846_v8 = vor.u32 %v3845_v18, %v3842_v1  ;;  %v16380_v40 = vld [vmem:[#allocation249_spill] sm:$0xff]  ;;  %v11693_v24 = vpop.permute.xlu1 %3763 }
 0x5e2   : > { %v4174_v15 = vsel %vm1576_vm13, %v4119_v38, %v16375_v61  ;;  %v16378_v35 = vld [vmem:[#allocation347_spill] sm:$0xff]  ;;  %v4300_v56 = vsel %vm1675_vm2, %v4264_v12, %v16379_v25  ;;  %5534 = vmatpush1.bf16.msra.mxu1 %v5575_v59  ;;  %5155 = vmatprep.subr.bf16.mxu0 %v16345_v22  ;;  %v5576_v38 = vld [vmem:[%s13493_s1 + $0x18] sm:$0xff]   ;;  %v11681_v0 = vsel %vm14340_vm11, %v16380_v40, %v16364_v11  ;;  %v16381_v3 = vld [vmem:[#allocation634_spill] sm:$0xff] }
 0x5e3   : > { %v4224_v30 = vsel %vm1609_vm14, %v4174_v15, %v16378_v35  ;;  %v11686_v15 = vsel %vm1543_vm12, %v11461_v13, %v16381_v3  ;;  %v16382_v12 = vld [vmem:[#allocation132_spill] sm:$0xff]  ;;  %v16383_v18 = vld [vmem:[#allocation65_spill] sm:$0xff]  ;;  %16385 = vst [vmem:[#allocation510_spill] sm:$0xff] %v11693_v24  ;;  %5525 = vmatprep.subr.bf16.mxu1 %v16345_v22  ;;  %v16387_v35 = vld [vmem:[#allocation275_spill] sm:$0xff] }
 0x5e4   : > { %v4200_v1 = vsel %vm1609_vm14, %v4150_v34, %v16382_v12  ;;  %v16384_v59 = vrot.slane %v16383_v18, 6  ;;  %v16386_v61 = vld [vmem:[#allocation152_spill] sm:$0xff]  ;;  %v4252_v13 = vsel %vm14349_vm15, %v4204_v62, %v16387_v35  ;;  %v16388_v40 = vld [vmem:[#allocation290_spill] sm:$0xff]  ;;  %v16390_v34 = vld [vmem:[#allocation9_spill] sm:$0xff]  ;;  %5156 = vmatpush1.bf16.msra.mxu0 %v5576_v38 }
 0x5e5   : > { %v11699_v11 = vsel %vm1543_vm12, %v11490_v50, %v16386_v61  ;;  %v4320_v3 = vsel %vm16389_vm1, %v4284_v46, %v16388_v40  ;;  %v4286_v12 = vsel %vm1675_vm2, %v4250_v41, %v16390_v34  ;;  %v16391_v18 = vld [vmem:[#allocation80_spill] sm:$0xff]  ;;  %v16392_v5 = vld [vmem:[#allocation526_spill] sm:$0xff]  ;;  %vm16394_vm11 = vmmov %vm16389_vm1  ;;  %v11713_v50 = vpop.permute.xlu0 %3747  ;;  %vm16399_vm1 = vcmask 244736   ;;  %5157 = vmatprep.subr.bf16.mxu0 %v16345_v22 }
 0x5e6   : > { %3821 = vrot.lane.b32.xlu0 %v16384_v59, %s5600_s27  ;;  %v4157_v59 = vsel %vm1576_vm13, %v4097_v42, %v16391_v18  ;;  %v4265_v32 = vsel %vm14349_vm15, %v4224_v30, %v16392_v5  ;;  %v16393_v25 = vld [vmem:[#allocation298_spill] sm:$0xff]  ;;  %16395 = vst [vmem:[#allocation444_spill] sm:$0xff] %v11713_v50  ;;  %v16398_v35 = vld [vmem:[#allocation183_spill] sm:$0xff]  ;;  %v3851_v42 = vsel %vm3461_vm7, %v3846_v8, %v3850_v48  ;;  %v16400_v5 = vld [vmem:[#allocation645_spill] sm:$0xff]  ;;  %vm16409_vm7 = vcmask 220160  }
 0x5e7   : > { %v4336_v43 = vsel %vm16394_vm11, %v4300_v56, %v16393_v25  ;;  %v16396_v61 = vld [vmem:[#allocation610_spill] sm:$0xff]  ;;  %v4357_v41 = vsel %vm16399_vm1, %v4320_v3, %v16398_v35  ;;  %5535 = vmatpush1.bf16.msra.mxu1 %v5576_v38  ;;  %vm16401_vm11 = vmmov %vm16399_vm1  ;;  %v16402_v56 = vld [vmem:[#allocation191_spill] sm:$0xff]  ;;  %v11733_v3 = vpop.permute.xlu1 %3833 }
 0x5e8   : > { %3882 = vrot.lane.b32.xlu1 %v16396_v61, %s5601_s28  ;;  %v16397_v62 = vld [vmem:[#allocation138_spill] sm:$0xff]  ;;  %v4381_v30 = vsel %vm16401_vm11, %v4336_v43, %v16400_v5  ;;  %v4405_v61 = vsel %vm1774_vm9, %v4357_v41, %v16402_v56  ;;  %v16403_v34 = vld [vmem:[#allocation208_spill] sm:$0xff]  ;;  %16405 = vst [vmem:[#allocation492_spill] sm:$0xff] %v11733_v3  ;;  %5526 = vmatprep.subr.bf16.mxu1 %v16345_v22  ;;  %v16406_v38 = vld [vmem:[#allocation189_spill] sm:$0xff] }
 0x5e9   : > { %v4249_v46 = vsel %vm14349_vm15, %v4200_v1, %v16397_v62  ;;  %v4121_v1 = vsel %vm1543_vm12, %v11535_v57, %v16403_v34  ;;  %v16404_v62 = vld [vmem:[#allocation69_spill] sm:$0xff]  ;;  %v5577_v48 = vld [vmem:[%s13493_s1 + $0x20] sm:$0xff]   ;;  %v4301_v43 = vsel %vm1675_vm2, %v4265_v32, %v16406_v38  ;;  %v16407_v18 = vld [vmem:[#allocation200_spill] sm:$0xff]  ;;  %v11758_v38 = vpop.permute.xlu0 %3817 }
 0x5ea   : > { %3880 = vrot.lane.b32.xlu0 %v16404_v62, %s5601_s28  ;;  %v4437_v41 = vsel %vm1774_vm9, %v4381_v30, %v16407_v18  ;;  %v16408_v56 = vld [vmem:[#allocation289_spill] sm:$0xff]  ;;  %v16411_v40 = vld [vmem:[#allocation636_spill] sm:$0xff]  ;;  %v16413_v24 = vld [vmem:[#allocation171_spill] sm:$0xff]  ;;  %5158 = vmatpush1.bf16.msra.mxu0 %v5577_v48  ;;  %v16416_v30 = vshrl.u32 %v11569_v26, 16 }
 0x5eb   : > { %v11745_v57 = vsel %vm16409_vm7, %v4286_v12, %v16408_v56  ;;  %v16410_v34 = vld [vmem:[#allocation277_spill] sm:$0xff]  ;;  %v11752_v25 = vsel %vm1543_vm12, %v11482_v10, %v16411_v40  ;;  %v4285_v32 = vsel %vm1675_vm2, %v4249_v46, %v16413_v24  ;;  %v3917_v12 = vrot.slane %v11554_v4, 7  ;;  %v16414_v18 = vld [vmem:[#allocation436_spill] sm:$0xff]  ;;  %v16415_v40 = vld [vmem:[#allocation503_spill] sm:$0xff]  ;;  %5536 = vmatpush1.bf16.msra.mxu1 %v5577_v48  ;;  %5159 = vmatprep.subr.bf16.mxu0 %v16345_v22 }
 0x5ec   : > { %v4288_v62 = vsel %vm1675_vm2, %v4252_v13, %v16410_v34  ;;  %v16412_v3 = vld [vmem:[#allocation521_spill] sm:$0xff]  ;;  %3914 = vrot.lane.b32.xlu1 %v3851_v42, %s5601_s28  ;;  %v4101_v13 = vsel %vm1543_vm12, %v11506_v16, %v16414_v18  ;;  %v4468_v10 = vsel %vm14348_vm5, %v4405_v61, %v16170_v29  ;;  %v3960_v24 = vrot.slane %v16416_v30, 7  ;;  %v5578_v46 = vld [vmem:[%s13493_s1 + $0x28] sm:$0xff]   ;;  %vm16418_vm1 = vmmov %vm16409_vm7  ;;  %5527 = vmatprep.subr.bf16.mxu1 %v16345_v22 }
 0x5ed   : > { %v4207_v50 = vsel %vm1609_vm14, %v4157_v59, %v16412_v3  ;;  %v4175_v59 = vsel %vm1576_vm13, %v4121_v1, %v16415_v40  ;;  %v16417_v42 = vld [vmem:[#allocation549_spill] sm:$0xff]  ;;  %v4492_v16 = vsel %vm14348_vm5, %v4437_v41, %v16186_v14  ;;  %v16419_v29 = vld [vmem:[#allocation292_spill] sm:$0xff]  ;;  %vm16420_vm11 = vmmov %vm16418_vm1  ;;  %v11784_v1 = vpop.permute.xlu1 %3874 }
 0x5ee   : > { %v4337_v3 = vsel %vm16418_vm1, %v4301_v43, %v16417_v42  ;;  %v11781_v61 = vsel %vm16420_vm11, %v4288_v62, %v16419_v29  ;;  %3912 = vrot.lane.b32.xlu0 %v3846_v8, %s5601_s28  ;;  %v16421_v48 = vld [vmem:[#allocation162_spill] sm:$0xff]  ;;  %v16422_v40 = vld [vmem:[#allocation467_spill] sm:$0xff]  ;;  %vm16424_vm7 = vmmov %vm16418_vm1  ;;  %v3918_v62 = vrot.slane %v11569_v26, 7  ;;  %v4518_v42 = vsel %vm1840_vm3, %v4468_v10, %v16182_v58  ;;  %5160 = vmatpush1.bf16.msra.mxu0 %v5578_v46  ;;  %s5608_s28 = smov 48  }
 0x5ef   : > { %v11789_v18 = vsel %vm14349_vm15, %v4207_v50, %v16421_v48  ;;  %v11794_v43 = vsel %vm1543_vm12, %v11519_v51, %v16422_v40  ;;  %v16423_v14 = vld [vmem:[#allocation543_spill] sm:$0xff]  ;;  %v16425_v30 = vld [vmem:[#allocation500_spill] sm:$0xff]  ;;  %v11807_v48 = vpop.permute.xlu0 %3872  ;;  %vm16427_vm1 = vcmask 244736   ;;  %v3961_v40 = vor.u32 %v3960_v24, %v11631_v23  ;;  %5537 = vmatpush1.bf16.msra.mxu1 %v5578_v46  ;;  %5161 = vmatprep.subr.bf16.mxu0 %v16345_v22 }
 0x5f0   : > { %v4321_v41 = vsel %vm16424_vm7, %v4285_v32, %v16423_v14  ;;  %v11801_v8 = vsel %vm1576_vm13, %v4101_v13, %v16425_v30  ;;  %v16426_v29 = vld [vmem:[#allocation112_spill] sm:$0xff]  ;;  %3952 = vrot.lane.b32.xlu1 %v3917_v12, %s5602_s29  ;;  %v4382_v51 = vsel %vm16427_vm1, %v4337_v3, %v16400_v5  ;;  %v4542_v32 = vsel %vm1840_vm3, %v4492_v16, %v16215_v7  ;;  %vm16428_vm11 = vmmov %vm16427_vm1  ;;  %v16431_v16 = vld [vmem:[#allocation611_spill] sm:$0xff] }
 0x5f1   : > { %v4225_v50 = vsel %vm1609_vm14, %v4175_v59, %v16426_v29  ;;  %v3956_v13 = vrot.slane %v11572_v47, 7  ;;  %v5579_v58 = vld [vmem:[%s13493_s1 + $0x30] sm:$0xff]   ;;  %v4358_v10 = vsel %vm16428_vm11, %v4321_v41, %v16398_v35  ;;  %v11829_v24 = vpop.permute.xlu1 %3906  ;;  %5528 = vmatprep.subr.bf16.mxu1 %v16345_v22  ;;  %v4568_v29 = vsel %vm1873_vm4, %v4518_v42, %v16191_v19  ;;  %v16433_v41 = vld [vmem:[#allocation231_spill] sm:$0xff] }
 0x5f2   : > { %v16429_v59 = vld [vmem:[#allocation196_spill] sm:$0xff]  ;;  %3934 = vrot.lane.b32.xlu0 %v16431_v16, %s5602_s29  ;;  %v16435_v16 = vld [vmem:[#allocation477_spill] sm:$0xff]  ;;  %5162 = vmatpush1.bf16.msra.mxu0 %v5579_v58 }
 0x5f3   : > { %v4439_v5 = vsel %vm1774_vm9, %v4382_v51, %v16429_v59  ;;  %v16430_v3 = vld [vmem:[#allocation440_spill] sm:$0xff]  ;;  %v4584_v51 = vsel %vm1873_vm4, %v4542_v32, %v16227_v31  ;;  %v16434_v59 = vld [vmem:[#allocation233_spill] sm:$0xff]  ;;  %v11847_v34 = vpop.permute.xlu0 %3904  ;;  %5538 = vmatpush1.bf16.msra.mxu1 %v5579_v58  ;;  %5163 = vmatprep.subr.bf16.mxu0 %v16345_v22  ;;  %v16441_v58 = vld [vmem:[#allocation2_spill] sm:$0xff] }
 0x5f4   : > { %v4123_v7 = vsel %vm1543_vm12, %v11540_v28, %v16430_v3  ;;  %v16432_v35 = vld [vmem:[#allocation176_spill] sm:$0xff]  ;;  %v3919_v28 = vsel %vm3615_vm8, %v3917_v12, %v3918_v62  ;;  %v4153_v3 = vsel %vm1576_vm13, %v11686_v15, %v16434_v59  ;;  %v16438_v62 = vld [vmem:[#allocation253_spill] sm:$0xff]  ;;  %5529 = vmatprep.subr.bf16.mxu1 %v16345_v22 }
 0x5f5   : > { %v4266_v14 = vsel %vm14349_vm15, %v4225_v50, %v16432_v35  ;;  %v4177_v30 = vsel %vm1576_vm13, %v4123_v7, %v16433_v41  ;;  %v16436_v42 = vld [vmem:[#allocation456_spill] sm:$0xff]  ;;  %v16437_v7 = vld [vmem:[#allocation217_spill] sm:$0xff]  ;;  %v4203_v32 = vsel %vm1609_vm14, %v4153_v3, %v16438_v62  ;;  %v3962_v41 = vsel %vm2164_vm6, %v3956_v13, %v3961_v40  ;;  %v16442_v62 = vld [vmem:[#allocation159_spill] sm:$0xff] }
 0x5f6   : > { %v4227_v46 = vsel %vm1609_vm14, %v4177_v30, %v16435_v16  ;;  %3977 = vrot.lane.b32.xlu1 %v16436_v42, %s5603_s30  ;;  %v4494_v12 = vsel %vm14348_vm5, %v4439_v5, %v16437_v7  ;;  %v16439_v59 = vld [vmem:[#allocation240_spill] sm:$0xff]  ;;  %v16440_v42 = vld [vmem:[#allocation281_spill] sm:$0xff]  ;;  %3954 = vrot.lane.b32.xlu0 %v3919_v28, %s5602_s29  ;;  %v11865_v5 = vpop.permute.xlu1 %3608  ;;  %v3957_v3 = vor.u32 %v3956_v13, %v11575_v45  ;;  %v16445_v30 = vld [vmem:[#allocation146_spill] sm:$0xff]  ;;  %s5609_s29 = smov 96  }
 0x5f7   : > { %v4544_v16 = vsel %vm1840_vm3, %v4494_v12, %v16439_v59  ;;  %v4302_v50 = vsel %vm1675_vm2, %v4266_v14, %v16440_v42  ;;  %v5580_v40 = vld [vmem:[%s13493_s1 + $0x38] sm:$0xff]   ;;  %v4407_v7 = vsel %vm1774_vm9, %v4358_v10, %v16441_v58  ;;  %v4267_v12 = vsel %vm14349_vm15, %v4227_v46, %v16442_v62  ;;  %v16443_v59 = vld [vmem:[#allocation382_spill] sm:$0xff]  ;;  %v11885_v42 = vpop.permute.xlu0 %3606  ;;  %vm16447_vm6 = vmmov %vm16424_vm7 }
 0x5f8   : > { %v4007_v14 = vrot.slane %v11575_v45, 1  ;;  %v11879_v28 = vsel %vm1906_vm10, %v4568_v29, %v16443_v59  ;;  %v16444_v15 = vld [vmem:[#allocation229_spill] sm:$0xff]  ;;  %v4251_v56 = vsel %vm14349_vm15, %v4203_v32, %v16445_v30  ;;  %v4009_v10 = vrot.slane %v11631_v23, 1  ;;  %5164 = vmatpush1.bf16.msra.mxu0 %v5580_v40  ;;  %v16448_v32 = vld [vmem:[#allocation11_spill] sm:$0xff]  ;;  %5539 = vmatpush1.bf16.msra.mxu1 %v5580_v40  ;;  %v5581_v23 = vld [vmem:[%s13493_s1 + $0x40] sm:$0xff]  }
 0x5f9   : > { %v4470_v13 = vsel %vm14348_vm5, %v4407_v7, %v16444_v15  ;;  %v11891_v46 = vsel %vm1906_vm10, %v4584_v51, %v16239_v36  ;;  %v4585_v29 = vsel %vm1873_vm4, %v4544_v16, %v16271_v17  ;;  %v16446_v15 = vld [vmem:[#allocation297_spill] sm:$0xff]  ;;  %v4125_v30 = vsel %vm1543_vm12, %v11591_v9, %v16448_v32  ;;  %5165 = vmatprep.subr.bf16.mxu0 %v16345_v22  ;;  %v16450_v17 = vld [vmem:[#allocation18_spill] sm:$0xff]  ;;  %vm16452_vm7 = vmmov %vm16427_vm1 }
 0x5fa   : > { %3997 = vrot.lane.b32.xlu1 %v3962_v41, %s5603_s30  ;;  %v4338_v58 = vsel %vm16447_vm6, %v4302_v50, %v16446_v15  ;;  %v16449_v41 = vld [vmem:[#allocation251_spill] sm:$0xff]  ;;  %v4303_v16 = vsel %vm1675_vm2, %v4267_v12, %v16450_v17  ;;  %v16451_v50 = vld [vmem:[#allocation254_spill] sm:$0xff]  ;;  %3995 = vrot.lane.b32.xlu0 %v3957_v3, %s5603_s30  ;;  %v11914_v9 = vpop.permute.xlu1 %3946  ;;  %v16453_v40 = vld [vmem:[#allocation177_spill] sm:$0xff]  ;;  %vm5143_vm1 = vcmask 1041408   ;;  %s5610_s30 = smov 16  }
 0x5fb   : > { %v4520_v7 = vsel %vm1840_vm3, %v4470_v13, %v16449_v41  ;;  %v4360_v62 = vsel %vm16452_vm7, %v11745_v57, %v16451_v50  ;;  %5530 = vmatprep.subr.bf16.mxu1 %v16345_v22  ;;  %v4287_v32 = vsel %vm1675_vm2, %v4251_v56, %v16453_v40  ;;  %v16454_v45 = vld [vmem:[#allocation256_spill] sm:$0xff]  ;;  %v4008_v13 = vor.u32 %v4007_v14, %v11572_v47  ;;  %v16455_v41 = vld [vmem:[#allocation506_spill] sm:$0xff]  ;;  %v11924_v17 = vpop.permute.xlu0 %3930  ;;  %v5582_v56 = vld [vmem:[%s13493_s1 + $0x48] ss:$0 sps:$4 sm:$0x33]  }
 0x5fc   : > { %v4409_v51 = vsel %vm1774_vm9, %v4360_v62, %v16454_v45  ;;  %v4178_v12 = vsel %vm1576_vm13, %v4125_v30, %v16455_v41  ;;  %v16456_v57 = vshrl.u32 %v11569_v26, 16  ;;  %5166 = vmatpush1.bf16.msra.mxu0 %v5581_v23  ;;  %v5607_v45 = vmov 65535   ;;  %v16457_v30 = vld [vmem:[#allocation420_spill] sm:$0xff]  ;;  %vm16458_vm11 = vmmov %vm16447_vm6  ;;  %5540 = vmatpush1.bf16.msra.mxu1 %v5581_v23  ;;  %v16461_v15 = vld [vmem:[#allocation583_spill] sm:$0xff] }
 0x5fd   : > { %v5144_v47 = vsel %vm3615_vm8, 4294967295, %v5607_v45  ;;  %v4569_v14 = vsel %vm1873_vm4, %v4520_v7, %v16259_v21  ;;  %v4339_v62 = vsel %vm16458_vm11, %v4303_v16, %v16457_v30  ;;  %v16459_v40 = vld [vmem:[#allocation24_spill] sm:$0xff]  ;;  %vm16460_vm6 = vmmov %vm16452_vm7  ;;  %5167 = vmatprep.subr.bf16.mxu0 %v16345_v22  ;;  %v4471_v35 = vsel %vm14348_vm5, %v4409_v51, %v16461_v15  ;;  %v16462_v59 = vld [vmem:[#allocation259_spill] sm:$0xff]  ;;  %5531 = vmatprep.subr.bf16.mxu1 %v16345_v22 }
 0x5fe   : > { %4005 = vrot.lane.b32.xlu1 %v11569_v26, %s5604_s4  ;;  %v4011_v3 = vor.u32 %v4009_v10, %v16456_v57  ;;  %v4384_v41 = vsel %vm16460_vm6, %v4338_v58, %v16459_v40  ;;  %v5145_v57 = vsel %vm5143_vm1, %v5144_v47, 0  ;;  %4003 = vrot.lane.b32.xlu0 %v11554_v4, %s5604_s4  ;;  %v11947_v21 = vpop.permute.xlu1 %3677  ;;  %v4784_v7 = vrot.slane %v11879_v28, 2  ;;  %v16463_v16 = vld [vmem:[#allocation542_spill] sm:$0xff]  ;;  %vm16464_vm8 = vmmov %vm16458_vm11  ;;  %v16467_v30 = vld [vmem:[#allocation169_spill] sm:$0xff]  ;;  %s5543_s4 = smul.u32 432, %s17112_s13 }
 0x5ff   : > { %v4441_v19 = vsel %vm1774_vm9, %v4384_v41, %v16462_v59  ;;  %v5147_v58 = vand.u32 %v5582_v56, %v5145_v57  ;;  %v4621_v23 = vsel %vm1906_vm10, %v4585_v29, %v16274_v49  ;;  %v4323_v45 = vsel %vm16464_vm8, %v4287_v32, %v16463_v16  ;;  %v16465_v15 = vld [vmem:[#allocation522_spill] sm:$0xff]  ;;  %vm16466_vm7 = vmmov %vm16460_vm6  ;;  %v11965_v56 = vpop.permute.xlu0 %3661  ;;  %v16468_v29 = vld [vmem:[#allocation597_spill] sm:$0xff] }
 0x600   : > { %v4228_v51 = vsel %vm1609_vm14, %v4178_v12, %v16465_v15  ;;  %v4010_v59 = vsel %vm282_vm0, %v4008_v13, %v4009_v10  ;;  %v4605_v47 = vsel %vm1906_vm10, %v4569_v14, %v9456_v2  ;;  %v4385_v28 = vsel %vm16466_vm7, %v4339_v62, %v16459_v40  ;;  %v16469_v32 = vld [vmem:[#allocation591_spill] sm:$0xff]  ;;  %v16470_v13 = vld [vmem:[#allocation393_spill] sm:$0xff]  ;;  %v16471_v14 = vld [vmem:[#allocation394_spill] sm:$0xff]  ;;  %s13224_s7 = scalar_lea.vmem %s13495_s3, %s5543_s4 }
 0x601   : > { %v4127_v22 = vsel %vm1543_vm12, %v11603_v44, %v16467_v30  ;;  %v4808_v49 = vrot.slane %v11891_v46, 2  ;;  %5168 = vmatpush1.bf16.msra.mxu0 %v5147_v58  ;;  %v4521_v10 = vsel %vm1840_vm3, %v4471_v35, %v16468_v29  ;;  %v4495_v2 = vsel %vm14348_vm5, %v4441_v19, %v16469_v32  ;;  %5541 = vmatpush1.bf16.msra.mxu1 %v5147_v58  ;;  %vm16472_vm0 = vmmov %vm16460_vm6  ;;  %v16473_v62 = vld [vmem:[#allocation174_spill] sm:$0xff]  ;;  %v16474_v40 = vld [vmem:[#allocation396_spill] sm:$0xff] }
 0x602   : > { %4018 = vrot.lane.b32.xlu1 %v4011_v3, %s5605_s5  ;;  %v4180_v12 = vsel %vm1576_vm13, %v4127_v22, %v16470_v13  ;;  %v4156_v44 = vsel %vm1576_vm13, %v11699_v11, %v16471_v14  ;;  %v4361_v3 = vsel %vm16472_vm0, %v4323_v45, %v16451_v50  ;;  %v4268_v46 = vsel %vm14349_vm15, %v4228_v51, %v16473_v62  ;;  %v16475_v41 = vld [vmem:[#allocation397_spill] sm:$0xff]  ;;  %v11987_v57 = vpop.permute.xlu1 %3973  ;;  %v16476_v11 = vld [vmem:[#allocation255_spill] sm:$0xff]  ;;  %v16477_v30 = vld [vmem:[#allocation258_spill] sm:$0xff] }
 0x603   : > { %v4230_v35 = vsel %vm1609_vm14, %v4180_v12, %v16474_v40  ;;  %v4206_v19 = vsel %vm1609_vm14, %v4156_v44, %v16475_v41  ;;  %4016 = vrot.lane.b32.xlu0 %v4010_v59, %s5605_s5  ;;  %v4809_v16 = vrot.slane %v4621_v23, 2  ;;  %v4785_v15 = vrot.slane %v4605_v47, 2  ;;  %v16478_v45 = vld [vmem:[#allocation365_spill] sm:$0xff]  ;;  %v16479_v22 = vld [vmem:[#allocation39_spill] sm:$0xff]  ;;  %v16480_v32 = vld [vmem:[#allocation392_spill] sm:$0xff]  ;;  %v12001_v23 = vpop.permute.xlu0 %3679 }
 0x604   : > { %v4411_v58 = vsel %vm1774_vm9, %v4361_v3, %v16476_v11  ;;  %v4443_v50 = vsel %vm1774_vm9, %v4385_v28, %v16477_v30  ;;  %v4570_v51 = vsel %vm1873_vm4, %v4521_v10, %v16478_v45  ;;  %v4545_v29 = vsel %vm1840_vm3, %v4495_v2, %v16479_v22  ;;  %v16481_v59 = vld [vmem:[#allocation3_spill] sm:$0xff]  ;;  %v16482_v47 = vld [vmem:[#allocation528_spill] sm:$0xff]  ;;  %v16485_v3 = vld [vmem:[#allocation73_spill] sm:$0xff] }
 0x605   : > { %v4497_v13 = vsel %vm14348_vm5, %v4443_v50, %v16480_v32  ;;  %v4473_v12 = vsel %vm14348_vm5, %v4411_v58, %v16481_v59  ;;  %v4269_v28 = vsel %vm14349_vm15, %v4230_v35, %v16482_v47  ;;  %v16483_v14 = vld [vmem:[#allocation143_spill] sm:$0xff]  ;;  %v16484_v44 = vld [vmem:[#allocation284_spill] sm:$0xff]  ;;  %v4129_v40 = vsel %vm1543_vm12, %v11581_v55, %v16485_v3  ;;  %v16486_v41 = vld [vmem:[#allocation94_spill] sm:$0xff] }
 0x606   : > { %4736 = vrot.lane.b32.xlu1 %v11436_v63, %s5608_s28  ;;  %v4253_v10 = vsel %vm14349_vm15, %v4206_v19, %v16483_v14  ;;  %v4304_v2 = vsel %vm1675_vm2, %v4268_v46, %v16484_v44  ;;  %v4210_v11 = vsel %vm1609_vm14, %v11801_v8, %v16486_v41  ;;  %v16487_v58 = vld [vmem:[#allocation26_spill] sm:$0xff]  ;;  %v16488_v30 = vld [vmem:[#allocation395_spill] sm:$0xff]  ;;  %v16489_v50 = vld [vmem:[#allocation8_spill] sm:$0xff]  ;;  %v12026_v46 = vpop.permute.xlu1 %3749  ;;  %v4586_v55 = vsel %vm1873_vm4, %v4545_v29, %v16228_v6 }
 0x607   : > { %v4547_v63 = vsel %vm1840_vm3, %v4497_v13, %v16487_v58  ;;  %v4523_v35 = vsel %vm1840_vm3, %v4473_v12, %v16488_v30  ;;  %v4290_v19 = vsel %vm1675_vm2, %v11789_v18, %v16489_v50  ;;  %4720 = vrot.lane.b32.xlu0 %v11395_v27, %s5608_s28  ;;  %vm16490_vm1 = vcmask 1045504   ;;  %v16492_v32 = vld [vmem:[#allocation381_spill] sm:$0xff]  ;;  %v16493_v59 = vld [vmem:[#allocation535_spill] sm:$0xff]  ;;  %v16495_v27 = vld [vmem:[#allocation300_spill] sm:$0xff]  ;;  %v12044_v41 = vpop.permute.xlu0 %3989 }
 0x608   : > { %v4810_v8 = vsel %vm16490_vm1, %v4808_v49, %v4809_v16  ;;  %vm16491_vm11 = vmmov %vm16490_vm1  ;;  %v12034_v13 = vsel %vm1906_vm10, %v4570_v51, %v16492_v32  ;;  %v4305_v12 = vsel %vm1675_vm2, %v4269_v28, %v16493_v59  ;;  %v16494_v18 = vld [vmem:[#allocation175_spill] sm:$0xff]  ;;  %v16497_v3 = vld [vmem:[#allocation505_spill] sm:$0xff]  ;;  %v4571_v49 = vsel %vm1873_vm4, %v4523_v35, %v16258_v20 }
 0x609   : > { %v4786_v22 = vsel %vm16491_vm11, %v4784_v7, %v4785_v15  ;;  %v4289_v47 = vsel %vm1675_vm2, %v4253_v10, %v16494_v18  ;;  %vm16496_vm6 = vmmov %vm16464_vm8  ;;  %v4181_v29 = vsel %vm1576_vm13, %v4129_v40, %v16497_v3  ;;  %v4587_v7 = vsel %vm1873_vm4, %v4547_v63, %v16267_v54  ;;  %v16498_v16 = vld [vmem:[#allocation398_spill] sm:$0xff]  ;;  %v16500_v51 = vld [vmem:[#allocation187_spill] sm:$0xff] }
 0x60a   : > { %v4340_v14 = vsel %vm16496_vm6, %v4304_v2, %v16495_v27  ;;  %4848 = vrot.lane.b32.xlu1 %v4810_v8, %s5609_s29  ;;  %vm16499_vm8 = vmmov %vm16472_vm0  ;;  %v16502_v10 = vld [vmem:[#allocation399_spill] sm:$0xff]  ;;  %v16503_v40 = vld [vmem:[#allocation190_spill] sm:$0xff]  ;;  %v12063_v54 = vpop.permute.xlu1 %3767 }
 0x60b   : > { %v4387_v15 = vsel %vm16499_vm8, %v4340_v14, %v16498_v16  ;;  %vm16501_vm7 = vmmov %vm16472_vm0  ;;  %v16504_v30 = vld [vmem:[#allocation291_spill] sm:$0xff]  ;;  %4832 = vrot.lane.b32.xlu0 %v4786_v22, %s5609_s29  ;;  %v16506_v20 = vld [vmem:[#allocation389_spill] sm:$0xff] }
 0x60c   : > { %v4363_v28 = vsel %vm16501_vm7, %v11781_v61, %v16500_v51  ;;  %v4445_v58 = vsel %vm1774_vm9, %v4387_v15, %v16503_v40  ;;  %vm16505_vm0 = vmmov %vm16496_vm6  ;;  %v4622_v63 = vsel %vm1906_vm10, %v4586_v55, %v16506_v20  ;;  %v16507_v35 = vld [vmem:[#allocation164_spill] sm:$0xff]  ;;  %v16508_v61 = vld [vmem:[#allocation551_spill] sm:$0xff] }
 0x60d   : > { %v4413_v2 = vsel %vm1774_vm9, %v4363_v28, %v16502_v10  ;;  %v4326_v8 = vsel %vm16505_vm0, %v4290_v19, %v16504_v30  ;;  %v4256_v59 = vsel %vm14349_vm15, %v4210_v11, %v16507_v35  ;;  %vm16509_vm1 = vmmov %vm16505_vm0  ;;  %v16510_v14 = vld [vmem:[#allocation545_spill] sm:$0xff]  ;;  %v16512_v15 = vld [vmem:[#allocation523_spill] sm:$0xff]  ;;  %v12082_v11 = vpop.permute.xlu0 %3765 }
 0x60e   : > { %v4341_v18 = vsel %vm16509_vm1, %v4305_v12, %v16508_v61  ;;  %vm16511_vm11 = vmmov %vm16505_vm0  ;;  %v4231_v28 = vsel %vm1609_vm14, %v4181_v29, %v16512_v15  ;;  %v16513_v19 = vld [vmem:[#allocation615_spill] sm:$0xff]  ;;  %v16514_v10 = vld [vmem:[#allocation612_spill] sm:$0xff] }
 0x60f   : > { %v4325_v3 = vsel %vm16511_vm11, %v4289_v47, %v16510_v14  ;;  %v4623_v22 = vsel %vm1906_vm10, %v4587_v7, %v16513_v19  ;;  %v4607_v40 = vsel %vm1906_vm10, %v4571_v49, %v16514_v10  ;;  %v16515_v30 = vld [vmem:[#allocation400_spill] sm:$0xff]  ;;  %v16516_v55 = vld [vmem:[#allocation486_spill] sm:$0xff]  ;;  %v4787_v47 = vrot.slane %v12034_v13, 2  ;;  %vm16521_vm6 = vmmov %vm16501_vm7 }
 0x610   : > { %v4131_v50 = vsel %vm1543_vm12, %v16516_v55, %v16515_v30  ;;  %v16517_v12 = vld [vmem:[#allocation232_spill] sm:$0xff]  ;;  %v16518_v61 = vld [vmem:[#allocation586_spill] sm:$0xff]  ;;  %v4811_v19 = vrot.slane %v4622_v63, 2  ;;  %v4388_v30 = vsel %vm16521_vm6, %v4341_v18, %v16498_v16  ;;  %vm16522_vm8 = vmmov %vm16521_vm6  ;;  %vm16545_vm7 = vcmask 1045504  }
 0x611   : > { %4895 = vrot.lane.b32.xlu1 %v16517_v12, %s5610_s30  ;;  %v4474_v29 = vsel %vm14348_vm5, %v4413_v2, %v16518_v61  ;;  %v16519_v14 = vld [vmem:[#allocation594_spill] sm:$0xff]  ;;  %v16520_v15 = vld [vmem:[#allocation404_spill] sm:$0xff]  ;;  %v4364_v10 = vsel %vm16522_vm8, %v4325_v3, %v16500_v51  ;;  %v16523_v55 = vld [vmem:[#allocation181_spill] sm:$0xff]  ;;  %v4812_v61 = vrot.slane %v4623_v22, 2 }
 0x612   : > { %v4498_v7 = vsel %vm14348_vm5, %v4445_v58, %v16519_v14  ;;  %v4183_v49 = vsel %vm1576_vm13, %v4131_v50, %v16520_v15  ;;  %v4270_v12 = vsel %vm14349_vm15, %v4231_v28, %v16523_v55  ;;  %v16524_v13 = vld [vmem:[#allocation409_spill] sm:$0xff]  ;;  %v16525_v2 = vld [vmem:[#allocation216_spill] sm:$0xff]  ;;  %v12103_v58 = vpop.permute.xlu1 %3775  ;;  %v4788_v50 = vrot.slane %v4607_v40, 2  ;;  %v16526_v63 = vld [vmem:[#allocation55_spill] sm:$0xff]  ;;  %v12118_v40 = vpop.permute.xlu0 %3773 }
 0x613   : > { %v4233_v27 = vsel %vm1609_vm14, %v4183_v49, %v16524_v13  ;;  %4879 = vrot.lane.b32.xlu0 %v16525_v2, %s5610_s30  ;;  %v4415_v14 = vsel %vm1774_vm9, %v4364_v10, %v16526_v63  ;;  %v16527_v16 = vld [vmem:[#allocation62_spill] sm:$0xff]  ;;  %v16528_v51 = vld [vmem:[#allocation599_spill] sm:$0xff]  ;;  %v16530_v49 = vld [vmem:[#allocation401_spill] sm:$0xff] }
 0x614   : > { %v4447_v18 = vsel %vm1774_vm9, %v4388_v30, %v16527_v16  ;;  %v4524_v3 = vsel %vm1840_vm3, %v4474_v29, %v16528_v51  ;;  %v16529_v28 = vld [vmem:[#allocation54_spill] sm:$0xff]  ;;  %v16531_v2 = vld [vmem:[#allocation405_spill] sm:$0xff]  ;;  %v16533_v63 = vld [vmem:[#allocation403_spill] sm:$0xff] }
 0x615   : > { %v4548_v15 = vsel %vm1840_vm3, %v4498_v7, %v16529_v28  ;;  %v4500_v13 = vsel %vm14348_vm5, %v4447_v18, %v16530_v49  ;;  %v4159_v22 = vsel %vm1576_vm13, %v11752_v25, %v16531_v2  ;;  %v16532_v10 = vld [vmem:[#allocation457_spill] sm:$0xff]  ;;  %v4476_v30 = vsel %vm14348_vm5, %v4415_v14, %v16533_v63  ;;  %v16534_v16 = vld [vmem:[#allocation527_spill] sm:$0xff]  ;;  %v16541_v14 = vld [vmem:[#allocation278_spill] sm:$0xff] }
 0x616   : > { %4738 = vrot.lane.b32.xlu1 %v16532_v10, %s5608_s28  ;;  %v4271_v29 = vsel %vm14349_vm15, %v4233_v27, %v16534_v16  ;;  %v16535_v51 = vld [vmem:[#allocation411_spill] sm:$0xff]  ;;  %v16538_v55 = vld [vmem:[#allocation469_spill] sm:$0xff]  ;;  %v16540_v10 = vld [vmem:[#allocation408_spill] sm:$0xff]  ;;  %v4292_v63 = vsel %vm1675_vm2, %v4256_v59, %v16541_v14 }
 0x617   : > { %v4209_v7 = vsel %vm1609_vm14, %v4159_v22, %v16535_v51  ;;  %v16536_v28 = vld [vmem:[#allocation283_spill] sm:$0xff]  ;;  %v4526_v62 = vsel %vm1840_vm3, %v4476_v30, %v16540_v10  ;;  %v16542_v27 = vld [vmem:[#allocation453_spill] sm:$0xff]  ;;  %v12141_v22 = vpop.permute.xlu1 %3788  ;;  %v16544_v51 = vld [vmem:[#allocation376_spill] sm:$0xff] }
 0x618   : > { %v4306_v18 = vsel %vm1675_vm2, %v4270_v12, %v16536_v28  ;;  %v16537_v49 = vld [vmem:[#allocation639_spill] sm:$0xff]  ;;  %4722 = vrot.lane.b32.xlu0 %v16542_v27, %s5608_s28  ;;  %v16543_v16 = vld [vmem:[#allocation369_spill] sm:$0xff]  ;;  %vm16546_vm0 = vmmov %vm16545_vm7 }
 0x619   : > { %v4105_v25 = vsel %vm1543_vm12, %v16538_v55, %v16537_v49  ;;  %v16539_v2 = vld [vmem:[#allocation407_spill] sm:$0xff]  ;;  %v4572_v12 = vsel %vm1873_vm4, %v4524_v3, %v16543_v16  ;;  %v4588_v55 = vsel %vm1873_vm4, %v4548_v15, %v16544_v51  ;;  %v4813_v49 = vsel %vm16545_vm7, %v4811_v19, %v4812_v61  ;;  %v16550_v32 = vld [vmem:[#allocation429_spill] sm:$0xff]  ;;  %v12158_v16 = vpop.permute.xlu0 %3786  ;;  %v16552_v19 = vld [vmem:[#allocation64_spill] sm:$0xff] }
 0x61a   : > { %v4550_v44 = vsel %vm1840_vm3, %v4500_v13, %v16539_v2  ;;  %v4789_v13 = vsel %vm16546_vm0, %v4787_v47, %v4788_v50  ;;  %v16547_v2 = vld [vmem:[#allocation402_spill] sm:$0xff]  ;;  %v16548_v10 = vld [vmem:[#allocation151_spill] sm:$0xff]  ;;  %v16551_v45 = vld [vmem:[#allocation497_spill] sm:$0xff]  ;;  %4850 = vrot.lane.b32.xlu1 %v4813_v49, %s5609_s29 }
 0x61b   : > { %v4307_v30 = vsel %vm1675_vm2, %v4271_v29, %v16547_v2  ;;  %v4255_v59 = vsel %vm14349_vm15, %v4209_v7, %v16548_v10  ;;  %v16549_v28 = vld [vmem:[#allocation299_spill] sm:$0xff]  ;;  %v4133_v3 = vsel %vm1543_vm12, %v16551_v45, %v16550_v32  ;;  %v4589_v47 = vsel %vm1873_vm4, %v4550_v44, %v16552_v19  ;;  %v16553_v61 = vld [vmem:[#allocation34_spill] sm:$0xff]  ;;  %v16554_v15 = vld [vmem:[#allocation412_spill] sm:$0xff] }
 0x61c   : > { %v4342_v27 = vsel %vm16509_vm1, %v4306_v18, %v16549_v28  ;;  %v4573_v50 = vsel %vm1873_vm4, %v4526_v62, %v16553_v61  ;;  %vm16555_vm11 = vmmov %vm16521_vm6  ;;  %v16556_v7 = vld [vmem:[#allocation414_spill] sm:$0xff]  ;;  %v16558_v10 = vld [vmem:[#allocation67_spill] sm:$0xff]  ;;  %4834 = vrot.lane.b32.xlu0 %v4789_v13, %s5609_s29  ;;  %v12179_v62 = vpop.permute.xlu1 %3799 }
 0x61d   : > { %v4390_v29 = vsel %vm16555_vm11, %v4342_v27, %v16554_v15  ;;  %v4366_v18 = vsel %vm16521_vm6, %v4326_v8, %v16556_v7  ;;  %v16557_v2 = vld [vmem:[#allocation638_spill] sm:$0xff]  ;;  %v16560_v28 = vld [vmem:[#allocation28_spill] sm:$0xff]  ;;  %v16561_v19 = vld [vmem:[#allocation391_spill] sm:$0xff] }
 0x61e   : > { %v12172_v45 = vsel %vm1543_vm12, %v16558_v10, %v16557_v2  ;;  %v16559_v32 = vld [vmem:[#allocation422_spill] sm:$0xff]  ;;  %v4449_v44 = vsel %vm1774_vm9, %v4390_v29, %v16560_v28  ;;  %v4624_v27 = vsel %vm1906_vm10, %v4588_v55, %v16561_v19  ;;  %v16562_v61 = vld [vmem:[#allocation499_spill] sm:$0xff]  ;;  %v16563_v51 = vld [vmem:[#allocation180_spill] sm:$0xff] }
 0x61f   : > { %v4417_v49 = vsel %vm1774_vm9, %v4366_v18, %v16559_v32  ;;  %v4163_v8 = vsel %vm1576_vm13, %v4105_v25, %v16562_v61  ;;  %v4291_v2 = vsel %vm1675_vm2, %v4255_v59, %v16563_v51  ;;  %v16564_v10 = vld [vmem:[#allocation550_spill] sm:$0xff]  ;;  %vm16565_vm8 = vmmov %vm16509_vm1  ;;  %v16566_v18 = vld [vmem:[#allocation508_spill] sm:$0xff]  ;;  %v12199_v25 = vpop.permute.xlu0 %3797 }
 0x620   : > { %v4343_v20 = vsel %vm16565_vm8, %v4307_v30, %v16564_v10  ;;  %v4184_v32 = vsel %vm1576_vm13, %v4133_v3, %v16566_v18  ;;  %v16567_v28 = vld [vmem:[#allocation618_spill] sm:$0xff]  ;;  %v16568_v29 = vld [vmem:[#allocation428_spill] sm:$0xff]  ;;  %vm16570_vm7 = vmmov %vm16509_vm1 }
 0x621   : > { %v4625_v13 = vsel %vm1906_vm10, %v4589_v47, %v16567_v28  ;;  %v4609_v6 = vsel %vm1906_vm10, %v4573_v50, %v16568_v29  ;;  %v16569_v36 = vld [vmem:[#allocation294_spill] sm:$0xff]  ;;  %v16572_v59 = vld [vmem:[#allocation384_spill] sm:$0xff]  ;;  %v16573_v61 = vld [vmem:[#allocation585_spill] sm:$0xff] }
 0x622   : > { %v12197_v55 = vsel %vm16570_vm7, %v4292_v63, %v16569_v36  ;;  %v16571_v51 = vld [vmem:[#allocation230_spill] sm:$0xff]  ;;  %v4608_v30 = vsel %vm1906_vm10, %v4572_v12, %v16572_v59  ;;  %v4477_v3 = vsel %vm14348_vm5, %v4417_v49, %v16573_v61  ;;  %v16574_v10 = vld [vmem:[#allocation593_spill] sm:$0xff]  ;;  %v4814_v63 = vrot.slane %v4624_v27, 2  ;;  %vm16576_vm0 = vmmov %vm16521_vm6 }
 0x623   : > { %4897 = vrot.lane.b32.xlu1 %v16571_v51, %s5610_s30  ;;  %v4501_v47 = vsel %vm14348_vm5, %v4449_v44, %v16574_v10  ;;  %v16575_v18 = vld [vmem:[#allocation13_spill] sm:$0xff]  ;;  %v4391_v28 = vsel %vm16576_vm0, %v4343_v20, %v16554_v15  ;;  %v16577_v29 = vld [vmem:[#allocation544_spill] sm:$0xff]  ;;  %v16580_v61 = vld [vmem:[#allocation214_spill] sm:$0xff]  ;;  %v12222_v44 = vpop.permute.xlu1 %3835  ;;  %v4815_v10 = vrot.slane %v4625_v13, 2  ;;  %vm16599_vm6 = vcmask 1045504  }
 0x624   : > { %v4135_v50 = vsel %vm1543_vm12, %v11681_v0, %v16575_v18  ;;  %v4327_v51 = vsel %vm16509_vm1, %v4291_v2, %v16577_v29  ;;  %v16578_v19 = vld [vmem:[#allocation525_spill] sm:$0xff]  ;;  %v16579_v59 = vld [vmem:[#allocation432_spill] sm:$0xff]  ;;  %4881 = vrot.lane.b32.xlu0 %v16580_v61, %s5610_s30  ;;  %v4791_v0 = vrot.slane %v4609_v6, 2  ;;  %v16581_v27 = vld [vmem:[#allocation427_spill] sm:$0xff]  ;;  %v12237_v6 = vpop.permute.xlu0 %3819 }
 0x625   : > { %v4234_v12 = vsel %vm1609_vm14, %v4184_v32, %v16578_v19  ;;  %v4186_v49 = vsel %vm1576_vm13, %v4135_v50, %v16579_v59  ;;  %v4451_v18 = vsel %vm1774_vm9, %v4391_v28, %v16581_v27  ;;  %v16582_v20 = vld [vmem:[#allocation437_spill] sm:$0xff]  ;;  %v16584_v19 = vld [vmem:[#allocation608_spill] sm:$0xff]  ;;  %v16587_v28 = vld [vmem:[#allocation466_spill] sm:$0xff] }
 0x626   : > { %v4236_v15 = vsel %vm1609_vm14, %v4186_v49, %v16582_v20  ;;  %v16583_v2 = vld [vmem:[#allocation601_spill] sm:$0xff]  ;;  %v4551_v32 = vsel %vm1840_vm3, %v4501_v47, %v16584_v19  ;;  %vm16588_vm11 = vmmov %vm16576_vm0  ;;  %v16589_v27 = vld [vmem:[#allocation530_spill] sm:$0xff] }
 0x627   : > { %v4527_v29 = vsel %vm1840_vm3, %v4477_v3, %v16583_v2  ;;  %v16585_v59 = vld [vmem:[#allocation29_spill] sm:$0xff]  ;;  %4740 = vrot.lane.b32.xlu1 %v16587_v28, %s5608_s28  ;;  %v4367_v49 = vsel %vm16588_vm11, %v4327_v51, %v16556_v7  ;;  %v4272_v3 = vsel %vm14349_vm15, %v4234_v12, %v16589_v27  ;;  %v16590_v20 = vld [vmem:[#allocation515_spill] sm:$0xff]  ;;  %v16591_v2 = vld [vmem:[#allocation438_spill] sm:$0xff]  ;;  %v12257_v51 = vpop.permute.xlu1 %3878  ;;  %v4790_v12 = vrot.slane %v4608_v30, 2 }
 0x628   : > { %v4503_v50 = vsel %vm14348_vm5, %v4451_v18, %v16585_v59  ;;  %v16586_v61 = vld [vmem:[#allocation425_spill] sm:$0xff]  ;;  %v16592_v19 = vld [vmem:[#allocation96_spill] sm:$0xff]  ;;  %v16593_v59 = vld [vmem:[#allocation419_spill] sm:$0xff] }
 0x629   : > { %v4162_v13 = vsel %vm1576_vm13, %v11794_v43, %v16586_v61  ;;  %v4553_v47 = vsel %vm1840_vm3, %v4503_v50, %v16590_v20  ;;  %v4213_v43 = vsel %vm1609_vm14, %v4163_v8, %v16592_v19  ;;  %v4419_v61 = vsel %vm1774_vm9, %v4367_v49, %v16593_v59  ;;  %v16594_v31 = vld [vmem:[#allocation529_spill] sm:$0xff]  ;;  %v16595_v7 = vld [vmem:[#allocation458_spill] sm:$0xff]  ;;  %v16596_v27 = vld [vmem:[#allocation367_spill] sm:$0xff] }
 0x62a   : > { %v4212_v18 = vsel %vm1609_vm14, %v4162_v13, %v16591_v2  ;;  %v4273_v28 = vsel %vm14349_vm15, %v4236_v15, %v16594_v31  ;;  %4724 = vrot.lane.b32.xlu0 %v16595_v7, %s5608_s28  ;;  %v4574_v50 = vsel %vm1873_vm4, %v4527_v29, %v16596_v27  ;;  %v16597_v20 = vld [vmem:[#allocation375_spill] sm:$0xff]  ;;  %v4816_v49 = vsel %vm16599_vm6, %v4814_v63, %v4815_v10  ;;  %v16602_v7 = vld [vmem:[#allocation148_spill] sm:$0xff]  ;;  %v16603_v36 = vld [vmem:[#allocation537_spill] sm:$0xff]  ;;  %v12274_v27 = vpop.permute.xlu0 %3876 }
 0x62b   : > { %v4590_v13 = vsel %vm1873_vm4, %v4551_v32, %v16597_v20  ;;  %v16598_v2 = vld [vmem:[#allocation431_spill] sm:$0xff]  ;;  %v4257_v30 = vsel %vm14349_vm15, %v4212_v18, %v16602_v7  ;;  %v4308_v29 = vsel %vm1675_vm2, %v4272_v3, %v16603_v36  ;;  %4852 = vrot.lane.b32.xlu1 %v4816_v49, %s5609_s29  ;;  %v16604_v32 = vld [vmem:[#allocation168_spill] sm:$0xff]  ;;  %vm16608_vm8 = vmmov %vm16599_vm6  ;;  %v12289_v3 = vpop.permute.xlu1 %3910 }
 0x62c   : > { %v4479_v8 = vsel %vm14348_vm5, %v4419_v61, %v16598_v2  ;;  %v16600_v19 = vld [vmem:[#allocation63_spill] sm:$0xff]  ;;  %v4258_v61 = vsel %vm14349_vm15, %v4213_v43, %v16604_v32  ;;  %v16605_v63 = vld [vmem:[#allocation536_spill] sm:$0xff]  ;;  %v16611_v49 = vld [vmem:[#allocation165_spill] sm:$0xff] }
 0x62d   : > { %v4591_v31 = vsel %vm1873_vm4, %v4553_v47, %v16600_v19  ;;  %v16601_v15 = vld [vmem:[#allocation435_spill] sm:$0xff]  ;;  %v4309_v10 = vsel %vm1675_vm2, %v4273_v28, %v16605_v63  ;;  %v16606_v47 = vld [vmem:[#allocation472_spill] sm:$0xff]  ;;  %v4792_v19 = vsel %vm16608_vm8, %v4790_v12, %v4791_v0  ;;  %v4626_v43 = vsel %vm1906_vm10, %v4590_v13, %v16611_v49  ;;  %v16613_v63 = vld [vmem:[#allocation322_spill] sm:$0xff] }
 0x62e   : > { %v4529_v59 = vsel %vm1840_vm3, %v4479_v8, %v16601_v15  ;;  %v16607_v2 = vld [vmem:[#allocation487_spill] sm:$0xff]  ;;  %v16609_v18 = vld [vmem:[#allocation328_spill] sm:$0xff]  ;;  %v16610_v15 = vld [vmem:[#allocation474_spill] sm:$0xff]  ;;  %4836 = vrot.lane.b32.xlu0 %v4792_v19, %s5609_s29  ;;  %v4864_v20 = vrot.slane %v16613_v63, 3  ;;  %v12310_v26 = vpop.permute.xlu0 %3908 }
 0x62f   : > { %v4137_v8 = vsel %vm1543_vm12, %v16607_v2, %v16606_v47  ;;  %v4109_v36 = vsel %vm1543_vm12, %v16610_v15, %v16609_v18  ;;  %v16612_v7 = vld [vmem:[#allocation383_spill] sm:$0xff]  ;;  %v16614_v32 = vld [vmem:[#allocation617_spill] sm:$0xff]  ;;  %vm16618_vm7 = vmmov %vm16509_vm1  ;;  %16624 = vst [vmem:[#allocation493_spill] sm:$0xff] %v12310_v26 }
 0x630   : > { %v4610_v28 = vsel %vm1906_vm10, %v4574_v50, %v16612_v7  ;;  %v4627_v47 = vsel %vm1906_vm10, %v4591_v31, %v16614_v32  ;;  %v16615_v0 = vld [vmem:[#allocation33_spill] sm:$0xff]  ;;  %v16619_v14 = vld [vmem:[#allocation552_spill] sm:$0xff]  ;;  %vm16620_vm0 = vmmov %vm16509_vm1 }
 0x631   : > { %v4575_v12 = vsel %vm1873_vm4, %v4529_v59, %v16615_v0  ;;  %v16616_v2 = vld [vmem:[#allocation533_spill] sm:$0xff]  ;;  %v4345_v13 = vsel %vm16620_vm0, %v4309_v10, %v16619_v14  ;;  %vm16622_vm1 = vmmov %vm16588_vm11  ;;  %v16623_v7 = vld [vmem:[#allocation507_spill] sm:$0xff]  ;;  %v4817_v10 = vrot.slane %v4626_v43, 2 }
 0x632   : > { %v4293_v18 = vsel %vm1675_vm2, %v4257_v30, %v16616_v2  ;;  %v16617_v19 = vld [vmem:[#allocation553_spill] sm:$0xff]  ;;  %v4187_v63 = vsel %vm1576_vm13, %v4137_v8, %v16623_v7  ;;  %v16626_v59 = vld [vmem:[#allocation60_spill] sm:$0xff]  ;;  %v16627_v30 = vld [vmem:[#allocation462_spill] sm:$0xff] }
 0x633   : > { %v4344_v15 = vsel %vm16618_vm7, %v4308_v29, %v16617_v19  ;;  %v16621_v49 = vld [vmem:[#allocation441_spill] sm:$0xff]  ;;  %v4865_v32 = vrot.slane %v16626_v59, 3  ;;  %v16628_v29 = vld [vmem:[#allocation468_spill] sm:$0xff]  ;;  %v4793_v19 = vrot.slane %v4610_v28, 2  ;;  %v16631_v7 = vld [vmem:[#allocation547_spill] sm:$0xff] }
 0x634   : > { %v4393_v50 = vsel %vm16622_vm1, %v4344_v15, %v16621_v49  ;;  %v16625_v31 = vld [vmem:[#allocation305_spill] sm:$0xff]  ;;  %v4818_v15 = vrot.slane %v4627_v47, 2  ;;  %vm16632_vm11 = vmmov %vm16620_vm0  ;;  %v16633_v26 = vld [vmem:[#allocation476_spill] sm:$0xff]  ;;  %vm16658_vm0 = vcmask 1045504  }
 0x635   : > { %4899 = vrot.lane.b32.xlu1 %v16625_v31, %s5610_s30  ;;  %v4453_v0 = vsel %vm1774_vm9, %v4393_v50, %v16627_v30  ;;  %v16629_v2 = vld [vmem:[#allocation489_spill] sm:$0xff]  ;;  %v4329_v35 = vsel %vm16632_vm11, %v4293_v18, %v16631_v7  ;;  %v16634_v59 = vld [vmem:[#allocation220_spill] sm:$0xff]  ;;  %v12328_v50 = vpop.permute.xlu1 %3612  ;;  %vm16636_vm6 = vmmov %vm16622_vm1 }
 0x636   : > { %v4139_v14 = vsel %vm1543_vm12, %v16629_v2, %v16628_v29  ;;  %v16630_v4 = vld [vmem:[#allocation613_spill] sm:$0xff]  ;;  %4883 = vrot.lane.b32.xlu0 %v16634_v59, %s5610_s30  ;;  %16635 = vst [vmem:[#allocation494_spill] sm:$0xff] %v12328_v50  ;;  %v4394_v30 = vsel %vm16636_vm6, %v4345_v13, %v16621_v49  ;;  %v16637_v43 = vld [vmem:[#allocation442_spill] sm:$0xff]  ;;  %vm16638_vm8 = vmmov %vm16622_vm1  ;;  %vm16669_vm6 = vcmask 72704  }
 0x637   : > { %v4611_v8 = vsel %vm1906_vm10, %v4575_v12, %v16630_v4  ;;  %v4189_v31 = vsel %vm1576_vm13, %v4139_v14, %v16633_v26  ;;  %v4369_v28 = vsel %vm16638_vm8, %v12197_v55, %v16637_v43  ;;  %v16639_v47 = vld [vmem:[#allocation126_spill] sm:$0xff]  ;;  %v16641_v29 = vld [vmem:[#allocation445_spill] sm:$0xff]  ;;  %v16643_v7 = vld [vmem:[#allocation596_spill] sm:$0xff]  ;;  %v12348_v55 = vpop.permute.xlu0 %3610  ;;  %vm16678_vm8 = vcmask 1046528  }
 0x638   : > { %v4237_v4 = vsel %vm1609_vm14, %v4187_v63, %v16639_v47  ;;  %v16640_v12 = vld [vmem:[#allocation510_spill] sm:$0xff]  ;;  %v4421_v26 = vsel %vm1774_vm9, %v4369_v28, %v16641_v29  ;;  %v4504_v59 = vsel %vm14348_vm5, %v4453_v0, %v16643_v7  ;;  %v16644_v49 = vld [vmem:[#allocation488_spill] sm:$0xff]  ;;  %16645 = vst [vmem:[#allocation496_spill] sm:$0xff] %v12348_v55  ;;  %v4794_v47 = vrot.slane %v4611_v8, 2  ;;  %vm16647_vm7 = vmmov %vm16622_vm1 }
 0x639   : > { %v4239_v18 = vsel %vm1609_vm14, %v4189_v31, %v16640_v12  ;;  %v16642_v2 = vld [vmem:[#allocation450_spill] sm:$0xff]  ;;  %v4165_v13 = vsel %vm1576_vm13, %v12172_v45, %v16644_v49  ;;  %v16646_v63 = vld [vmem:[#allocation464_spill] sm:$0xff]  ;;  %v4370_v31 = vsel %vm16647_vm7, %v4329_v35, %v16637_v43  ;;  %v12368_v43 = vpop.permute.xlu1 %3948  ;;  %vm16662_vm1 = vcmask 1044480   ;;  %vm16666_vm11 = vmmov %vm16658_vm0 }
 0x63a   : > { %v4455_v14 = vsel %vm1774_vm9, %v4394_v30, %v16642_v2  ;;  %4742 = vrot.lane.b32.xlu1 %v16646_v63, %s5608_s28  ;;  %v16648_v28 = vld [vmem:[#allocation478_spill] sm:$0xff]  ;;  %v16649_v30 = vld [vmem:[#allocation444_spill] sm:$0xff]  ;;  %v16653_v63 = vld [vmem:[#allocation531_spill] sm:$0xff]  ;;  %vm16681_vm7 = vcmask 220160  }
 0x63b   : > { %v4506_v12 = vsel %vm14348_vm5, %v4455_v14, %v16648_v28  ;;  %v4215_v29 = vsel %vm1609_vm14, %v4165_v13, %v16649_v30  ;;  %v16650_v0 = vld [vmem:[#allocation140_spill] sm:$0xff]  ;;  %v16652_v49 = vld [vmem:[#allocation490_spill] sm:$0xff]  ;;  %v4275_v8 = vsel %vm14349_vm15, %v4239_v18, %v16653_v63  ;;  %v16656_v28 = vld [vmem:[#allocation75_spill] sm:$0xff]  ;;  %v12383_v50 = vpop.permute.xlu0 %3932 }
 0x63c   : > { %v4423_v2 = vsel %vm1774_vm9, %v4370_v31, %v16650_v0  ;;  %v16651_v7 = vld [vmem:[#allocation532_spill] sm:$0xff]  ;;  %v4556_v55 = vsel %vm1840_vm3, %v4506_v12, %v16652_v49  ;;  %v16654_v35 = vld [vmem:[#allocation454_spill] sm:$0xff]  ;;  %v4554_v31 = vsel %vm1840_vm3, %v4504_v59, %v16656_v28  ;;  %v16657_v30 = vld [vmem:[#allocation483_spill] sm:$0xff]  ;;  %v4819_v0 = vsel %vm16658_vm0, %v4817_v10, %v4818_v15 }
 0x63d   : > { %v4274_v45 = vsel %vm14349_vm15, %v4237_v4, %v16651_v7  ;;  %4726 = vrot.lane.b32.xlu0 %v16654_v35, %s5608_s28  ;;  %v16655_v14 = vld [vmem:[#allocation588_spill] sm:$0xff]  ;;  %v4482_v4 = vsel %vm14348_vm5, %v4423_v2, %v16657_v30  ;;  %v16659_v12 = vld [vmem:[#allocation491_spill] sm:$0xff]  ;;  %v16660_v18 = vld [vmem:[#allocation157_spill] sm:$0xff] }
 0x63e   : > { %v4480_v13 = vsel %vm14348_vm5, %v4421_v26, %v16655_v14  ;;  %v4532_v7 = vsel %vm1840_vm3, %v4482_v4, %v16659_v12  ;;  %v4259_v49 = vsel %vm14349_vm15, %v4215_v29, %v16660_v18  ;;  %v16661_v63 = vld [vmem:[#allocation192_spill] sm:$0xff]  ;;  %4854 = vrot.lane.b32.xlu1 %v4819_v0, %s5609_s29  ;;  %v4866_v26 = vsel %vm16662_vm1, %v4864_v20, %v4865_v32  ;;  %v16664_v14 = vld [vmem:[#allocation538_spill] sm:$0xff]  ;;  %v16665_v15 = vld [vmem:[#allocation539_spill] sm:$0xff] }
 0x63f   : > { %v4294_v35 = vsel %vm1675_vm2, %v4258_v61, %v16661_v63  ;;  %v16663_v59 = vld [vmem:[#allocation76_spill] sm:$0xff]  ;;  %v4311_v10 = vsel %vm1675_vm2, %v4275_v8, %v16664_v14  ;;  %v4310_v28 = vsel %vm1675_vm2, %v4274_v45, %v16665_v15  ;;  %v4795_v29 = vsel %vm16666_vm11, %v4793_v19, %v4794_v47  ;;  %v16668_v4 = vld [vmem:[#allocation241_spill] sm:$0xff]  ;;  %v16670_v12 = vld [vmem:[#allocation502_spill] sm:$0xff]  ;;  %v12404_v8 = vpop.permute.xlu1 %3663 }
 0x640   : > { %v4593_v2 = vsel %vm1873_vm4, %v4556_v55, %v16663_v59  ;;  %v16667_v30 = vld [vmem:[#allocation628_spill] sm:$0xff]  ;;  %v4166_v0 = vsel %vm1576_vm13, %v4109_v36, %v16670_v12  ;;  %v16671_v18 = vld [vmem:[#allocation603_spill] sm:$0xff]  ;;  %v16672_v32 = vld [vmem:[#allocation77_spill] sm:$0xff]  ;;  %v16676_v36 = vrot.slane %v11445_v37, 1  ;;  %vm16689_vm11 = vcmask 244736  }
 0x641   : > { %v4056_v61 = vsel %vm16669_vm6, %v16668_v4, %v16667_v30  ;;  %v4530_v20 = vsel %vm1840_vm3, %v4480_v13, %v16671_v18  ;;  %v4592_v55 = vsel %vm1873_vm4, %v4554_v31, %v16672_v32  ;;  %4838 = vrot.lane.b32.xlu0 %v4795_v29, %s5609_s29  ;;  %v16673_v45 = vld [vmem:[#allocation74_spill] sm:$0xff]  ;;  %v16674_v47 = vld [vmem:[#allocation52_spill] sm:$0xff]  ;;  %v16675_v14 = vld [vmem:[#allocation179_spill] sm:$0xff]  ;;  %v16677_v13 = vrot.slane %v11291_v39, 1 }
 0x642   : > { %v4111_v19 = vsel %vm1543_vm12, %v4056_v61, %v16673_v45  ;;  %v4577_v59 = vsel %vm1873_vm4, %v4532_v7, %v16674_v47  ;;  %v4295_v15 = vsel %vm1675_vm2, %v4259_v49, %v16675_v14  ;;  %v16679_v31 = vld [vmem:[#allocation153_spill] sm:$0xff]  ;;  %v16680_v4 = vld [vmem:[#allocation554_spill] sm:$0xff]  ;;  %v16682_v18 = vld [vmem:[#allocation555_spill] sm:$0xff]  ;;  %v12425_v45 = vpop.permute.xlu0 %3950  ;;  %4901 = vrot.lane.b32.xlu1 %v4866_v26, %s5610_s30 }
 0x643   : > { %v4710_v30 = vsel %vm16678_vm8, %v16677_v13, %v16676_v36  ;;  %v4629_v29 = vsel %vm1906_vm10, %v4593_v2, %v16679_v31  ;;  %v4347_v12 = vsel %vm16681_vm7, %v4311_v10, %v16680_v4  ;;  %vm16683_vm0 = vmmov %vm16681_vm7  ;;  %v16684_v32 = vld [vmem:[#allocation293_spill] sm:$0xff]  ;;  %v16686_v37 = vld [vmem:[#allocation100_spill] sm:$0xff] }
 0x644   : > { %v4346_v61 = vsel %vm16683_vm0, %v4310_v28, %v16682_v18  ;;  %vm16685_vm1 = vmmov %vm16683_vm0  ;;  %v4216_v39 = vsel %vm1609_vm14, %v4166_v0, %v16686_v37  ;;  %v16687_v49 = vld [vmem:[#allocation371_spill] sm:$0xff]  ;;  %v16688_v2 = vld [vmem:[#allocation492_spill] sm:$0xff]  ;;  %v12446_v18 = vpop.permute.xlu1 %3683 }
 0x645   : > { %v4330_v7 = vsel %vm16685_vm1, %v4294_v35, %v16684_v32  ;;  %v4576_v47 = vsel %vm1873_vm4, %v4530_v20, %v16687_v49  ;;  %v4396_v14 = vsel %vm16689_vm11, %v4346_v61, %v16688_v2  ;;  %v16690_v10 = vld [vmem:[#allocation129_spill] sm:$0xff]  ;;  %v16691_v28 = vld [vmem:[#allocation88_spill] sm:$0xff]  ;;  %v16692_v35 = vld [vmem:[#allocation546_spill] sm:$0xff]  ;;  %v4821_v61 = vrot.slane %v4629_v29, 2 }
 0x646   : > { %v4628_v36 = vsel %vm1906_vm10, %v4592_v55, %v16690_v10  ;;  %v4613_v13 = vsel %vm1906_vm10, %v4577_v59, %v16691_v28  ;;  %vm16693_vm6 = vmmov %vm16683_vm0  ;;  %v4457_v0 = vsel %vm1774_vm9, %v4396_v14, %v11847_v34  ;;  %v16695_v20 = vld [vmem:[#allocation218_spill] sm:$0xff]  ;;  %v16697_v37 = vld [vmem:[#allocation421_spill] sm:$0xff]  ;;  %4744 = vrot.lane.b32.xlu1 %v4710_v30, %s5608_s28  ;;  %vm16704_vm1 = vcmask 1045504  }
 0x647   : > { %v4331_v4 = vsel %vm16693_vm6, %v4295_v15, %v16692_v35  ;;  %vm16694_vm8 = vmmov %vm16689_vm11  ;;  %4885 = vrot.lane.b32.xlu0 %v16695_v20, %s5610_s30  ;;  %v4867_v15 = vrot.slane %v16697_v37, 3  ;;  %v12455_v35 = vpop.permute.xlu0 %3681  ;;  %v4820_v34 = vrot.slane %v4628_v36, 2  ;;  %v16698_v14 = vld [vmem:[#allocation386_spill] sm:$0xff]  ;;  %v16699_v29 = vld [vmem:[#allocation471_spill] sm:$0xff]  ;;  %v4797_v63 = vrot.slane %v4613_v13, 2 }
 0x648   : > { %v4372_v26 = vsel %vm16694_vm8, %v4330_v7, %v11758_v38  ;;  %vm16696_vm7 = vmmov %vm16694_vm8  ;;  %v4612_v20 = vsel %vm1906_vm10, %v4576_v47, %v16698_v14  ;;  %v4868_v32 = vrot.slane %v16699_v29, 3  ;;  %v16702_v30 = vld [vmem:[#allocation587_spill] sm:$0xff]  ;;  %v4168_v47 = vsel %vm1576_vm13, %v4111_v19, %v11965_v56  ;;  %v16706_v19 = vld [vmem:[#allocation166_spill] sm:$0xff] }
 0x649   : > { %v4397_v55 = vsel %vm16696_vm7, %v4347_v12, %v16688_v2  ;;  %v4425_v59 = vsel %vm1774_vm9, %v4372_v26, %v11807_v48  ;;  %vm16700_vm0 = vmmov %vm16696_vm7  ;;  %v16701_v48 = vld [vmem:[#allocation595_spill] sm:$0xff]  ;;  %vm16709_vm11 = vcmask 1046528   ;;  %vm16713_vm8 = vcmask 1044480  }
 0x64a   : > { %v4459_v7 = vsel %vm1774_vm9, %v4397_v55, %v11829_v24  ;;  %v4373_v12 = vsel %vm16700_vm0, %v4331_v4, %v11758_v38  ;;  %v4507_v2 = vsel %vm14348_vm5, %v4457_v0, %v16701_v48  ;;  %v4483_v36 = vsel %vm14348_vm5, %v4425_v59, %v16702_v30  ;;  %v16703_v38 = vld [vmem:[#allocation460_spill] sm:$0xff]  ;;  %v12477_v4 = vpop.permute.xlu1 %3991  ;;  %v16705_v59 = vld [vmem:[#allocation23_spill] sm:$0xff]  ;;  %vm16712_vm6 = vmmov %vm16704_vm1 }
 0x64b   : > { %v4509_v24 = vsel %vm14348_vm5, %v4459_v7, %v11914_v9  ;;  %v4427_v26 = vsel %vm1774_vm9, %v4373_v12, %v11784_v1  ;;  %4728 = vrot.lane.b32.xlu0 %v16703_v38, %s5608_s28  ;;  %v4218_v1 = vsel %vm1609_vm14, %v4168_v47, %v12026_v46  ;;  %v4822_v0 = vsel %vm16704_vm1, %v4820_v34, %v4821_v61  ;;  %v3976_v12 = vpop.permute.xlu0 %3975  ;;  %v16710_v61 = vld [vmem:[#allocation606_spill] sm:$0xff]  ;;  %v16717_v47 = vld [vmem:[#allocation155_spill] sm:$0xff]  ;;  %vm16720_vm0 = vmmov %vm16709_vm11 }
 0x64c   : > { %v4559_v13 = vsel %vm1840_vm3, %v4509_v24, %v12044_v41  ;;  %v4485_v9 = vsel %vm14348_vm5, %v4427_v26, %v11924_v17  ;;  %v4796_v55 = vrot.slane %v4612_v20, 2  ;;  %v4557_v56 = vsel %vm1840_vm3, %v4507_v2, %v16705_v59  ;;  %4856 = vrot.lane.b32.xlu1 %v4822_v0, %s5609_s29  ;;  %v16711_v20 = vld [vmem:[#allocation70_spill] sm:$0xff]  ;;  %v16724_v0 = vld [vmem:[#allocation51_spill] sm:$0xff] }
 0x64d   : > { %v4535_v41 = vsel %vm1840_vm3, %v4485_v9, %v11987_v57  ;;  %v4260_v7 = vsel %vm14349_vm15, %v4216_v39, %v16706_v19  ;;  %v16707_v17 = vrot.slane %v11386_v33, 1  ;;  %v16708_v24 = vrot.slane %v11221_v60, 1  ;;  %v16714_v39 = vld [vmem:[#allocation410_spill] sm:$0xff]  ;;  %v16715_v33 = vld [vmem:[#allocation459_spill] sm:$0xff] }
 0x64e   : > { %v4533_v34 = vsel %vm1840_vm3, %v4483_v36, %v16710_v61  ;;  %v4595_v2 = vsel %vm1873_vm4, %v4559_v13, %v16711_v20  ;;  %v4798_v57 = vsel %vm16712_vm6, %v4796_v55, %v4797_v63  ;;  %v4869_v26 = vsel %vm16713_vm8, %v4867_v15, %v4868_v32  ;;  %v12513_v36 = vpop.permute.xlu1 %3751  ;;  %v16721_v13 = vld [vmem:[#allocation430_spill] sm:$0xff]  ;;  %v16723_v9 = vld [vmem:[#allocation71_spill] sm:$0xff]  ;;  %v16725_v55 = vld [vmem:[#allocation280_spill] sm:$0xff] }
 0x64f   : > { %v4689_v46 = vsel %vm16709_vm11, %v16708_v24, %v16707_v17  ;;  %v12505_v30 = vsel %vm1906_vm10, %v16714_v39, %v16691_v28  ;;  %vm16716_vm7 = vcmask 23552   ;;  %v4261_v38 = vsel %vm14349_vm15, %v4218_v1, %v16717_v47  ;;  %4840 = vrot.lane.b32.xlu0 %v4798_v57, %s5609_s29  ;;  %v16726_v24 = vld [vmem:[#allocation81_spill] sm:$0xff]  ;;  %v16728_v57 = vld [vmem:[#allocation82_spill] sm:$0xff]  ;;  %v16730_v39 = vld [vmem:[#allocation123_spill] sm:$0xff] }
 0x650   : > { %v4023_v60 = vsel %vm16716_vm7, %v16699_v29, %v16715_v33  ;;  %v16718_v63 = vrot.slane %v11425_v52, 1  ;;  %v16719_v32 = vrot.slane %v11298_v53, 1  ;;  %vm16722_vm1 = vmmov %vm16716_vm7  ;;  %v4594_v29 = vsel %vm1873_vm4, %v4557_v56, %v16723_v9  ;;  %v16731_v47 = vld [vmem:[#allocation619_spill] sm:$0xff]  ;;  %4903 = vrot.lane.b32.xlu1 %v4869_v26, %s5610_s30  ;;  %v16732_v56 = vld [vmem:[#allocation446_spill] sm:$0xff] }
 0x651   : > { %v4021_v28 = vsel %vm16722_vm1, %v16697_v37, %v16721_v13  ;;  %v4579_v1 = vsel %vm1873_vm4, %v4535_v41, %v16724_v0  ;;  %v4296_v17 = vsel %vm1675_vm2, %v4260_v7, %v16725_v55  ;;  %vm16727_vm11 = vcmask 48128   ;;  %v16733_v7 = vld [vmem:[#allocation631_spill] sm:$0xff]  ;;  %v16736_v13 = vld [vmem:[#allocation534_spill] sm:$0xff] }
 0x652   : > { %v4713_v15 = vsel %vm16720_vm0, %v16719_v32, %v16718_v63  ;;  %v4031_v52 = vsel %vm16727_vm11, %v4023_v60, %v16726_v24  ;;  %vm16729_vm6 = vmmov %vm16727_vm11  ;;  %v4578_v33 = vsel %vm1873_vm4, %v4533_v34, %v16730_v39  ;;  %v4631_v37 = vsel %vm1906_vm10, %v4595_v2, %v16731_v47  ;;  %v12537_v63 = vpop.permute.xlu0 %3993  ;;  %v16738_v24 = vld [vmem:[#allocation296_spill] sm:$0xff]  ;;  %v16742_v55 = vld [vmem:[#allocation423_spill] sm:$0xff] }
 0x653   : > { %v4029_v53 = vsel %vm16729_vm6, %v4021_v28, %v16728_v57  ;;  %v12543_v41 = vsel %vm1906_vm10, %v16732_v56, %v16679_v31  ;;  %vm16734_vm8 = vcmask 72704   ;;  %v4297_v34 = vsel %vm1675_vm2, %v4261_v38, %v16736_v13  ;;  %v16737_v28 = vld [vmem:[#allocation87_spill] sm:$0xff]  ;;  %v16740_v57 = vld [vmem:[#allocation224_spill] sm:$0xff]  ;;  %v12557_v31 = vpop.permute.xlu1 %3771  ;;  %v16745_v13 = vld [vmem:[#allocation569_spill] sm:$0xff] }
 0x654   : > { %v4079_v60 = vsel %vm16734_vm8, %v4029_v53, %v16733_v7  ;;  %vm16735_vm7 = vmmov %vm16734_vm8  ;;  %v4615_v2 = vsel %vm1906_vm10, %v4579_v1, %v16737_v28  ;;  %vm16739_vm0 = vcmask 220160   ;;  %4887 = vrot.lane.b32.xlu0 %v16740_v57, %s5610_s30  ;;  %v16741_v56 = vld [vmem:[#allocation620_spill] sm:$0xff]  ;;  %v4870_v19 = vrot.slane %v16742_v55, 3  ;;  %4746 = vrot.lane.b32.xlu1 %v4713_v15, %s5608_s28 }
 0x655   : > { %v4080_v32 = vsel %vm16735_vm7, %v4031_v52, %v16733_v7  ;;  %v4332_v26 = vsel %vm16739_vm0, %v4296_v17, %v16738_v24  ;;  %v4630_v53 = vsel %vm1906_vm10, %v4594_v29, %v16741_v56  ;;  %v4824_v52 = vrot.slane %v4631_v37, 2  ;;  %v16744_v7 = vld [vmem:[#allocation385_spill] sm:$0xff]  ;;  %v16746_v24 = vld [vmem:[#allocation548_spill] sm:$0xff]  ;;  %vm16747_vm11 = vmmov %vm16739_vm0 }
 0x656   : > { %vm16743_vm1 = vcmask 244736   ;;  %v4614_v1 = vsel %vm1906_vm10, %v4578_v33, %v16744_v7  ;;  %v4871_v14 = vrot.slane %v16745_v13, 3  ;;  %v4143_v17 = vsel %vm1543_vm12, %v4080_v32, %v11865_v5  ;;  %v12575_v49 = vpop.permute.xlu0 %3769  ;;  %vm16752_vm7 = vmmov %vm16739_vm0 }
 0x657   : > { %v4375_v38 = vsel %vm16743_vm1, %v4332_v26, %v12237_v6  ;;  %v4141_v57 = vsel %vm1543_vm12, %v4079_v60, %v11885_v42  ;;  %v4333_v29 = vsel %vm16747_vm11, %v4297_v34, %v16746_v24  ;;  %v4800_v26 = vrot.slane %v4615_v2, 2  ;;  %vm16748_vm6 = vmmov %vm16743_vm1  ;;  %v4002_v15 = vpop.permute.xlu1 %4001  ;;  %v16749_v2 = vld [vmem:[#allocation590_spill] sm:$0xff] }
 0x658   : > { %v4429_v37 = vsel %vm1774_vm9, %v4375_v38, %v12274_v27  ;;  %v4193_v33 = vsel %vm1576_vm13, %v4143_v17, %v12001_v23  ;;  %v4376_v5 = vsel %vm16748_vm6, %v4333_v29, %v12237_v6  ;;  %v4823_v32 = vrot.slane %v4630_v53, 2  ;;  %4730 = vrot.lane.b32.xlu0 %v4689_v46, %s5608_s28  ;;  %vm16755_vm11 = vmmov %vm16748_vm6  ;;  %v16756_v17 = vld [vmem:[#allocation607_spill] sm:$0xff] }
 0x659   : > { %v4191_v42 = vsel %vm1576_vm13, %v4141_v57, %v11947_v21  ;;  %v4243_v60 = vsel %vm1609_vm14, %v4193_v33, %v12063_v54  ;;  %v4431_v27 = vsel %vm1774_vm9, %v4376_v5, %v12257_v51  ;;  %v4799_v34 = vrot.slane %v4614_v1, 2  ;;  %v16751_v54 = vld [vmem:[#allocation449_spill] sm:$0xff]  ;;  %vm16757_vm6 = vmmov %vm16752_vm7 }
 0x65a   : > { %v4279_v23 = vsel %vm14349_vm15, %v4243_v60, %v12103_v58  ;;  %v4486_v6 = vsel %vm14348_vm5, %v4429_v37, %v16749_v2  ;;  %v4488_v24 = vsel %vm14348_vm5, %v4431_v27, %v12383_v50  ;;  %vm16750_vm8 = vcmask 1045504   ;;  %v4000_v38 = vpop.permute.xlu0 %3999  ;;  %v16763_v27 = vld [vmem:[#allocation493_spill] sm:$0xff] }
 0x65b   : > { %v4825_v21 = vsel %vm16750_vm8, %v4823_v32, %v4824_v52  ;;  %v3386_v53 = vsel %vm1906_vm10, %v16751_v54, %v16690_v10  ;;  %v4241_v51 = vsel %vm1609_vm14, %v4191_v42, %v12082_v11  ;;  %v4315_v46 = vsel %vm1675_vm2, %v4279_v23, %v12141_v22  ;;  %vm16753_vm0 = vmmov %vm16750_vm8  ;;  %v16762_v42 = vld [vmem:[#allocation373_spill] sm:$0xff]  ;;  %v16764_v23 = vld [vmem:[#allocation614_spill] sm:$0xff] }
 0x65c   : > { %v4538_v58 = vsel %vm1840_vm3, %v4488_v24, %v3976_v12  ;;  %4858 = vrot.lane.b32.xlu1 %v4825_v21, %s5609_s29  ;;  %v4277_v50 = vsel %vm14349_vm15, %v4241_v51, %v12118_v40  ;;  %v4351_v52 = vsel %vm16752_vm7, %v4315_v46, %v12179_v62  ;;  %v4801_v1 = vsel %vm16753_vm0, %v4799_v34, %v4800_v26  ;;  %v12619_v40 = vpop.permute.xlu1 %3779  ;;  %v16760_v26 = vld [vmem:[#allocation418_spill] sm:$0xff]  ;;  %vm16761_vm8 = vmmov %vm16755_vm11  ;;  %v16767_v54 = vld [vmem:[#allocation627_spill] sm:$0xff] }
 0x65d   : > { %vm16754_vm1 = vcmask 1044480   ;;  %v4715_v11 = vrot.slane %v12543_v41, 1  ;;  %v4313_v22 = vsel %vm1675_vm2, %v4277_v50, %v12158_v16  ;;  %v4400_v12 = vsel %vm16755_vm11, %v4351_v52, %v12222_v44  ;;  %4842 = vrot.lane.b32.xlu0 %v4801_v1, %s5609_s29  ;;  %v16759_v41 = vld [vmem:[#allocation416_spill] sm:$0xff]  ;;  %v16766_v24 = vld [vmem:[#allocation434_spill] sm:$0xff] }
 0x65e   : > { %v4872_v10 = vsel %vm16754_vm1, %v4870_v19, %v4871_v14  ;;  %v4536_v57 = vsel %vm1840_vm3, %v4486_v6, %v16756_v17  ;;  %v4714_v62 = vrot.slane %v3386_v53, 1  ;;  %v4349_v29 = vsel %vm16757_vm6, %v4313_v22, %v12199_v25  ;;  %v16758_v19 = vld [vmem:[#allocation53_spill] sm:$0xff]  ;;  %v12637_v32 = vpop.permute.xlu0 %3777  ;;  %v16765_v6 = vld [vmem:[#allocation222_spill] sm:$0xff] }
 0x65f   : > { %v4463_v14 = vsel %vm1774_vm9, %v4400_v12, %v12289_v3  ;;  %v4581_v16 = vsel %vm1873_vm4, %v4538_v58, %v16758_v19  ;;  %v3228_v37 = vsel %vm14348_vm5, %v16759_v41, %v16701_v48  ;;  %v3227_v33 = vsel %vm14348_vm5, %v16760_v26, %v16701_v48  ;;  %v16768_v53 = vld [vmem:[#allocation470_spill] sm:$0xff]  ;;  %v16771_v58 = vld [vmem:[#allocation640_spill] sm:$0xff] }
 0x660   : > { %v4399_v5 = vsel %vm16761_vm8, %v4349_v29, %v12222_v44  ;;  %v4513_v25 = vsel %vm14348_vm5, %v4463_v14, %v12425_v45  ;;  %4905 = vrot.lane.b32.xlu1 %v4872_v10, %s5610_s30  ;;  %v4691_v3 = vrot.slane %v12505_v30, 1  ;;  %v4580_v60 = vsel %vm1873_vm4, %v4536_v57, %v16762_v42  ;;  %v4015_v30 = vpop.permute.xlu1 %4014  ;;  %v16772_v10 = vld [vmem:[#allocation388_spill] sm:$0xff]  ;;  %v16778_v26 = vld [vmem:[#allocation406_spill] sm:$0xff] }
 0x661   : > { %v4461_v34 = vsel %vm1774_vm9, %v4399_v5, %v16763_v27  ;;  %v4563_v48 = vsel %vm1840_vm3, %v4513_v25, %v12537_v63  ;;  %v4617_v45 = vsel %vm1906_vm10, %v4581_v16, %v16764_v23  ;;  %4889 = vrot.lane.b32.xlu0 %v16765_v6, %s5610_s30  ;;  %v4690_v21 = vrot.slane %v16766_v24, 1  ;;  %v16773_v12 = vld [vmem:[#allocation12_spill] sm:$0xff]  ;;  %v16777_v16 = vld [vmem:[#allocation609_spill] sm:$0xff]  ;;  %v16779_v25 = vld [vmem:[#allocation22_spill] sm:$0xff] }
 0x662   : > { %v4511_v44 = vsel %vm14348_vm5, %v4461_v34, %v12368_v43  ;;  %v4599_v2 = vsel %vm1873_vm4, %v4563_v48, %v4002_v15  ;;  %vm16769_vm7 = vcmask 72704   ;;  %vm16770_vm0 = vcmask 1046528   ;;  %v4013_v1 = vpop.permute.xlu0 %4012  ;;  %v16776_v29 = vld [vmem:[#allocation424_spill] sm:$0xff] }
 0x663   : > { %v4058_v51 = vsel %vm16769_vm7, %v16768_v53, %v16767_v54  ;;  %v4561_v63 = vsel %vm1840_vm3, %v4511_v44, %v12477_v4  ;;  %v4635_v43 = vsel %vm1906_vm10, %v4599_v2, %v4015_v30  ;;  %v4716_v46 = vsel %vm16770_vm0, %v4714_v62, %v4715_v11  ;;  %vm16774_vm1 = vmmov %vm16770_vm0  ;;  %v16775_v62 = vld [vmem:[#allocation604_spill] sm:$0xff] }
 0x664   : > { %v4113_v15 = vsel %vm1543_vm12, %v4058_v51, %v16771_v58  ;;  %v4597_v50 = vsel %vm1873_vm4, %v4561_v63, %v4000_v38  ;;  %v4827_v52 = vrot.slane %v4635_v43, 2  ;;  %4748 = vrot.lane.b32.xlu1 %v4716_v46, %s5608_s28  ;;  %v4616_v22 = vsel %vm1906_vm10, %v4580_v60, %v16772_v10  ;;  %v12677_v19 = vpop.permute.xlu1 %3792  ;;  %v16786_v43 = vld [vmem:[#allocation228_spill] sm:$0xff]  ;;  %v16787_v58 = vld [vmem:[#allocation239_spill] sm:$0xff] }
 0x665   : > { %v3258_v4 = vsel %vm1840_vm3, %v16773_v12, %v16710_v61  ;;  %v4803_v17 = vrot.slane %v4617_v45, 2  ;;  %v4633_v57 = vsel %vm1906_vm10, %v4597_v50, %v4013_v1  ;;  %v4692_v11 = vsel %vm16774_vm1, %v4690_v21, %v4691_v3  ;;  %v16780_v3 = vld [vmem:[#allocation501_spill] sm:$0xff]  ;;  %vm16790_vm1 = vmmov %vm16770_vm0 }
 0x666   : > { %v3260_v38 = vsel %vm1840_vm3, %v16776_v29, %v16775_v62  ;;  %v4826_v14 = vrot.slane %v4633_v57, 2  ;;  %4732 = vrot.lane.b32.xlu0 %v4692_v11, %s5608_s28  ;;  %v4873_v41 = vrot.slane %v16777_v16, 3  ;;  %v4874_v5 = vrot.slane %v16778_v26, 3  ;;  %v12693_v45 = vpop.permute.xlu0 %3790  ;;  %v16791_v29 = vld [vmem:[#allocation295_spill] sm:$0xff] }
 0x667   : > { %v3292_v61 = vsel %vm1840_vm3, %v3228_v37, %v16779_v25  ;;  %v3290_v60 = vsel %vm1840_vm3, %v3227_v33, %v16705_v59  ;;  %v4169_v27 = vsel %vm1576_vm13, %v4113_v15, %v16780_v3  ;;  %v4802_v34 = vrot.slane %v4616_v22, 2  ;;  %v16789_v22 = vld [vmem:[#allocation279_spill] sm:$0xff] }
 0x668   : > { %v3314_v48 = vsel %vm1873_vm4, %v3258_v4, %v16730_v39  ;;  %v3342_v44 = vsel %vm1873_vm4, %v3292_v61, %v16711_v20  ;;  %v3340_v23 = vsel %vm1873_vm4, %v3290_v60, %v16723_v9  ;;  %vm16781_vm11 = vcmask 1045504   ;;  %v16783_v9 = vld [vmem:[#allocation104_spill] sm:$0xff]  ;;  %v12709_v24 = vpop.permute.xlu1 %3803  ;;  %v16796_v60 = vld [vmem:[#allocation182_spill] sm:$0xff] }
 0x669   : > { %v4828_v37 = vsel %vm16781_vm11, %v4826_v14, %v4827_v52  ;;  %v3316_v59 = vsel %vm1873_vm4, %v3260_v38, %v16724_v0  ;;  %v3392_v33 = vsel %vm1906_vm10, %v3342_v44, %v16731_v47  ;;  %v3390_v2 = vsel %vm1906_vm10, %v3340_v23, %v16741_v56  ;;  %vm16782_vm6 = vmmov %vm16781_vm11  ;;  %v16788_v52 = vld [vmem:[#allocation330_spill] sm:$0xff]  ;;  %v16798_v44 = vld [vmem:[#allocation417_spill] sm:$0xff] }
 0x66a   : > { %v4804_v6 = vsel %vm16782_vm6, %v4802_v34, %v4803_v17  ;;  %4860 = vrot.lane.b32.xlu1 %v4828_v37, %s5609_s29  ;;  %v3366_v20 = vsel %vm1906_vm10, %v3316_v59, %v16737_v28  ;;  %v4219_v30 = vsel %vm1609_vm14, %v4169_v27, %v16783_v9  ;;  %vm16784_vm8 = vcmask 1044480   ;;  %v12714_v53 = vpop.permute.xlu0 %3801  ;;  %v16785_v28 = vld [vmem:[#allocation172_spill] sm:$0xff] }
 0x66b   : > { %4844 = vrot.lane.b32.xlu0 %v4804_v6, %s5609_s29  ;;  %v4875_v0 = vsel %vm16784_vm8, %v4873_v41, %v4874_v5  ;;  %v3364_v47 = vsel %vm1906_vm10, %v3314_v48, %v16744_v7  ;;  %v4718_v56 = vrot.slane %v3392_v33, 1  ;;  %v4717_v21 = vrot.slane %v3390_v2, 1  ;;  %v16794_v41 = vld [vmem:[#allocation161_spill] sm:$0xff]  ;;  %v16797_v27 = vld [vmem:[#allocation16_spill] sm:$0xff] }
 0x66c   : > { %v4694_v51 = vrot.slane %v3366_v20, 1  ;;  %v4262_v63 = vsel %vm14349_vm15, %v4219_v30, %v16785_v28  ;;  %v12721_v46 = vpop.permute.xlu1 %3837  ;;  %v4059_v15 = vsel %vm16769_vm7, %v16787_v58, %v16767_v54  ;;  %v4693_v50 = vrot.slane %v3364_v47, 1  ;;  %v16795_v5 = vld [vmem:[#allocation589_spill] sm:$0xff]  ;;  %v16801_v59 = vld [vmem:[#allocation372_spill] sm:$0xff] }
 0x66d   : > { %v4115_v1 = vsel %vm1543_vm12, %v4059_v15, %v16788_v52  ;;  %v4298_v12 = vsel %vm1675_vm2, %v4262_v63, %v16789_v22  ;;  %v4719_v17 = vsel %vm16770_vm0, %v4717_v21, %v4718_v56  ;;  %vm16792_vm11 = vcmask 220160   ;;  %v16802_v6 = vld [vmem:[#allocation621_spill] sm:$0xff]  ;;  %v16806_v21 = vld [vmem:[#allocation622_spill] sm:$0xff]  ;;  %v16810_v15 = vld [vmem:[#allocation387_spill] sm:$0xff] }
 0x66e   : > { %4907 = vrot.lane.b32.xlu1 %v4875_v0, %s5610_s30  ;;  %v3822_v4 = vpop.permute.xlu0 %3821  ;;  %v4171_v57 = vsel %vm1576_vm13, %v4115_v1, %v12404_v8  ;;  %v4695_v11 = vsel %vm16790_vm1, %v4693_v50, %v4694_v51  ;;  %v4334_v38 = vsel %vm16792_vm11, %v4298_v12, %v16791_v29  ;;  %vm16793_vm6 = vcmask 244736   ;;  %vm16799_vm8 = vmmov %vm16792_vm11  ;;  %v16804_v30 = vld [vmem:[#allocation85_spill] sm:$0xff]  ;;  %v16811_v50 = vld [vmem:[#allocation623_spill] sm:$0xff] }
 0x66f   : > { %4891 = vrot.lane.b32.xlu0 %v16786_v43, %s5610_s30  ;;  %v4221_v54 = vsel %vm1609_vm14, %v4171_v57, %v12513_v36  ;;  %v4378_v14 = vsel %vm16793_vm6, %v4334_v38, %v3822_v4  ;;  %vm16800_vm7 = vmmov %vm16793_vm6  ;;  %vm16803_vm0 = vcmask 23552   ;;  %vm16805_vm1 = vcmask 48128   ;;  %v16808_v63 = vld [vmem:[#allocation261_spill] sm:$0xff]  ;;  %v16813_v1 = vld [vmem:[#allocation494_spill] sm:$0xff] }
 0x670   : > { %v3883_v62 = vpop.permute.xlu1 %3882  ;;  %v4263_v26 = vsel %vm14349_vm15, %v4221_v54, %v16794_v41  ;;  %v4027_v20 = vsel %vm16803_vm0, %v16745_v13, %v16802_v6  ;;  %vm16807_vm11 = vmmov %vm16803_vm0  ;;  %vm16809_vm6 = vcmask 72704   ;;  %v16816_v54 = vld [vmem:[#allocation89_spill] sm:$0xff]  ;;  %v16817_v38 = vld [vmem:[#allocation496_spill] sm:$0xff]  ;;  %vm16818_vm0 = vcmask 1045504  }
 0x671   : > { %v4299_v36 = vsel %vm1675_vm2, %v4263_v26, %v16796_v60  ;;  %v4035_v0 = vsel %vm16805_vm1, %v4027_v20, %v16804_v30  ;;  %v4025_v51 = vsel %vm16807_vm11, %v16742_v55, %v16806_v21  ;;  %vm16820_vm11 = vcmask 244736   ;;  %v16826_v20 = vld [vmem:[#allocation226_spill] sm:$0xff]  ;;  %v16831_v21 = vld [vmem:[#allocation245_spill] sm:$0xff] }
 0x672   : > { %4750 = vrot.lane.b32.xlu1 %v4719_v17, %s5608_s28  ;;  %v3881_v16 = vpop.permute.xlu0 %3880  ;;  %v4335_v23 = vsel %vm16799_vm8, %v4299_v36, %v16798_v44  ;;  %v4083_v43 = vsel %vm16809_vm6, %v4035_v0, %v16808_v63  ;;  %vm16812_vm8 = vmmov %vm16805_vm1  ;;  %vm16819_vm1 = vcmask 220160   ;;  %v16829_v0 = vld [vmem:[#allocation225_spill] sm:$0xff] }
 0x673   : > { %4734 = vrot.lane.b32.xlu0 %v4695_v11, %s5608_s28  ;;  %v4433_v8 = vsel %vm1774_vm9, %v4378_v14, %v3881_v16  ;;  %v4379_v37 = vsel %vm16800_vm7, %v4335_v23, %v3822_v4  ;;  %v4033_v52 = vsel %vm16812_vm8, %v4025_v51, %v16811_v50  ;;  %v4147_v12 = vsel %vm1543_vm12, %v4083_v43, %v16813_v1  ;;  %v16814_v4 = vld [vmem:[#allocation35_spill] sm:$0xff]  ;;  %vm16815_vm7 = vmmov %vm16809_vm6 }
 0x674   : > { %v4489_v25 = vsel %vm14348_vm5, %v4433_v8, %v16795_v5  ;;  %v3915_v61 = vpop.permute.xlu1 %3914  ;;  %v4435_v9 = vsel %vm1774_vm9, %v4379_v37, %v3883_v62  ;;  %v4082_v55 = vsel %vm16815_vm7, %v4033_v52, %v16808_v63  ;;  %v4197_v11 = vsel %vm1576_vm13, %v4147_v12, %v12446_v18  ;;  %vm16821_vm6 = vmmov %vm16819_vm1  ;;  %v16823_v37 = vld [vmem:[#allocation184_spill] sm:$0xff]  ;;  %v16832_v63 = vld [vmem:[#allocation93_spill] sm:$0xff] }
 0x675   : > { %v4539_v34 = vsel %vm1840_vm3, %v4489_v25, %v16797_v27  ;;  %v4145_v14 = vsel %vm1543_vm12, %v4082_v55, %v16817_v38  ;;  %v4247_v16 = vsel %vm1609_vm14, %v4197_v11, %v12557_v31  ;;  %vm16822_vm8 = vmmov %vm16820_vm11  ;;  %vm16825_vm7 = vcmask 23552   ;;  %v16833_v43 = vld [vmem:[#allocation211_spill] sm:$0xff]  ;;  %v16835_v12 = vld [vmem:[#allocation125_spill] sm:$0xff] }
 0x676   : > { %v3913_v3 = vpop.permute.xlu0 %3912  ;;  %v4582_v33 = vsel %vm1873_vm4, %v4539_v34, %v16801_v59  ;;  %v4195_v5 = vsel %vm1576_vm13, %v4145_v14, %v12455_v35  ;;  %v4283_v25 = vsel %vm14349_vm15, %v4247_v16, %v12619_v40  ;;  %v16834_v52 = vld [vmem:[#allocation263_spill] sm:$0xff]  ;;  %v16838_v14 = vld [vmem:[#allocation485_spill] sm:$0xff] }
 0x677   : > { %v4618_v13 = vsel %vm1906_vm10, %v4582_v33, %v16810_v15  ;;  %v4245_v18 = vsel %vm1609_vm14, %v4195_v5, %v12575_v49  ;;  %v4319_v60 = vsel %vm1675_vm2, %v4283_v25, %v12677_v19  ;;  %v16824_v33 = vld [vmem:[#allocation4_spill] sm:$0xff]  ;;  %v4877_v16 = vrot.slane %v16838_v14, 3  ;;  %v16841_v25 = vld [vmem:[#allocation149_spill] sm:$0xff]  ;;  %v16870_v14 = vld [vmem:[#allocation378_spill] sm:$0xff] }
 0x678   : > { %v3953_v48 = vpop.permute.xlu1 %3952  ;;  %v4805_v8 = vrot.slane %v4618_v13, 2  ;;  %v4281_v31 = vsel %vm14349_vm15, %v4245_v18, %v12637_v32  ;;  %v4355_v34 = vsel %vm16819_vm1, %v4319_v60, %v12709_v24  ;;  %vm16830_vm1 = vcmask 72704   ;;  %v16842_v60 = vld [vmem:[#allocation294_spill] sm:$0xff] }
 0x679   : > { %v4317_v35 = vsel %vm1675_vm2, %v4281_v31, %v12693_v45  ;;  %v4403_v49 = vsel %vm16820_vm11, %v4355_v34, %v12721_v46  ;;  %vm16843_vm11 = vmmov %vm16821_vm6  ;;  %v16845_v34 = vld [vmem:[#allocation178_spill] sm:$0xff] }
 0x67a   : > { %v3935_v2 = vpop.permute.xlu0 %3934  ;;  %v4353_v19 = vsel %vm16821_vm6, %v4317_v35, %v12714_v53  ;;  %v4467_v44 = vsel %vm1774_vm9, %v4403_v49, %v3915_v61  ;;  %v16827_v53 = vld [vmem:[#allocation203_spill] sm:$0xff]  ;;  %vm16844_vm6 = vcmask 1045504  }
 0x67b   : > { %v4491_v47 = vsel %vm14348_vm5, %v4435_v9, %v3935_v2  ;;  %v4402_v32 = vsel %vm16822_vm8, %v4353_v19, %v12721_v46  ;;  %v1446_v2 = vsel %vm16825_vm7, %v16824_v33, %v16823_v37  ;;  %v16846_v49 = vld [vmem:[#allocation311_spill] sm:$0xff]  ;;  %v16847_v19 = vld [vmem:[#allocation286_spill] sm:$0xff]  ;;  %vm16848_vm7 = vmmov %vm16843_vm11 }
 0x67c   : > { %v3978_v56 = vpop.permute.xlu1 %3977  ;;  %v4465_v45 = vsel %vm1774_vm9, %v4402_v32, %v3913_v3  ;;  %v16849_v32 = vld [vmem:[#allocation327_spill] sm:$0xff]  ;;  %v16851_v33 = vld [vmem:[#allocation302_spill] sm:$0xff] }
 0x67d   : > { %v4541_v58 = vsel %vm1840_vm3, %v4491_v47, %v3978_v56  ;;  %v4515_v9 = vsel %vm14348_vm5, %v4465_v45, %v3953_v48  ;;  %v16853_v45 = vld [vmem:[#allocation6_spill] sm:$0xff] }
 0x67e   : > { %v4583_v17 = vsel %vm1873_vm4, %v4541_v58, %v16814_v4  ;;  %v3955_v57 = vpop.permute.xlu0 %3954  ;;  %v1594_v58 = vsel %vm1576_vm13, %v16833_v43, %v16832_v63  ;;  %v16861_v63 = vld [vmem:[#allocation341_spill] sm:$0xff] }
 0x67f   : > { %v4619_v62 = vsel %vm1906_vm10, %v4583_v17, %v16816_v54  ;;  %v4517_v23 = vsel %vm14348_vm5, %v4467_v44, %v3955_v57  ;;  %v1627_v4 = vsel %vm1609_vm14, %v1594_v58, %v16835_v12  ;;  %v16836_v57 = vld [vmem:[#allocation164_spill] sm:$0xff]  ;;  %v16862_v58 = vld [vmem:[#allocation386_spill] sm:$0xff] }
 0x680   : > { %v4806_v41 = vrot.slane %v4619_v62, 2  ;;  %v3998_v26 = vpop.permute.xlu1 %3997  ;;  %v1660_v55 = vsel %vm14349_vm15, %v1627_v4, %v16836_v57  ;;  %v16837_v62 = vld [vmem:[#allocation481_spill] sm:$0xff]  ;;  %v16866_v57 = vld [vmem:[#allocation223_spill] sm:$0xff] }
 0x681   : > { %v4567_v6 = vsel %vm1840_vm3, %v4517_v23, %v3998_v26  ;;  %v4876_v38 = vrot.slane %v16837_v62, 3  ;;  %v16869_v62 = vld [vmem:[#allocation210_spill] sm:$0xff] }
 0x682   : > { %v3996_v36 = vpop.permute.xlu0 %3995  ;;  %v4807_v27 = vsel %vm16818_vm0, %v4805_v8, %v4806_v41  ;;  %vm16828_vm0 = vcmask 48128   ;;  %v16839_v41 = vld [vmem:[#allocation107_spill] sm:$0xff]  ;;  %v16840_v8 = vld [vmem:[#allocation278_spill] sm:$0xff] }
 0x683   : > { %4846 = vrot.lane.b32.xlu0 %v4807_v27, %s5609_s29  ;;  %v1479_v61 = vsel %vm16828_vm0, %v1446_v2, %v16827_v53  ;;  %v4565_v56 = vsel %vm1840_vm3, %v4515_v9, %v3996_v36  ;;  %v1693_v5 = vsel %vm1675_vm2, %v1660_v55, %v16840_v8  ;;  %vm16850_vm0 = vcmask 1044480   ;;  %v16871_v8 = vld [vmem:[#allocation244_spill] sm:$0xff] }
 0x684   : > { %v4006_v40 = vpop.permute.xlu1 %4005  ;;  %v1512_v47 = vsel %vm16830_vm1, %v1479_v61, %v16829_v0  ;;  %v1726_v36 = vsel %vm16843_vm11, %v1693_v5, %v16842_v60  ;;  %v4878_v37 = vsel %vm16850_vm0, %v4876_v38, %v4877_v16  ;;  %vm16852_vm1 = vmmov %vm16822_vm8  ;;  %v16855_v61 = vld [vmem:[#allocation354_spill] sm:$0xff]  ;;  %vm4911_vm11 = vcmask 392192  }
 0x685   : > { %v4603_v46 = vsel %vm1873_vm4, %v4567_v6, %v4006_v40  ;;  %v1545_v51 = vsel %vm1543_vm12, %v1512_v47, %v16831_v21  ;;  %v1759_v40 = vsel %vm16822_vm8, %v1726_v36, %v16846_v49  ;;  %v16857_v47 = vld [vmem:[#allocation371_spill] sm:$0xff]  ;;  %vm5109_vm8 = vcmask 154624   ;;  %v16872_v5 = vld [vmem:[#allocation134_spill] sm:$0xff] }
 0x686   : > { %v4004_v24 = vpop.permute.xlu0 %4003  ;;  %v1578_v1 = vsel %vm1576_vm13, %v1545_v51, %v16834_v52  ;;  %v1792_v23 = vsel %vm1774_vm9, %v1759_v40, %v16849_v32  ;;  %v16859_v21 = vld [vmem:[#allocation15_spill] sm:$0xff]  ;;  %vm16860_vm0 = vcmask 23552   ;;  %v16873_v36 = vld [vmem:[#allocation262_spill] sm:$0xff]  ;;  %v16876_v32 = vld [vmem:[#allocation192_spill] sm:$0xff] }
 0x687   : > { %4893 = vrot.lane.b32.xlu0 %v16826_v20, %s5610_s30  ;;  %v4601_v13 = vsel %vm1873_vm4, %v4565_v56, %v4004_v24  ;;  %v1611_v26 = vsel %vm1609_vm14, %v1578_v1, %v16839_v41  ;;  %v1825_v6 = vsel %vm14348_vm5, %v1792_v23, %v16853_v45  ;;  %v16854_v20 = vld [vmem:[#allocation319_spill] sm:$0xff]  ;;  %v16865_v1 = vld [vmem:[#allocation362_spill] sm:$0xff]  ;;  %v16877_v23 = vld [vmem:[#allocation156_spill] sm:$0xff] }
 0x688   : > { %v4019_v30 = vpop.permute.xlu1 %4018  ;;  %v1644_v18 = vsel %vm14349_vm15, %v1611_v26, %v16841_v25  ;;  %v1858_v9 = vsel %vm1840_vm3, %v1825_v6, %v16855_v61  ;;  %v16880_v45 = vld [vmem:[#allocation186_spill] sm:$0xff]  ;;  %v16883_v61 = vld [vmem:[#allocation285_spill] sm:$0xff] }
 0x689   : > { %v4639_v3 = vsel %vm1906_vm10, %v4603_v46, %v4019_v30  ;;  %v1677_v35 = vsel %vm1675_vm2, %v1644_v18, %v16845_v34  ;;  %v16856_v30 = vld [vmem:[#allocation331_spill] sm:$0xff]  ;;  %v1891_v56 = vsel %vm1873_vm4, %v1858_v9, %v16857_v47  ;;  %v16874_v34 = vld [vmem:[#allocation168_spill] sm:$0xff]  ;;  %v16886_v47 = vld [vmem:[#allocation301_spill] sm:$0xff] }
 0x68a   : > { %v4830_v48 = vrot.slane %v4639_v3, 2  ;;  %v4017_v50 = vpop.permute.xlu0 %4016  ;;  %v1710_v44 = vsel %vm16848_vm7, %v1677_v35, %v16847_v19  ;;  %vm4944_vm7 = vcmask 785408   ;;  %v16858_v3 = vld [vmem:[#allocation17_spill] sm:$0xff] }
 0x68b   : > { %v4637_v17 = vsel %vm1906_vm10, %v4601_v13, %v4017_v50  ;;  %v1743_v2 = vsel %vm16852_vm1, %v1710_v44, %v16851_v33  ;;  %v1448_v51 = vsel %vm16860_vm0, %v16859_v21, %v16858_v3  ;;  %v1924_v13 = vsel %vm1906_vm10, %v1891_v56, %v16862_v58  ;;  %v16863_v50 = vld [vmem:[#allocation202_spill] sm:$0xff]  ;;  %v16875_v19 = vld [vmem:[#allocation113_spill] sm:$0xff] }
 0x68c   : > { %v4829_v11 = vrot.slane %v4637_v17, 2  ;;  %v4737_v54 = vpop.permute.xlu1 %4736  ;;  %v1776_v53 = vsel %vm1774_vm9, %v1743_v2, %v16854_v20  ;;  %vm16864_vm1 = vcmask 48128   ;;  %v16881_v20 = vld [vmem:[#allocation310_spill] sm:$0xff] }
 0x68d   : > { %v1809_v0 = vsel %vm14348_vm5, %v1776_v53, %v16856_v30  ;;  %v1481_v52 = vsel %vm16864_vm1, %v1448_v51, %v16863_v50  ;;  %v4929_v4 = vsel %vm4911_vm11, %v1924_v13, %v4737_v54  ;;  %vm16867_vm5 = vcmask 72704   ;;  %v16888_v3 = vld [vmem:[#allocation266_spill] sm:$0xff] }
 0x68e   : > { %v4721_v27 = vpop.permute.xlu0 %4720  ;;  %v4831_v31 = vsel %vm16844_vm6, %v4829_v11, %v4830_v48  ;;  %vm4993_vm6 = vcmask 130048   ;;  %v1842_v43 = vsel %vm1840_vm3, %v1809_v0, %v16861_v63  ;;  %v1514_v55 = vsel %vm16867_vm5, %v1481_v52, %v16866_v57  ;;  %v16868_v11 = vld [vmem:[#allocation97_spill] sm:$0xff]  ;;  %v16890_v51 = vld [vmem:[#allocation318_spill] sm:$0xff] }
 0x68f   : > { %4862 = vrot.lane.b32.xlu1 %v4831_v31, %s5609_s29  ;;  %v1875_v12 = vsel %vm1873_vm4, %v1842_v43, %v16865_v1  ;;  %v1596_v38 = vsel %vm1576_vm13, %v16869_v62, %v16868_v11  ;;  %v1547_v54 = vsel %vm1543_vm12, %v1514_v55, %v16871_v8  ;;  %vm16879_vm5 = vcmask 220160   ;;  %v16891_v43 = vld [vmem:[#allocation353_spill] sm:$0xff]  ;;  %v16894_v1 = vld [vmem:[#allocation339_spill] sm:$0xff] }
 0x690   : > { %v4849_v24 = vpop.permute.xlu1 %4848  ;;  %v1908_v16 = vsel %vm1906_vm10, %v1875_v12, %v16870_v14  ;;  %v1629_v25 = vsel %vm1609_vm14, %v1596_v38, %v16872_v5  ;;  %v1580_v31 = vsel %vm1576_vm13, %v1547_v54, %v16873_v36  ;;  %vm16882_vm12 = vcmask 244736   ;;  %vm16884_vm0 = vmmov %vm16879_vm5  ;;  %v16895_v57 = vld [vmem:[#allocation361_spill] sm:$0xff]  ;;  %v16896_v38 = vld [vmem:[#allocation95_spill] sm:$0xff] }
 0x691   : > { %v4970_v26 = vsel %vm4944_vm7, %v4929_v4, %v4849_v24  ;;  %v4913_v18 = vsel %vm4911_vm11, %v1908_v16, %v4721_v27  ;;  %v1662_v35 = vsel %vm14349_vm15, %v1629_v25, %v16874_v34  ;;  %v1613_v44 = vsel %vm1609_vm14, %v1580_v31, %v16875_v19  ;;  %vm16887_vm1 = vmmov %vm16882_vm12  ;;  %v16897_v14 = vld [vmem:[#allocation213_spill] sm:$0xff]  ;;  %v16899_v8 = vld [vmem:[#allocation131_spill] sm:$0xff] }
 0x692   : > { %v4833_v46 = vpop.permute.xlu0 %4832  ;;  %v1695_v27 = vsel %vm1675_vm2, %v1662_v35, %v16876_v32  ;;  %v1598_v16 = vsel %vm1576_vm13, %v16897_v14, %v16896_v38  ;;  %v16902_v31 = vld [vmem:[#allocation166_spill] sm:$0xff]  ;;  %v16925_v38 = vld [vmem:[#allocation212_spill] sm:$0xff] }
 0x693   : > { %4909 = vrot.lane.b32.xlu1 %v4878_v37, %s5610_s30  ;;  %v4946_v49 = vsel %vm4944_vm7, %v4913_v18, %v4833_v46  ;;  %v16878_v37 = vld [vmem:[#allocation293_spill] sm:$0xff]  ;;  %v1631_v54 = vsel %vm1609_vm14, %v1598_v16, %v16899_v8  ;;  %v16926_v16 = vld [vmem:[#allocation380_spill] sm:$0xff] }
 0x694   : > { %v4896_v48 = vpop.permute.xlu1 %4895  ;;  %v1728_v33 = vsel %vm16879_vm5, %v1695_v27, %v16878_v37  ;;  %v16900_v18 = vld [vmem:[#allocation265_spill] sm:$0xff]  ;;  %v16906_v27 = vld [vmem:[#allocation154_spill] sm:$0xff] }
 0x695   : > { %v5011_v17 = vsel %vm4993_vm6, %v4849_v24, %v4896_v48  ;;  %v1646_v24 = vsel %vm14349_vm15, %v1613_v44, %v16877_v23  ;;  %v1761_v53 = vsel %vm16882_vm12, %v1728_v33, %v16881_v20  ;;  %vm16889_vm15 = vcmask 293888   ;;  %v16892_v48 = vld [vmem:[#allocation79_spill] sm:$0xff]  ;;  %v16905_v44 = vld [vmem:[#allocation280_spill] sm:$0xff] }
 0x696   : > { %v4880_v41 = vpop.permute.xlu0 %4879  ;;  %5480 = vmatprep.mubr.msk.bf16.mxu1 %vm5109_vm8, %v5011_v17  ;;  %v1679_v6 = vsel %vm1675_vm2, %v1646_v24, %v16880_v45  ;;  %vm16893_vm5 = vmmov %vm16889_vm15  ;;  %v16908_v24 = vld [vmem:[#allocation296_spill] sm:$0xff] }
 0x697   : > { %v4995_v60 = vsel %vm4993_vm6, %v4833_v46, %v4880_v41  ;;  %5246 = vmatmul.mubr.bf16.vlgmr.msra.gmra.mrb[0].mxu1 %v4970_v26  ;;  %v1712_v9 = vsel %vm16884_vm0, %v1679_v6, %v16883_v61  ;;  %v16885_v46 = vld [vmem:[#allocation19_spill] sm:$0xff]  ;;  %v16898_v41 = vld [vmem:[#allocation377_spill] sm:$0xff] }
 0x698   : > { %5472 = vmatprep.mubr.msk.bf16.mxu0 %vm5109_vm8, %v4995_v60  ;;  %v4739_v40 = vpop.permute.xlu1 %4738  ;;  %v1794_v30 = vsel %vm1774_vm9, %v1761_v53, %v16885_v46  ;;  %v1745_v56 = vsel %vm16887_vm1, %v1712_v9, %v16886_v47  ;;  %v16901_v60 = vld [vmem:[#allocation204_spill] sm:$0xff]  ;;  %v16910_v6 = vld [vmem:[#allocation313_spill] sm:$0xff] }
 0x699   : > { %5182 = vmatmul.mubr.bf16.vlgmr.msra.gmra.mrb[0].mxu0 %v4946_v49  ;;  %v1827_v21 = vsel %vm16889_vm15, %v1794_v30, %v16888_v3  ;;  %v1778_v63 = vsel %vm1774_vm9, %v1745_v56, %v16890_v51  ;;  %v1582_v36 = vsel %vm1576_vm13, %v16901_v60, %v16900_v18  ;;  %vm16903_vm15 = vcmask 171008   ;;  %v16911_v53 = vld [vmem:[#allocation288_spill] sm:$0xff]  ;;  %v16913_v9 = vld [vmem:[#allocation45_spill] sm:$0xff] }
 0x69a   : > { %v4723_v2 = vpop.permute.xlu0 %4722  ;;  %v1860_v58 = vsel %vm1840_vm3, %v1827_v21, %v16891_v43  ;;  %v1811_v50 = vsel %vm16893_vm5, %v1778_v63, %v16892_v48  ;;  %v1664_v34 = vsel %vm16903_vm15, %v1631_v54, %v16902_v31  ;;  %vm16907_vm12 = vmmov %vm16903_vm15  ;;  %v16916_v56 = vld [vmem:[#allocation32_spill] sm:$0xff]  ;;  %v16918_v21 = vld [vmem:[#allocation321_spill] sm:$0xff] }
 0x69b   : > { %v1893_v52 = vsel %vm1873_vm4, %v1860_v58, %v16730_v39  ;;  %v1844_v12 = vsel %vm1840_vm3, %v1811_v50, %v16894_v1  ;;  %v1697_v32 = vsel %vm1675_vm2, %v1664_v34, %v16905_v44  ;;  %vm16912_vm5 = vmmov %vm16884_vm0  ;;  %v16919_v63 = vld [vmem:[#allocation356_spill] sm:$0xff]  ;;  %v16931_v31 = vld [vmem:[#allocation111_spill] sm:$0xff] }
 0x69c   : > { %v4851_v0 = vpop.permute.xlu1 %4850  ;;  %v1926_v4 = vsel %vm1906_vm10, %v1893_v52, %v16744_v7  ;;  %v1877_v55 = vsel %vm1873_vm4, %v1844_v12, %v16895_v57  ;;  %v1730_v37 = vsel %vm16884_vm0, %v1697_v32, %v16908_v24  ;;  %vm16915_vm15 = vmmov %vm16887_vm1  ;;  %v16922_v52 = vld [vmem:[#allocation345_spill] sm:$0xff]  ;;  %v16928_v54 = vld [vmem:[#allocation264_spill] sm:$0xff] }
 0x69d   : > { %v4931_v11 = vsel %vm4911_vm11, %v1926_v4, %v4739_v40  ;;  %v1910_v39 = vsel %vm1906_vm10, %v1877_v55, %v16898_v41  ;;  %v16904_v40 = vld [vmem:[#allocation271_spill] sm:$0xff]  ;;  %v1763_v20 = vsel %vm16887_vm1, %v1730_v37, %v16910_v6  ;;  %vm16930_vm1 = vcmask 171008  }
 0x69e   : > { %v4835_v13 = vpop.permute.xlu0 %4834  ;;  %v4973_v7 = vsel %vm4944_vm7, %v4931_v11, %v4851_v0  ;;  %v4915_v5 = vsel %vm4911_vm11, %v1910_v39, %v4723_v2  ;;  %v1615_v19 = vsel %vm1609_vm14, %v1582_v36, %v16904_v40  ;;  %v16909_v2 = vld [vmem:[#allocation276_spill] sm:$0xff]  ;;  %v1796_v46 = vsel %vm1774_vm9, %v1763_v20, %v16913_v9  ;;  %v16927_v39 = vld [vmem:[#allocation139_spill] sm:$0xff] }
 0x69f   : > { %v4949_v35 = vsel %vm4944_vm7, %v4915_v5, %v4835_v13  ;;  %v1648_v23 = vsel %vm16907_vm12, %v1615_v19, %v16906_v27  ;;  %vm16917_vm12 = vcmask 293888   ;;  %v16929_v5 = vld [vmem:[#allocation201_spill] sm:$0xff]  ;;  %v16936_v27 = vld [vmem:[#allocation312_spill] sm:$0xff]  ;;  %v16938_v24 = vld [vmem:[#allocation287_spill] sm:$0xff] }
 0x6a0   : > { %v4898_v17 = vpop.permute.xlu1 %4897  ;;  %v1681_v45 = vsel %vm1675_vm2, %v1648_v23, %v16909_v2  ;;  %v1829_v3 = vsel %vm16917_vm12, %v1796_v46, %v16916_v56  ;;  %vm16921_vm0 = vmmov %vm16917_vm12  ;;  %vm16937_vm12 = vcmask 244736   ;;  %v16943_v20 = vld [vmem:[#allocation120_spill] sm:$0xff]  ;;  %v16946_v9 = vld [vmem:[#allocation355_spill] sm:$0xff] }
 0x6a1   : > { %v5013_v62 = vsel %vm4993_vm6, %v4851_v0, %v4898_v17  ;;  %v1714_v61 = vsel %vm16912_vm5, %v1681_v45, %v16911_v53  ;;  %v16914_v0 = vld [vmem:[#allocation304_spill] sm:$0xff]  ;;  %v1862_v43 = vsel %vm1840_vm3, %v1829_v3, %v16919_v63  ;;  %vm16933_vm5 = vmmov %vm16930_vm1  ;;  %v16941_v45 = vld [vmem:[#allocation303_spill] sm:$0xff] }
 0x6a2   : > { %v4882_v26 = vpop.permute.xlu0 %4881  ;;  %5481 = vmatprep.mubr.msk.bf16.mxu1 %vm5109_vm8, %v5013_v62  ;;  %v1747_v47 = vsel %vm16915_vm15, %v1714_v61, %v16914_v0  ;;  %v1895_v50 = vsel %vm1873_vm4, %v1862_v43, %v16762_v42  ;;  %v16923_v17 = vld [vmem:[#allocation364_spill] sm:$0xff]  ;;  %v16924_v62 = vld [vmem:[#allocation101_spill] sm:$0xff]  ;;  %vm16934_vm15 = vcmask 220160   ;;  %v16949_v3 = vld [vmem:[#allocation343_spill] sm:$0xff] }
 0x6a3   : > { %v4997_v25 = vsel %vm4993_vm6, %v4835_v13, %v4882_v26  ;;  %5254 = vmatmul.mubr.bf16.gmra.mrb[4].mxu1 %v4973_v7  ;;  %v1780_v51 = vsel %vm1774_vm9, %v1747_v47, %v16918_v21  ;;  %v16920_v13 = vld [vmem:[#allocation90_spill] sm:$0xff]  ;;  %v1928_v12 = vsel %vm1906_vm10, %v1895_v50, %v16772_v10  ;;  %v1600_v14 = vsel %vm1576_vm13, %v16925_v38, %v16924_v62  ;;  %v16945_v53 = vld [vmem:[#allocation320_spill] sm:$0xff]  ;;  %v16950_v43 = vld [vmem:[#allocation363_spill] sm:$0xff] }
 0x6a4   : > { %5473 = vmatprep.mubr.msk.bf16.mxu0 %vm5109_vm8, %v4997_v25  ;;  %v4741_v49 = vpop.permute.xlu1 %4740  ;;  %v1813_v48 = vsel %vm16921_vm0, %v1780_v51, %v16920_v13  ;;  %v1633_v26 = vsel %vm1609_vm14, %v1600_v14, %v16927_v39  ;;  %v1584_v25 = vsel %vm1576_vm13, %v16929_v5, %v16928_v54  ;;  %vm16939_vm0 = vmmov %vm16934_vm15  ;;  %v16947_v0 = vld [vmem:[#allocation84_spill] sm:$0xff]  ;;  %v16951_v50 = vld [vmem:[#allocation99_spill] sm:$0xff] }
 0x6a5   : > { %5190 = vmatmul.mubr.bf16.gmra.mrb[4].mxu0 %v4949_v35  ;;  %v1846_v1 = vsel %vm1840_vm3, %v1813_v48, %v16922_v52  ;;  %v4933_v55 = vsel %vm4911_vm11, %v1928_v12, %v4741_v49  ;;  %v1666_v18 = vsel %vm16930_vm1, %v1633_v26, %v16785_v28  ;;  %v1617_v34 = vsel %vm1609_vm14, %v1584_v25, %v16931_v31  ;;  %v16932_v49 = vld [vmem:[#allocation160_spill] sm:$0xff]  ;;  %v16935_v28 = vld [vmem:[#allocation185_spill] sm:$0xff]  ;;  %vm16942_vm1 = vmmov %vm16937_vm12 }
 0x6a6   : > { %v4725_v33 = vpop.permute.xlu0 %4724  ;;  %v1879_v57 = vsel %vm1873_vm4, %v1846_v1, %v16923_v17  ;;  %v1699_v35 = vsel %vm1675_vm2, %v1666_v18, %v16789_v22  ;;  %v1650_v40 = vsel %vm16933_vm5, %v1617_v34, %v16932_v49  ;;  %vm16944_vm5 = vcmask 293888   ;;  %v16952_v52 = vld [vmem:[#allocation219_spill] sm:$0xff]  ;;  %v16954_v17 = vld [vmem:[#allocation136_spill] sm:$0xff]  ;;  %v16956_v38 = vld [vmem:[#allocation206_spill] sm:$0xff] }
 0x6a7   : > { %v1912_v42 = vsel %vm1906_vm10, %v1879_v57, %v16926_v16  ;;  %v1732_v19 = vsel %vm16934_vm15, %v1699_v35, %v16791_v29  ;;  %v1683_v32 = vsel %vm1675_vm2, %v1650_v40, %v16935_v28  ;;  %vm16948_vm15 = vmmov %vm16944_vm5  ;;  %v1602_v1 = vsel %vm1576_vm13, %v16952_v52, %v16951_v50  ;;  %v16953_v12 = vld [vmem:[#allocation379_spill] sm:$0xff]  ;;  %v16955_v62 = vld [vmem:[#allocation268_spill] sm:$0xff] }
 0x6a8   : > { %v4853_v30 = vpop.permute.xlu1 %4852  ;;  %v4917_v7 = vsel %vm4911_vm11, %v1912_v42, %v4725_v33  ;;  %v1765_v23 = vsel %vm16937_vm12, %v1732_v19, %v16936_v27  ;;  %v1716_v37 = vsel %vm16939_vm0, %v1683_v32, %v16938_v24  ;;  %v16940_v33 = vld [vmem:[#allocation37_spill] sm:$0xff]  ;;  %v1635_v57 = vsel %vm1609_vm14, %v1602_v1, %v16954_v17  ;;  %v16957_v16 = vld [vmem:[#allocation170_spill] sm:$0xff]  ;;  %v16959_v39 = vld [vmem:[#allocation272_spill] sm:$0xff] }
 0x6a9   : > { %v4976_v10 = vsel %vm4944_vm7, %v4933_v55, %v4853_v30  ;;  %v1798_v22 = vsel %vm1774_vm9, %v1765_v23, %v16940_v33  ;;  %v1749_v6 = vsel %vm16942_vm1, %v1716_v37, %v16941_v45  ;;  %v1586_v14 = vsel %vm1576_vm13, %v16956_v38, %v16955_v62  ;;  %v16961_v54 = vld [vmem:[#allocation158_spill] sm:$0xff]  ;;  %v16966_v34 = vld [vmem:[#allocation315_spill] sm:$0xff]  ;;  %v16970_v19 = vld [vmem:[#allocation57_spill] sm:$0xff] }
 0x6aa   : > { %v4837_v58 = vpop.permute.xlu0 %4836  ;;  %v1831_v29 = vsel %vm16944_vm5, %v1798_v22, %v16943_v20  ;;  %v1782_v61 = vsel %vm1774_vm9, %v1749_v6, %v16945_v53  ;;  %vm16958_vm12 = vcmask 171008   ;;  %v1619_v26 = vsel %vm1609_vm14, %v1586_v14, %v16959_v39  ;;  %v16963_v25 = vld [vmem:[#allocation298_spill] sm:$0xff]  ;;  %v16971_v32 = vld [vmem:[#allocation307_spill] sm:$0xff]  ;;  %v16973_v23 = vld [vmem:[#allocation333_spill] sm:$0xff] }
 0x6ab   : > { %v4952_v60 = vsel %vm4944_vm7, %v4917_v7, %v4837_v58  ;;  %v1864_v46 = vsel %vm1840_vm3, %v1831_v29, %v16946_v9  ;;  %v1815_v47 = vsel %vm16948_vm15, %v1782_v61, %v16947_v0  ;;  %v1668_v42 = vsel %vm16958_vm12, %v1635_v57, %v16957_v16  ;;  %v16960_v7 = vld [vmem:[#allocation282_spill] sm:$0xff]  ;;  %vm16962_vm0 = vmmov %vm16958_vm12  ;;  %v16975_v37 = vld [vmem:[#allocation324_spill] sm:$0xff] }
 0x6ac   : > { %v4900_v4 = vpop.permute.xlu1 %4899  ;;  %v1897_v56 = vsel %vm1873_vm4, %v1864_v46, %v16801_v59  ;;  %v1848_v21 = vsel %vm1840_vm3, %v1815_v47, %v16949_v3  ;;  %v1652_v5 = vsel %vm16962_vm0, %v1619_v26, %v16961_v54  ;;  %vm16964_vm1 = vcmask 220160   ;;  %v16968_v49 = vld [vmem:[#allocation290_spill] sm:$0xff]  ;;  %v16977_v6 = vld [vmem:[#allocation332_spill] sm:$0xff]  ;;  %v16980_v61 = vld [vmem:[#allocation349_spill] sm:$0xff] }
 0x6ad   : > { %v5015_v11 = vsel %vm4993_vm6, %v4853_v30, %v4900_v4  ;;  %v1930_v51 = vsel %vm1906_vm10, %v1897_v56, %v16810_v15  ;;  %vm16967_vm5 = vcmask 244736   ;;  %vm16969_vm15 = vmmov %vm16964_vm1  ;;  %vm16974_vm0 = vcmask 293888   ;;  %v16976_v22 = vld [vmem:[#allocation358_spill] sm:$0xff]  ;;  %v16986_v52 = vld [vmem:[#allocation145_spill] sm:$0xff] }
 0x6ae   : > { %v4884_v41 = vpop.permute.xlu0 %4883  ;;  %5482 = vmatprep.mubr.msk.bf16.mxu1 %vm5109_vm8, %v5015_v11  ;;  %vm16972_vm12 = vmmov %vm16967_vm5  ;;  %v16979_v29 = vld [vmem:[#allocation374_spill] sm:$0xff]  ;;  %v16989_v57 = vld [vmem:[#allocation176_spill] sm:$0xff] }
 0x6af   : > { %v4999_v8 = vsel %vm4993_vm6, %v4837_v58, %v4884_v41  ;;  %5262 = vmatmul.mubr.bf16.gmra.mrb[8].mxu1 %v4976_v10  ;;  %v1881_v58 = vsel %vm1873_vm4, %v1848_v21, %v16950_v43  ;;  %v16981_v46 = vld [vmem:[#allocation390_spill] sm:$0xff]  ;;  %v16991_v38 = vld [vmem:[#allocation116_spill] sm:$0xff]  ;;  %v16992_v16 = vld [vmem:[#allocation281_spill] sm:$0xff] }
 0x6b0   : > { %5474 = vmatprep.mubr.msk.bf16.mxu0 %vm5109_vm8, %v4999_v8  ;;  %v4743_v36 = vpop.permute.xlu1 %4742  ;;  %v1914_v59 = vsel %vm1906_vm10, %v1881_v58, %v16953_v12  ;;  %v1701_v8 = vsel %vm1675_vm2, %v1668_v42, %v16960_v7  ;;  %v16982_v47 = vld [vmem:[#allocation366_spill] sm:$0xff]  ;;  %v16995_v39 = vld [vmem:[#allocation297_spill] sm:$0xff] }
 0x6b1   : > { %5198 = vmatmul.mubr.bf16.gmra.mrb[8].mxu0 %v4952_v60  ;;  %v4935_v13 = vsel %vm4911_vm11, %v1930_v51, %v4743_v36  ;;  %v1734_v18 = vsel %vm16964_vm1, %v1701_v8, %v16963_v25  ;;  %v16965_v36 = vld [vmem:[#allocation188_spill] sm:$0xff]  ;;  %vm16978_vm1 = vmmov %vm16974_vm0  ;;  %v16983_v51 = vld [vmem:[#allocation105_spill] sm:$0xff] }
 0x6b2   : > { %v4727_v44 = vpop.permute.xlu0 %4726  ;;  %v1685_v31 = vsel %vm1675_vm2, %v1652_v5, %v16965_v36  ;;  %v1767_v35 = vsel %vm16967_vm5, %v1734_v18, %v16966_v34  ;;  %v16985_v58 = vld [vmem:[#allocation382_spill] sm:$0xff]  ;;  %vm16990_vm5 = vcmask 171008   ;;  %v16997_v8 = vld [vmem:[#allocation9_spill] sm:$0xff] }
 0x6b3   : > { %v4919_v55 = vsel %vm4911_vm11, %v1914_v59, %v4727_v44  ;;  %v1718_v40 = vsel %vm16969_vm15, %v1685_v31, %v16968_v49  ;;  %v1800_v44 = vsel %vm1774_vm9, %v1767_v35, %v16970_v19  ;;  %vm16994_vm15 = vmmov %vm16990_vm5  ;;  %v16998_v5 = vld [vmem:[#allocation314_spill] sm:$0xff]  ;;  %v17000_v18 = vld [vmem:[#allocation289_spill] sm:$0xff] }
 0x6b4   : > { %v4855_v2 = vpop.permute.xlu1 %4854  ;;  %v1751_v27 = vsel %vm16972_vm12, %v1718_v40, %v16971_v32  ;;  %v1833_v24 = vsel %vm16974_vm0, %v1800_v44, %v16973_v23  ;;  %vm16996_vm12 = vcmask 220160   ;;  %vm16999_vm0 = vcmask 244736   ;;  %v17002_v36 = vld [vmem:[#allocation50_spill] sm:$0xff]  ;;  %v17005_v40 = vld [vmem:[#allocation124_spill] sm:$0xff]  ;;  %v17007_v44 = vld [vmem:[#allocation323_spill] sm:$0xff] }
 0x6b5   : > { %v4979_v15 = vsel %vm4944_vm7, %v4935_v13, %v4855_v2  ;;  %v1784_v33 = vsel %vm1774_vm9, %v1751_v27, %v16975_v37  ;;  %v17003_v35 = vld [vmem:[#allocation306_spill] sm:$0xff]  ;;  %v17008_v32 = vld [vmem:[#allocation357_spill] sm:$0xff] }
 0x6b6   : > { %v4839_v30 = vpop.permute.xlu0 %4838  ;;  %v1817_v20 = vsel %vm16978_vm1, %v1784_v33, %v16977_v6  ;;  %vm17001_vm1 = vmmov %vm16996_vm12  ;;  %v17011_v33 = vld [vmem:[#allocation128_spill] sm:$0xff]  ;;  %v17013_v6 = vld [vmem:[#allocation389_spill] sm:$0xff] }
 0x6b7   : > { %v4955_v41 = vsel %vm4944_vm7, %v4919_v55, %v4839_v30  ;;  %v1850_v9 = vsel %vm1840_vm3, %v1817_v20, %v16980_v61 }
 0x6b8   : > { %v4902_v63 = vpop.permute.xlu1 %4901  ;;  %v1883_v56 = vsel %vm1873_vm4, %v1850_v9, %v16982_v47 }
 0x6b9   : > { %v5017_v48 = vsel %vm4993_vm6, %v4855_v2, %v4902_v63  ;;  %v1866_v2 = vsel %vm1840_vm3, %v1833_v24, %v16976_v22  ;;  %v16984_v63 = vld [vmem:[#allocation215_spill] sm:$0xff]  ;;  %v1916_v13 = vsel %vm1906_vm10, %v1883_v56, %v16985_v58  ;;  %v17009_v24 = vld [vmem:[#allocation92_spill] sm:$0xff]  ;;  %v17018_v58 = vld [vmem:[#allocation270_spill] sm:$0xff] }
 0x6ba   : > { %v4886_v4 = vpop.permute.xlu0 %4885  ;;  %5483 = vmatprep.mubr.msk.bf16.mxu1 %vm5109_vm8, %v5017_v48  ;;  %v1899_v53 = vsel %vm1873_vm4, %v1866_v2, %v16979_v29  ;;  %v1604_v43 = vsel %vm1576_vm13, %v16984_v63, %v16983_v51  ;;  %v17012_v2 = vld [vmem:[#allocation348_spill] sm:$0xff] }
 0x6bb   : > { %v5001_v11 = vsel %vm4993_vm6, %v4839_v30, %v4886_v4  ;;  %5270 = vmatmul.mubr.bf16.gmra.mrb[12].mxu1 %v4979_v15  ;;  %v1932_v30 = vsel %vm1906_vm10, %v1899_v53, %v16981_v46  ;;  %v1637_v1 = vsel %vm1609_vm14, %v1604_v43, %v16986_v52  ;;  %v16987_v4 = vld [vmem:[#allocation267_spill] sm:$0xff]  ;;  %v16988_v15 = vld [vmem:[#allocation205_spill] sm:$0xff] }
 0x6bc   : > { %5475 = vmatprep.mubr.msk.bf16.mxu0 %vm5109_vm8, %v5001_v11  ;;  %v4745_v10 = vpop.permute.xlu1 %4744  ;;  %v1588_v17 = vsel %vm1576_vm13, %v16988_v15, %v16987_v4  ;;  %v1670_v55 = vsel %vm16990_vm5, %v1637_v1, %v16989_v57  ;;  %vm17004_vm5 = vmmov %vm16999_vm0  ;;  %v17014_v53 = vld [vmem:[#allocation365_spill] sm:$0xff]  ;;  %v17022_v15 = vld [vmem:[#allocation174_spill] sm:$0xff] }
 0x6bd   : > { %5206 = vmatmul.mubr.bf16.gmra.mrb[12].mxu0 %v4955_v41  ;;  %v4937_v3 = vsel %vm4911_vm11, %v1932_v30, %v4745_v10  ;;  %v1621_v14 = vsel %vm1609_vm14, %v1588_v17, %v16991_v38  ;;  %v1703_v42 = vsel %vm1675_vm2, %v1670_v55, %v16992_v16  ;;  %v16993_v41 = vld [vmem:[#allocation163_spill] sm:$0xff]  ;;  %v17015_v30 = vld [vmem:[#allocation381_spill] sm:$0xff] }
 0x6be   : > { %v4729_v60 = vpop.permute.xlu0 %4728  ;;  %v1654_v10 = vsel %vm16994_vm15, %v1621_v14, %v16993_v41  ;;  %v1736_v26 = vsel %vm16996_vm12, %v1703_v42, %v16995_v39  ;;  %vm17006_vm15 = vcmask 293888   ;;  %v17024_v57 = vld [vmem:[#allocation275_spill] sm:$0xff]  ;;  %v17027_v14 = vld [vmem:[#allocation277_spill] sm:$0xff]  ;;  %v17028_v42 = vld [vmem:[#allocation300_spill] sm:$0xff] }
 0x6bf   : > { %v4921_v12 = vsel %vm4911_vm11, %v1916_v13, %v4729_v60  ;;  %v1687_v54 = vsel %vm1675_vm2, %v1654_v10, %v16997_v8  ;;  %v1769_v25 = vsel %vm16999_vm0, %v1736_v26, %v16998_v5  ;;  %vm17010_vm12 = vmmov %vm17006_vm15  ;;  %v17019_v13 = vld [vmem:[#allocation209_spill] sm:$0xff]  ;;  %vm17023_vm0 = vcmask 171008   ;;  %v17030_v10 = vld [vmem:[#allocation292_spill] sm:$0xff] }
 0x6c0   : > { %v4857_v28 = vpop.permute.xlu1 %4856  ;;  %v1720_v60 = vsel %vm17001_vm1, %v1687_v54, %v17000_v18  ;;  %v1802_v31 = vsel %vm1774_vm9, %v1769_v25, %v17002_v36  ;;  %vm17025_vm1 = vmmov %vm17023_vm0  ;;  %v17032_v26 = vld [vmem:[#allocation317_spill] sm:$0xff] }
 0x6c1   : > { %v4982_v50 = vsel %vm4944_vm7, %v4937_v3, %v4857_v28  ;;  %v1753_v49 = vsel %vm17004_vm5, %v1720_v60, %v17003_v35  ;;  %v1835_v19 = vsel %vm17006_vm15, %v1802_v31, %v17005_v40  ;;  %v17016_v3 = vld [vmem:[#allocation103_spill] sm:$0xff]  ;;  %vm17029_vm5 = vcmask 220160   ;;  %v17034_v8 = vld [vmem:[#allocation309_spill] sm:$0xff]  ;;  %v17037_v60 = vld [vmem:[#allocation326_spill] sm:$0xff] }
 0x6c2   : > { %v4841_v45 = vpop.permute.xlu0 %4840  ;;  %v1868_v27 = vsel %vm1840_vm3, %v1835_v19, %v17008_v32  ;;  %vm17031_vm15 = vmmov %vm17029_vm5  ;;  %v17036_v5 = vld [vmem:[#allocation329_spill] sm:$0xff]  ;;  %v17042_v19 = vld [vmem:[#allocation360_spill] sm:$0xff] }
 0x6c3   : > { %v4958_v11 = vsel %vm4944_vm7, %v4921_v12, %v4841_v45  ;;  %v1901_v22 = vsel %vm1873_vm4, %v1868_v27, %v17011_v33  ;;  %v17038_v31 = vld [vmem:[#allocation337_spill] sm:$0xff]  ;;  %v17044_v27 = vld [vmem:[#allocation376_spill] sm:$0xff]  ;;  %v17046_v33 = vld [vmem:[#allocation391_spill] sm:$0xff] }
 0x6c4   : > { %v4904_v0 = vpop.permute.xlu1 %4903  ;;  %v1934_v20 = vsel %vm1906_vm10, %v1901_v22, %v17013_v6  ;;  %v17047_v6 = vld [vmem:[#allocation384_spill] sm:$0xff] }
 0x6c5   : > { %v5019_v21 = vsel %vm4993_vm6, %v4857_v28, %v4904_v0  ;;  %v1786_v28 = vsel %vm1774_vm9, %v1753_v49, %v17007_v44  ;;  %v17040_v49 = vld [vmem:[#allocation117_spill] sm:$0xff] }
 0x6c6   : > { %v4888_v48 = vpop.permute.xlu0 %4887  ;;  %5484 = vmatprep.mubr.msk.bf16.mxu1 %vm5109_vm8, %v5019_v21  ;;  %v1819_v37 = vsel %vm17010_vm12, %v1786_v28, %v17009_v24  ;;  %v17017_v21 = vld [vmem:[#allocation227_spill] sm:$0xff]  ;;  %vm17033_vm12 = vcmask 244736   ;;  %v17043_v28 = vld [vmem:[#allocation352_spill] sm:$0xff]  ;;  %v17045_v24 = vld [vmem:[#allocation369_spill] sm:$0xff] }
 0x6c7   : > { %v5003_v59 = vsel %vm4993_vm6, %v4841_v45, %v4888_v48  ;;  %5278 = vmatmul.mubr.bf16.gmra.mrb[16].mxu1 %v4982_v50  ;;  %v1852_v45 = vsel %vm1840_vm3, %v1819_v37, %v17012_v2  ;;  %v1606_v51 = vsel %vm1576_vm13, %v17017_v21, %v17016_v3  ;;  %v1590_v48 = vsel %vm1576_vm13, %v17019_v13, %v17018_v58  ;;  %v17020_v50 = vld [vmem:[#allocation274_spill] sm:$0xff]  ;;  %v17050_v21 = vld [vmem:[#allocation121_spill] sm:$0xff]  ;;  %v17053_v13 = vld [vmem:[#allocation8_spill] sm:$0xff] }
 0x6c8   : > { %5476 = vmatprep.mubr.msk.bf16.mxu0 %vm5109_vm8, %v5003_v59  ;;  %v4747_v62 = vpop.permute.xlu1 %4746  ;;  %v1885_v61 = vsel %vm1873_vm4, %v1852_v45, %v17014_v53  ;;  %v1639_v52 = vsel %vm1609_vm14, %v1606_v51, %v17020_v50  ;;  %v17021_v59 = vld [vmem:[#allocation273_spill] sm:$0xff]  ;;  %v17054_v50 = vld [vmem:[#allocation291_spill] sm:$0xff] }
 0x6c9   : > { %5214 = vmatmul.mubr.bf16.gmra.mrb[16].mxu0 %v4958_v11  ;;  %v4939_v9 = vsel %vm4911_vm11, %v1934_v20, %v4747_v62  ;;  %v1918_v0 = vsel %vm1906_vm10, %v1885_v61, %v17015_v30  ;;  %v1623_v4 = vsel %vm1609_vm14, %v1590_v48, %v17021_v59  ;;  %v1672_v17 = vsel %vm17023_vm0, %v1639_v52, %v17022_v15  ;;  %v17026_v11 = vld [vmem:[#allocation284_spill] sm:$0xff]  ;;  %vm17035_vm0 = vmmov %vm17033_vm12  ;;  %v17058_v59 = vld [vmem:[#allocation325_spill] sm:$0xff] }
 0x6ca   : > { %v4731_v7 = vpop.permute.xlu0 %4730  ;;  %v1656_v55 = vsel %vm17025_vm1, %v1623_v4, %v17024_v57  ;;  %v1705_v62 = vsel %vm1675_vm2, %v1672_v17, %v17026_v11  ;;  %vm17039_vm1 = vcmask 293888   ;;  %v17059_v17 = vld [vmem:[#allocation14_spill] sm:$0xff] }
 0x6cb   : > { %v4923_v63 = vsel %vm4911_vm11, %v1918_v0, %v4731_v7  ;;  %v1689_v16 = vsel %vm1675_vm2, %v1656_v55, %v17027_v14  ;;  %v1738_v41 = vsel %vm17029_vm5, %v1705_v62, %v17028_v42  ;;  %vm17041_vm5 = vmmov %vm17039_vm1  ;;  %v5611_v0 = vmov 0.0   ;;  %v17061_v55 = vld [vmem:[#allocation351_spill] sm:$0xff] }
 0x6cc   : > { %v1722_v39 = vsel %vm17031_vm15, %v1689_v16, %v17030_v10  ;;  %v1771_v7 = vsel %vm17033_vm12, %v1738_v41, %v17032_v26  ;;  %vm14350_vm15 = vcmask 64512   ;;  %vm5313_vm12 = vcmask 58368   ;;  %v17062_v62 = vld [vmem:[#allocation367_spill] sm:$0xff]  ;;  %v17065_v26 = vld [vmem:[#allocation221_spill] sm:$0xff] }
 0x6cd   : > { %v1755_v54 = vsel %vm17035_vm0, %v1722_v39, %v17034_v8  ;;  %v1804_v25 = vsel %vm1774_vm9, %v1771_v7, %v17036_v5  ;;  %5315 = vst.msk [vmem:[%s13224_s7 + $0x18] sm:$0xff] %vm14350_vm15, %v5611_v0  ;;  %5316 = vst.msk [vmem:[%s13224_s7 + $0x20] sm:$0xff] %vm14350_vm15, %v5611_v0  ;;  %vm17052_vm0 = vcmask 171008   ;;  %v17063_v14 = vld [vmem:[#allocation383_spill] sm:$0xff]  ;;  %v17064_v39 = vld [vmem:[#allocation109_spill] sm:$0xff] }
 0x6ce   : > { %v4859_v34 = vpop.permute.xlu1 %4858  ;;  %v1788_v36 = vsel %vm1774_vm9, %v1755_v54, %v17037_v60  ;;  %5311 = vst.msk [vmem:[%s13224_s7] sm:$0xff] %vm14350_vm15, %v5611_v0  ;;  %5312 = vst.msk [vmem:[%s13224_s7 + $0x8] sm:$0xff] %vm14350_vm15, %v5611_v0  ;;  %v1608_v7 = vsel %vm1576_vm13, %v17065_v26, %v17064_v39  ;;  %v17066_v54 = vld [vmem:[#allocation142_spill] sm:$0xff] }
 0x6cf   : > { %v4843_v23 = vpop.permute.xlu0 %4842  ;;  %v4985_v56 = vsel %vm4944_vm7, %v4939_v9, %v4859_v34  ;;  %v1821_v40 = vsel %vm17041_vm5, %v1788_v36, %v17040_v49  ;;  %5318 = vst.msk [vmem:[%s13224_s7 + $0x30] sm:$0xff] %vm14350_vm15, %v5611_v0  ;;  %5319 = vst.msk [vmem:[%s13224_s7 + $0x38] sm:$0xff] %vm14350_vm15, %v5611_v0  ;;  %vm17057_vm5 = vcmask 244736   ;;  %v1641_v5 = vsel %vm1609_vm14, %v1608_v7, %v17066_v54  ;;  %v17069_v36 = vld [vmem:[#allocation283_spill] sm:$0xff]  ;;  %v17072_v49 = vld [vmem:[#allocation316_spill] sm:$0xff] }
 0x6d0   : > { %v4961_v1 = vsel %vm4944_vm7, %v4923_v63, %v4843_v23  ;;  %v1854_v32 = vsel %vm1840_vm3, %v1821_v40, %v17043_v28  ;;  %5321 = vst.msk [vmem:[%s13224_s7 + $0x48] sm:$0xff] %vm14350_vm15, %v5611_v0  ;;  %5322 = vst.msk [vmem:[%s13224_s7 + $0x50] sm:$0xff] %vm14350_vm15, %v5611_v0  ;;  %v17051_v63 = vld [vmem:[#allocation162_spill] sm:$0xff] }
 0x6d1   : > { %v1887_v37 = vsel %vm1873_vm4, %v1854_v32, %v17045_v24  ;;  %5324 = vst.msk [vmem:[%s13224_s7 + $0x60] sm:$0xff] %vm14350_vm15, %v5611_v0  ;;  %5325 = vst.msk [vmem:[%s13224_s7 + $0x68] sm:$0xff] %vm14350_vm15, %v5611_v0  ;;  %v17075_v32 = vld [vmem:[#allocation335_spill] sm:$0xff] }
 0x6d2   : > { %v4906_v29 = vpop.permute.xlu1 %4905  ;;  %v1920_v20 = vsel %vm1906_vm10, %v1887_v37, %v17047_v6  ;;  %5327 = vst.msk [vmem:[%s13224_s7 + $0x78] sm:$0xff] %vm14350_vm15, %v5611_v0  ;;  %5328 = vst.msk [vmem:[%s13224_s7 + $0x80] sm:$0xff] %vm14350_vm15, %v5611_v0  ;;  %v17078_v37 = vld [vmem:[#allocation375_spill] sm:$0xff] }
 0x6d3   : > { %v5021_v46 = vsel %vm4993_vm6, %v4859_v34, %v4906_v29  ;;  %v4890_v47 = vpop.permute.xlu0 %4889  ;;  %v1837_v34 = vsel %vm17039_vm1, %v1804_v25, %v17038_v31  ;;  %5330 = vst.msk [vmem:[%s13224_s7 + $0x90] sm:$0xff] %vm14350_vm15, %v5611_v0  ;;  %5331 = vst.msk [vmem:[%s13224_s7 + $0x98] sm:$0xff] %vm14350_vm15, %v5611_v0  ;;  %vm17055_vm1 = vcmask 220160   ;;  %v17067_v25 = vld [vmem:[#allocation181_spill] sm:$0xff] }
 0x6d4   : > { %5485 = vmatprep.mubr.msk.bf16.mxu1 %vm5109_vm8, %v5021_v46  ;;  %v5005_v43 = vsel %vm4993_vm6, %v4843_v23, %v4890_v47  ;;  %v1870_v44 = vsel %vm1840_vm3, %v1837_v34, %v17042_v19  ;;  %5333 = vst.msk [vmem:[%s13224_s7 + $0xa8] sm:$0xff] %vm14350_vm15, %v5611_v0  ;;  %5334 = vst.msk [vmem:[%s13224_s7 + $0xb0] sm:$0xff] %vm14350_vm15, %v5611_v0  ;;  %v17048_v47 = vld [vmem:[#allocation269_spill] sm:$0xff]  ;;  %v17070_v34 = vld [vmem:[#allocation299_spill] sm:$0xff] }
 0x6d5   : > { %5286 = vmatmul.mubr.bf16.gmra.mrb[20].mxu1 %v4985_v56  ;;  %5477 = vmatprep.mubr.msk.bf16.mxu0 %vm5109_vm8, %v5005_v43  ;;  %v1903_v23 = vsel %vm1873_vm4, %v1870_v44, %v17044_v27  ;;  %5336 = vst.msk [vmem:[%s13224_s7 + $0xc0] sm:$0xff] %vm14350_vm15, %v5611_v0  ;;  %5337 = vst.msk [vmem:[%s13224_s7 + $0xc8] sm:$0xff] %vm14350_vm15, %v5611_v0  ;;  %v17049_v56 = vld [vmem:[#allocation207_spill] sm:$0xff]  ;;  %v17074_v19 = vld [vmem:[#allocation66_spill] sm:$0xff] }
 0x6d6   : > { %v4749_v12 = vpop.permute.xlu1 %4748  ;;  %5222 = vmatmul.mubr.bf16.gmra.mrb[20].mxu0 %v4961_v1  ;;  %v1936_v22 = vsel %vm1906_vm10, %v1903_v23, %v17046_v33  ;;  %5339 = vst.msk [vmem:[%s13224_s7 + $0xd8] sm:$0xff] %vm14350_vm15, %v5611_v0  ;;  %5340 = vst.msk [vmem:[%s13224_s7 + $0xe0] sm:$0xff] %vm14350_vm15, %v5611_v0  ;;  %v1592_v3 = vsel %vm1576_vm13, %v17049_v56, %v17048_v47  ;;  %v17056_v1 = vld [vmem:[#allocation308_spill] sm:$0xff]  ;;  %v17077_v23 = vld [vmem:[#allocation359_spill] sm:$0xff] }
 0x6d7   : > { %v4941_v45 = vsel %vm4911_vm11, %v1936_v22, %v4749_v12  ;;  %5342 = vst.msk [vmem:[%s13224_s7 + $0xf0] sm:$0xff] %vm14350_vm15, %v5611_v0  ;;  %5343 = vst.msk [vmem:[%s13224_s7 + $0xf8] sm:$0xff] %vm14350_vm15, %v5611_v0  ;;  %v1625_v51 = vsel %vm1609_vm14, %v1592_v3, %v17050_v21  ;;  %vm17076_vm14 = vcmask 293888   ;;  %v17079_v22 = vld [vmem:[#allocation165_spill] sm:$0xff] }
 0x6d8   : > { %v4733_v38 = vpop.permute.xlu0 %4732  ;;  %5345 = vst.msk [vmem:[%s13224_s7 + $0x108] sm:$0xff] %vm14350_vm15, %v5611_v0  ;;  %5346 = vst.msk [vmem:[%s13224_s7 + $0x110] sm:$0xff] %vm14350_vm15, %v5611_v0  ;;  %v1658_v43 = vsel %vm17052_vm0, %v1625_v51, %v17051_v63 }
 0x6d9   : > { %v4925_v61 = vsel %vm4911_vm11, %v1920_v20, %v4733_v38  ;;  %5348 = vst.msk [vmem:[%s13224_s7 + $0x120] sm:$0xff] %vm14350_vm15, %v5611_v0  ;;  %5349 = vst.msk [vmem:[%s13224_s7 + $0x128] sm:$0xff] %vm14350_vm15, %v5611_v0  ;;  %v1691_v48 = vsel %vm1675_vm2, %v1658_v43, %v17053_v13 }
 0x6da   : > { %5351 = vst.msk [vmem:[%s13224_s7 + $0x138] sm:$0xff] %vm14350_vm15, %v5611_v0  ;;  %5352 = vst.msk [vmem:[%s13224_s7 + $0x140] sm:$0xff] %vm14350_vm15, %v5611_v0  ;;  %v1724_v52 = vsel %vm17055_vm1, %v1691_v48, %v17054_v50 }
 0x6db   : > { %5354 = vst.msk [vmem:[%s13224_s7 + $0x150] sm:$0xff] %vm14350_vm15, %v5611_v0  ;;  %5355 = vst.msk [vmem:[%s13224_s7 + $0x158] sm:$0xff] %vm14350_vm15, %v5611_v0  ;;  %v1757_v12 = vsel %vm17057_vm5, %v1724_v52, %v17056_v1 }
 0x6dc   : > { %v4861_v18 = vpop.permute.xlu1 %4860  ;;  %5357 = vst.msk [vmem:[%s13224_s7 + $0x168] sm:$0xff] %vm14350_vm15, %v5611_v0  ;;  %5358 = vst.msk [vmem:[%s13224_s7 + $0x170] sm:$0xff] %vm14350_vm15, %v5611_v0  ;;  %v1790_v4 = vsel %vm1774_vm9, %v1757_v12, %v17058_v59 }
 0x6dd   : > { %v4845_v35 = vpop.permute.xlu0 %4844  ;;  %v4988_v46 = vsel %vm4944_vm7, %v4941_v45, %v4861_v18  ;;  %5360 = vst.msk [vmem:[%s13224_s7 + $0x180] sm:$0xff] %vm14350_vm15, %v5611_v0  ;;  %5361 = vst.msk [vmem:[%s13224_s7 + $0x188] sm:$0xff] %vm14350_vm15, %v5611_v0 }
 0x6de   : > { %v4964_v30 = vsel %vm4944_vm7, %v4925_v61, %v4845_v35  ;;  %5363 = vst.msk [vmem:[%s13224_s7 + $0x198] sm:$0xff] %vm14350_vm15, %v5611_v0  ;;  %5364 = vst.msk [vmem:[%s13224_s7 + $0x1a0] sm:$0xff] %vm14350_vm15, %v5611_v0  ;;  %vm17060_vm15 = vcmask 293888  }
 0x6df   : > { %5314 = vst.msk [vmem:[%s13224_s7 + $0x10] sm:$0x3] %vm5313_vm12, %v5611_v0  ;;  %5317 = vst.msk [vmem:[%s13224_s7 + $0x28] sm:$0x3] %vm5313_vm12, %v5611_v0  ;;  %v1823_v57 = vsel %vm17060_vm15, %v1790_v4, %v17059_v17 }
 0x6e0   : > { %v4908_v2 = vpop.permute.xlu1 %4907  ;;  %5365 = vst.msk [vmem:[%s13224_s7 + $0x1a8] sm:$0x3] %vm5313_vm12, %v5611_v0  ;;  %5320 = vst.msk [vmem:[%s13224_s7 + $0x40] sm:$0x3] %vm5313_vm12, %v5611_v0  ;;  %v1856_v11 = vsel %vm1840_vm3, %v1823_v57, %v17061_v55 }
 0x6e1   : > { %v5023_v29 = vsel %vm4993_vm6, %v4861_v18, %v4908_v2  ;;  %v4892_v53 = vpop.permute.xlu0 %4891  ;;  %5323 = vst.msk [vmem:[%s13224_s7 + $0x58] sm:$0x3] %vm5313_vm12, %v5611_v0  ;;  %5326 = vst.msk [vmem:[%s13224_s7 + $0x70] sm:$0x3] %vm5313_vm12, %v5611_v0  ;;  %v1889_v38 = vsel %vm1873_vm4, %v1856_v11, %v17062_v62 }
 0x6e2   : > { %v5007_v9 = vsel %vm4993_vm6, %v4845_v35, %v4892_v53  ;;  %5486 = vmatprep.mubr.msk.bf16.mxu1 %vm5109_vm8, %v5023_v29  ;;  %5329 = vst.msk [vmem:[%s13224_s7 + $0x88] sm:$0x3] %vm5313_vm12, %v5611_v0  ;;  %5332 = vst.msk [vmem:[%s13224_s7 + $0xa0] sm:$0x3] %vm5313_vm12, %v5611_v0  ;;  %v1922_v16 = vsel %vm1906_vm10, %v1889_v38, %v17063_v14  ;;  %v13391_v53 = vld [vmem:[%s13494_s2] ss:$0 sm:$0xff] }
 0x6e3   : > { %5478 = vmatprep.mubr.msk.bf16.mxu0 %vm5109_vm8, %v5007_v9  ;;  %5294 = vmatmul.mubr.bf16.gmra.mrb[24].mxu1 %v4988_v46  ;;  %5335 = vst.msk [vmem:[%s13224_s7 + $0xb8] sm:$0x3] %vm5313_vm12, %v5611_v0  ;;  %5338 = vst.msk [vmem:[%s13224_s7 + $0xd0] sm:$0x3] %vm5313_vm12, %v5611_v0 }
 0x6e4   : > { %5230 = vmatmul.mubr.bf16.gmra.mrb[24].mxu0 %v4964_v30  ;;  %5341 = vst.msk [vmem:[%s13224_s7 + $0xe8] sm:$0x3] %vm5313_vm12, %v5611_v0  ;;  %5344 = vst.msk [vmem:[%s13224_s7 + $0x100] sm:$0x3] %vm5313_vm12, %v5611_v0  ;;  %v4751_v60 = vpop.permute.xlu1 %4750 }
 0x6e5   : > { %5347 = vst.msk [vmem:[%s13224_s7 + $0x118] sm:$0x3] %vm5313_vm12, %v5611_v0  ;;  %5350 = vst.msk [vmem:[%s13224_s7 + $0x130] sm:$0x3] %vm5313_vm12, %v5611_v0  ;;  %v4735_v58 = vpop.permute.xlu0 %4734 }
 0x6e6   : > { %5353 = vst.msk [vmem:[%s13224_s7 + $0x148] sm:$0x3] %vm5313_vm12, %v5611_v0  ;;  %5356 = vst.msk [vmem:[%s13224_s7 + $0x160] sm:$0x3] %vm5313_vm12, %v5611_v0  ;;  %v4927_v41 = vsel %vm4911_vm11, %v1922_v16, %v4735_v58 }
 0x6e7   : > { %5359 = vst.msk [vmem:[%s13224_s7 + $0x178] sm:$0x3] %vm5313_vm12, %v5611_v0  ;;  %5362 = vst.msk [vmem:[%s13224_s7 + $0x190] sm:$0x3] %vm5313_vm12, %v5611_v0 }
 0x6e8   : > { %vm17068_vm15 = vmmov %vm17052_vm0 }
 0x6e9   : > { %v1674_v18 = vsel %vm17068_vm15, %v1641_v5, %v17067_v25  ;;  %vm17071_vm12 = vmmov %vm17055_vm1 }
 0x6ea   : > { %v1707_v31 = vsel %vm1675_vm2, %v1674_v18, %v17069_v36  ;;  %vm17073_vm13 = vmmov %vm17057_vm5 }
 0x6eb   : > { %v1740_v35 = vsel %vm17071_vm12, %v1707_v31, %v17070_v34 }
 0x6ec   : > { %v1773_v40 = vsel %vm17073_vm13, %v1740_v35, %v17072_v49 }
 0x6ed   : > { %v1806_v44 = vsel %vm1774_vm9, %v1773_v40, %v17074_v19 }
 0x6ee   : > { %v1839_v27 = vsel %vm17076_vm14, %v1806_v44, %v17075_v32 }
 0x6ef   : > { %v1872_v24 = vsel %vm1840_vm3, %v1839_v27, %v17077_v23  ;;  %vm17080_vm3 = vcmask 64512  }
 0x6f0   : > { %v1905_v33 = vsel %vm1873_vm4, %v1872_v24, %v17078_v37  ;;  %vm17081_vm9 = vmmov %vm17080_vm3 }
 0x6f1   : > { %v1938_v2 = vsel %vm1906_vm10, %v1905_v33, %v17079_v22  ;;  %vm17082_vm10 = vmmov %vm17080_vm3 }
 0x6f2   : > { %v4943_v6 = vsel %vm4911_vm11, %v1938_v2, %v4751_v60  ;;  %vm17083_vm2 = vmmov %vm17080_vm3 }
 0x6f3   : > { %vm17084_vm4 = vmmov %vm17083_vm2 }
 0x6f4   : > { %vm17085_vm11 = vmmov %vm17083_vm2 }
 0x6f5   : > { %v4847_v15 = vpop.permute.xlu0 %4846  ;;  %vm17089_vm0 = vmmov %vm17083_vm2 }
 0x6f6   : > { %v4967_v8 = vsel %vm4944_vm7, %v4927_v41, %v4847_v15  ;;  %vm17090_vm1 = vmmov %vm17089_vm0 }
 0x6f7   : > { %vm17091_vm5 = vmmov %vm17089_vm0 }
 0x6f8   : > { %vm17092_vm15 = vmmov %vm17089_vm0 }
 0x6f9   : > { %v4894_v42 = vpop.permute.xlu0 %4893  ;;  %vm17093_vm12 = vmmov %vm17089_vm0 }
 0x6fa   : > { %v5009_v10 = vsel %vm4993_vm6, %v4847_v15, %v4894_v42  ;;  %vm17094_vm13 = vmmov %vm17089_vm0 }
 0x6fb   : > { %5479 = vmatprep.mubr.msk.bf16.mxu0 %vm5109_vm8, %v5009_v10  ;;  %vm17095_vm14 = vmmov %vm17089_vm0 }
 0x6fc   : > { %5238 = vmatmul.mubr.bf16.gmra.mrb[28].mxu0 %v4967_v8 }
 0x701   : > { %v4863_v28 = vpop.permute.xlu1 %4862 }
 0x702   : > { %v4991_v29 = vsel %vm4944_vm7, %v4943_v6, %v4863_v28  ;;  %vm17088_vm7 = vmmov %vm17083_vm2 }
 0x705   : > { %v4910_v45 = vpop.permute.xlu1 %4909 }
 0x706   : > { %v5025_v20 = vsel %vm4993_vm6, %v4863_v28, %v4910_v45  ;;  %vm17086_vm6 = vmmov %vm17083_vm2 }
 0x707   : > { %5487 = vmatprep.mubr.msk.bf16.mxu1 %vm5109_vm8, %v5025_v20  ;;  %vm17087_vm8 = vmmov %vm17083_vm2 }
 0x708   : > { %5302 = vmatmul.mubr.bf16.gmra.mrb[28].mxu1 %v4991_v29 }
 0x76a   : > { %v5247_v61 = vpop.f32.mrb[0].mxu1 }
 0x76b   : > { %v5248_v9 = vadd.f32 %v13391_v53, %v5247_v61  ;;  %v5249_v46 = vpop.f32.mrb[1].mxu1 }
 0x76c   : > { %v5183_v30 = vpop.f32.mrb[0].mxu0  ;;  %v5250_v0 = vpop.f32.mrb[2].mxu1 }
 0x76d   : > { %v5184_v47 = vadd.f32 %v13391_v53, %v5183_v30  ;;  %5504 = vst.msk [vmem:[%s13224_s7 + $0xd9] sm:$0xff] %vm17080_vm3, %v5248_v9  ;;  %v5185_v56 = vpop.f32.mrb[1].mxu0  ;;  %v5251_v3 = vadd.f32 %v13391_v53, %v5250_v0  ;;  %v5252_v21 = vpop.f32.mrb[3].mxu1  ;;  %vm17096_vm3 = vmmov %vm17089_vm0 }
 0x76e   : > { %v5186_v51 = vpop.f32.mrb[2].mxu0 }
 0x76f   : > { %5488 = vst.msk [vmem:[%s13224_s7 + $0x19] sm:$0xff] %vm17081_vm9, %v5184_v47  ;;  %v5187_v63 = vadd.f32 %v13391_v53, %v5186_v51  ;;  %v5188_v43 = vpop.f32.mrb[3].mxu0  ;;  %vm17097_vm9 = vmmov %vm17089_vm0 }
 0x770   : > { %5505 = vst.msk [vmem:[%s13224_s7 + $0xe1] sm:$0xff] %vm17082_vm10, %v5251_v3  ;;  %vm17098_vm10 = vmmov %vm17089_vm0 }
 0x771   : > { %5489 = vst.msk [vmem:[%s13224_s7 + $0x21] sm:$0xff] %vm17083_vm2, %v5187_v63  ;;  %vm17099_vm2 = vmmov %vm17089_vm0 }
 0x776   : > { %v5255_v58 = vpop.f32.mrb[4].mxu1 }
 0x777   : > { %v5256_v13 = vadd.f32 %v13391_v53, %v5255_v58  ;;  %v5257_v48 = vpop.f32.mrb[5].mxu1 }
 0x778   : > { %v5191_v50 = vpop.f32.mrb[4].mxu0  ;;  %v5258_v52 = vpop.f32.mrb[6].mxu1 }
 0x779   : > { %v5192_v1 = vadd.f32 %v13391_v53, %v5191_v50  ;;  %5506 = vst.msk [vmem:[%s13224_s7 + $0xf1] sm:$0xff] %vm17084_vm4, %v5256_v13  ;;  %v5193_v12 = vpop.f32.mrb[5].mxu0  ;;  %v5259_v59 = vadd.f32 %v13391_v53, %v5258_v52  ;;  %v5260_v4 = vpop.f32.mrb[7].mxu1  ;;  %vm17100_vm4 = vmmov %vm17089_vm0 }
 0x77a   : > { %v5194_v15 = vpop.f32.mrb[6].mxu0 }
 0x77b   : > { %5490 = vst.msk [vmem:[%s13224_s7 + $0x31] sm:$0xff] %vm17085_vm11, %v5192_v1  ;;  %v5195_v17 = vadd.f32 %v13391_v53, %v5194_v15  ;;  %v5196_v57 = vpop.f32.mrb[7].mxu0  ;;  %vm17101_vm11 = vmmov %vm17089_vm0 }
 0x77c   : > { %5507 = vst.msk [vmem:[%s13224_s7 + $0xf9] sm:$0xff] %vm17086_vm6, %v5259_v59  ;;  %vm17102_vm6 = vmmov %vm17089_vm0 }
 0x77d   : > { %5491 = vst.msk [vmem:[%s13224_s7 + $0x39] sm:$0xff] %vm17087_vm8, %v5195_v17  ;;  %vm17103_vm8 = vmmov %vm17089_vm0 }
 0x782   : > { %v5263_v55 = vpop.f32.mrb[8].mxu1 }
 0x783   : > { %v5264_v11 = vadd.f32 %v13391_v53, %v5263_v55  ;;  %v5265_v62 = vpop.f32.mrb[9].mxu1 }
 0x784   : > { %v5199_v38 = vpop.f32.mrb[8].mxu0  ;;  %v5266_v14 = vpop.f32.mrb[10].mxu1 }
 0x785   : > { %v5200_v16 = vadd.f32 %v13391_v53, %v5199_v38  ;;  %5508 = vst.msk [vmem:[%s13224_s7 + $0x109] sm:$0xff] %vm17088_vm7, %v5264_v11  ;;  %v5201_v42 = vpop.f32.mrb[9].mxu0  ;;  %v5267_v41 = vadd.f32 %v13391_v53, %v5266_v14  ;;  %v5268_v10 = vpop.f32.mrb[11].mxu1  ;;  %vm17104_vm7 = vmmov %vm17089_vm0 }
 0x786   : > { %v5202_v39 = vpop.f32.mrb[10].mxu0 }
 0x787   : > { %5492 = vst.msk [vmem:[%s13224_s7 + $0x49] sm:$0xff] %vm17089_vm0, %v5200_v16  ;;  %v5203_v26 = vadd.f32 %v13391_v53, %v5202_v39  ;;  %v5204_v7 = vpop.f32.mrb[11].mxu0 }
 0x788   : > { %5509 = vst.msk [vmem:[%s13224_s7 + $0x111] sm:$0xff] %vm17090_vm1, %v5267_v41  ;;  %vm17105_vm1 = vmmov %vm17089_vm0 }
 0x789   : > { %5493 = vst.msk [vmem:[%s13224_s7 + $0x51] sm:$0xff] %vm17091_vm5, %v5203_v26  ;;  %vm17106_vm5 = vmmov %vm17089_vm0 }
 0x78e   : > { %v5271_v8 = vpop.f32.mrb[12].mxu1 }
 0x78f   : > { %v5272_v54 = vadd.f32 %v13391_v53, %v5271_v8  ;;  %v5273_v5 = vpop.f32.mrb[13].mxu1 }
 0x790   : > { %v5207_v25 = vpop.f32.mrb[12].mxu0  ;;  %v5274_v18 = vpop.f32.mrb[14].mxu1 }
 0x791   : > { %v5208_v60 = vadd.f32 %v13391_v53, %v5207_v25  ;;  %5510 = vst.msk [vmem:[%s13224_s7 + $0x121] sm:$0xff] %vm17092_vm15, %v5272_v54  ;;  %v5209_v36 = vpop.f32.mrb[13].mxu0  ;;  %v5275_v31 = vadd.f32 %v13391_v53, %v5274_v18  ;;  %v5276_v34 = vpop.f32.mrb[15].mxu1  ;;  %vm17107_vm15 = vmmov %vm17089_vm0 }
 0x792   : > { %v5210_v35 = vpop.f32.mrb[14].mxu0 }
 0x793   : > { %5494 = vst.msk [vmem:[%s13224_s7 + $0x61] sm:$0xff] %vm17093_vm12, %v5208_v60  ;;  %v5211_v49 = vadd.f32 %v13391_v53, %v5210_v35  ;;  %v5212_v40 = vpop.f32.mrb[15].mxu0  ;;  %vm17108_vm12 = vmmov %vm17089_vm0 }
 0x794   : > { %5511 = vst.msk [vmem:[%s13224_s7 + $0x129] sm:$0xff] %vm17094_vm13, %v5275_v31  ;;  %vm17109_vm13 = vmmov %vm17089_vm0 }
 0x795   : > { %5495 = vst.msk [vmem:[%s13224_s7 + $0x69] sm:$0xff] %vm17095_vm14, %v5211_v49  ;;  %vm17110_vm14 = vmmov %vm17089_vm0 }
 0x79a   : > { %v5279_v19 = vpop.f32.mrb[16].mxu1 }
 0x79b   : > { %v5280_v44 = vadd.f32 %v13391_v53, %v5279_v19  ;;  %v5281_v28 = vpop.f32.mrb[17].mxu1 }
 0x79c   : > { %v5215_v32 = vpop.f32.mrb[16].mxu0  ;;  %v5282_v27 = vpop.f32.mrb[18].mxu1 }
 0x79d   : > { %v5216_v23 = vadd.f32 %v13391_v53, %v5215_v32  ;;  %5512 = vst.msk [vmem:[%s13224_s7 + $0x139] sm:$0xff] %vm17096_vm3, %v5280_v44  ;;  %v5217_v24 = vpop.f32.mrb[17].mxu0  ;;  %v5283_v37 = vadd.f32 %v13391_v53, %v5282_v27  ;;  %v5284_v33 = vpop.f32.mrb[19].mxu1 }
 0x79e   : > { %v5218_v22 = vpop.f32.mrb[18].mxu0 }
 0x79f   : > { %5496 = vst.msk [vmem:[%s13224_s7 + $0x79] sm:$0xff] %vm17097_vm9, %v5216_v23  ;;  %v5219_v2 = vadd.f32 %v13391_v53, %v5218_v22  ;;  %v5220_v45 = vpop.f32.mrb[19].mxu0 }
 0x7a0   : > { %5513 = vst.msk [vmem:[%s13224_s7 + $0x141] sm:$0xff] %vm17098_vm10, %v5283_v37 }
 0x7a1   : > { %5497 = vst.msk [vmem:[%s13224_s7 + $0x81] sm:$0xff] %vm17099_vm2, %v5219_v2 }
 0x7a8   : > { %v5287_v6 = vpop.f32.mrb[20].mxu1 }
 0x7a9   : > { %v5288_v20 = vadd.f32 %v13391_v53, %v5287_v6  ;;  %v5289_v29 = vpop.f32.mrb[21].mxu1  ;;  %v5223_v61 = vpop.f32.mrb[20].mxu0 }
 0x7aa   : > { %v5290_v9 = vpop.f32.mrb[22].mxu1  ;;  %v5224_v46 = vadd.f32 %v13391_v53, %v5223_v61  ;;  %v5225_v30 = vpop.f32.mrb[21].mxu0 }
 0x7ab   : > { %5514 = vst.msk [vmem:[%s13224_s7 + $0x151] sm:$0xff] %vm17100_vm4, %v5288_v20  ;;  %v5291_v0 = vadd.f32 %v13391_v53, %v5290_v9  ;;  %v5292_v47 = vpop.f32.mrb[23].mxu1  ;;  %v5226_v56 = vpop.f32.mrb[22].mxu0 }
 0x7ac   : > { %5498 = vst.msk [vmem:[%s13224_s7 + $0x91] sm:$0xff] %vm17101_vm11, %v5224_v46  ;;  %v5227_v3 = vadd.f32 %v13391_v53, %v5226_v56  ;;  %v5228_v21 = vpop.f32.mrb[23].mxu0 }
 0x7ad   : > { %5515 = vst.msk [vmem:[%s13224_s7 + $0x159] sm:$0xff] %vm17102_vm6, %v5291_v0 }
 0x7ae   : > { %5499 = vst.msk [vmem:[%s13224_s7 + $0x99] sm:$0xff] %vm17103_vm8, %v5227_v3 }
 0x7b6   : > { %v5295_v51 = vpop.f32.mrb[24].mxu1 }
 0x7b7   : > { %v5231_v63 = vpop.f32.mrb[24].mxu0  ;;  %v5296_v43 = vadd.f32 %v13391_v53, %v5295_v51  ;;  %v5297_v58 = vpop.f32.mrb[25].mxu1 }
 0x7b8   : > { %v5232_v13 = vadd.f32 %v13391_v53, %v5231_v63  ;;  %v5233_v48 = vpop.f32.mrb[25].mxu0  ;;  %v5298_v50 = vpop.f32.mrb[26].mxu1 }
 0x7b9   : > { %5516 = vst.msk [vmem:[%s13224_s7 + $0x169] sm:$0xff] %vm17104_vm7, %v5296_v43  ;;  %v5234_v52 = vpop.f32.mrb[26].mxu0  ;;  %v5299_v1 = vadd.f32 %v13391_v53, %v5298_v50  ;;  %v5300_v12 = vpop.f32.mrb[27].mxu1 }
 0x7ba   : > { %5500 = vst.msk [vmem:[%s13224_s7 + $0xa9] sm:$0xff] %vm17089_vm0, %v5232_v13  ;;  %v5235_v59 = vadd.f32 %v13391_v53, %v5234_v52  ;;  %v5236_v4 = vpop.f32.mrb[27].mxu0 }
 0x7bb   : > { %5517 = vst.msk [vmem:[%s13224_s7 + $0x171] sm:$0xff] %vm17105_vm1, %v5299_v1 }
 0x7bc   : > { %5501 = vst.msk [vmem:[%s13224_s7 + $0xb1] sm:$0xff] %vm17106_vm5, %v5235_v59 }
 0x7cf   : > { %v5239_v15 = vpop.f32.mrb[28].mxu0 }
 0x7d0   : > { %v5240_v17 = vadd.f32 %v13391_v53, %v5239_v15  ;;  %v5241_v57 = vpop.f32.mrb[29].mxu0 }
 0x7d1   : > { %v5242_v55 = vpop.f32.mrb[30].mxu0 }
 0x7d2   : > { %5502 = vst.msk [vmem:[%s13224_s7 + $0xc1] sm:$0xff] %vm17107_vm15, %v5240_v17  ;;  %v5243_v11 = vadd.f32 %v13391_v53, %v5242_v55  ;;  %v5244_v62 = vpop.f32.mrb[31].mxu0 }
 0x7d4   : > { %5503 = vst.msk [vmem:[%s13224_s7 + $0xc9] sm:$0xff] %vm17108_vm12, %v5243_v11 }
 0x7db   : > { %v5303_v38 = vpop.f32.mrb[28].mxu1 }
 0x7dc   : > { %v5304_v14 = vadd.f32 %v13391_v53, %v5303_v38  ;;  %v5305_v16 = vpop.f32.mrb[29].mxu1 }
 0x7dd   : > { %v5306_v42 = vpop.f32.mrb[30].mxu1 }
 0x7de   : > { %5518 = vst.msk [vmem:[%s13224_s7 + $0x181] sm:$0xff] %vm17109_vm13, %v5304_v14  ;;  %v5307_v41 = vadd.f32 %v13391_v53, %v5306_v42  ;;  %v5308_v10 = vpop.f32.mrb[31].mxu1 }
 0x7e0   : > { %5519 = vst.msk [vmem:[%s13224_s7 + $0x189] sm:$0xff] %vm17110_vm14, %v5307_v41 }
 0x7e1 PF: > { %s13_s12 = sadd.s32 1, %s5589_s12  }
 0x7e2   : > { %p10_p4 = scmp.ge.s32.totalorder %s13_s12, 4  }
 0x7e4   :  { %12 = sbr.rel (!%p10_p4) target bundleno = 1 (0x1), region = 63 }

</bundles_post_ra>
